<compile_context>
chip_gen: v6e
topology: v6e:2x2x1
jax: 0.10.0
libtpu: 0.0.40
codegen_flags: <defaults>
</compile_context>

<pallas_src>
import numpy as np
import jax
import jax.numpy as jnp
from jax.experimental import pallas as pl
from jax.experimental.pallas import tpu as pltpu


# ---------------------------------------------------------------------------
# Host-side (static) nearest-neighbor index / selection-matrix helpers.
# ---------------------------------------------------------------------------

def _nearest_indices(in_size: int, out_size: int) -> np.ndarray:
    # PyTorch 'nearest' (non-exact): src = floor(dst * (in/out)) with float32
    # scale, clamped.
    scale = np.float32(in_size) / np.float32(out_size)
    idx = np.floor(np.arange(out_size, dtype=np.float32) * scale).astype(np.int64)
    return np.clip(idx, 0, in_size - 1)


def _flat_nearest_indices(h_in, w_in, h_out, w_out) -> np.ndarray:
    ri = _nearest_indices(h_in, h_out)
    ci = _nearest_indices(w_in, w_out)
    return (ri[:, None] * w_in + ci[None, :]).reshape(-1).astype(np.int32)


def _selection_matrix(in_size: int, out_size: int, dtype) -> np.ndarray:
    # S[out, in] = 1 where in == nearest_src(out)
    idx = _nearest_indices(in_size, out_size)
    S = np.zeros((out_size, in_size), dtype=dtype)
    S[np.arange(out_size), idx] = 1
    return S


def _flat_selection_matrix_T(h_in, w_in, h_out, w_out, dtype) -> np.ndarray:
    src = _flat_nearest_indices(h_in, w_in, h_out, w_out)
    S_T = np.zeros((h_in * w_in, h_out * w_out), dtype=dtype)
    S_T[src, np.arange(h_out * w_out)] = 1
    return S_T


def _numpy_ref(x_np, h_out, w_out):
    h_in, w_in = x_np.shape[-2:]
    ri = _nearest_indices(h_in, h_out)
    ci = _nearest_indices(w_in, w_out)
    return x_np[:, :, ri[:, None], ci[None, :]]


# ---------------------------------------------------------------------------
# Sizing helpers (generation-aware VMEM budget, channel blocking).
# ---------------------------------------------------------------------------

_FLAT_GATHER_HWIN_LIMIT = 1024   # flat lane-gather path (no MXU work)


def _flat_matmul_hwin_limit(itemsize: int) -> int:
    # Roofline rule for the selection-matmul fallback: keep MXU time below DMA
    # time across v5e/v6e/v7x for f32 (conservative minimum); 2-byte dtypes
    # roughly double the limit.
    return 256 if itemsize >= 4 else 512


def _vmem_limit_bytes() -> int:
    try:
        cap = int(pltpu.get_tpu_info().vmem_capacity_bytes)
    except Exception:
        return 32 * 1024 * 1024          # unknown part: conservative default
    # ~3/4 of physical VMEM, capped at 64 MiB: 48 MiB on v7x (64 MiB parts),
    # 64 MiB on v5e/v6e (128 MiB parts), leaving pipeline/compiler headroom.
    return int(min(64 * 1024 * 1024, max(32 * 1024 * 1024, (cap * 3) // 4)))


def _sublane_multiple(itemsize: int) -> int:
    return 8 * max(1, 4 // int(itemsize))


def _choose_c_block(C, per_channel_bytes, fixed_bytes, budget_bytes, itemsize):
    """Largest channel block (multiple of the sublane pack) within the budget."""
    sub = _sublane_multiple(itemsize)
    if C <= sub:
        return C
    avail = max(budget_bytes - fixed_bytes, per_channel_bytes)
    blk = int(avail // max(per_channel_bytes, 1))
    blk = max(sub, (blk // sub) * sub)
    return min(blk, C)


def _ensure_two_steps(N, C, c_blk, itemsize):
    # v7x shards the "parallel" grid axes over 2 TensorCores; keep >= 2 steps
    # whenever the channel dim can be split on sublane granularity.
    if N * pl.cdiv(C, c_blk) >= 2:
        return c_blk
    sub = _sublane_multiple(itemsize)
    if C >= 2 * sub:
        half = -(-((C + 1) // 2) // sub) * sub    # round_up(ceil(C/2), sub)
        return min(c_blk, half)
    return c_blk


def _compiler_params(vmem_limit):
    return pltpu.CompilerParams(
        dimension_semantics=("parallel", "parallel"),
        vmem_limit_bytes=int(vmem_limit),
    )


# ---------------------------------------------------------------------------
# Kernels.
# ---------------------------------------------------------------------------

def _flat_gather_kernel(idx_ref, x_ref, o_ref):
    # idx_ref: (1, HW_out) int32 flattened nearest-source indices (resident)
    # x_ref:   (C_BLK, HW_in)   multi-channel slab (N dim squeezed)
    # o_ref:   (C_BLK, HW_out)  lane-dense output slab
    x = x_ref[...]
    idx = jnp.broadcast_to(idx_ref[...], (x.shape[0], idx_ref.shape[1]))
    # Pure data movement: exact copy, no MXU, no precision concerns.
    o_ref[...] = jnp.take_along_axis(x, idx, axis=1, mode="clip")


def _flat_matmul_kernel(s_ref, x_ref, o_ref):
    # Fallback when the Mosaic gather lowering is unavailable.
    # s_ref: (HW_in, HW_out) 0/1 selection matrix (transposed, resident)
    # precision=HIGHEST keeps f32 activations exact through the MXU.
    out = jnp.dot(x_ref[...], s_ref[...],
                  preferred_element_type=jnp.float32,
                  precision=jax.lax.Precision.HIGHEST)
    o_ref[...] = out.astype(o_ref.dtype)


def _make_sep_kernel(h_first: bool):
    def kernel(sh_ref, swt_ref, x_ref, o_ref):
        # sh_ref : (H_out, H_in)     row-selection matrix
        # swt_ref: (W_in, W_out)     transposed column-selection matrix
        # x_ref  : (C_BLK, H_in, W_in)
        # o_ref  : (C_BLK, H_out, W_out)
        x = x_ref[...]
        dtype = x.dtype
        h_out = sh_ref.shape[0]
        w_out = swt_ref.shape[1]

        def apply_w(t):
            # (B, h, W_in) -> (B, h, W_out); flattened to one big-M matmul.
            # NOTE: collapsing (B, h) is layout-free when h % 8 == 0 (typical
            # for the large maps that reach this path).
            b, h, w = t.shape
            r = jnp.dot(t.reshape(b * h, w), swt_ref[...],
                        preferred_element_type=jnp.float32,
                        precision=jax.lax.Precision.HIGHEST)
            return r.reshape(b, h, w_out).astype(dtype)

        def apply_h(t):
            # (B, h, w) -> (B, H_out, w) as a batched 0/1 selection matmul.
            # TODO(synk): replace with a sublane gather once universally
            # supported; the c_blk budget below already accounts for this temp.
            b, h, w = t.shape
            sh_b = jnp.broadcast_to(sh_ref[...], (b, h_out, h))
            r = jax.lax.dot_general(
                sh_b, t,
                dimension_numbers=(((2,), (1,)), ((0,), (0,))),
                preferred_element_type=jnp.float32,
                precision=jax.lax.Precision.HIGHEST)
            return r.astype(dtype)

        out = apply_w(apply_h(x)) if h_first else apply_h(apply_w(x))
        o_ref[...] = out

    return kernel


# ---------------------------------------------------------------------------
# pallas_call wrappers.
# ---------------------------------------------------------------------------

def _upsample_flat(x, h_out, w_out, *, use_gather):
    N, C, h_in, w_in = x.shape
    np_dtype = np.dtype(x.dtype)
    item = np_dtype.itemsize
    hw_in, hw_out = h_in * w_in, h_out * w_out

    x_flat = x.reshape(N, C, hw_in)                 # free (collapses minor dims)
    limit = _vmem_limit_bytes()
    budget = (limit * 6) // 10

    if use_gather:
        idx_arr = jnp.asarray(
            _flat_nearest_indices(h_in, w_in, h_out, w_out).reshape(1, hw_out))
        per_chan = 2 * hw_in * item + 2 * hw_out * item + hw_out * 4
        fixed = 2 * hw_out * 4
        kernel = _flat_gather_kernel
        aux = idx_arr
        aux_spec = pl.BlockSpec((1, hw_out), lambda n, c: (0, 0))
    else:
        S_T = jnp.asarray(
            _flat_selection_matrix_T(h_in, w_in, h_out, w_out, np_dtype))
        per_chan = 2 * hw_in * item + 2 * hw_out * item + hw_out * 4
        fixed = 2 * hw_in * hw_out * item
        kernel = _flat_matmul_kernel
        aux = S_T
        aux_spec = pl.BlockSpec((hw_in, hw_out), lambda n, c: (0, 0))

    c_blk = _choose_c_block(C, per_chan, fixed, budget, item)
    c_blk = _ensure_two_steps(N, C, c_blk, item)
    grid = (N, pl.cdiv(C, c_blk))

    out = pl.pallas_call(
        kernel,
        out_shape=jax.ShapeDtypeStruct((N, C, hw_out), x.dtype),
        grid_spec=pltpu.PrefetchScalarGridSpec(
            num_scalar_prefetch=0,
            grid=grid,
            in_specs=[
                aux_spec,   # resident (same block every step -> copy elided)
                pl.BlockSpec((pl.Squeezed(), c_blk, hw_in),
                             lambda n, c: (n, c, 0)),
            ],
            out_specs=pl.BlockSpec((pl.Squeezed(), c_blk, hw_out),
                                   lambda n, c: (n, c, 0)),
        ),
        compiler_params=_compiler_params(limit),
    )(aux, x_flat)
    return out.reshape(N, C, h_out, w_out)          # free (splits minor dim)


def _upsample_separable(x, h_out, w_out):
    N, C, h_in, w_in = x.shape
    np_dtype = np.dtype(x.dtype)
    item = np_dtype.itemsize
    hw_in, hw_out = h_in * w_in, h_out * w_out

    S_h = jnp.asarray(_selection_matrix(h_in, h_out, np_dtype))       # (H_out, H_in)
    S_w_T = jnp.asarray(_selection_matrix(w_in, w_out, np_dtype).T)   # (W_in, W_out)

    limit = _vmem_limit_bytes()
    budget = (limit * 6) // 10
    # Apply the axis with the smaller expansion first to minimize the temp.
    h_first = (h_out * w_in) <= (h_in * w_out)
    inter = min(h_out * w_in, h_in * w_out)
    per_chan = (2 * hw_in * item + 2 * hw_out * item     # double-buffered slabs
                + h_out * h_in * item                    # S_h broadcast temp
                + inter * 4 + inter * item               # first-dot f32 + cast
                + hw_out * 4)                            # second-dot f32 temp
    fixed = 2 * (h_out * h_in + w_in * w_out) * item
    c_blk = _choose_c_block(C, per_chan, fixed, budget, item)
    c_blk = _ensure_two_steps(N, C, c_blk, item)
    grid = (N, pl.cdiv(C, c_blk))
    # TODO(synk): for w_out < 128 this path's stores are lane-masked; the flat
    # path (lane-dense) is preferred for such small maps by the dispatcher.

    out = pl.pallas_call(
        _make_sep_kernel(h_first),
        out_shape=jax.ShapeDtypeStruct((N, C, h_out, w_out), x.dtype),
        grid_spec=pltpu.PrefetchScalarGridSpec(
            num_scalar_prefetch=0,
            grid=grid,
            in_specs=[
                pl.BlockSpec((h_out, h_in), lambda n, c: (0, 0)),
                pl.BlockSpec((w_in, w_out), lambda n, c: (0, 0)),
                pl.BlockSpec((pl.Squeezed(), c_blk, h_in, w_in),
                             lambda n, c: (n, c, 0, 0)),
            ],
            out_specs=pl.BlockSpec((pl.Squeezed(), c_blk, h_out, w_out),
                                   lambda n, c: (n, c, 0, 0)),
        ),
        compiler_params=_compiler_params(limit),
    )(S_h, S_w_T, x)
    return out


# ---------------------------------------------------------------------------
# Gather-capability probe (once per spatial config; result is a static bool,
# so the dispatcher works identically inside jit).
# ---------------------------------------------------------------------------

_GATHER_PROBE_CACHE = {}


def _gather_supported(h_in, w_in, h_out, w_out, dtype) -> bool:
    key = (int(h_in), int(w_in), int(h_out), int(w_out), np.dtype(dtype).name)
    hit = _GATHER_PROBE_CACHE.get(key)
    if hit is not None:
        return hit
    ok = True
    try:
        probe = (jnp.arange(8 * h_in * w_in, dtype=jnp.float32)
                 .reshape(1, 8, h_in, w_in).astype(dtype))
        y = jax.block_until_ready(
            _upsample_flat(probe, h_out, w_out, use_gather=True))
        ref = _numpy_ref(np.asarray(probe), h_out, w_out)
        ok = bool(np.array_equal(np.asarray(y, dtype=np.float32),
                                 np.asarray(ref, dtype=np.float32)))
    except Exception:
        ok = False
    _GATHER_PROBE_CACHE[key] = ok
    return ok


# ---------------------------------------------------------------------------
# Public API.
# ---------------------------------------------------------------------------

def upsample_nearest(x, size=None, scale_factor=None, force_path=None):
    """Pallas TPU nearest-neighbor upsample of an NCHW tensor."""
    N, C, h_in, w_in = x.shape
    if size is None:
        if isinstance(scale_factor, tuple):
            sf = tuple(float(f) for f in scale_factor)
        else:
            sf = (float(scale_factor), float(scale_factor))
        h_out, w_out = int(h_in * sf[0]), int(w_in * sf[1])
    else:
        h_out, w_out = int(size[0]), int(size[1])

    if (h_out, w_out) == (h_in, w_in):
        return x

    itemsize = np.dtype(x.dtype).itemsize
    hw_in = h_in * w_in

    if force_path == "flat_matmul":
        return _upsample_flat(x, h_out, w_out, use_gather=False)
    if force_path == "separable":
        return _upsample_separable(x, h_out, w_out)

    use_flat = (hw_in <= _FLAT_GATHER_HWIN_LIMIT) or (force_path == "flat")
    if use_flat:
        gather_ok = _gather_supported(h_in, w_in, h_out, w_out, x.dtype)
        if gather_ok:
            return _upsample_flat(x, h_out, w_out, use_gather=True)
        if hw_in <= _flat_matmul_hwin_limit(itemsize) or force_path == "flat":
            return _upsample_flat(x, h_out, w_out, use_gather=False)
    return _upsample_separable(x, h_out, w_out)


class Upsample:
    """Mirror of the PyTorch Upsample module (nearest mode) backed by Pallas."""

    def __init__(self, size=None, scale_factor=None, mode="nearest",
                 align_corners=None):
        self.size = size
        if isinstance(scale_factor, tuple):
            self.scale_factor = tuple(float(f) for f in scale_factor)
        else:
            self.scale_factor = float(scale_factor) if scale_factor else None
        self.mode = mode
        self.align_corners = align_corners
        # TODO(synk): only mode='nearest' is implemented in the Pallas kernel;
        # bilinear/bicubic interpolation paths are not translated.
        assert mode == "nearest", "Pallas kernel implements mode='nearest' only"

    def __call__(self, x):
        if not self.size:
            if isinstance(self.scale_factor, tuple):
                size = [int(t * f) for t, f in zip(x.shape[-2:], self.scale_factor)]
            else:
                size = [int(t * self.scale_factor) for t in x.shape[-2:]]
        else:
            size = self.size
        return upsample_nearest(x, size=size)


# ---------------------------------------------------------------------------
# Self-test.
# ---------------------------------------------------------------------------

if __name__ == "__main__":
    key = jax.random.PRNGKey(0)
    x = jax.random.normal(key, (2, 4, 16, 16), dtype=jnp.float32)
    x_np = np.asarray(x)

    # Module path (gather primary, exact matmul fallback if gather unsupported).
    model = Upsample(scale_factor=2.0, mode="nearest")
    y = jax.block_until_ready(model(x))
    np.testing.assert_allclose(np.asarray(y), _numpy_ref(x_np, 32, 32),
                               rtol=1e-6, atol=1e-6)

    # Selection-matmul fallback kernel (precision=HIGHEST), forced.
    y1 = jax.block_until_ready(
        upsample_nearest(x, size=(32, 32), force_path="flat_matmul"))
    np.testing.assert_allclose(np.asarray(y1), _numpy_ref(x_np, 32, 32),
                               rtol=1e-6, atol=1e-6)

    # Separable fallback path (used for large spatial maps), forced here.
    y2 = jax.block_until_ready(
        upsample_nearest(x, size=(32, 32), force_path="separable"))
    np.testing.assert_allclose(np.asarray(y2), _numpy_ref(x_np, 32, 32),
                               rtol=1e-6, atol=1e-6)

    # Non-integer / asymmetric scale on the default path.
    y3 = jax.block_until_ready(upsample_nearest(x, size=(24, 40)))
    np.testing.assert_allclose(np.asarray(y3), _numpy_ref(x_np, 24, 40),
                               rtol=1e-6, atol=1e-6)

    # Asymmetric scale on the separable path with the W-first ordering.
    y4 = jax.block_until_ready(
        upsample_nearest(x, size=(40, 24), force_path="separable"))
    np.testing.assert_allclose(np.asarray(y4), _numpy_ref(x_np, 40, 24),
                               rtol=1e-6, atol=1e-6)

    # bf16: nearest must remain an exact copy of the stored bf16 values.
    xb = x.astype(jnp.bfloat16)
    yb = jax.block_until_ready(upsample_nearest(xb, size=(32, 32)))
    np.testing.assert_array_equal(
        np.asarray(yb, dtype=np.float32),
        np.asarray(_numpy_ref(np.asarray(xb), 32, 32), dtype=np.float32))

    print("KERNEL_OK")
</pallas_src>

<mosaic_0001>
module attributes {stable_mosaic.version = 11 : i64} {
  func.func @_flat_matmul_kernel(%arg0: i32, %arg1: i32, %arg2: memref<256x1024xf32, #tpu.memory_space<vmem>>, %arg3: memref<1x4x256xf32, #tpu.memory_space<vmem>>, %arg4: memref<1x4x1024xf32, #tpu.memory_space<vmem>>) attributes {dimension_semantics = [#tpu.dimension_semantics<parallel>, #tpu.dimension_semantics<parallel>], iteration_bounds = array<i64: 2, 1>, scalar_prefetch = 0 : i64, scratch_operands = 0 : i64, tpu.core_type = #tpu.core_type<tc>, window_params = [{pipeline_mode = #tpu.pipeline_mode<synchronous>, transform_indices = @transform_0, window_bounds = array<i64: 256, 1024>}, {transform_indices = @transform_1, window_bounds = array<i64: 1, 4, 256>}, {transform_indices = @transform_2, window_bounds = array<i64: 1, 4, 1024>}]} {
    %c0 = arith.constant 0 : index
    %c0_0 = arith.constant 0 : index
    %c0_1 = arith.constant 0 : index
    %0 = vector.load %arg3[%c0, %c0_0, %c0_1] : memref<1x4x256xf32, #tpu.memory_space<vmem>>, vector<1x4x256xf32>
    %1 = vector.shape_cast %0 : vector<1x4x256xf32> to vector<4x256xf32>
    %c0_2 = arith.constant 0 : index
    %c0_3 = arith.constant 0 : index
    %2 = vector.load %arg2[%c0_2, %c0_3] : memref<256x1024xf32, #tpu.memory_space<vmem>>, vector<256x1024xf32>
    %cst = arith.constant dense<0.000000e+00> : vector<4x1024xf32>
    %3 = tpu.matmul %1, %2, %cst {dimension_numbers = #tpu.dot_dimension_numbers<[1], [0], [0], [1], [0, 0, 1, 1], [], []>, precision = #tpu.contract_precision<fp32>} : vector<4x256xf32>, vector<256x1024xf32>, vector<4x1024xf32> -> vector<4x1024xf32>
    %c0_4 = arith.constant 0 : index
    %c0_5 = arith.constant 0 : index
    %c0_6 = arith.constant 0 : index
    %4 = vector.load %arg4[%c0_4, %c0_5, %c0_6] : memref<1x4x1024xf32, #tpu.memory_space<vmem>>, vector<1x4x1024xf32>
    %5 = vector.shape_cast %4 : vector<1x4x1024xf32> to vector<4x1024xf32>
    %6 = vector.shape_cast %3 : vector<4x1024xf32> to vector<1x4x1024xf32>
    tpu.vector_store %arg4[%c0_4, %c0_5, %c0_6], %6 {strides = array<i32>} : memref<1x4x1024xf32, #tpu.memory_space<vmem>>, vector<1x4x1024xf32>,
    return
  }
  func.func @transform_0(%arg0: i32, %arg1: i32) -> (i32, i32) {
    %c0_i32 = arith.constant 0 : i32
    %c0_i32_0 = arith.constant 0 : i32
    %c0_i32_1 = arith.constant 0 : i32
    return %c0_i32, %c0_i32_0 : i32, i32
  }
  func.func @transform_1(%arg0: i32, %arg1: i32) -> (i32, i32, i32) {
    %c0_i32 = arith.constant 0 : i32
    %c0_i32_0 = arith.constant 0 : i32
    return %arg0, %arg1, %c0_i32 : i32, i32, i32
  }
  func.func @transform_2(%arg0: i32, %arg1: i32) -> (i32, i32, i32) {
    %c0_i32 = arith.constant 0 : i32
    %c0_i32_0 = arith.constant 0 : i32
    return %arg0, %arg1, %c0_i32 : i32, i32, i32
  }
}

</mosaic_0001>

<bundles_post_ra>
// kernel: tpu_custom_call.1
= control target key start
LH: loop header
LB: loop body
LE: loop exit
PB: predicated region body
PF: predicated region fallthrough
CT: control target
= control target key end

     0   :  { %7 = vsyncpa [#allocation3], 0  ;;  %s10939_s0 = inlined_call_operand.hbm [shape: f32[256,1024], index: 0, kind: input, shape index: {}]   ;;  %s10940_s1 = inlined_call_operand.hbm [shape: f32[2,4,256], index: 1, kind: input, shape index: {}]   ;;  %s10941_s2 = inlined_call_operand.hbm [shape: f32[2,4,1024], index: 2, kind: output, shape index: {}]  }
   0x1   :  { %8 = vsyncpa [#allocation6], 0 }
   0x2   :  { %10 = vsyncpa [#allocation6 + $0x1], 0 }
   0x3   :  { %11 = vsyncpa [#allocation4], 0 }
   0x4   :  { %13 = vsyncpa [#allocation4 + $0x1], 0  ;;  %s5977_s9 = smov 0   ;;  %s5979_s10 = smov 0  }
   0x5   :  { %s5981_s11 = smov 0   ;;  %s5983_s12 = smov 0  }
   0x6   :  { %s5985_s13 = smov 0   ;;  %s5987_s14 = smov 0  }
   0x7 LB: > { %s5722_s15 = sadd.s32 4294967295, %s5955_s14   ;;  %s5723_s16 = sadd.s32 4294967294, %s5955_s14   ;;  %s5955_s14 = sphi %s5987_s14, %s19_s14   ;;  %s5951_s13 = sphi %s5985_s13, %s13398_s13   ;;  %s5947_s12 = sphi %s5983_s12, %s13397_s12   ;;  %s5943_s11 = sphi %s5981_s11, %s13396_s11   ;;  %s5939_s10 = sphi %s5979_s10, %s13395_s10   ;;  %s5935_s9 = sphi %s5977_s9, %s13394_s9  }
   0x8   : > { %p74_p0 = scmp.ne.s32.totalorder %s5939_s10, %s5935_s9  ;;  %p6011_p1 = scmp.eq.s32.totalorder %s5722_s15, 0 }
   0x9   : > { %p6015_p2 = scmp.eq.s32.totalorder %s5722_s15, 1  ;;  %p106_p3 = scmp.eq.s32.totalorder %s5723_s16, 1 }
   0xa   : > { %p6021_p4 = por %p6011_p1, %p74_p0  ;;  %p5724_p5 = scmp.ge.s32.totalorder %s5955_s14, 1 }
   0xb   : > { %p6026_p6 = por %p106_p3, %p74_p0  ;;  %p113_p7 = scmp.lt.s32.totalorder %s5955_s14, 3 }
   0xc   : > { %s11769_s19 = scalar_select %p6021_p4, 1, 0 }
   0xd   : > { %s11770_s20 = scalar_select %p6026_p6, 1, 0 }
   0xe   : > { %p6031_p8 = pnand %p5724_p5, %p113_p7  ;;  %s5957_s22 = smov [#allocation2]  }
   0xf   : > { %s125_s23 = sshll.u32 %s5957_s22, 4  ;;  %s31_s25 = sadd.s32 1, %s5951_s13  ;;  %s126_s23 = int_to_ptr.vmem [resolvable:$true] %s125_s23 }
  0x10   : > { %p5749_p9 = pneg %p6031_p8  ;;  %s5828_s26 = scalar_lea.vmem %s126_s23, 32768 }
  0x11   : > { %p5829_p13 = scmp.ne.s32.totalorder %s126_s23, %s5828_s26  ;;  %p5836_p5 = scmp.lt.s32.totalorder %s126_s23, %s126_s23 }
  0x12   : > { %p6040_p11 = pnand %p5749_p9, %p6011_p1  ;;  %p5837_p7 = scmp.lt.s32.totalorder %s5828_s26, %s5828_s26 }
  0x14   : > { %p5819_p12 = pneg %p6040_p11  ;;  %p5838_p6 = por %p5837_p7, %p5836_p5 }
  0x16   : > { %p5831_p0 = pnand %p5829_p13, %p5819_p12 }
  0x18   : > { %p5832_p3 = pneg %p5831_p0 }
  0x1a   : > { %p5839_p4 = pnand %p5838_p6, %p5832_p3 }
  0x1c   : > { %5842 = shalt.err (!%p5839_p4)
}
  0x1d   : > { %s5958_s27 = smov 1024   ;;  %s5959_s28 = smov 64  }
  0x1e   : > { %5752 = dma.hbm_to_vmem [thread:$0]  (!%p6040_p11), %s10939_s0, 32768, %s126_s23, [#allocation3], %s5958_s27, %s5958_s27, %s5959_s28  }
  0x1f   : > { %p33_p6 = scmp.ge.s32.totalorder %s31_s25, 2  ;;  %s61_s3 = sadd.s32 1, %s5943_s11 }
  0x20   : > { %p68_p4 = scmp.ne.s32.totalorder %s5943_s11, %s5939_s10  ;;  %p69_p9 = scmp.eq.s32.totalorder %s5955_s14, 0 }
  0x21   : > { %s13400_s25 = smov (%p33_p6, %s31_s25), 0  ;;  %p5762_p0 = scmp.lt.s32.totalorder %s5955_s14, 2 }
  0x22   : > { %p6058_p12 = por %p69_p9, %p68_p4  ;;  %p6064_p13 = por %p6015_p2, %p68_p4 }
  0x23   : > { %s56_s6 = ssub.s32 %s5951_s13, %s13400_s25  ;;  %s139_s7 = sand.u32 1, %s5943_s11  }
  0x24   : > { %p59_p11 = scmp.eq.s32.totalorder %s56_s6, 0  ;;  %s5727_s8 = sshll.u32 %s139_s7, 3 }
  0x25   : > { %s5739_s16 = sshll.u32 %s5951_s13, 7  ;;  %s143_s26 = scalar_lea.vmem [#allocation5], %s5727_s8 }
  0x26   : > { %s6073_s15 = scalar_select %p59_p11, %s5943_s11, %s61_s3  }
  0x27   : > { %s151_s24 = scalar_lea.hbm %s10940_s1, %s5739_s16  ;;  %s153_s27 = sshll.u32 %s143_s26, 4  ;;  %s154_s27 = int_to_ptr.vmem [resolvable:$true] %s153_s27 }
  0x28   : > { %p6081_p2 = pnand %p5762_p0, %p6058_p12  ;;  %s140_s28 = scalar_lea.sflag [#allocation6], %s139_s7 }
  0x29   : > { %s5856_s29 = scalar_lea.vmem %s154_s27, 128  ;;  %s5960_s30 = smov [#allocation5]  }
  0x2a   : > { %p5845_p3 = pneg %p6081_p2  ;;  %p5857_p5 = scmp.ne.s32.totalorder %s154_s27, %s5856_s29 }
  0x2b   : > { %s5861_s3 = sshll.u32 %s5960_s30, 4  ;;  %s5862_s3 = int_to_ptr.vmem [resolvable:$false] %s5861_s3 }
  0x2c   : > { %p5859_p7 = pnand %p5857_p5, %p5845_p3  ;;  %s5863_s6 = scalar_lea.vmem %s5862_s3, 256 }
  0x2d   : > { %p5864_p4 = scmp.lt.s32.totalorder %s154_s27, %s5862_s3  ;;  %p5865_p9 = scmp.lt.s32.totalorder %s5863_s6, %s5856_s29 }
  0x2e   : > { %p5860_p6 = pneg %p5859_p7 }
  0x2f   : > { %p5866_p11 = por %p5865_p9, %p5864_p4 }
  0x31   : > { %p5867_p10 = pnand %p5866_p11, %p5860_p6 }
  0x33   : > { %5870 = shalt.err (!%p5867_p10)
}
  0x34   : > { %5756 = dma.hbm_to_vmem [thread:$0]  (!%p6081_p2), %s151_s24, 128, %s154_s27, %s140_s28  }
  0x35   : > { %162 = sbr.rel (%p6031_p8) target bundleno = 1115 (0x45b), region = 28 }
  0x3a   : > { %5922 = dma.done.wait (%p6011_p1), [#allocation3], 32768  }
  0x3b   : > { %5924 = vsyncadd (%p6011_p1), [#allocation3], 4294934528  ;;  %s6096_s4 = sand.u32 1, %s5939_s10   ;;  %p11776_p10 = scmp.ne.s32.totalorder %s11769_s19, 0 }
  0x3c   : > { %s5732_s7 = sshll.u32 %s6096_s4, 3  ;;  %s169_s8 = scalar_lea.sflag [#allocation6], %s6096_s4 }
  0x3d   : > { %s6100_s16 = scalar_lea.vmem [#allocation5], %s5732_s7 }
  0x3e   : > { %5926 = dma.done.wait (%p11776_p10), %s169_s8, 128  }
  0x3f   : > { %5928 = vsyncadd (%p11776_p10), %s169_s8, 4294967168  ;;  %v315_v0 = vld [vmem:[#allocation2 + $0x3c8] sm:$0xff]  ;;  %v314_v1 = vld [vmem:[#allocation2 + $0x3c0] sm:$0xff]  ;;  %s5733_s17 = sshll.u32 %s6096_s4, 5  ;;  %s5740_s21 = sshll.u32 %s5947_s12, 9 }
  0x40   : > { %v307_v2 = vld [vmem:[#allocation2 + $0x388] sm:$0xff]  ;;  %v6106_v3 = vand.u32 4294901760, %v315_v0  ;;  %v6108_v4 = vand.u32 4294901760, %v314_v1  ;;  %v306_v6 = vld [vmem:[#allocation2 + $0x380] sm:$0xff]  ;;  %s8781_s19 = scalar_lea.vmem [#allocation7], %s5733_s17  ;;  %s5624_s26 = scalar_lea.hbm %s10941_s2, %s5740_s21 }
  0x41   : > { %v6110_v5 = vand.u32 4294901760, %v307_v2  ;;  %v299_v7 = vld [vmem:[#allocation2 + $0x348] sm:$0xff]  ;;  %v298_v8 = vld [vmem:[#allocation2 + $0x340] sm:$0xff]  ;;  %v6112_v9 = vand.u32 4294901760, %v306_v6  ;;  %s5626_s22 = sshll.u32 %s8781_s19, 4  ;;  %s5610_s27 = scalar_lea.sflag [#allocation4], %s6096_s4  ;;  %s5627_s22 = int_to_ptr.vmem [resolvable:$true] %s5626_s22 }
  0x42   : > { %v6114_v10 = vand.u32 4294901760, %v299_v7  ;;  %v6116_v11 = vand.u32 4294901760, %v298_v8  ;;  %v291_v12 = vld [vmem:[#allocation2 + $0x308] sm:$0xff]  ;;  %v290_v13 = vld [vmem:[#allocation2 + $0x300] sm:$0xff]  ;;  %454 = vmatprep.subr.mxu0 %v6106_v3  ;;  %v6126_v18 = vsub.f32 %v315_v0, %v6106_v3  ;;  %v6139_v23 = vsub.f32 %v314_v1, %v6108_v4  ;;  %s5871_s18 = scalar_lea.vmem %s5627_s22, 512  ;;  %s5961_s28 = smov [#allocation7]  }
  0x43   : > { %v283_v14 = vld [vmem:[#allocation2 + $0x2c8] sm:$0xff]  ;;  %v6119_v15 = vand.u32 4294901760, %v291_v12  ;;  %v6121_v16 = vand.u32 4294901760, %v290_v13  ;;  %v6128_v19 = vld [vmem:[#allocation2 + $0x2c0] sm:$0xff]  ;;  %456 = vmatpush1.msra.mxu0 %v6108_v4  ;;  %v6145_v25 = vsub.f32 %v307_v2, %v6110_v5  ;;  %v6159_v31 = vsub.f32 %v306_v6, %v6112_v9  ;;  %p5872_p1 = scmp.ne.s32.totalorder %s5627_s22, %s5871_s18  ;;  %s5875_s29 = sshll.u32 %s5961_s28, 4  ;;  %s5876_s29 = int_to_ptr.vmem [resolvable:$false] %s5875_s29 }
  0x44   : > { %v6123_v17 = vand.u32 4294901760, %v283_v14  ;;  %11777 = vst [vmem:[#allocation11_spill] sm:$0xff] %v6126_v18  ;;  %v6130_v20 = vld [vmem:[#allocation2 + $0x288] sm:$0xff]  ;;  %v6132_v21 = vld [vmem:[#allocation2 + $0x280] sm:$0xff]  ;;  %v6136_v22 = vand.u32 4294901760, %v6128_v19  ;;  %458 = vmatprep.subr.mxu0 %v6110_v5  ;;  %v10956_v29 = vand.u32 4294901760, %v6126_v18  ;;  %v6168_v35 = vsub.f32 %v299_v7, %v6114_v10  ;;  %p5878_p0 = scmp.lt.s32.totalorder %s5627_s22, %s5876_s29 }
  0x45   : > { %v6142_v24 = vand.u32 4294901760, %v6130_v20  ;;  %v6147_v26 = vld [vmem:[#allocation2 + $0x248] sm:$0xff]  ;;  %v6149_v27 = vld [vmem:[#allocation2 + $0x240] sm:$0xff]  ;;  %v6156_v30 = vand.u32 4294901760, %v6132_v21  ;;  %460 = vmatpush1.msra.mxu0 %v6112_v9  ;;  %v10954_v33 = vand.u32 4294901760, %v6139_v23  ;;  %v10953_v34 = vand.u32 4294901760, %v6145_v25  ;;  %p5873_p8 = pnand %p5872_p1, %p6064_p13 }
  0x46   : > { %v6151_v28 = vld [vmem:[#allocation2 + $0x208] sm:$0xff]  ;;  %v6162_v32 = vand.u32 4294901760, %v6147_v26  ;;  %v6171_v36 = vand.u32 4294901760, %v6149_v27  ;;  %v6173_v37 = vld [vmem:[#allocation2 + $0x200] sm:$0xff]  ;;  %462 = vmatprep.subr.mxu0 %v6114_v10  ;;  %v601_v38 = vsub.f32 %v6126_v18, %v10956_v29  ;;  %v10951_v39 = vand.u32 4294901760, %v6159_v31  ;;  %s5877_s12 = scalar_lea.vmem %s5876_s29, 1024 }
  0x47   : > { %11778 = vst [vmem:[#allocation12_spill] sm:$0xff] %v6156_v30  ;;  %v6181_v40 = vsub.f32 %v298_v8, %v6116_v11  ;;  %v6184_v41 = vand.u32 4294901760, %v6151_v28  ;;  %464 = vmatpush1.msra.mxu0 %v6116_v11  ;;  %v607_v42 = vsub.f32 %v6139_v23, %v10954_v33  ;;  %v613_v43 = vsub.f32 %v6145_v25, %v10953_v34  ;;  %v6197_v46 = vld [vmem:[#allocation2 + $0x1c8] sm:$0xff]  ;;  %v6207_v51 = vld [vmem:[#allocation2 + $0x1c0] sm:$0xff]  ;;  %p5874_p12 = pneg %p5873_p8  ;;  %p5879_p2 = scmp.lt.s32.totalorder %s5877_s12, %s5871_s18 }
  0x48   : > { %11779 = vst [vmem:[#allocation13_spill] sm:$0xff] %v6162_v32  ;;  %11780 = vst [vmem:[#allocation14_spill] sm:$0xff] %v6171_v36  ;;  %v10949_v44 = vand.u32 4294901760, %v6168_v35  ;;  %v6195_v45 = vsub.f32 %v291_v12, %v6119_v15  ;;  %466 = vmatprep.subr.mxu0 %v6119_v15  ;;  %v602_v47 = vand.u32 4294901760, %v601_v38  ;;  %v619_v48 = vsub.f32 %v6159_v31, %v10951_v39  ;;  %v6214_v56 = vld [vmem:[#allocation2 + $0x188] sm:$0xff]  ;;  %v6226_v61 = vld [vmem:[#allocation2 + $0x180] sm:$0xff] }
  0x49   : > { %11781 = vst [vmem:[#allocation15_spill] sm:$0xff] %v6184_v41  ;;  %v10948_v49 = vand.u32 4294901760, %v6181_v40  ;;  %v6205_v50 = vand.u32 4294901760, %v6173_v37  ;;  %468 = vmatpush1.msra.mxu0 %v6121_v16  ;;  %v608_v52 = vand.u32 4294901760, %v607_v42  ;;  %v614_v53 = vand.u32 4294901760, %v613_v43  ;;  %v6238_v2 = vld [vmem:[#allocation2 + $0x148] sm:$0xff]  ;;  %p5880_p3 = por %p5879_p2, %p5878_p0 }
  0x4a   : > { %v625_v54 = vsub.f32 %v6168_v35, %v10949_v44  ;;  %v10946_v55 = vand.u32 4294901760, %v6195_v45  ;;  %470 = vmatprep.subr.mxu0 %v6123_v17  ;;  %603 = vmatprep.subr.mxu1 %v602_v47  ;;  %v620_v57 = vand.u32 4294901760, %v619_v48  ;;  %v6221_v59 = vsub.f32 %v290_v13, %v6121_v16  ;;  %v6249_v13 = vld [vmem:[#allocation2 + $0x140] sm:$0xff]  ;;  %v6329_v39 = vld [vmem:[#allocation2 + $0x88] sm:$0xff] }
  0x4b   : > { %11782 = vst [vmem:[#allocation16_spill] sm:$0xff] %v6205_v50  ;;  %v631_v58 = vsub.f32 %v6181_v40, %v10948_v49  ;;  %v6224_v60 = vand.u32 4294901760, %v6197_v46  ;;  %472 = vmatpush1.msra.mxu0 %v6136_v22  ;;  %609 = vmatpush1.msra.mxu1 %v608_v52  ;;  %v6233_v0 = vsub.f32 %v283_v14, %v6123_v17  ;;  %v6236_v1 = vand.u32 4294901760, %v6207_v51  ;;  %v6316_v49 = vld [vmem:[#allocation2 + $0xc0] sm:$0xff]  ;;  %p5881_p5 = pnand %p5880_p3, %p5874_p12 }
  0x4c   : > { %v626_v62 = vand.u32 4294901760, %v625_v54  ;;  %v637_v63 = vsub.f32 %v6195_v45, %v10946_v55  ;;  %474 = vmatprep.subr.mxu0 %v6142_v24  ;;  %615 = vmatprep.subr.mxu1 %v614_v53  ;;  %v10944_v7 = vand.u32 4294901760, %v6221_v59  ;;  %v6244_v8 = vsub.f32 %v6128_v19, %v6136_v22  ;;  %v6339_v34 = vld [vmem:[#allocation2 + $0x80] sm:$0xff] }
  0x4d   : > { %11783 = vst [vmem:[#allocation17_spill] sm:$0xff] %v6224_v60  ;;  %11784 = vst [vmem:[#allocation18_spill] sm:$0xff] %v6236_v1  ;;  %v632_v6 = vand.u32 4294901760, %v631_v58  ;;  %v6247_v12 = vand.u32 4294901760, %v6214_v56  ;;  %476 = vmatpush1.msra.mxu0 %v6156_v30  ;;  %621 = vmatpush1.msra.mxu1 %v620_v57  ;;  %v10943_v38 = vand.u32 4294901760, %v6233_v0  ;;  %v6255_v42 = vsub.f32 %v6130_v20, %v6142_v24  ;;  %v6272_v20 = vld [vmem:[#allocation2 + $0x108] sm:$0xff] }
  0x4e   : > { %v638_v14 = vand.u32 4294901760, %v637_v63  ;;  %v6258_v43 = vand.u32 4294901760, %v6226_v61  ;;  %478 = vmatprep.subr.mxu0 %v6162_v32  ;;  %627 = vmatprep.subr.mxu1 %v626_v62  ;;  %v643_v19 = vsub.f32 %v6221_v59, %v10944_v7  ;;  %v10945_v47 = vand.u32 4294901760, %v6244_v8 }
  0x4f   : > { %11785 = vst [vmem:[#allocation19_spill] sm:$0xff] %v6247_v12  ;;  %v6267_v48 = vsub.f32 %v6132_v21, %v6156_v30  ;;  %v6270_v52 = vand.u32 4294901760, %v6238_v2  ;;  %480 = vmatpush1.msra.mxu0 %v6171_v36  ;;  %633 = vmatpush1.msra.mxu1 %v632_v6  ;;  %v649_v53 = vsub.f32 %v6233_v0, %v10943_v38  ;;  %v10947_v54 = vand.u32 4294901760, %v6255_v42  ;;  %v6295_v38 = vld [vmem:[#allocation2 + $0x100] sm:$0xff] }
  0x50   : > { %11786 = vst [vmem:[#allocation20_spill] sm:$0xff] %v6258_v43  ;;  %v6281_v57 = vsub.f32 %v6147_v26, %v6162_v32  ;;  %v6284_v21 = vand.u32 4294901760, %v6249_v13  ;;  %482 = vmatprep.subr.mxu0 %v6184_v41  ;;  %639 = vmatprep.subr.mxu1 %v638_v14  ;;  %v644_v58 = vand.u32 4294901760, %v643_v19  ;;  %v655_v62 = vsub.f32 %v6244_v8, %v10945_v47  ;;  %v6305_v47 = vld [vmem:[#allocation2 + $0xc8] sm:$0xff] }
  0x51   : > { %11787 = vst [vmem:[#allocation21_spill] sm:$0xff] %v6270_v52  ;;  %v10950_v63 = vand.u32 4294901760, %v6267_v48  ;;  %v6293_v6 = vsub.f32 %v6149_v27, %v6171_v36  ;;  %484 = vmatpush1.msra.mxu0 %v6205_v50  ;;  %v650_v26 = vand.u32 4294901760, %v649_v53  ;;  %v661_v14 = vsub.f32 %v6255_v42, %v10947_v54  ;;  %v6419_v36 = vld [vmem:[#allocation2 + $0x7c8] sm:$0xff] }
  0x52   : > { %11788 = vst [vmem:[#allocation22_spill] sm:$0xff] %v6284_v21  ;;  %v10952_v19 = vand.u32 4294901760, %v6281_v57  ;;  %v6303_v7 = vand.u32 4294901760, %v6272_v20  ;;  %645 = vmatpush1.msra.mxu1 %v644_v58  ;;  %486 = vmatprep.subr.mxu0 %v6224_v60  ;;  %v656_v27 = vand.u32 4294901760, %v655_v62  ;;  %v6314_v54 = vsub.f32 %v6151_v28, %v6184_v41 }
  0x53   : > { %v667_v55 = vsub.f32 %v6267_v48, %v10950_v63  ;;  %v10955_v53 = vand.u32 4294901760, %v6293_v6  ;;  %651 = vmatprep.subr.mxu1 %v650_v26  ;;  %488 = vmatpush1.msra.mxu0 %v6236_v1  ;;  %v662_v44 = vand.u32 4294901760, %v661_v14  ;;  %v6323_v62 = vand.u32 4294901760, %v6295_v38 }
  0x54   : > { %11789 = vst [vmem:[#allocation23_spill] sm:$0xff] %v6303_v7  ;;  %v673_v58 = vsub.f32 %v6281_v57, %v10952_v19  ;;  %v6327_v63 = vsub.f32 %v6173_v37, %v6205_v50  ;;  %657 = vmatpush1.msra.mxu1 %v656_v27  ;;  %490 = vmatprep.subr.mxu0 %v6247_v12  ;;  %v10959_v14 = vand.u32 4294901760, %v6314_v54  ;;  %v6337_v19 = vand.u32 4294901760, %v6305_v47 }
  0x55   : > { %11790 = vst [vmem:[#allocation24_spill] sm:$0xff] %v6323_v62  ;;  %v668_v28 = vand.u32 4294901760, %v667_v55  ;;  %v679_v26 = vsub.f32 %v6293_v6, %v10955_v53  ;;  %663 = vmatprep.subr.mxu1 %v662_v44  ;;  %492 = vmatpush1.msra.mxu0 %v6258_v43  ;;  %v6345_v55 = vsub.f32 %v6197_v46, %v6224_v60  ;;  %v6348_v33 = vand.u32 4294901760, %v6316_v49  ;;  %v6350_v53 = vld [vmem:[#allocation2 + $0x48] sm:$0xff] }
  0x56   : > { %11791 = vst [vmem:[#allocation25_spill] sm:$0xff] %v6337_v19  ;;  %v674_v37 = vand.u32 4294901760, %v673_v58  ;;  %v10962_v27 = vand.u32 4294901760, %v6327_v63  ;;  %494 = vmatprep.subr.mxu0 %v6270_v52  ;;  %v685_v44 = vsub.f32 %v6314_v54, %v10959_v14  ;;  %v6358_v58 = vsub.f32 %v6207_v51, %v6236_v1  ;;  %v6375_v51 = vld [vmem:[#allocation2 + $0x40] sm:$0xff] }
  0x57   : > { %11792 = vst [vmem:[#allocation26_spill] sm:$0xff] %v6348_v33  ;;  %669 = vmatpush1.msra.mxu1 %v668_v28  ;;  %v680_v29 = vand.u32 4294901760, %v679_v26  ;;  %v6361_v46 = vand.u32 4294901760, %v6329_v39  ;;  %496 = vmatpush1.msra.mxu0 %v6284_v21  ;;  %v6370_v60 = vsub.f32 %v6214_v56, %v6247_v12  ;;  %v6373_v14 = vand.u32 4294901760, %v6339_v34  ;;  %v6386_v56 = vld [vmem:[#allocation2 + $0x8] sm:$0xff] }
  0x58   : > { %675 = vmatprep.subr.mxu1 %v674_v37  ;;  %v691_v28 = vsub.f32 %v6327_v63, %v10962_v27  ;;  %498 = vmatprep.subr.mxu0 %v6303_v7  ;;  %v686_v37 = vand.u32 4294901760, %v685_v44  ;;  %v6381_v27 = vsub.f32 %v6226_v61, %v6258_v43  ;;  %v6384_v26 = vand.u32 4294901760, %v6350_v53  ;;  %v6409_v44 = vld [vmem:[#allocation2] sm:$0xff] }
  0x59   : > { %11793 = vst [vmem:[#allocation27_spill] sm:$0xff] %v6361_v46  ;;  %11794 = vst [vmem:[#allocation28_spill] sm:$0xff] %v6370_v60  ;;  %681 = vmatpush1.msra.mxu1 %v680_v29  ;;  %500 = vmatpush1.msra.mxu0 %v6323_v62  ;;  %v11798_v50 = vand.u32 4294901760, %v6345_v55  ;;  %v6395_v1 = vsub.f32 %v6238_v2, %v6270_v52  ;;  %v11800_v61 = vand.u32 4294901760, %v6358_v58  ;;  %v6417_v41 = vand.u32 4294901760, %v6386_v56 }
  0x5a   : > { %11795 = vst [vmem:[#allocation29_spill] sm:$0xff] %v6373_v14  ;;  %11796 = vst [vmem:[#allocation30_spill] sm:$0xff] %v6381_v27  ;;  %v692_v12 = vand.u32 4294901760, %v691_v28  ;;  %687 = vmatprep.subr.mxu1 %v686_v37  ;;  %502 = vmatprep.subr.mxu0 %v6337_v19  ;;  %v6403_v28 = vand.u32 4294901760, %v6375_v51  ;;  %v11803_v37 = vand.u32 4294901760, %v6370_v60 }
  0x5b   : > { %11797 = vst [vmem:[#allocation31_spill] sm:$0xff] %v6384_v26  ;;  %v697_v29 = vsub.f32 %v6345_v55, %v11798_v50  ;;  %11799 = vst [vmem:[#allocation32_spill] sm:$0xff] %v6395_v1  ;;  %v703_v43 = vsub.f32 %v6358_v58, %v11800_v61  ;;  %v6407_v50 = vsub.f32 %v6249_v13, %v6284_v21  ;;  %504 = vmatpush1.msra.mxu0 %v6348_v33 }
  0x5c   : > { %11801 = vst [vmem:[#allocation33_spill] sm:$0xff] %v6403_v28  ;;  %693 = vmatpush1.msra.mxu1 %v692_v12  ;;  %v709_v52 = vsub.f32 %v6370_v60, %v11803_v37  ;;  %11804 = vst [vmem:[#allocation35_spill] sm:$0xff] %v6417_v41  ;;  %506 = vmatprep.subr.mxu0 %v6361_v46  ;;  %v11805_v13 = vand.u32 4294901760, %v6381_v27  ;;  %v6428_v21 = vsub.f32 %v6272_v20, %v6303_v7  ;;  %v6430_v37 = vld [vmem:[#allocation2 + $0x7c0] sm:$0xff] }
  0x5d   : > { %11802 = vst [vmem:[#allocation34_spill] sm:$0xff] %v6407_v50  ;;  %v698_v2 = vand.u32 4294901760, %v697_v29  ;;  %v704_v32 = vand.u32 4294901760, %v703_v43  ;;  %508 = vmatpush1.msra.mxu0 %v6373_v14  ;;  %v11807_v43 = vand.u32 4294901760, %v6395_v1  ;;  %v6437_v60 = vand.u32 4294901760, %v6409_v44  ;;  %v6443_v29 = vld [vmem:[#allocation2 + $0x788] sm:$0xff] }
  0x5e   : > { %v715_v12 = vsub.f32 %v6381_v27, %v11805_v13  ;;  %11806 = vst [vmem:[#allocation36_spill] sm:$0xff] %v6428_v21  ;;  %v710_v61 = vand.u32 4294901760, %v709_v52  ;;  %v6441_v13 = vsub.f32 %v6295_v38, %v6323_v62  ;;  %510 = vmatprep.subr.mxu0 %v6384_v26  ;;  %v11810_v52 = vand.u32 4294901760, %v6407_v50 }
  0x5f   : > { %699 = vmatprep.subr.mxu1 %v698_v2  ;;  %v721_v30 = vsub.f32 %v6395_v1, %v11807_v43  ;;  %11808 = vst [vmem:[#allocation37_spill] sm:$0xff] %v6437_v60  ;;  %v6451_v43 = vand.u32 4294901760, %v6419_v36  ;;  %v6453_v1 = vld [vmem:[#allocation2 + $0x780] sm:$0xff]  ;;  %512 = vmatpush1.msra.mxu0 %v6403_v28  ;;  %v6462_v62 = vand.u32 4294901760, %v6430_v37 }
  0x60   : > { %11809 = vst [vmem:[#allocation38_spill] sm:$0xff] %v6441_v13  ;;  %705 = vmatpush1.msra.mxu1 %v704_v32  ;;  %v716_v20 = vand.u32 4294901760, %v715_v12  ;;  %v727_v2 = vsub.f32 %v6407_v50, %v11810_v52  ;;  %v6459_v12 = vsub.f32 %v6305_v47, %v6337_v19  ;;  %v6464_v52 = vld [vmem:[#allocation2 + $0x748] sm:$0xff]  ;;  %514 = vmatprep.subr.mxu0 %v6417_v41  ;;  %v6475_v47 = vand.u32 4294901760, %v6443_v29 }
  0x61   : > { %11811 = vst [vmem:[#allocation39_spill] sm:$0xff] %v6451_v43  ;;  %711 = vmatprep.subr.mxu1 %v710_v61  ;;  %v722_v38 = vand.u32 4294901760, %v721_v30  ;;  %11813 = vst [vmem:[#allocation41_spill] sm:$0xff] %v6462_v62  ;;  %v11814_v61 = vand.u32 4294901760, %v6428_v21  ;;  %v6472_v32 = vsub.f32 %v6316_v49, %v6348_v33  ;;  %516 = vmatpush1.msra.mxu0 %v6437_v60  ;;  %v11817_v19 = vand.u32 4294901760, %v6441_v13  ;;  %v6489_v49 = vld [vmem:[#allocation2 + $0x740] sm:$0xff] }
  0x62   : > { %11812 = vst [vmem:[#allocation40_spill] sm:$0xff] %v6459_v12  ;;  %717 = vmatpush1.msra.mxu1 %v716_v20  ;;  %v728_v7 = vand.u32 4294901760, %v727_v2  ;;  %11816 = vst [vmem:[#allocation43_spill] sm:$0xff] %v6475_v47  ;;  %v6484_v50 = vsub.f32 %v6329_v39, %v6361_v46  ;;  %518 = vmatprep.subr.mxu0 %v6451_v43  ;;  %v6498_v2 = vand.u32 4294901760, %v6464_v52  ;;  %v6500_v39 = vld [vmem:[#allocation2 + $0x708] sm:$0xff] }
  0x63   : > { %v733_v30 = vsub.f32 %v6428_v21, %v11814_v61  ;;  %11815 = vst [vmem:[#allocation42_spill] sm:$0xff] %v6472_v32  ;;  %723 = vmatprep.subr.mxu1 %v722_v38  ;;  %v739_v20 = vsub.f32 %v6441_v13, %v11817_v19  ;;  %v6487_v61 = vand.u32 4294901760, %v6453_v1  ;;  %v11005_v38 = vand.u32 4294901760, %v6472_v32  ;;  %520 = vmatpush2.msra.mxu0 %v6462_v62 }
  0x64   : > { %11818 = vst [vmem:[#allocation44_spill] sm:$0xff] %v6484_v50  ;;  %729 = vmatpush1.msra.mxu1 %v728_v7  ;;  %v6495_v19 = vsub.f32 %v6339_v34, %v6373_v14  ;;  %11821 = vst [vmem:[#allocation47_spill] sm:$0xff] %v6498_v2  ;;  %v11822_v13 = vand.u32 4294901760, %v6459_v12  ;;  %522 = vmatprep.subr.mxu0 %v6475_v47  ;;  %v6517_v14 = vand.u32 4294901760, %v6489_v49  ;;  %v6523_v7 = vld [vmem:[#allocation2 + $0x700] sm:$0xff] }
  0x65   : > { %11819 = vst [vmem:[#allocation45_spill] sm:$0xff] %v6487_v61  ;;  %v734_v33 = vand.u32 4294901760, %v733_v30  ;;  %v740_v46 = vand.u32 4294901760, %v739_v20  ;;  %v6509_v30 = vsub.f32 %v6350_v53, %v6384_v26  ;;  %v751_v34 = vsub.f32 %v6472_v32, %v11005_v38  ;;  %524 = vmatpush2.msra.mxu0 %v6487_v61  ;;  %v6533_v32 = vld [vmem:[#allocation2 + $0x6c8] sm:$0xff] }
  0x66   : > { %11820 = vst [vmem:[#allocation46_spill] sm:$0xff] %v6495_v19  ;;  %v745_v21 = vsub.f32 %v6459_v12, %v11822_v13  ;;  %11824 = vst [vmem:[#allocation49_spill] sm:$0xff] %v6517_v14  ;;  %v6521_v13 = vsub.f32 %v6375_v51, %v6403_v28  ;;  %v6531_v20 = vand.u32 4294901760, %v6500_v39  ;;  %v11828_v51 = vand.u32 4294901760, %v6495_v19  ;;  %526 = vmatprep.subr.mxu0 %v6498_v2 }
  0x67   : > { %11823 = vst [vmem:[#allocation48_spill] sm:$0xff] %v6509_v30  ;;  %735 = vmatprep.subr.mxu1 %v734_v33  ;;  %v11826_v33 = vand.u32 4294901760, %v6484_v50  ;;  %v752_v12 = vand.u32 4294901760, %v751_v34  ;;  %528 = vmatpush2.msra.mxu0 %v6517_v14 }
  0x68   : > { %11825 = vst [vmem:[#allocation50_spill] sm:$0xff] %v6521_v13  ;;  %741 = vmatpush1.msra.mxu1 %v740_v46  ;;  %v746_v53 = vand.u32 4294901760, %v745_v21  ;;  %11827 = vst [vmem:[#allocation51_spill] sm:$0xff] %v6531_v20  ;;  %v763_v28 = vsub.f32 %v6495_v19, %v11828_v51  ;;  %v6542_v46 = vsub.f32 %v6386_v56, %v6417_v41  ;;  %v6551_v51 = vand.u32 4294901760, %v6523_v7  ;;  %v6557_v19 = vld [vmem:[#allocation2 + $0x688] sm:$0xff] }
  0x69   : > { %v757_v26 = vsub.f32 %v6484_v50, %v11826_v33  ;;  %v6544_v33 = vld [vmem:[#allocation2 + $0x6c0] sm:$0xff]  ;;  %v11830_v50 = vand.u32 4294901760, %v6509_v30  ;;  %v6555_v21 = vsub.f32 %v6409_v44, %v6437_v60  ;;  %530 = vmatprep.subr.mxu0 %v6531_v20  ;;  %v6565_v41 = vand.u32 4294901760, %v6533_v32  ;;  %v6578_v60 = vld [vmem:[#allocation2 + $0x648] sm:$0xff] }
  0x6a   : > { %11829 = vst [vmem:[#allocation52_spill] sm:$0xff] %v6542_v46  ;;  %747 = vmatprep.subr.mxu1 %v746_v53  ;;  %11831 = vst [vmem:[#allocation53_spill] sm:$0xff] %v6551_v51  ;;  %v764_v56 = vand.u32 4294901760, %v763_v28  ;;  %v11833_v53 = vand.u32 4294901760, %v6521_v13  ;;  %532 = vmatpush2.msra.mxu0 %v6551_v51  ;;  %v6573_v28 = vsub.f32 %v6419_v36, %v6451_v43  ;;  %v6589_v36 = vand.u32 4294901760, %v6557_v19 }
  0x6b   : > { %v758_v38 = vand.u32 4294901760, %v757_v26  ;;  %v769_v34 = vsub.f32 %v6509_v30, %v11830_v50  ;;  %11832 = vst [vmem:[#allocation54_spill] sm:$0xff] %v6555_v21  ;;  %753 = vmatpush1.msra.mxu1 %v752_v12  ;;  %11834 = vst [vmem:[#allocation55_spill] sm:$0xff] %v6565_v41  ;;  %v6567_v30 = vld [vmem:[#allocation2 + $0x680] sm:$0xff]  ;;  %v11028_v12 = vand.u32 4294901760, %v6555_v21  ;;  %534 = vmatprep.subr.mxu0 %v6565_v41 }
  0x6c   : > { %v775_v26 = vsub.f32 %v6521_v13, %v11833_v53  ;;  %11835 = vst [vmem:[#allocation56_spill] sm:$0xff] %v6573_v28  ;;  %v6576_v53 = vand.u32 4294901760, %v6544_v33  ;;  %v11837_v13 = vand.u32 4294901760, %v6542_v46  ;;  %11839 = vst [vmem:[#allocation59_spill] sm:$0xff] %v6589_v36 }
  0x6d   : > { %759 = vmatprep.subr.mxu1 %v758_v38  ;;  %v770_v44 = vand.u32 4294901760, %v769_v34  ;;  %v6586_v34 = vsub.f32 %v6430_v37, %v6462_v62  ;;  %v787_v43 = vsub.f32 %v6555_v21, %v11028_v12  ;;  %v6603_v37 = vld [vmem:[#allocation2 + $0x640] sm:$0xff]  ;;  %v6609_v12 = vsub.f32 %v6453_v1, %v6487_v61 }
  0x6e   : > { %11836 = vst [vmem:[#allocation57_spill] sm:$0xff] %v6576_v53  ;;  %765 = vmatpush1.msra.mxu1 %v764_v56  ;;  %v776_v50 = vand.u32 4294901760, %v775_v26  ;;  %v781_v38 = vsub.f32 %v6542_v46, %v11837_v13  ;;  %536 = vmatpush2.msra.mxu0 %v6576_v53  ;;  %v6598_v13 = vsub.f32 %v6443_v29, %v6475_v47  ;;  %v6601_v26 = vand.u32 4294901760, %v6567_v30  ;;  %v6614_v29 = vld [vmem:[#allocation2 + $0x608] sm:$0xff] }
  0x6f   : > { %11838 = vst [vmem:[#allocation58_spill] sm:$0xff] %v6586_v34  ;;  %771 = vmatprep.subr.mxu1 %v770_v44  ;;  %v11039_v44 = vand.u32 4294901760, %v6586_v34  ;;  %538 = vmatprep.subr.mxu0 %v6589_v36  ;;  %11842 = vst [vmem:[#allocation62_spill] sm:$0xff] %v6609_v12  ;;  %v6612_v56 = vand.u32 4294901760, %v6578_v60  ;;  %v788_v47 = vand.u32 4294901760, %v787_v43  ;;  %v11844_v21 = vand.u32 4294901760, %v6573_v28 }
  0x70   : > { %11840 = vst [vmem:[#allocation60_spill] sm:$0xff] %v6598_v13  ;;  %11841 = vst [vmem:[#allocation61_spill] sm:$0xff] %v6601_v26  ;;  %777 = vmatpush1.msra.mxu1 %v776_v50  ;;  %v782_v62 = vand.u32 4294901760, %v781_v38  ;;  %540 = vmatpush2.msra.mxu0 %v6601_v26  ;;  %v6623_v38 = vsub.f32 %v6464_v52, %v6498_v2  ;;  %v6631_v43 = vand.u32 4294901760, %v6603_v37  ;;  %v6637_v50 = vld [vmem:[#allocation2 + $0x600] sm:$0xff]  ;;  %v6644_v61 = vand.u32 4294901760, %v6614_v29 }
  0x71   : > { %11843 = vst [vmem:[#allocation63_spill] sm:$0xff] %v6612_v56  ;;  %v793_v46 = vsub.f32 %v6573_v28, %v11844_v21  ;;  %v799_v1 = vsub.f32 %v6586_v34, %v11039_v44  ;;  %542 = vmatprep.subr.mxu0 %v6612_v56  ;;  %v6635_v21 = vsub.f32 %v6489_v49, %v6517_v14  ;;  %v6646_v34 = vld [vmem:[#allocation2 + $0x5c8] sm:$0xff]  ;;  %v11850_v27 = vand.u32 4294901760, %v6609_v12 }
  0x72   : > { %11845 = vst [vmem:[#allocation64_spill] sm:$0xff] %v6623_v38  ;;  %783 = vmatprep.subr.mxu1 %v782_v62  ;;  %11846 = vst [vmem:[#allocation65_spill] sm:$0xff] %v6631_v43  ;;  %v11848_v62 = vand.u32 4294901760, %v6598_v13  ;;  %544 = vmatpush2.msra.mxu0 %v6631_v43  ;;  %v11852_v14 = vand.u32 4294901760, %v6623_v38 }
  0x73   : > { %11847 = vst [vmem:[#allocation66_spill] sm:$0xff] %v6635_v21  ;;  %789 = vmatpush1.msra.mxu1 %v788_v47  ;;  %v794_v52 = vand.u32 4294901760, %v793_v46  ;;  %11849 = vst [vmem:[#allocation67_spill] sm:$0xff] %v6644_v61  ;;  %v800_v28 = vand.u32 4294901760, %v799_v1  ;;  %v811_v49 = vsub.f32 %v6609_v12, %v11850_v27  ;;  %v6655_v46 = vsub.f32 %v6500_v39, %v6531_v20  ;;  %v6670_v12 = vld [vmem:[#allocation2 + $0x588] sm:$0xff] }
  0x74   : > { %v805_v2 = vsub.f32 %v6598_v13, %v11848_v62  ;;  %v6657_v62 = vld [vmem:[#allocation2 + $0x5c0] sm:$0xff]  ;;  %v817_v1 = vsub.f32 %v6623_v38, %v11852_v14  ;;  %546 = vmatprep.subr.mxu0 %v6644_v61  ;;  %v6664_v27 = vand.u32 4294901760, %v6637_v50  ;;  %v6668_v47 = vsub.f32 %v6523_v7, %v6551_v51 }
  0x75   : > { %11851 = vst [vmem:[#allocation68_spill] sm:$0xff] %v6655_v46  ;;  %795 = vmatprep.subr.mxu1 %v794_v52  ;;  %v812_v39 = vand.u32 4294901760, %v811_v49  ;;  %v11855_v52 = vand.u32 4294901760, %v6635_v21  ;;  %v6677_v14 = vand.u32 4294901760, %v6646_v34  ;;  %v6679_v38 = vld [vmem:[#allocation2 + $0x580] sm:$0xff]  ;;  %v6688_v49 = vand.u32 4294901760, %v6657_v62 }
  0x76   : > { %v806_v44 = vand.u32 4294901760, %v805_v2  ;;  %11853 = vst [vmem:[#allocation69_spill] sm:$0xff] %v6664_v27  ;;  %11854 = vst [vmem:[#allocation70_spill] sm:$0xff] %v6668_v47  ;;  %801 = vmatpush2.msra.mxu1 %v800_v28  ;;  %v818_v13 = vand.u32 4294901760, %v817_v1  ;;  %548 = vmatpush2.msra.mxu0 %v6664_v27  ;;  %v11062_v7 = vand.u32 4294901760, %v6668_v47  ;;  %v6685_v28 = vsub.f32 %v6533_v32, %v6565_v41 }
  0x77   : > { %v823_v2 = vsub.f32 %v6635_v21, %v11855_v52  ;;  %11856 = vst [vmem:[#allocation71_spill] sm:$0xff] %v6677_v14  ;;  %11858 = vst [vmem:[#allocation73_spill] sm:$0xff] %v6688_v49  ;;  %v6690_v52 = vld [vmem:[#allocation2 + $0x548] sm:$0xff]  ;;  %v11859_v51 = vand.u32 4294901760, %v6655_v46  ;;  %550 = vmatprep.subr.mxu0 %v6677_v14  ;;  %v6698_v1 = vsub.f32 %v6544_v33, %v6576_v53  ;;  %v6701_v32 = vand.u32 4294901760, %v6670_v12  ;;  %v6715_v33 = vld [vmem:[#allocation2 + $0x540] sm:$0xff] }
  0x78   : > { %807 = vmatprep.subr.mxu1 %v806_v44  ;;  %11857 = vst [vmem:[#allocation72_spill] sm:$0xff] %v6685_v28  ;;  %v835_v41 = vsub.f32 %v6668_v47, %v11062_v7  ;;  %552 = vmatpush2.msra.mxu0 %v6688_v49  ;;  %v6721_v7 = vsub.f32 %v6567_v30, %v6601_v26  ;;  %v11866_v47 = vand.u32 4294901760, %v6685_v28 }
  0x79   : > { %813 = vmatpush2.msra.mxu1 %v812_v39  ;;  %v824_v20 = vand.u32 4294901760, %v823_v2  ;;  %v829_v44 = vsub.f32 %v6655_v46, %v11859_v51  ;;  %11860 = vst [vmem:[#allocation74_spill] sm:$0xff] %v6698_v1  ;;  %11861 = vst [vmem:[#allocation75_spill] sm:$0xff] %v6701_v32  ;;  %v6710_v51 = vsub.f32 %v6557_v19, %v6589_v36  ;;  %v6713_v2 = vand.u32 4294901760, %v6679_v38  ;;  %v6726_v19 = vld [vmem:[#allocation2 + $0x508] sm:$0xff] }
  0x7a   : > { %819 = vmatprep.subr.mxu1 %v818_v13  ;;  %v11073_v13 = vand.u32 4294901760, %v6698_v1  ;;  %554 = vmatprep.subr.mxu0 %v6701_v32  ;;  %11864 = vst [vmem:[#allocation78_spill] sm:$0xff] %v6721_v7  ;;  %v6724_v39 = vand.u32 4294901760, %v6690_v52  ;;  %v836_v36 = vand.u32 4294901760, %v835_v41  ;;  %v841_v46 = vsub.f32 %v6685_v28, %v11866_v47 }
  0x7b   : > { %11862 = vst [vmem:[#allocation76_spill] sm:$0xff] %v6710_v51  ;;  %11863 = vst [vmem:[#allocation77_spill] sm:$0xff] %v6713_v2  ;;  %825 = vmatpush2.msra.mxu1 %v824_v20  ;;  %v830_v53 = vand.u32 4294901760, %v829_v44  ;;  %556 = vmatpush2.msra.mxu0 %v6713_v2  ;;  %v6735_v44 = vsub.f32 %v6578_v60, %v6612_v56  ;;  %v6743_v41 = vand.u32 4294901760, %v6715_v33  ;;  %v6749_v20 = vld [vmem:[#allocation2 + $0x500] sm:$0xff]  ;;  %v6756_v26 = vand.u32 4294901760, %v6726_v19 }
  0x7c   : > { %11865 = vst [vmem:[#allocation79_spill] sm:$0xff] %v6724_v39  ;;  %v847_v30 = vsub.f32 %v6698_v1, %v11073_v13  ;;  %558 = vmatprep.subr.mxu0 %v6724_v39  ;;  %v6747_v47 = vsub.f32 %v6603_v37, %v6631_v43  ;;  %v842_v60 = vand.u32 4294901760, %v841_v46  ;;  %v6758_v1 = vld [vmem:[#allocation2 + $0x4c8] sm:$0xff]  ;;  %v11872_v21 = vand.u32 4294901760, %v6721_v7 }
  0x7d   : > { %11867 = vst [vmem:[#allocation80_spill] sm:$0xff] %v6735_v44  ;;  %831 = vmatprep.subr.mxu1 %v830_v53  ;;  %11868 = vst [vmem:[#allocation81_spill] sm:$0xff] %v6743_v41  ;;  %v11870_v53 = vand.u32 4294901760, %v6710_v51  ;;  %560 = vmatpush2.msra.mxu0 %v6743_v41  ;;  %v6767_v46 = vsub.f32 %v6614_v29, %v6644_v61  ;;  %v11874_v43 = vand.u32 4294901760, %v6735_v44 }
  0x7e   : > { %11869 = vst [vmem:[#allocation82_spill] sm:$0xff] %v6747_v47  ;;  %837 = vmatpush2.msra.mxu1 %v836_v36  ;;  %11871 = vst [vmem:[#allocation83_spill] sm:$0xff] %v6756_v26  ;;  %v848_v28 = vand.u32 4294901760, %v847_v30  ;;  %v859_v37 = vsub.f32 %v6721_v7, %v11872_v21  ;;  %562 = vmatprep.subr.mxu0 %v6756_v26  ;;  %v6776_v21 = vand.u32 4294901760, %v6749_v20  ;;  %v6782_v7 = vld [vmem:[#allocation2 + $0x488] sm:$0xff] }
  0x7f   : > { %v853_v56 = vsub.f32 %v6710_v51, %v11870_v53  ;;  %11873 = vst [vmem:[#allocation84_spill] sm:$0xff] %v6767_v46  ;;  %v6769_v53 = vld [vmem:[#allocation2 + $0x4c0] sm:$0xff]  ;;  %843 = vmatprep.subr.mxu1 %v842_v60  ;;  %v865_v30 = vsub.f32 %v6735_v44, %v11874_v43  ;;  %v6780_v36 = vsub.f32 %v6637_v50, %v6664_v27  ;;  %v11877_v60 = vand.u32 4294901760, %v6747_v47 }
  0x80   : > { %11875 = vst [vmem:[#allocation85_spill] sm:$0xff] %v6776_v21  ;;  %849 = vmatpush2.msra.mxu1 %v848_v28  ;;  %v860_v29 = vand.u32 4294901760, %v859_v37  ;;  %v6789_v43 = vand.u32 4294901760, %v6758_v1  ;;  %v6791_v44 = vld [vmem:[#allocation2 + $0x480] sm:$0xff]  ;;  %564 = vmatpush2.msra.mxu0 %v6776_v21  ;;  %v6797_v28 = vsub.f32 %v6646_v34, %v6677_v14  ;;  %v6800_v37 = vand.u32 4294901760, %v6769_v53 }
  0x81   : > { %v854_v13 = vand.u32 4294901760, %v853_v56  ;;  %11876 = vst [vmem:[#allocation86_spill] sm:$0xff] %v6780_v36  ;;  %v871_v56 = vsub.f32 %v6747_v47, %v11877_v60  ;;  %v866_v51 = vand.u32 4294901760, %v865_v30  ;;  %v11096_v50 = vand.u32 4294901760, %v6780_v36  ;;  %v6802_v60 = vld [vmem:[#allocation2 + $0x448] sm:$0xff] }
  0x82   : > { %11878 = vst [vmem:[#allocation87_spill] sm:$0xff] %v6789_v43  ;;  %11879 = vst [vmem:[#allocation88_spill] sm:$0xff] %v6797_v28  ;;  %v11880_v27 = vand.u32 4294901760, %v6767_v46  ;;  %566 = vmatprep.subr.mxu0 %v6789_v43  ;;  %v6810_v30 = vsub.f32 %v6657_v62, %v6688_v49  ;;  %v6813_v34 = vand.u32 4294901760, %v6782_v7  ;;  %v6827_v62 = vld [vmem:[#allocation2 + $0x440] sm:$0xff] }
  0x83   : > { %855 = vmatprep.subr.mxu1 %v854_v13  ;;  %v872_v61 = vand.u32 4294901760, %v871_v56  ;;  %v883_v14 = vsub.f32 %v6780_v36, %v11096_v50  ;;  %568 = vmatpush2.msra.mxu0 %v6800_v37  ;;  %v6825_v56 = vand.u32 4294901760, %v6791_v44  ;;  %v6833_v50 = vsub.f32 %v6679_v38, %v6713_v2  ;;  %v6861_v2 = vld [vmem:[#allocation2 + $0x400] sm:$0xff] }
  0x84   : > { %861 = vmatpush2.msra.mxu1 %v860_v29  ;;  %v877_v13 = vsub.f32 %v6767_v46, %v11880_v27  ;;  %11881 = vst [vmem:[#allocation89_spill] sm:$0xff] %v6810_v30  ;;  %v6822_v27 = vsub.f32 %v6670_v12, %v6701_v32  ;;  %570 = vmatprep.subr.mxu0 %v6813_v34  ;;  %v6836_v29 = vand.u32 4294901760, %v6802_v60  ;;  %v6838_v12 = vld [vmem:[#allocation2 + $0x408] sm:$0xff]  ;;  %v11885_v36 = vand.u32 4294901760, %v6797_v28 }
  0x85   : > { %867 = vmatprep.subr.mxu1 %v866_v51  ;;  %11882 = vst [vmem:[#allocation90_spill] sm:$0xff] %v6825_v56  ;;  %v11107_v51 = vand.u32 4294901760, %v6810_v30  ;;  %11883 = vst [vmem:[#allocation91_spill] sm:$0xff] %v6833_v50  ;;  %v884_v32 = vand.u32 4294901760, %v883_v14  ;;  %572 = vmatpush2.msra.mxu0 %v6825_v56  ;;  %v6868_v14 = vand.u32 4294901760, %v6838_v12  ;;  %v11889_v47 = vand.u32 4294901760, %v6833_v50 }
  0x86   : > { %873 = vmatpush2.msra.mxu1 %v872_v61  ;;  %v878_v49 = vand.u32 4294901760, %v877_v13  ;;  %11884 = vst [vmem:[#allocation92_spill] sm:$0xff] %v6836_v29  ;;  %v889_v46 = vsub.f32 %v6797_v28, %v11885_v36  ;;  %v6847_v13 = vsub.f32 %v6690_v52, %v6724_v39  ;;  %574 = vmatprep.subr.mxu0 %v6836_v29  ;;  %v6855_v36 = vand.u32 4294901760, %v6827_v62 }
  0x87   : > { %v895_v38 = vsub.f32 %v6810_v30, %v11107_v51  ;;  %v6859_v61 = vsub.f32 %v6715_v33, %v6743_v41  ;;  %v193_v30 = vld [vmem:[%s6100_s16] sm:$0xff]  ;;  %v907_v33 = vsub.f32 %v6833_v50, %v11889_v47  ;;  %v6889_v47 = vsub.f32 %v6749_v20, %v6776_v21 }
  0x88   : > { %11886 = vst [vmem:[#allocation93_spill] sm:$0xff] %v6847_v13  ;;  %879 = vmatprep.subr.mxu1 %v878_v49  ;;  %11887 = vst [vmem:[#allocation94_spill] sm:$0xff] %v6855_v36  ;;  %v890_v52 = vand.u32 4294901760, %v889_v46  ;;  %v11888_v49 = vand.u32 4294901760, %v6822_v27  ;;  %v11118_v51 = vand.u32 4294901760, %v6847_v13  ;;  %576 = vmatpush2.msra.mxu0 %v6855_v36  ;;  %v6878_v46 = vsub.f32 %v6726_v19, %v6756_v26 }
  0x89   : > { %885 = vmatpush2.msra.mxu1 %v884_v32  ;;  %v896_v28 = vand.u32 4294901760, %v895_v38  ;;  %578 = vmatprep.subr.mxu0 %v6868_v14  ;;  %v6885_v38 = vand.u32 4294901760, %v6861_v2  ;;  %v908_v32 = vand.u32 4294901760, %v907_v33  ;;  %v11890_v19 = vand.u32 4294901760, %v6859_v61 }
  0x8a   : > { %v901_v39 = vsub.f32 %v6822_v27, %v11888_v49  ;;  %891 = vmatprep.subr.mxu1 %v890_v52  ;;  %v913_v41 = vsub.f32 %v6847_v13, %v11118_v51  ;;  %v451_v26 = vcombine.high %v193_v30, %v193_v30  ;;  %v11125_v13 = vand.u32 4294901760, %v6889_v47 }
  0x8b   : > { %897 = vmatpush2.msra.mxu1 %v896_v28  ;;  %v919_v52 = vsub.f32 %v6859_v61, %v11890_v19  ;;  %580 = vmatpush2.msra.mxu0 %v6885_v38  ;;  %v6897_v50 = vand.u32 4294901760, %v193_v30  ;;  %v6901_v20 = vsub.f32 %v6758_v1, %v6789_v43 }
  0x8c   : > { %v902_v49 = vand.u32 4294901760, %v901_v39  ;;  %v11123_v39 = vand.u32 4294901760, %v6878_v46  ;;  %v914_v51 = vand.u32 4294901760, %v913_v41  ;;  %v6906_v19 = vand.u32 4294901760, %v451_v26  ;;  %993 = vmatprep.subr.mxu0 %v6126_v18 }
  0x8d   : > { %11891 = vst [vmem:[#allocation95_spill] sm:$0xff] %v6897_v50  ;;  %v920_v28 = vand.u32 4294901760, %v919_v52  ;;  %v6911_v41 = vsub.f32 %v6769_v53, %v6800_v37  ;;  %v931_v1 = vsub.f32 %v6889_v47, %v11125_v13  ;;  %v6922_v52 = vsub.f32 %v6782_v7, %v6813_v34 }
  0x8e   : > { %903 = vmatprep.subr.mxu1 %v902_v49  ;;  %v925_v33 = vsub.f32 %v6878_v46, %v11123_v39  ;;  %11892 = vst [vmem:[#allocation96_spill] sm:$0xff] %v6906_v19  ;;  %v6918_v49 = vsub.f32 %v193_v30, %v6897_v50  ;;  %v6925_v18 = vsub.f32 %v451_v26, %v6906_v19 }
  0x8f   : > { %909 = vmatpush2.msra.mxu1 %v908_v32  ;;  %v11126_v32 = vand.u32 4294901760, %v6901_v20  ;;  %v11131_v53 = vand.u32 4294901760, %v6911_v41  ;;  %983 = vmatprep.mubr.f32.mxu1 %v6906_v19  ;;  %v932_v13 = vand.u32 4294901760, %v931_v1  ;;  %v6949_v1 = vsub.f32 %v6802_v60, %v6836_v29 }
  0x90   : > { %915 = vmatprep.subr.mxu1 %v914_v51  ;;  %11893 = vst [vmem:[#allocation97_spill] sm:$0xff] %v6918_v49  ;;  %v926_v39 = vand.u32 4294901760, %v925_v33  ;;  %11894 = vst [vmem:[#allocation98_spill] sm:$0xff] %v6925_v18  ;;  %v6930_v51 = vsub.f32 %v6791_v44, %v6825_v56  ;;  %v6937_v7 = vand.u32 4294901760, %v6918_v49  ;;  %v6941_v26 = vand.u32 4294901760, %v6925_v18 }
  0x91   : > { %921 = vmatpush2.msra.mxu1 %v920_v28  ;;  %v937_v30 = vsub.f32 %v6901_v20, %v11126_v32  ;;  %v11136_v28 = vand.u32 4294901760, %v6922_v52  ;;  %v943_v44 = vsub.f32 %v6911_v41, %v11131_v53  ;;  %v6958_v56 = vsub.f32 %v6827_v62, %v6855_v36 }
  0x92   : > { %11895 = vst [vmem:[#allocation99_spill] sm:$0xff] %v6937_v7  ;;  %927 = vmatprep.subr.mxu1 %v926_v39  ;;  %11896 = vst [vmem:[#allocation100_spill] sm:$0xff] %v6941_v26  ;;  %v590_v19 = vsub.f32 %v6918_v49, %v6937_v7  ;;  %v584_v53 = vsub.f32 %v6925_v18, %v6941_v26  ;;  %v11897_v60 = vand.u32 4294901760, %v6930_v51 }
  0x93   : > { %933 = vmatpush2.msra.mxu1 %v932_v13  ;;  %v938_v32 = vand.u32 4294901760, %v937_v30  ;;  %v949_v39 = vsub.f32 %v6922_v52, %v11136_v28  ;;  %v944_v33 = vand.u32 4294901760, %v943_v44  ;;  %v11142_v30 = vand.u32 4294901760, %v6949_v1 }
  0x94   : > { %v955_v13 = vsub.f32 %v6930_v51, %v11897_v60  ;;  %v6966_v7 = vand.u32 4294901760, %v590_v19  ;;  %v11141_v28 = vand.u32 4294901760, %v6958_v56  ;;  %v6971_v62 = vsub.f32 %v6838_v12, %v6868_v14 }
  0x95   : > { %939 = vmatprep.subr.mxu1 %v938_v32  ;;  %v950_v29 = vand.u32 4294901760, %v949_v39  ;;  %v6973_v36 = vand.u32 4294901760, %v584_v53  ;;  %v961_v60 = vsub.f32 %v6949_v1, %v11142_v30  ;;  %v6980_v32 = vsub.f32 %v6861_v2, %v6885_v38  ;;  %v11912_v30 = vld [vmem:[#allocation17_spill] sm:$0xff] }
  0x96   : > { %11898 = vst [vmem:[#allocation101_spill] sm:$0xff] %v6966_v7  ;;  %945 = vmatpush2.msra.mxu1 %v944_v33  ;;  %v956_v44 = vand.u32 4294901760, %v955_v13  ;;  %v967_v19 = vsub.f32 %v6958_v56, %v11141_v28  ;;  %v11140_v12 = vand.u32 4294901760, %v6971_v62  ;;  %v11911_v28 = vld [vmem:[#allocation38_spill] sm:$0xff] }
  0x97   : > { %11899 = vst [vmem:[#allocation102_spill] sm:$0xff] %v6973_v36  ;;  %11900 = vst [vmem:[#allocation103_spill] sm:$0xff] %v6980_v32  ;;  %951 = vmatprep.subr.mxu1 %v950_v29  ;;  %586 = vmatprep.mubr.f32.mxu0 %v6973_v36  ;;  %v962_v53 = vand.u32 4294901760, %v961_v60  ;;  %v11139_v33 = vand.u32 4294901760, %v6980_v32  ;;  %v11901_v60 = vld [vmem:[#allocation28_spill] sm:$0xff]  ;;  %v11915_v36 = vld [vmem:[#allocation42_spill] sm:$0xff] }
  0x98   : > { %957 = vmatpush2.msra.mxu1 %v956_v44  ;;  %592 = vmatmul.mubr.f32.vlgmr.msra.gmra.mxu0 %v6966_v7  ;;  %v968_v39 = vand.u32 4294901760, %v967_v19  ;;  %v973_v2 = vsub.f32 %v6971_v62, %v11140_v12  ;;  %v11902_v19 = vld [vmem:[#allocation12_spill] sm:$0xff]  ;;  %v11914_v7 = vld [vmem:[#allocation18_spill] sm:$0xff] }
  0x99   : > { %996 = vmatpush1.msra.mxu0 %v6139_v23  ;;  %963 = vmatprep.subr.mxu1 %v962_v53  ;;  %v979_v29 = vsub.f32 %v6980_v32, %v11139_v33  ;;  %v11903_v53 = vld [vmem:[#allocation30_spill] sm:$0xff]  ;;  %v11909_v33 = vld [vmem:[#allocation36_spill] sm:$0xff] }
  0x9a   : > { %999 = vmatprep.subr.mxu0 %v6145_v25  ;;  %969 = vmatpush2.msra.mxu1 %v968_v39  ;;  %v974_v13 = vand.u32 4294901760, %v973_v2  ;;  %v11904_v39 = vld [vmem:[#allocation13_spill] sm:$0xff]  ;;  %v11905_v2 = vld [vmem:[#allocation32_spill] sm:$0xff] }
  0x9b   : > { %1002 = vmatpush1.msra.mxu0 %v6159_v31  ;;  %v980_v44 = vand.u32 4294901760, %v979_v29  ;;  %1185 = vmatprep.mubr.f32.mxu0 %v6925_v18  ;;  %v11906_v29 = vld [vmem:[#allocation14_spill] sm:$0xff]  ;;  %v11910_v12 = vld [vmem:[#allocation16_spill] sm:$0xff] }
  0x9c   : > { %1005 = vmatprep.subr.mxu0 %v6168_v35  ;;  %975 = vmatprep.subr.mxu1 %v974_v13  ;;  %v11907_v13 = vld [vmem:[#allocation34_spill] sm:$0xff]  ;;  %v11913_v18 = vld [vmem:[#allocation40_spill] sm:$0xff] }
  0x9d   : > { %1008 = vmatpush1.msra.mxu0 %v6181_v40  ;;  %981 = vmatpush2.msra.mxu1 %v980_v44  ;;  %v11908_v44 = vld [vmem:[#allocation15_spill] sm:$0xff] }
  0x9e   : > { %1011 = vmatprep.subr.mxu0 %v6195_v45  ;;  %985 = vmatmul.mubr.f32.vlgmr.msra.gmra.mxu1 %v6897_v50  ;;  %v11916_v50 = vld [vmem:[#allocation19_spill] sm:$0xff] }
  0x9f   : > { %1014 = vmatpush1.msra.mxu0 %v6221_v59  ;;  %1195 = vmatprep.subr.mxu1 %v6106_v3 }
  0xa0   : > { %1017 = vmatprep.subr.mxu0 %v6233_v0  ;;  %1197 = vmatpush1.msra.mxu1 %v6108_v4 }
  0xa1   : > { %1020 = vmatpush1.msra.mxu0 %v6244_v8  ;;  %1199 = vmatprep.subr.mxu1 %v6110_v5 }
  0xa2   : > { %1023 = vmatprep.subr.mxu0 %v6255_v42  ;;  %1201 = vmatpush1.msra.mxu1 %v6112_v9 }
  0xa3   : > { %1026 = vmatpush1.msra.mxu0 %v6267_v48  ;;  %1203 = vmatprep.subr.mxu1 %v6114_v10 }
  0xa4   : > { %1029 = vmatprep.subr.mxu0 %v6281_v57  ;;  %1205 = vmatpush1.msra.mxu1 %v6116_v11 }
  0xa5   : > { %1032 = vmatpush1.msra.mxu0 %v6293_v6  ;;  %1207 = vmatprep.subr.mxu1 %v6119_v15 }
  0xa6   : > { %1035 = vmatprep.subr.mxu0 %v6314_v54  ;;  %1209 = vmatpush1.msra.mxu1 %v6121_v16 }
  0xa7   : > { %1038 = vmatpush1.msra.mxu0 %v6327_v63  ;;  %1211 = vmatprep.subr.mxu1 %v6123_v17 }
  0xa8   : > { %1041 = vmatprep.subr.mxu0 %v6345_v55  ;;  %1213 = vmatpush1.msra.mxu1 %v6136_v22 }
  0xa9   : > { %1044 = vmatpush1.msra.mxu0 %v6358_v58  ;;  %1215 = vmatprep.subr.mxu1 %v6142_v24 }
  0xaa   : > { %1047 = vmatprep.subr.mxu0 %v11901_v60  ;;  %1217 = vmatpush1.msra.mxu1 %v11902_v19 }
  0xab   : > { %1050 = vmatpush1.msra.mxu0 %v11903_v53  ;;  %1219 = vmatprep.subr.mxu1 %v11904_v39 }
  0xac   : > { %1053 = vmatprep.subr.mxu0 %v11905_v2  ;;  %1221 = vmatpush1.msra.mxu1 %v11906_v29  ;;  %v11917_v29 = vld [vmem:[#allocation44_spill] sm:$0xff] }
  0xad   : > { %1056 = vmatpush1.msra.mxu0 %v11907_v13  ;;  %1223 = vmatprep.subr.mxu1 %v11908_v44  ;;  %v11918_v13 = vld [vmem:[#allocation20_spill] sm:$0xff]  ;;  %v11919_v44 = vld [vmem:[#allocation46_spill] sm:$0xff] }
  0xae   : > { %1059 = vmatprep.subr.mxu0 %v11909_v33  ;;  %1225 = vmatpush1.msra.mxu1 %v11910_v12  ;;  %v11920_v33 = vld [vmem:[#allocation21_spill] sm:$0xff]  ;;  %v11921_v12 = vld [vmem:[#allocation48_spill] sm:$0xff] }
  0xaf   : > { %1062 = vmatpush1.msra.mxu0 %v11911_v28  ;;  %1227 = vmatprep.subr.mxu1 %v11912_v30  ;;  %v11922_v28 = vld [vmem:[#allocation22_spill] sm:$0xff] }
  0xb0   : > { %1065 = vmatprep.subr.mxu0 %v11913_v18  ;;  %1229 = vmatpush1.msra.mxu1 %v11914_v7  ;;  %v11923_v30 = vld [vmem:[#allocation50_spill] sm:$0xff]  ;;  %v11924_v18 = vld [vmem:[#allocation23_spill] sm:$0xff]  ;;  %v11925_v7 = vld [vmem:[#allocation52_spill] sm:$0xff] }
  0xb1   : > { %1068 = vmatpush1.msra.mxu0 %v11915_v36  ;;  %1231 = vmatprep.subr.mxu1 %v11916_v50  ;;  %v11926_v36 = vld [vmem:[#allocation24_spill] sm:$0xff]  ;;  %v11927_v50 = vld [vmem:[#allocation54_spill] sm:$0xff] }
  0xb2   : > { %1071 = vmatprep.subr.mxu0 %v11917_v29  ;;  %1233 = vmatpush1.msra.mxu1 %v11918_v13  ;;  %v11928_v29 = vld [vmem:[#allocation25_spill] sm:$0xff]  ;;  %v11929_v13 = vld [vmem:[#allocation56_spill] sm:$0xff] }
  0xb3   : > { %1074 = vmatpush1.msra.mxu0 %v11919_v44  ;;  %1235 = vmatprep.subr.mxu1 %v11920_v33  ;;  %v11930_v44 = vld [vmem:[#allocation26_spill] sm:$0xff] }
  0xb4   : > { %1077 = vmatprep.subr.mxu0 %v11921_v12  ;;  %1237 = vmatpush1.msra.mxu1 %v11922_v28  ;;  %v11931_v33 = vld [vmem:[#allocation58_spill] sm:$0xff]  ;;  %v11932_v12 = vld [vmem:[#allocation27_spill] sm:$0xff]  ;;  %v11933_v28 = vld [vmem:[#allocation60_spill] sm:$0xff] }
  0xb5   : > { %1080 = vmatpush1.msra.mxu0 %v11923_v30  ;;  %1239 = vmatprep.subr.mxu1 %v11924_v18  ;;  %v11934_v30 = vld [vmem:[#allocation29_spill] sm:$0xff]  ;;  %v11935_v18 = vld [vmem:[#allocation62_spill] sm:$0xff] }
  0xb6   : > { %1083 = vmatprep.subr.mxu0 %v11925_v7  ;;  %1241 = vmatpush1.msra.mxu1 %v11926_v36  ;;  %v11936_v7 = vld [vmem:[#allocation31_spill] sm:$0xff]  ;;  %v11937_v36 = vld [vmem:[#allocation64_spill] sm:$0xff] }
  0xb7   : > { %1086 = vmatpush1.msra.mxu0 %v11927_v50  ;;  %1243 = vmatprep.subr.mxu1 %v11928_v29  ;;  %v11938_v50 = vld [vmem:[#allocation33_spill] sm:$0xff]  ;;  %v11939_v29 = vld [vmem:[#allocation66_spill] sm:$0xff] }
  0xb8   : > { %1089 = vmatprep.subr.mxu0 %v11929_v13  ;;  %1245 = vmatpush1.msra.mxu1 %v11930_v44  ;;  %v11940_v13 = vld [vmem:[#allocation35_spill] sm:$0xff]  ;;  %v11941_v44 = vld [vmem:[#allocation68_spill] sm:$0xff] }
  0xb9   : > { %1092 = vmatpush2.msra.mxu0 %v11931_v33  ;;  %1247 = vmatprep.subr.mxu1 %v11932_v12  ;;  %v11942_v33 = vld [vmem:[#allocation37_spill] sm:$0xff]  ;;  %v11943_v12 = vld [vmem:[#allocation70_spill] sm:$0xff] }
  0xba   : > { %1095 = vmatprep.subr.mxu0 %v11933_v28  ;;  %1249 = vmatpush1.msra.mxu1 %v11934_v30  ;;  %v11944_v28 = vld [vmem:[#allocation39_spill] sm:$0xff]  ;;  %v11945_v30 = vld [vmem:[#allocation72_spill] sm:$0xff] }
  0xbb   : > { %1098 = vmatpush2.msra.mxu0 %v11935_v18  ;;  %1251 = vmatprep.subr.mxu1 %v11936_v7  ;;  %v11946_v18 = vld [vmem:[#allocation41_spill] sm:$0xff]  ;;  %v11947_v7 = vld [vmem:[#allocation74_spill] sm:$0xff] }
  0xbc   : > { %1101 = vmatprep.subr.mxu0 %v11937_v36  ;;  %1253 = vmatpush1.msra.mxu1 %v11938_v50  ;;  %v11948_v36 = vld [vmem:[#allocation43_spill] sm:$0xff]  ;;  %v11949_v50 = vld [vmem:[#allocation76_spill] sm:$0xff] }
  0xbd   : > { %1104 = vmatpush2.msra.mxu0 %v11939_v29  ;;  %1255 = vmatprep.subr.mxu1 %v11940_v13  ;;  %v11950_v29 = vld [vmem:[#allocation45_spill] sm:$0xff]  ;;  %v11951_v13 = vld [vmem:[#allocation78_spill] sm:$0xff] }
  0xbe   : > { %1107 = vmatprep.subr.mxu0 %v11941_v44  ;;  %1257 = vmatpush1.msra.mxu1 %v11942_v33  ;;  %v11952_v44 = vld [vmem:[#allocation47_spill] sm:$0xff]  ;;  %v11953_v33 = vld [vmem:[#allocation80_spill] sm:$0xff] }
  0xbf   : > { %1110 = vmatpush2.msra.mxu0 %v11943_v12  ;;  %1259 = vmatprep.subr.mxu1 %v11944_v28  ;;  %v11954_v12 = vld [vmem:[#allocation49_spill] sm:$0xff]  ;;  %v11955_v28 = vld [vmem:[#allocation82_spill] sm:$0xff] }
  0xc0   : > { %1113 = vmatprep.subr.mxu0 %v11945_v30  ;;  %1261 = vmatpush2.msra.mxu1 %v11946_v18  ;;  %v11956_v30 = vld [vmem:[#allocation51_spill] sm:$0xff]  ;;  %v11957_v18 = vld [vmem:[#allocation84_spill] sm:$0xff] }
  0xc1   : > { %1116 = vmatpush2.msra.mxu0 %v11947_v7  ;;  %1263 = vmatprep.subr.mxu1 %v11948_v36  ;;  %v11958_v7 = vld [vmem:[#allocation53_spill] sm:$0xff]  ;;  %v11959_v36 = vld [vmem:[#allocation86_spill] sm:$0xff] }
  0xc2   : > { %1119 = vmatprep.subr.mxu0 %v11949_v50  ;;  %1265 = vmatpush2.msra.mxu1 %v11950_v29  ;;  %v11960_v50 = vld [vmem:[#allocation55_spill] sm:$0xff]  ;;  %v11961_v29 = vld [vmem:[#allocation88_spill] sm:$0xff] }
  0xc3   : > { %1122 = vmatpush2.msra.mxu0 %v11951_v13  ;;  %1267 = vmatprep.subr.mxu1 %v11952_v44  ;;  %v11962_v13 = vld [vmem:[#allocation57_spill] sm:$0xff] }
  0xc4   : > { %1125 = vmatprep.subr.mxu0 %v11953_v33  ;;  %1269 = vmatpush2.msra.mxu1 %v11954_v12  ;;  %v11963_v44 = vld [vmem:[#allocation89_spill] sm:$0xff]  ;;  %v11964_v33 = vld [vmem:[#allocation59_spill] sm:$0xff] }
  0xc5   : > { %1128 = vmatpush2.msra.mxu0 %v11955_v28  ;;  %1271 = vmatprep.subr.mxu1 %v11956_v30  ;;  %v11965_v12 = vld [vmem:[#allocation61_spill] sm:$0xff]  ;;  %v11966_v30 = vld [vmem:[#allocation91_spill] sm:$0xff] }
  0xc6   : > { %1131 = vmatprep.subr.mxu0 %v11957_v18  ;;  %1273 = vmatpush2.msra.mxu1 %v11958_v7  ;;  %v11967_v18 = vld [vmem:[#allocation63_spill] sm:$0xff]  ;;  %v11968_v7 = vld [vmem:[#allocation93_spill] sm:$0xff] }
  0xc7   : > { %1134 = vmatpush2.msra.mxu0 %v11959_v36  ;;  %1275 = vmatprep.subr.mxu1 %v11960_v50  ;;  %v11969_v36 = vld [vmem:[#allocation65_spill] sm:$0xff]  ;;  %v11970_v50 = vld [vmem:[#allocation67_spill] sm:$0xff] }
  0xc8   : > { %1137 = vmatprep.subr.mxu0 %v11961_v29  ;;  %1277 = vmatpush2.msra.mxu1 %v11962_v13  ;;  %v11971_v13 = vld [vmem:[#allocation69_spill] sm:$0xff] }
  0xc9   : > { %1140 = vmatpush2.msra.mxu0 %v11963_v44  ;;  %1279 = vmatprep.subr.mxu1 %v11964_v33  ;;  %v11972_v33 = vld [vmem:[#allocation71_spill] sm:$0xff] }
  0xca   : > { %1143 = vmatprep.subr.mxu0 %v6822_v27  ;;  %1281 = vmatpush2.msra.mxu1 %v11965_v12  ;;  %v11973_v12 = vld [vmem:[#allocation73_spill] sm:$0xff] }
  0xcb   : > { %1146 = vmatpush2.msra.mxu0 %v11966_v30  ;;  %1283 = vmatprep.subr.mxu1 %v11967_v18  ;;  %v11974_v18 = vld [vmem:[#allocation75_spill] sm:$0xff] }
  0xcc   : > { %1149 = vmatprep.subr.mxu0 %v11968_v7  ;;  %1285 = vmatpush2.msra.mxu1 %v11969_v36  ;;  %v11975_v36 = vld [vmem:[#allocation77_spill] sm:$0xff] }
  0xcd   : > { %1152 = vmatpush2.msra.mxu0 %v6859_v61  ;;  %1287 = vmatprep.subr.mxu1 %v11970_v50  ;;  %v11976_v50 = vld [vmem:[#allocation79_spill] sm:$0xff] }
  0xce   : > { %1155 = vmatprep.subr.mxu0 %v6878_v46  ;;  %1289 = vmatpush2.msra.mxu1 %v11971_v13  ;;  %v11977_v13 = vld [vmem:[#allocation81_spill] sm:$0xff] }
  0xcf   : > { %1158 = vmatpush2.msra.mxu0 %v6889_v47  ;;  %1291 = vmatprep.subr.mxu1 %v11972_v33  ;;  %v11978_v33 = vld [vmem:[#allocation83_spill] sm:$0xff] }
  0xd0   : > { %1161 = vmatprep.subr.mxu0 %v6901_v20  ;;  %1293 = vmatpush2.msra.mxu1 %v11973_v12 }
  0xd1   : > { %1164 = vmatpush2.msra.mxu0 %v6911_v41  ;;  %1295 = vmatprep.subr.mxu1 %v11974_v18 }
  0xd2   : > { %1167 = vmatprep.subr.mxu0 %v6922_v52  ;;  %1297 = vmatpush2.msra.mxu1 %v11975_v36  ;;  %v11979_v36 = vld [vmem:[#allocation11_spill] sm:$0xff] }
  0xd3   : > { %1170 = vmatpush2.msra.mxu0 %v6930_v51  ;;  %1299 = vmatprep.subr.mxu1 %v11976_v50  ;;  %v11980_v50 = vand.u32 4294901760, %v11979_v36  ;;  %v11986_v36 = vand.u32 4294901760, %v6168_v35  ;;  %v11992_v35 = vand.u32 4294901760, %v6233_v0  ;;  %v11996_v0 = vand.u32 4294901760, %v6281_v57 }
  0xd4   : > { %1173 = vmatprep.subr.mxu0 %v6949_v1  ;;  %1301 = vmatpush2.msra.mxu1 %v11977_v13  ;;  %v11981_v13 = vand.u32 4294901760, %v6139_v23  ;;  %v11988_v23 = vand.u32 4294901760, %v6181_v40  ;;  %v11993_v40 = vand.u32 4294901760, %v6244_v8 }
  0xd5   : > { %1176 = vmatpush2.msra.mxu0 %v6958_v56  ;;  %1303 = vmatprep.subr.mxu1 %v11978_v33  ;;  %v11982_v33 = vand.u32 4294901760, %v6145_v25  ;;  %v11989_v25 = vand.u32 4294901760, %v6195_v45  ;;  %v11994_v45 = vand.u32 4294901760, %v6255_v42  ;;  %v12007_v42 = vld [vmem:[#allocation14_spill] sm:$0xff] }
  0xd6   : > { %1179 = vmatprep.subr.mxu0 %v6971_v62  ;;  %1305 = vmatpush2.msra.mxu1 %v6776_v21  ;;  %v11983_v21 = vld [vmem:[#allocation90_spill] sm:$0xff] }
  0xd7   : > { %1182 = vmatpush2.msra.mxu0 %v6980_v32  ;;  %1307 = vmatprep.subr.mxu1 %v6789_v43  ;;  %v11984_v32 = vand.u32 4294901760, %v6159_v31  ;;  %v11985_v43 = vld [vmem:[#allocation92_spill] sm:$0xff]  ;;  %v11990_v31 = vand.u32 4294901760, %v6221_v59  ;;  %v11995_v59 = vand.u32 4294901760, %v6267_v48 }
  0xd8   : > { %1188 = vmatmul.mubr.f32.vlgmr.msra.gmra.mxu0 %v6918_v49  ;;  %1338 = vmatprep.subr.mxu0 %v11980_v50  ;;  %v11987_v50 = vld [vmem:[#allocation94_spill] sm:$0xff]  ;;  %v12141_v49 = vld [vmem:[#allocation96_spill] sm:$0xff] }
  0xd9   : > { %1309 = vmatpush2.msra.mxu1 %v6800_v37  ;;  %1342 = vmatpush1.msra.mxu0 %v11981_v13  ;;  %v12023_v13 = vld [vmem:[#allocation46_spill] sm:$0xff] }
  0xda   : > { %1311 = vmatprep.subr.mxu1 %v6813_v34  ;;  %1346 = vmatprep.subr.mxu0 %v11982_v33  ;;  %v12017_v33 = vld [vmem:[#allocation42_spill] sm:$0xff] }
  0xdb   : > { %1313 = vmatpush2.msra.mxu1 %v11983_v21  ;;  %1350 = vmatpush1.msra.mxu0 %v11984_v32  ;;  %v11991_v32 = vld [vmem:[#allocation99_spill] sm:$0xff] }
  0xdc   : > { %1315 = vmatprep.subr.mxu1 %v11985_v43  ;;  %1354 = vmatprep.subr.mxu0 %v11986_v36  ;;  %v12024_v36 = vand.u32 4294901760, %v12023_v13  ;;  %v317_v13 = vld [vmem:[#allocation2 + $0x3d8] sm:$0xff] }
  0xdd   : > { %1317 = vmatpush2.msra.mxu1 %v11987_v50  ;;  %1358 = vmatpush1.msra.mxu0 %v11988_v23  ;;  %v12025_v23 = vld [vmem:[#allocation20_spill] sm:$0xff] }
  0xde   : > { %1319 = vmatprep.subr.mxu1 %v6868_v14  ;;  %1362 = vmatprep.subr.mxu0 %v11989_v25  ;;  %v12026_v25 = vld [vmem:[#allocation48_spill] sm:$0xff] }
  0xdf   : > { %1321 = vmatpush2.msra.mxu1 %v6885_v38  ;;  %1325 = vmatprep.mubr.f32.mxu1 %v6941_v26 }
  0xe0   : > { %1366 = vmatpush1.msra.mxu0 %v11990_v31  ;;  %1329 = vmatmul.mubr.f32.vlgmr.msra.gmra.mxu1 %v11991_v32  ;;  %v12027_v31 = vand.u32 4294901760, %v12026_v25  ;;  %v12139_v32 = vld [vmem:[#allocation103_spill] sm:$0xff] }
  0xe1   : > { %1370 = vmatprep.subr.mxu0 %v11992_v35  ;;  %1601 = vmatprep.subr.mxu1 %v6106_v3  ;;  %v11997_v3 = vand.u32 4294901760, %v6293_v6  ;;  %v12014_v6 = vld [vmem:[#allocation40_spill] sm:$0xff]  ;;  %v12028_v35 = vld [vmem:[#allocation21_spill] sm:$0xff]  ;;  %v12140_v26 = vand.u32 4294901760, %v12139_v32  ;;  %v12147_v32 = vld [vmem:[#allocation95_spill] sm:$0xff] }
  0xe2   : > { %1374 = vmatpush1.msra.mxu0 %v11993_v40  ;;  %1603 = vmatpush1.msra.mxu1 %v6108_v4  ;;  %v11998_v4 = vand.u32 4294901760, %v6314_v54  ;;  %v12010_v54 = vld [vmem:[#allocation15_spill] sm:$0xff]  ;;  %v12029_v40 = vld [vmem:[#allocation50_spill] sm:$0xff] }
  0xe3   : > { %1378 = vmatprep.subr.mxu0 %v11994_v45  ;;  %1605 = vmatprep.subr.mxu1 %v6110_v5  ;;  %v11999_v5 = vand.u32 4294901760, %v6327_v63  ;;  %v12013_v63 = vld [vmem:[#allocation16_spill] sm:$0xff]  ;;  %v12030_v45 = vand.u32 4294901760, %v12029_v40 }
  0xe4   : > { %1382 = vmatpush1.msra.mxu0 %v11995_v59  ;;  %1607 = vmatpush1.msra.mxu1 %v6112_v9  ;;  %v12000_v9 = vand.u32 4294901760, %v6345_v55  ;;  %v12015_v55 = vand.u32 4294901760, %v12014_v6  ;;  %v12031_v59 = vld [vmem:[#allocation22_spill] sm:$0xff]  ;;  %v12050_v6 = vld [vmem:[#allocation64_spill] sm:$0xff] }
  0xe5   : > { %1386 = vmatprep.subr.mxu0 %v11996_v0  ;;  %1609 = vmatprep.subr.mxu1 %v6114_v10  ;;  %v12001_v10 = vand.u32 4294901760, %v6358_v58  ;;  %v12016_v58 = vld [vmem:[#allocation17_spill] sm:$0xff]  ;;  %v12032_v0 = vld [vmem:[#allocation52_spill] sm:$0xff] }
  0xe6   : > { %1390 = vmatpush1.msra.mxu0 %v11997_v3  ;;  %1611 = vmatpush1.msra.mxu1 %v6116_v11  ;;  %v12002_v11 = vand.u32 4294901760, %v11901_v60  ;;  %v12018_v60 = vand.u32 4294901760, %v12017_v33  ;;  %v12033_v3 = vand.u32 4294901760, %v12032_v0  ;;  %v12053_v33 = vld [vmem:[#allocation66_spill] sm:$0xff] }
  0xe7   : > { %1394 = vmatprep.subr.mxu0 %v11998_v4  ;;  %1613 = vmatprep.subr.mxu1 %v6119_v15  ;;  %v12003_v15 = vand.u32 4294901760, %v11903_v53  ;;  %v12020_v53 = vld [vmem:[#allocation44_spill] sm:$0xff]  ;;  %v12034_v4 = vld [vmem:[#allocation23_spill] sm:$0xff]  ;;  %v12065_v0 = vld [vmem:[#allocation74_spill] sm:$0xff] }
  0xe8   : > { %1398 = vmatpush1.msra.mxu0 %v11999_v5  ;;  %1615 = vmatpush1.msra.mxu1 %v6121_v16  ;;  %v12004_v16 = vand.u32 4294901760, %v11905_v2  ;;  %v12022_v2 = vld [vmem:[#allocation19_spill] sm:$0xff]  ;;  %v12035_v5 = vld [vmem:[#allocation54_spill] sm:$0xff] }
  0xe9   : > { %1402 = vmatprep.subr.mxu0 %v12000_v9  ;;  %1617 = vmatprep.subr.mxu1 %v6123_v17  ;;  %v12005_v17 = vld [vmem:[#allocation34_spill] sm:$0xff]  ;;  %v12036_v9 = vand.u32 4294901760, %v12035_v5  ;;  %v7245_v5 = vand.u32 4294901760, %v317_v13 }
  0xea   : > { %1406 = vmatpush1.msra.mxu0 %v12001_v10  ;;  %1619 = vmatpush1.msra.mxu1 %v6136_v22  ;;  %v12006_v8 = vand.u32 4294901760, %v12005_v17  ;;  %v12008_v22 = vld [vmem:[#allocation36_spill] sm:$0xff]  ;;  %v12041_v17 = vld [vmem:[#allocation58_spill] sm:$0xff] }
  0xeb   : > { %1410 = vmatprep.subr.mxu0 %v12002_v11  ;;  %1621 = vmatprep.subr.mxu1 %v6142_v24  ;;  %v12009_v48 = vand.u32 4294901760, %v12008_v22  ;;  %v12011_v24 = vld [vmem:[#allocation38_spill] sm:$0xff]  ;;  %v12037_v10 = vld [vmem:[#allocation24_spill] sm:$0xff] }
  0xec   : > { %1414 = vmatpush1.msra.mxu0 %v12003_v15  ;;  %1623 = vmatpush1.msra.mxu1 %v11902_v19  ;;  %v12012_v57 = vand.u32 4294901760, %v12011_v24  ;;  %v12019_v19 = vld [vmem:[#allocation18_spill] sm:$0xff]  ;;  %v12038_v11 = vld [vmem:[#allocation56_spill] sm:$0xff] }
  0xed   : > { %1418 = vmatprep.subr.mxu0 %v12004_v16  ;;  %1625 = vmatprep.subr.mxu1 %v11904_v39  ;;  %v12021_v39 = vand.u32 4294901760, %v12020_v53  ;;  %v12039_v15 = vand.u32 4294901760, %v12038_v11  ;;  %v12040_v16 = vld [vmem:[#allocation25_spill] sm:$0xff]  ;;  %v12044_v22 = vld [vmem:[#allocation60_spill] sm:$0xff]  ;;  %v12047_v24 = vld [vmem:[#allocation62_spill] sm:$0xff] }
  0xee   : > { %1422 = vmatpush1.msra.mxu0 %v12006_v8  ;;  %1627 = vmatpush1.msra.mxu1 %v12007_v42  ;;  %v12042_v8 = vand.u32 4294901760, %v12041_v17  ;;  %v12043_v42 = vld [vmem:[#allocation26_spill] sm:$0xff]  ;;  %v12056_v53 = vld [vmem:[#allocation68_spill] sm:$0xff] }
  0xef   : > { %1426 = vmatprep.subr.mxu0 %v12009_v48  ;;  %1629 = vmatprep.subr.mxu1 %v12010_v54  ;;  %v12045_v48 = vand.u32 4294901760, %v12044_v22  ;;  %v12046_v54 = vld [vmem:[#allocation27_spill] sm:$0xff]  ;;  %v12068_v11 = vld [vmem:[#allocation76_spill] sm:$0xff]  ;;  %v12071_v17 = vld [vmem:[#allocation78_spill] sm:$0xff] }
  0xf0   : > { %1430 = vmatpush1.msra.mxu0 %v12012_v57  ;;  %1631 = vmatpush1.msra.mxu1 %v12013_v63  ;;  %v12048_v57 = vand.u32 4294901760, %v12047_v24  ;;  %v12049_v63 = vld [vmem:[#allocation29_spill] sm:$0xff]  ;;  %v12075_v24 = vld [vmem:[#allocation80_spill] sm:$0xff] }
  0xf1   : > { %1434 = vmatprep.subr.mxu0 %v12015_v55  ;;  %1633 = vmatprep.subr.mxu1 %v12016_v58  ;;  %v12051_v55 = vand.u32 4294901760, %v12050_v6  ;;  %v12052_v58 = vld [vmem:[#allocation31_spill] sm:$0xff] }
  0xf2   : > { %1438 = vmatpush1.msra.mxu0 %v12018_v60  ;;  %1635 = vmatpush1.msra.mxu1 %v12019_v19  ;;  %v12054_v60 = vand.u32 4294901760, %v12053_v33  ;;  %v12055_v19 = vld [vmem:[#allocation33_spill] sm:$0xff] }
  0xf3   : > { %1442 = vmatprep.subr.mxu0 %v12021_v39  ;;  %1637 = vmatprep.subr.mxu1 %v12022_v2  ;;  %v12057_v39 = vand.u32 4294901760, %v12056_v53  ;;  %v12058_v2 = vld [vmem:[#allocation35_spill] sm:$0xff]  ;;  %v12081_v53 = vld [vmem:[#allocation84_spill] sm:$0xff] }
  0xf4   : > { %1446 = vmatpush1.msra.mxu0 %v12024_v36  ;;  %1639 = vmatpush1.msra.mxu1 %v12025_v23  ;;  %v316_v36 = vld [vmem:[#allocation2 + $0x3d0] sm:$0xff]  ;;  %v12059_v23 = vld [vmem:[#allocation70_spill] sm:$0xff] }
  0xf5   : > { %1450 = vmatprep.subr.mxu0 %v12027_v31  ;;  %1641 = vmatprep.subr.mxu1 %v12028_v35  ;;  %v12060_v25 = vand.u32 4294901760, %v12059_v23  ;;  %v12061_v31 = vld [vmem:[#allocation37_spill] sm:$0xff]  ;;  %v12062_v35 = vld [vmem:[#allocation72_spill] sm:$0xff] }
  0xf6   : > { %1454 = vmatpush1.msra.mxu0 %v12030_v45  ;;  %1643 = vmatpush1.msra.mxu1 %v12031_v59  ;;  %v12063_v40 = vand.u32 4294901760, %v12062_v35  ;;  %v12064_v45 = vld [vmem:[#allocation39_spill] sm:$0xff]  ;;  %v309_v59 = vld [vmem:[#allocation2 + $0x398] sm:$0xff] }
  0xf7   : > { %1458 = vmatprep.subr.mxu0 %v12033_v3  ;;  %1645 = vmatprep.subr.mxu1 %v12034_v4  ;;  %v12066_v3 = vand.u32 4294901760, %v12065_v0  ;;  %v12067_v4 = vld [vmem:[#allocation41_spill] sm:$0xff]  ;;  %v7255_v22 = vand.u32 4294901760, %v309_v59 }
  0xf8   : > { %1462 = vmatpush1.msra.mxu0 %v12036_v9  ;;  %1647 = vmatpush1.msra.mxu1 %v12037_v10  ;;  %v7247_v9 = vand.u32 4294901760, %v316_v36  ;;  %v308_v10 = vld [vmem:[#allocation2 + $0x390] sm:$0xff] }
  0xf9   : > { %1466 = vmatprep.subr.mxu0 %v12039_v15  ;;  %1649 = vmatprep.subr.mxu1 %v12040_v16  ;;  %v12069_v15 = vand.u32 4294901760, %v12068_v11  ;;  %v12070_v16 = vld [vmem:[#allocation43_spill] sm:$0xff]  ;;  %12074 = vst [vmem:[#allocation28_spill] sm:$0xff] %v7255_v22  ;;  %v7260_v6 = vand.u32 4294901760, %v308_v10 }
  0xfa   : > { %1470 = vmatpush2.msra.mxu0 %v12042_v8  ;;  %1651 = vmatpush1.msra.mxu1 %v12043_v42  ;;  %v12072_v8 = vand.u32 4294901760, %v12071_v17  ;;  %v12073_v42 = vld [vmem:[#allocation45_spill] sm:$0xff]  ;;  %v7266_v33 = vsub.f32 %v316_v36, %v7247_v9  ;;  %v7282_v36 = vsub.f32 %v309_v59, %v7255_v22  ;;  %v284_v11 = vld [vmem:[#allocation2 + $0x2d0] sm:$0xff] }
  0xfb   : > { %1474 = vmatprep.subr.mxu0 %v12045_v48  ;;  %1653 = vmatprep.subr.mxu1 %v12046_v54  ;;  %v301_v48 = vld [vmem:[#allocation2 + $0x358] sm:$0xff]  ;;  %v300_v54 = vld [vmem:[#allocation2 + $0x350] sm:$0xff]  ;;  %12078 = vst [vmem:[#allocation12_spill] sm:$0xff] %v7260_v6  ;;  %v7288_v0 = vsub.f32 %v308_v10, %v7260_v6 }
  0xfc   : > { %1478 = vmatpush2.msra.mxu0 %v12048_v57  ;;  %1655 = vmatpush1.msra.mxu1 %v12049_v63  ;;  %v12076_v57 = vand.u32 4294901760, %v12075_v24  ;;  %v12077_v63 = vld [vmem:[#allocation47_spill] sm:$0xff]  ;;  %v7274_v23 = vand.u32 4294901760, %v301_v48 }
  0xfd   : > { %1482 = vmatprep.subr.mxu0 %v12051_v55  ;;  %1657 = vmatprep.subr.mxu1 %v12052_v58  ;;  %v12079_v55 = vand.u32 4294901760, %v11955_v28  ;;  %v12080_v58 = vld [vmem:[#allocation49_spill] sm:$0xff]  ;;  %v292_v28 = vld [vmem:[#allocation2 + $0x310] sm:$0xff] }
  0xfe   : > { %1486 = vmatpush2.msra.mxu0 %v12054_v60  ;;  %1659 = vmatpush1.msra.mxu1 %v12055_v19  ;;  %v293_v60 = vld [vmem:[#allocation2 + $0x318] sm:$0xff]  ;;  %v7269_v19 = vsub.f32 %v317_v13, %v7245_v5  ;;  %12084 = vst [vmem:[#allocation30_spill] sm:$0xff] %v7274_v23  ;;  %v12089_v13 = vand.u32 4294901760, %v11961_v29  ;;  %v7295_v17 = vand.u32 4294901760, %v292_v28  ;;  %v11156_v29 = vand.u32 4294901760, %v7266_v33  ;;  %v12096_v10 = vld [vmem:[#allocation59_spill] sm:$0xff] }
  0xff   : > { %1490 = vmatprep.subr.mxu0 %v12057_v39  ;;  %1661 = vmatprep.subr.mxu1 %v12058_v2  ;;  %v12082_v39 = vand.u32 4294901760, %v12081_v53  ;;  %v12083_v2 = vld [vmem:[#allocation51_spill] sm:$0xff]  ;;  %v11155_v53 = vand.u32 4294901760, %v7282_v36 }
 0x100   : > { %1494 = vmatpush2.msra.mxu0 %v12060_v25  ;;  %1663 = vmatpush1.msra.mxu1 %v12061_v31  ;;  %v7276_v25 = vand.u32 4294901760, %v300_v54  ;;  %v12086_v31 = vld [vmem:[#allocation86_spill] sm:$0xff]  ;;  %12094 = vst [vmem:[#allocation82_spill] sm:$0xff] %v7295_v17  ;;  %v11158_v59 = vand.u32 4294901760, %v7269_v19  ;;  %v276_v24 = vld [vmem:[#allocation2 + $0x290] sm:$0xff] }
 0x101   : > { %1498 = vmatprep.subr.mxu0 %v12063_v40  ;;  %1665 = vmatprep.subr.mxu1 %v12064_v45  ;;  %v12087_v35 = vand.u32 4294901760, %v12086_v31  ;;  %v12088_v40 = vld [vmem:[#allocation53_spill] sm:$0xff]  ;;  %v12090_v45 = vld [vmem:[#allocation55_spill] sm:$0xff] }
 0x102   : > { %1502 = vmatpush2.msra.mxu0 %v12066_v3  ;;  %1667 = vmatpush2.msra.mxu1 %v12067_v4  ;;  %12085 = vst [vmem:[#allocation13_spill] sm:$0xff] %v7276_v25  ;;  %v7290_v3 = vand.u32 4294901760, %v293_v60  ;;  %v285_v4 = vld [vmem:[#allocation2 + $0x2d8] sm:$0xff]  ;;  %v12107_v31 = vld [vmem:[#allocation65_spill] sm:$0xff] }
 0x103   : > { %1506 = vmatprep.subr.mxu0 %v12069_v15  ;;  %1669 = vmatprep.subr.mxu1 %v12070_v16  ;;  %v12092_v15 = vand.u32 4294901760, %v11963_v44  ;;  %v12093_v16 = vld [vmem:[#allocation57_spill] sm:$0xff]  ;;  %v7306_v44 = vsub.f32 %v301_v48, %v7274_v23  ;;  %v11154_v48 = vand.u32 4294901760, %v7288_v0 }
 0x104   : > { %1510 = vmatpush2.msra.mxu0 %v12072_v8  ;;  %1671 = vmatpush2.msra.mxu1 %v12073_v42  ;;  %12091 = vst [vmem:[#allocation32_spill] sm:$0xff] %v7290_v3  ;;  %v12095_v8 = vand.u32 4294901760, %v6822_v27  ;;  %v7303_v42 = vsub.f32 %v300_v54, %v7276_v25  ;;  %v277_v27 = vld [vmem:[#allocation2 + $0x298] sm:$0xff]  ;;  %v12104_v54 = vld [vmem:[#allocation63_spill] sm:$0xff] }
 0x105   : > { %1514 = vmatprep.subr.mxu0 %v12076_v57  ;;  %1673 = vmatprep.subr.mxu1 %v12077_v63  ;;  %12098 = vst [vmem:[#allocation89_spill] sm:$0xff] %v7306_v44  ;;  %v12099_v57 = vand.u32 4294901760, %v11966_v30  ;;  %v12100_v63 = vld [vmem:[#allocation61_spill] sm:$0xff]  ;;  %v12106_v30 = vand.u32 4294901760, %v6859_v61  ;;  %v268_v61 = vld [vmem:[#allocation2 + $0x250] sm:$0xff] }
 0x106   : > { %1518 = vmatpush2.msra.mxu0 %v12079_v55  ;;  %1675 = vmatpush2.msra.mxu1 %v12080_v58  ;;  %12097 = vst [vmem:[#allocation88_spill] sm:$0xff] %v7303_v42  ;;  %v7311_v55 = vand.u32 4294901760, %v285_v4  ;;  %v7313_v58 = vand.u32 4294901760, %v284_v11 }
 0x107   : > { %1522 = vmatprep.subr.mxu0 %v12082_v39  ;;  %1677 = vmatprep.subr.mxu1 %v12083_v2  ;;  %v12103_v39 = vand.u32 4294901760, %v11968_v7  ;;  %v7321_v2 = vsub.f32 %v293_v60, %v7290_v3  ;;  %v7332_v7 = vsub.f32 %v7269_v19, %v11158_v59  ;;  %v7339_v60 = vand.u32 4294901760, %v276_v24  ;;  %v12137_v59 = vld [vmem:[#allocation83_spill] sm:$0xff] }
 0x108   : > { %1526 = vmatpush2.msra.mxu0 %v12087_v35  ;;  %1679 = vmatpush2.msra.mxu1 %v12088_v40  ;;  %12101 = vst [vmem:[#allocation91_spill] sm:$0xff] %v7311_v55  ;;  %12102 = vst [vmem:[#allocation93_spill] sm:$0xff] %v7313_v58  ;;  %v7327_v35 = vsub.f32 %v292_v28, %v7295_v17  ;;  %v7337_v40 = vsub.f32 %v7266_v33, %v11156_v29  ;;  %v7344_v28 = vand.u32 4294901760, %v277_v27 }
 0x109   : > { %1530 = vmatprep.subr.mxu0 %v12089_v13  ;;  %1681 = vmatprep.subr.mxu1 %v12090_v45  ;;  %12105 = vst [vmem:[#allocation73_spill] sm:$0xff] %v7321_v2  ;;  %12109 = vst [vmem:[#allocation11_spill] sm:$0xff] %v7339_v60  ;;  %v269_v13 = vld [vmem:[#allocation2 + $0x258] sm:$0xff]  ;;  %v12110_v45 = vand.u32 4294901760, %v6878_v46  ;;  %v7357_v46 = vsub.f32 %v7282_v36, %v11155_v53  ;;  %v252_v53 = vld [vmem:[#allocation2 + $0x1d0] sm:$0xff] }
 0x10a   : > { %1534 = vmatpush2.msra.mxu0 %v12092_v15  ;;  %1683 = vmatpush2.msra.mxu1 %v12093_v16  ;;  %12108 = vst [vmem:[#allocation75_spill] sm:$0xff] %v7327_v35  ;;  %v12111_v15 = vld [vmem:[#allocation67_spill] sm:$0xff]  ;;  %12112 = vst [vmem:[#allocation90_spill] sm:$0xff] %v7344_v28  ;;  %v11157_v16 = vand.u32 4294901760, %v7306_v44  ;;  %v7400_v29 = vsub.f32 %v277_v27, %v7344_v28 }
 0x10b   : > { %1538 = vmatprep.subr.mxu0 %v12095_v8  ;;  %1685 = vmatprep.subr.mxu1 %v12096_v10  ;;  %v11159_v8 = vand.u32 4294901760, %v7303_v42  ;;  %v12113_v10 = vand.u32 4294901760, %v6889_v47  ;;  %v7368_v47 = vsub.f32 %v7288_v0, %v11154_v48  ;;  %v12123_v48 = vand.u32 4294901760, %v6922_v52 }
 0x10c   : > { %1542 = vmatpush2.msra.mxu0 %v12099_v57  ;;  %1687 = vmatpush2.msra.mxu1 %v12100_v63  ;;  %v12114_v57 = vld [vmem:[#allocation69_spill] sm:$0xff]  ;;  %v7352_v63 = vsub.f32 %v284_v11, %v7313_v58  ;;  %v7370_v11 = vand.u32 4294901760, %v269_v13  ;;  %12125 = vst [vmem:[#allocation38_spill] sm:$0xff] %v7400_v29  ;;  %v12126_v52 = vand.u32 4294901760, %v6930_v51 }
 0x10d   : > { %1546 = vmatprep.subr.mxu0 %v12103_v39  ;;  %1689 = vmatprep.subr.mxu1 %v12104_v54  ;;  %v260_v39 = vld [vmem:[#allocation2 + $0x210] sm:$0xff]  ;;  %v7360_v54 = vsub.f32 %v285_v4, %v7311_v55  ;;  %v12121_v4 = vand.u32 4294901760, %v6911_v41  ;;  %v7390_v41 = vsub.f32 %v7306_v44, %v11157_v16 }
 0x10e   : > { %1550 = vmatpush2.msra.mxu0 %v12106_v30  ;;  %1691 = vmatpush2.msra.mxu1 %v12107_v31  ;;  %12115 = vst [vmem:[#allocation92_spill] sm:$0xff] %v7352_v63  ;;  %v12117_v30 = vand.u32 4294901760, %v6901_v20  ;;  %v12118_v31 = vld [vmem:[#allocation71_spill] sm:$0xff]  ;;  %12119 = vst [vmem:[#allocation34_spill] sm:$0xff] %v7370_v11 }
 0x10f   : > { %1554 = vmatprep.subr.mxu0 %v12110_v45  ;;  %1693 = vmatprep.subr.mxu1 %v12111_v15  ;;  %12116 = vst [vmem:[#allocation94_spill] sm:$0xff] %v7360_v54  ;;  %v7372_v45 = vand.u32 4294901760, %v268_v61  ;;  %v261_v15 = vld [vmem:[#allocation2 + $0x218] sm:$0xff]  ;;  %v12129_v20 = vld [vmem:[#allocation79_spill] sm:$0xff]  ;;  %v12142_v27 = vand.u32 4294901760, %v7360_v54 }
 0x110   : > { %1558 = vmatpush2.msra.mxu0 %v12113_v10  ;;  %1695 = vmatpush2.msra.mxu1 %v12114_v57  ;;  %v11160_v10 = vand.u32 4294901760, %v7321_v2  ;;  %v7406_v16 = vand.u32 4294901760, %v261_v15  ;;  %v12128_v57 = vand.u32 4294901760, %v6949_v1  ;;  %v12133_v1 = vld [vmem:[#allocation81_spill] sm:$0xff] }
 0x111   : > { %1562 = vmatprep.subr.mxu0 %v12117_v30  ;;  %1697 = vmatprep.subr.mxu1 %v12118_v31  ;;  %12120 = vst [vmem:[#allocation14_spill] sm:$0xff] %v7372_v45  ;;  %v7381_v30 = vsub.f32 %v276_v24, %v7339_v60  ;;  %v11161_v31 = vand.u32 4294901760, %v7327_v35  ;;  %v253_v24 = vld [vmem:[#allocation2 + $0x1d8] sm:$0xff]  ;;  %v7415_v51 = vsub.f32 %v268_v61, %v7372_v45 }
 0x112   : > { %1566 = vmatpush2.msra.mxu0 %v12121_v4  ;;  %1699 = vmatpush2.msra.mxu1 %v11973_v12  ;;  %v7395_v12 = vsub.f32 %v7303_v42, %v11159_v8  ;;  %v7397_v4 = vand.u32 4294901760, %v260_v39  ;;  %v12132_v8 = vand.u32 4294901760, %v6958_v56  ;;  %v7433_v61 = vand.u32 4294901760, %v253_v24  ;;  %v236_v56 = vld [vmem:[#allocation2 + $0x150] sm:$0xff] }
 0x113   : > { %12122 = vst [vmem:[#allocation36_spill] sm:$0xff] %v7381_v30  ;;  %1570 = vmatprep.subr.mxu0 %v12123_v48  ;;  %1701 = vmatprep.subr.mxu1 %v11974_v18  ;;  %v12127_v18 = vld [vmem:[#allocation77_spill] sm:$0xff]  ;;  %12130 = vst [vmem:[#allocation16_spill] sm:$0xff] %v7415_v51  ;;  %v7423_v48 = vsub.f32 %v269_v13, %v7370_v11  ;;  %v12136_v13 = vand.u32 4294901760, %v6971_v62  ;;  %v7453_v62 = vsub.f32 %v7360_v54, %v12142_v27  ;;  %v229_v54 = vld [vmem:[#allocation2 + $0x118] sm:$0xff] }
 0x114   : > { %12124 = vst [vmem:[#allocation15_spill] sm:$0xff] %v7397_v4  ;;  %1574 = vmatpush2.msra.mxu0 %v12126_v52  ;;  %1703 = vmatpush2.msra.mxu1 %v12127_v18  ;;  %v7420_v52 = vsub.f32 %v7321_v2, %v11160_v10  ;;  %v244_v18 = vld [vmem:[#allocation2 + $0x190] sm:$0xff]  ;;  %12134 = vst [vmem:[#allocation17_spill] sm:$0xff] %v7433_v61  ;;  %v245_v10 = vld [vmem:[#allocation2 + $0x198] sm:$0xff]  ;;  %v7484_v44 = vsub.f32 %v253_v24, %v7433_v61 }
 0x115   : > { %1578 = vmatprep.subr.mxu0 %v12128_v57  ;;  %1705 = vmatprep.subr.mxu1 %v12129_v20  ;;  %12131 = vst [vmem:[#allocation40_spill] sm:$0xff] %v7423_v48  ;;  %v7431_v20 = vsub.f32 %v7327_v35, %v11161_v31  ;;  %v7435_v57 = vand.u32 4294901760, %v252_v53  ;;  %v7463_v31 = vsub.f32 %v261_v15, %v7406_v16  ;;  %v7468_v27 = vand.u32 4294901760, %v245_v10  ;;  %v228_v35 = vld [vmem:[#allocation2 + $0x110] sm:$0xff] }
 0x116   : > { %1582 = vmatpush2.msra.mxu0 %v12132_v8  ;;  %1707 = vmatpush2.msra.mxu1 %v12133_v1  ;;  %v7444_v1 = vsub.f32 %v260_v39, %v7397_v4  ;;  %v7460_v8 = vand.u32 4294901760, %v244_v18  ;;  %v237_v39 = vld [vmem:[#allocation2 + $0x158] sm:$0xff]  ;;  %12152 = vst [vmem:[#allocation48_spill] sm:$0xff] %v7484_v44  ;;  %v7518_v24 = vand.u32 4294901760, %v228_v35 }
 0x117   : > { %12135 = vst [vmem:[#allocation42_spill] sm:$0xff] %v7435_v57  ;;  %1586 = vmatprep.subr.mxu0 %v12136_v13  ;;  %1709 = vmatprep.subr.mxu1 %v12137_v59  ;;  %v12143_v59 = vand.u32 4294901760, %v7352_v63  ;;  %12145 = vst [vmem:[#allocation19_spill] sm:$0xff] %v7463_v31  ;;  %v7476_v15 = vsub.f32 %v252_v53, %v7435_v57  ;;  %v7493_v53 = vand.u32 4294901760, %v237_v39 }
 0x118   : > { %12138 = vst [vmem:[#allocation18_spill] sm:$0xff] %v7444_v1  ;;  %1590 = vmatpush2.msra.mxu0 %v12140_v26  ;;  %1592 = vmatprep.mubr.f32.mxu0 %v12141_v49  ;;  %12144 = vst [vmem:[#allocation44_spill] sm:$0xff] %v7460_v8  ;;  %v12146_v26 = vld [vmem:[#allocation85_spill] sm:$0xff] }
 0x119   : > { %v7458_v13 = vsub.f32 %v7352_v63, %v12143_v59  ;;  %1711 = vmatpush2.msra.mxu1 %v12146_v26  ;;  %1594 = vmatmul.mubr.f32.vlgmr.msra.gmra.mxu0 %v12147_v32  ;;  %12148 = vst [vmem:[#allocation46_spill] sm:$0xff] %v7468_v27  ;;  %v12149_v63 = vld [vmem:[#allocation87_spill] sm:$0xff]  ;;  %12150 = vst [vmem:[#allocation20_spill] sm:$0xff] %v7476_v15  ;;  %v12151_v26 = vand.u32 4294901760, %v7381_v30  ;;  %v7495_v59 = vand.u32 4294901760, %v236_v56 }
 0x11a   : > { %1713 = vmatprep.subr.mxu1 %v12149_v63  ;;  %1738 = vmatprep.subr.mxu0 %v7245_v5  ;;  %v12153_v63 = vand.u32 4294901760, %v7400_v29  ;;  %12154 = vst [vmem:[#allocation21_spill] sm:$0xff] %v7493_v53  ;;  %12159 = vst [vmem:[#allocation52_spill] sm:$0xff] %v7518_v24 }
 0x11b   : > { %v7481_v42 = vsub.f32 %v7381_v30, %v12151_v26  ;;  %1715 = vmatpush2.msra.mxu1 %v6800_v37  ;;  %1740 = vmatpush1.msra.mxu0 %v7247_v9  ;;  %12155 = vst [vmem:[#allocation50_spill] sm:$0xff] %v7495_v59  ;;  %v7503_v30 = vsub.f32 %v244_v18, %v7460_v8  ;;  %v221_v18 = vld [vmem:[#allocation2 + $0xd8] sm:$0xff] }
 0x11c   : > { %v7491_v2 = vsub.f32 %v7400_v29, %v12153_v63  ;;  %1717 = vmatprep.subr.mxu1 %v6813_v34  ;;  %1742 = vmatprep.subr.mxu0 %v7255_v22  ;;  %v12157_v29 = vand.u32 4294901760, %v7423_v48  ;;  %v12158_v34 = vand.u32 4294901760, %v7415_v51  ;;  %v220_v22 = vld [vmem:[#allocation2 + $0xd0] sm:$0xff]  ;;  %v7521_v63 = vsub.f32 %v245_v10, %v7468_v27 }
 0x11d   : > { %12156 = vst [vmem:[#allocation22_spill] sm:$0xff] %v7503_v30  ;;  %1719 = vmatpush2.msra.mxu1 %v11983_v21  ;;  %1744 = vmatpush1.msra.mxu0 %v7260_v6  ;;  %v7534_v10 = vsub.f32 %v236_v56, %v7495_v59  ;;  %v212_v21 = vld [vmem:[#allocation2 + $0x90] sm:$0xff]  ;;  %v7542_v6 = vsub.f32 %v237_v39, %v7493_v53  ;;  %v7551_v56 = vand.u32 4294901760, %v221_v18 }
 0x11e   : > { %v7511_v26 = vsub.f32 %v7423_v48, %v12157_v29  ;;  %v7516_v37 = vsub.f32 %v7415_v51, %v12158_v34  ;;  %12160 = vst [vmem:[#allocation23_spill] sm:$0xff] %v7521_v63  ;;  %1721 = vmatprep.subr.mxu1 %v11985_v43  ;;  %1746 = vmatprep.subr.mxu0 %v7274_v23  ;;  %v7526_v29 = vand.u32 4294901760, %v229_v54  ;;  %v12163_v43 = vand.u32 4294901760, %v7444_v1  ;;  %v213_v48 = vld [vmem:[#allocation2 + $0x98] sm:$0xff] }
 0x11f   : > { %1723 = vmatpush2.msra.mxu1 %v11987_v50  ;;  %1748 = vmatpush1.msra.mxu0 %v7276_v25  ;;  %12162 = vst [vmem:[#allocation24_spill] sm:$0xff] %v7534_v10  ;;  %12164 = vst [vmem:[#allocation56_spill] sm:$0xff] %v7542_v6  ;;  %v12165_v50 = vand.u32 4294901760, %v7463_v31  ;;  %v7553_v34 = vand.u32 4294901760, %v220_v22  ;;  %v7576_v39 = vand.u32 4294901760, %v212_v21  ;;  %v7602_v25 = vsub.f32 %v221_v18, %v7551_v56 }
 0x120   : > { %12161 = vst [vmem:[#allocation54_spill] sm:$0xff] %v7526_v29  ;;  %v7539_v23 = vsub.f32 %v7444_v1, %v12163_v43  ;;  %1725 = vmatprep.subr.mxu1 %v6868_v14  ;;  %1750 = vmatprep.subr.mxu0 %v7290_v3  ;;  %12166 = vst [vmem:[#allocation25_spill] sm:$0xff] %v7551_v56  ;;  %v7561_v1 = vsub.f32 %v228_v35, %v7518_v24  ;;  %v12169_v3 = vand.u32 4294901760, %v7484_v44  ;;  %v205_v35 = vld [vmem:[#allocation2 + $0x58] sm:$0xff] }
 0x121   : > { %v7549_v51 = vsub.f32 %v7463_v31, %v12165_v50  ;;  %12167 = vst [vmem:[#allocation58_spill] sm:$0xff] %v7553_v34  ;;  %1727 = vmatpush2.msra.mxu1 %v6885_v38  ;;  %1729 = vmatprep.mubr.f32.mxu1 %v12141_v49  ;;  %v12170_v38 = vand.u32 4294901760, %v7476_v15  ;;  %12171 = vst [vmem:[#allocation60_spill] sm:$0xff] %v7576_v39  ;;  %v204_v31 = vld [vmem:[#allocation2 + $0x50] sm:$0xff]  ;;  %v7579_v50 = vsub.f32 %v229_v54, %v7526_v29 }
 0x122   : > { %12168 = vst [vmem:[#allocation26_spill] sm:$0xff] %v7561_v1  ;;  %1752 = vmatpush1.msra.mxu0 %v7295_v17  ;;  %1731 = vmatmul.mubr.f32.vlgmr.msra.gmra.mxu1 %v12147_v32  ;;  %v7569_v43 = vsub.f32 %v7484_v44, %v12169_v3  ;;  %v12173_v17 = vand.u32 4294901760, %v7332_v7  ;;  %v7585_v44 = vand.u32 4294901760, %v213_v48  ;;  %v196_v3 = vld [vmem:[#allocation2 + $0x10] sm:$0xff]  ;;  %12178 = vst [vmem:[#allocation64_spill] sm:$0xff] %v7602_v25  ;;  %v7614_v54 = vand.u32 4294901760, %v204_v31 }
 0x123   : > { %v7574_v14 = vsub.f32 %v7476_v15, %v12170_v38  ;;  %12172 = vst [vmem:[#allocation27_spill] sm:$0xff] %v7579_v50  ;;  %1754 = vmatprep.subr.mxu0 %v7311_v55  ;;  %v12175_v15 = vand.u32 4294901760, %v7337_v40  ;;  %v7594_v55 = vsub.f32 %v220_v22, %v7553_v34  ;;  %v12179_v38 = vand.u32 4294901760, %v7357_v46  ;;  %v444_v46 = vld [vmem:[#allocation2 + $0x7d0] sm:$0xff]  ;;  %2267 = vmatprep.mubr.f32.mxu1 %v12141_v49  ;;  %v12330_v49 = vld [vmem:[#allocation82_spill] sm:$0xff] }
 0x124   : > { %1887 = vmatprep.subr.mxu1 %v12173_v17  ;;  %12174 = vst [vmem:[#allocation62_spill] sm:$0xff] %v7585_v44  ;;  %1756 = vmatpush1.msra.mxu0 %v7313_v58  ;;  %v12177_v17 = vand.u32 4294901760, %v7503_v30  ;;  %v12180_v40 = vand.u32 4294901760, %v7521_v63  ;;  %v7612_v22 = vand.u32 4294901760, %v205_v35  ;;  %12182 = vst [vmem:[#allocation66_spill] sm:$0xff] %v7614_v54  ;;  %v12183_v18 = vand.u32 4294901760, %v7368_v47 }
 0x125   : > { %1893 = vmatpush1.msra.mxu1 %v12175_v15  ;;  %12176 = vst [vmem:[#allocation29_spill] sm:$0xff] %v7594_v55  ;;  %1758 = vmatprep.subr.mxu0 %v7344_v28  ;;  %v7623_v28 = vsub.f32 %v212_v21, %v7576_v39  ;;  %v12187_v47 = vand.u32 4294901760, %v7534_v10  ;;  %v445_v21 = vld [vmem:[#allocation2 + $0x7d8] sm:$0xff] }
 0x126   : > { %v7599_v7 = vsub.f32 %v7503_v30, %v12177_v17  ;;  %1899 = vmatprep.subr.mxu1 %v12179_v38  ;;  %v7610_v15 = vsub.f32 %v7521_v63, %v12180_v40  ;;  %12181 = vst [vmem:[#allocation31_spill] sm:$0xff] %v7612_v22  ;;  %v197_v17 = vld [vmem:[#allocation2 + $0x18] sm:$0xff]  ;;  %1760 = vmatpush1.msra.mxu0 %v7339_v60  ;;  %v12185_v63 = vand.u32 4294901760, %v7390_v41  ;;  %v12186_v30 = vand.u32 4294901760, %v7542_v6 }
 0x127   : > { %1905 = vmatpush1.msra.mxu1 %v12183_v18  ;;  %12184 = vst [vmem:[#allocation33_spill] sm:$0xff] %v7623_v28  ;;  %1762 = vmatprep.subr.mxu0 %v7370_v11  ;;  %v7637_v18 = vsub.f32 %v7534_v10, %v12187_v47  ;;  %v7639_v38 = vand.u32 4294901760, %v196_v3  ;;  %v7642_v40 = vsub.f32 %v213_v48, %v7585_v44  ;;  %v12190_v41 = vand.u32 4294901760, %v7395_v12 }
 0x128   : > { %1911 = vmatprep.subr.mxu1 %v12185_v63  ;;  %v7632_v60 = vsub.f32 %v7542_v6, %v12186_v30  ;;  %1764 = vmatpush1.msra.mxu0 %v7372_v45  ;;  %v7648_v63 = vand.u32 4294901760, %v197_v17  ;;  %v12192_v10 = vand.u32 4294901760, %v7420_v52  ;;  %v7657_v45 = vsub.f32 %v204_v31, %v7614_v54  ;;  %v437_v30 = vld [vmem:[#allocation2 + $0x798] sm:$0xff]  ;;  %v436_v6 = vld [vmem:[#allocation2 + $0x790] sm:$0xff] }
 0x129   : > { %12188 = vst [vmem:[#allocation68_spill] sm:$0xff] %v7639_v38  ;;  %12189 = vst [vmem:[#allocation35_spill] sm:$0xff] %v7642_v40  ;;  %1917 = vmatpush1.msra.mxu1 %v12190_v41  ;;  %1766 = vmatprep.subr.mxu0 %v7406_v16  ;;  %v12194_v12 = vand.u32 4294901760, %v7561_v1  ;;  %v7665_v11 = vsub.f32 %v205_v35, %v7612_v22  ;;  %v12196_v52 = vand.u32 4294901760, %v7431_v20  ;;  %v7675_v48 = vand.u32 4294901760, %v445_v21 }
 0x12a   : > { %12191 = vst [vmem:[#allocation70_spill] sm:$0xff] %v7648_v63  ;;  %1923 = vmatprep.subr.mxu1 %v12192_v10  ;;  %12193 = vst [vmem:[#allocation37_spill] sm:$0xff] %v7657_v45  ;;  %1768 = vmatpush1.msra.mxu0 %v7397_v4  ;;  %v12197_v10 = vand.u32 4294901760, %v7579_v50  ;;  %v7677_v47 = vand.u32 4294901760, %v444_v46  ;;  %v12200_v35 = vand.u32 4294901760, %v7453_v62  ;;  %v12204_v62 = vand.u32 4294901760, %v7594_v55 }
 0x12b   : > { %v7662_v41 = vsub.f32 %v7561_v1, %v12194_v12  ;;  %12195 = vst [vmem:[#allocation72_spill] sm:$0xff] %v7665_v11  ;;  %1929 = vmatpush1.msra.mxu1 %v12196_v52  ;;  %12198 = vst [vmem:[#allocation39_spill] sm:$0xff] %v7675_v48  ;;  %1770 = vmatprep.subr.mxu0 %v7433_v61  ;;  %v7686_v52 = vsub.f32 %v196_v3, %v7639_v38  ;;  %v12202_v1 = vand.u32 4294901760, %v7458_v13  ;;  %v429_v4 = vld [vmem:[#allocation2 + $0x758] sm:$0xff] }
 0x12c   : > { %v7673_v31 = vsub.f32 %v7579_v50, %v12197_v10  ;;  %12199 = vst [vmem:[#allocation74_spill] sm:$0xff] %v7677_v47  ;;  %1935 = vmatprep.subr.mxu1 %v12200_v35  ;;  %1772 = vmatpush1.msra.mxu0 %v7435_v57  ;;  %v12203_v12 = vand.u32 4294901760, %v7602_v25  ;;  %v7700_v35 = vsub.f32 %v7594_v55, %v12204_v62  ;;  %v7702_v20 = vand.u32 4294901760, %v437_v30  ;;  %v428_v10 = vld [vmem:[#allocation2 + $0x750] sm:$0xff]  ;;  %v421_v57 = vld [vmem:[#allocation2 + $0x718] sm:$0xff] }
 0x12d   : > { %12201 = vst [vmem:[#allocation41_spill] sm:$0xff] %v7686_v52  ;;  %1941 = vmatpush1.msra.mxu1 %v12202_v1  ;;  %v7704_v3 = vand.u32 4294901760, %v436_v6  ;;  %1774 = vmatprep.subr.mxu0 %v7468_v27  ;;  %v12207_v1 = vand.u32 4294901760, %v7491_v2  ;;  %v7713_v62 = vsub.f32 %v197_v17, %v7648_v63  ;;  %v420_v55 = vld [vmem:[#allocation2 + $0x710] sm:$0xff]  ;;  %v7720_v2 = vsub.f32 %v444_v46, %v7677_v47 }
 0x12e   : > { %v7695_v61 = vsub.f32 %v7602_v25, %v12203_v12  ;;  %12205 = vst [vmem:[#allocation76_spill] sm:$0xff] %v7702_v20  ;;  %1776 = vmatpush1.msra.mxu0 %v7460_v8  ;;  %v12209_v25 = vand.u32 4294901760, %v7481_v42  ;;  %v7728_v17 = vsub.f32 %v445_v21, %v7675_v48  ;;  %v12213_v12 = vand.u32 4294901760, %v7511_v26 }
 0x12f   : > { %12206 = vst [vmem:[#allocation43_spill] sm:$0xff] %v7704_v3  ;;  %1947 = vmatprep.subr.mxu1 %v12207_v1  ;;  %12208 = vst [vmem:[#allocation78_spill] sm:$0xff] %v7713_v62  ;;  %v12211_v1 = vand.u32 4294901760, %v7623_v28  ;;  %1778 = vmatprep.subr.mxu0 %v7493_v53  ;;  %v7738_v46 = vand.u32 4294901760, %v429_v4  ;;  %v7740_v27 = vand.u32 4294901760, %v428_v10  ;;  %v12217_v21 = vand.u32 4294901760, %v7516_v37 }
 0x130   : > { %1953 = vmatpush1.msra.mxu1 %v12209_v25  ;;  %12210 = vst [vmem:[#allocation45_spill] sm:$0xff] %v7720_v2  ;;  %12212 = vst [vmem:[#allocation80_spill] sm:$0xff] %v7728_v17  ;;  %v12214_v25 = vand.u32 4294901760, %v7642_v40  ;;  %1780 = vmatpush1.msra.mxu0 %v7495_v59  ;;  %v12220_v8 = vand.u32 4294901760, %v7549_v51  ;;  %v12222_v37 = vand.u32 4294901760, %v7657_v45  ;;  %v7766_v26 = vand.u32 4294901760, %v421_v57 }
 0x131   : > { %v7725_v13 = vsub.f32 %v7623_v28, %v12211_v1  ;;  %1959 = vmatprep.subr.mxu1 %v12213_v12  ;;  %12215 = vst [vmem:[#allocation47_spill] sm:$0xff] %v7738_v46  ;;  %12216 = vst [vmem:[#allocation49_spill] sm:$0xff] %v7740_v27  ;;  %v7749_v12 = vsub.f32 %v436_v6, %v7704_v3  ;;  %1782 = vmatprep.subr.mxu0 %v7526_v29  ;;  %v12221_v1 = vand.u32 4294901760, %v7665_v11  ;;  %v413_v53 = vld [vmem:[#allocation2 + $0x6d8] sm:$0xff]  ;;  %v412_v28 = vld [vmem:[#allocation2 + $0x6d0] sm:$0xff] }
 0x132   : > { %v7736_v42 = vsub.f32 %v7642_v40, %v12214_v25  ;;  %1965 = vmatpush1.msra.mxu1 %v12217_v21  ;;  %v7751_v25 = vand.u32 4294901760, %v420_v55  ;;  %v7764_v21 = vsub.f32 %v7657_v45, %v12222_v37  ;;  %12223 = vst [vmem:[#allocation86_spill] sm:$0xff] %v7766_v26  ;;  %1784 = vmatpush1.msra.mxu0 %v7518_v24  ;;  %v12224_v51 = vand.u32 4294901760, %v7539_v23  ;;  %v404_v45 = vld [vmem:[#allocation2 + $0x690] sm:$0xff]  ;;  %v405_v29 = vld [vmem:[#allocation2 + $0x698] sm:$0xff] }
 0x133   : > { %12218 = vst [vmem:[#allocation84_spill] sm:$0xff] %v7749_v12  ;;  %1971 = vmatprep.subr.mxu1 %v12220_v8  ;;  %v7759_v59 = vsub.f32 %v7665_v11, %v12221_v1  ;;  %v7776_v37 = vsub.f32 %v437_v30, %v7702_v20  ;;  %1786 = vmatprep.subr.mxu0 %v7551_v56  ;;  %v12226_v6 = vand.u32 4294901760, %v7569_v43  ;;  %v12230_v1 = vand.u32 4294901760, %v7574_v14  ;;  %v396_v56 = vld [vmem:[#allocation2 + $0x650] sm:$0xff] }
 0x134   : > { %12219 = vst [vmem:[#allocation51_spill] sm:$0xff] %v7751_v25  ;;  %1977 = vmatpush1.msra.mxu1 %v12224_v51  ;;  %v7783_v23 = vsub.f32 %v428_v10, %v7740_v27  ;;  %v12228_v51 = vand.u32 4294901760, %v7686_v52  ;;  %v7791_v30 = vsub.f32 %v429_v4, %v7738_v46  ;;  %1788 = vmatpush1.msra.mxu0 %v7553_v34  ;;  %v7801_v10 = vand.u32 4294901760, %v412_v28 }
 0x135   : > { %12225 = vst [vmem:[#allocation53_spill] sm:$0xff] %v7776_v37  ;;  %1983 = vmatprep.subr.mxu1 %v12226_v6  ;;  %v7797_v43 = vsub.f32 %v420_v55, %v7751_v25  ;;  %v7799_v6 = vand.u32 4294901760, %v413_v53  ;;  %1790 = vmatprep.subr.mxu0 %v7585_v44  ;;  %v12235_v14 = vand.u32 4294901760, %v7713_v62  ;;  %v12237_v24 = vand.u32 4294901760, %v7599_v7 }
 0x136   : > { %12227 = vst [vmem:[#allocation55_spill] sm:$0xff] %v7783_v23  ;;  %v7788_v8 = vsub.f32 %v7686_v52, %v12228_v51  ;;  %12229 = vst [vmem:[#allocation57_spill] sm:$0xff] %v7791_v30  ;;  %1989 = vmatpush1.msra.mxu1 %v12230_v1  ;;  %v12234_v51 = vand.u32 4294901760, %v7610_v15  ;;  %v7814_v1 = vand.u32 4294901760, %v404_v45  ;;  %1792 = vmatpush1.msra.mxu0 %v7576_v39  ;;  %v12238_v15 = vand.u32 4294901760, %v7728_v17  ;;  %v397_v52 = vld [vmem:[#allocation2 + $0x658] sm:$0xff] }
 0x137   : > { %12231 = vst [vmem:[#allocation59_spill] sm:$0xff] %v7797_v43  ;;  %12232 = vst [vmem:[#allocation61_spill] sm:$0xff] %v7799_v6  ;;  %v7812_v55 = vsub.f32 %v7713_v62, %v12235_v14  ;;  %v12239_v34 = vand.u32 4294901760, %v7720_v2  ;;  %v7829_v14 = vand.u32 4294901760, %v405_v29  ;;  %1794 = vmatprep.subr.mxu0 %v7612_v22  ;;  %v12241_v7 = vand.u32 4294901760, %v7632_v60  ;;  %v389_v39 = vld [vmem:[#allocation2 + $0x618] sm:$0xff] }
 0x138   : > { %12233 = vst [vmem:[#allocation63_spill] sm:$0xff] %v7801_v10  ;;  %1995 = vmatprep.subr.mxu1 %v12234_v51  ;;  %12236 = vst [vmem:[#allocation65_spill] sm:$0xff] %v7814_v1  ;;  %v7822_v51 = vsub.f32 %v7728_v17, %v12238_v15  ;;  %v7839_v17 = vsub.f32 %v421_v57, %v7766_v26  ;;  %1796 = vmatpush1.msra.mxu0 %v7614_v54  ;;  %v12243_v44 = vand.u32 4294901760, %v7637_v18 }
 0x139   : > { %2001 = vmatpush1.msra.mxu1 %v12237_v24  ;;  %v7827_v4 = vsub.f32 %v7720_v2, %v12239_v34  ;;  %12240 = vst [vmem:[#allocation67_spill] sm:$0xff] %v7829_v14  ;;  %v388_v34 = vld [vmem:[#allocation2 + $0x610] sm:$0xff]  ;;  %v7845_v22 = vsub.f32 %v412_v28, %v7801_v10  ;;  %v12245_v60 = vand.u32 4294901760, %v7749_v12  ;;  %v7852_v24 = vand.u32 4294901760, %v396_v56  ;;  %1798 = vmatprep.subr.mxu0 %v7648_v63 }
 0x13a   : > { %2007 = vmatprep.subr.mxu1 %v12241_v7  ;;  %12242 = vst [vmem:[#allocation69_spill] sm:$0xff] %v7839_v17  ;;  %v7855_v57 = vsub.f32 %v413_v53, %v7799_v6  ;;  %v12248_v15 = vand.u32 4294901760, %v7673_v31  ;;  %v7862_v28 = vsub.f32 %v404_v45, %v7814_v1  ;;  %v7864_v18 = vand.u32 4294901760, %v397_v52  ;;  %1800 = vmatpush1.msra.mxu0 %v7639_v38 }
 0x13b   : > { %2013 = vmatpush1.msra.mxu1 %v12243_v44  ;;  %12244 = vst [vmem:[#allocation71_spill] sm:$0xff] %v7845_v22  ;;  %v7850_v7 = vsub.f32 %v7749_v12, %v12245_v60  ;;  %12246 = vst [vmem:[#allocation77_spill] sm:$0xff] %v7852_v24  ;;  %v2066_v44 = vand.u32 4294901760, %v7812_v55  ;;  %v12251_v54 = vand.u32 4294901760, %v7662_v41  ;;  %v2078_v53 = vand.u32 4294901760, %v7822_v51  ;;  %1802 = vmatprep.subr.mxu0 %v7675_v48  ;;  %v381_v12 = vld [vmem:[#allocation2 + $0x5d8] sm:$0xff] }
 0x13c   : > { %12247 = vst [vmem:[#allocation79_spill] sm:$0xff] %v7855_v57  ;;  %2019 = vmatprep.subr.mxu1 %v12248_v15  ;;  %12249 = vst [vmem:[#allocation81_spill] sm:$0xff] %v7862_v28  ;;  %v12252_v31 = vand.u32 4294901760, %v7776_v37  ;;  %v7877_v45 = vand.u32 4294901760, %v388_v34  ;;  %v380_v15 = vld [vmem:[#allocation2 + $0x5d0] sm:$0xff]  ;;  %v12254_v60 = vand.u32 4294901760, %v7695_v61  ;;  %1804 = vmatpush2.msra.mxu0 %v7677_v47  ;;  %v7918_v48 = vsub.f32 %v397_v52, %v7864_v18 }
 0x13d   : > { %12250 = vst [vmem:[#allocation83_spill] sm:$0xff] %v7864_v18  ;;  %2025 = vmatpush1.msra.mxu1 %v12251_v54  ;;  %v12255_v41 = vand.u32 4294901760, %v7791_v30  ;;  %v12256_v51 = vand.u32 4294901760, %v7783_v23  ;;  %v12258_v61 = vand.u32 4294901760, %v7700_v35  ;;  %1806 = vmatprep.subr.mxu0 %v7702_v20  ;;  %v12261_v38 = vand.u32 4294901760, %v7736_v42 }
 0x13e   : > { %v7875_v55 = vsub.f32 %v7776_v37, %v12252_v31  ;;  %12253 = vst [vmem:[#allocation103_spill] sm:$0xff] %v7877_v45  ;;  %2031 = vmatprep.subr.mxu1 %v12254_v60  ;;  %v7892_v31 = vand.u32 4294901760, %v389_v39  ;;  %v12262_v47 = vand.u32 4294901760, %v7797_v43  ;;  %v373_v60 = vld [vmem:[#allocation2 + $0x598] sm:$0xff]  ;;  %12264 = vst [vmem:[#allocation106_spill] sm:$0xff] %v7918_v48  ;;  %1808 = vmatpush2.msra.mxu0 %v7704_v3  ;;  %v12271_v20 = vand.u32 4294901760, %v7764_v21 }
 0x13f   : > { %v7885_v54 = vsub.f32 %v7791_v30, %v12255_v41  ;;  %v7890_v63 = vsub.f32 %v7783_v23, %v12256_v51  ;;  %2037 = vmatpush1.msra.mxu1 %v12258_v61  ;;  %v7900_v41 = vsub.f32 %v396_v56, %v7852_v24  ;;  %v7904_v51 = vsub.f32 %v405_v29, %v7829_v14  ;;  %v372_v23 = vld [vmem:[#allocation2 + $0x590] sm:$0xff] }
 0x140   : > { %12257 = vst [vmem:[#allocation85_spill] sm:$0xff] %v7892_v31  ;;  %2043 = vmatprep.subr.mxu1 %v12261_v38  ;;  %v7912_v35 = vsub.f32 %v7797_v43, %v12262_v47  ;;  %v7914_v61 = vand.u32 4294901760, %v380_v15  ;;  %v12265_v29 = vand.u32 4294901760, %v7725_v13  ;;  %v2090_v38 = vand.u32 4294901760, %v7875_v55  ;;  %1810 = vmatprep.subr.mxu0 %v7738_v46  ;;  %v365_v46 = vld [vmem:[#allocation2 + $0x558] sm:$0xff] }
 0x141   : > { %12259 = vst [vmem:[#allocation87_spill] sm:$0xff] %v7900_v41  ;;  %12260 = vst [vmem:[#allocation104_spill] sm:$0xff] %v7904_v51  ;;  %v7925_v42 = vsub.f32 %v388_v34, %v7877_v45  ;;  %v7927_v47 = vand.u32 4294901760, %v381_v12  ;;  %v12268_v56 = vand.u32 4294901760, %v7759_v59  ;;  %v2102_v52 = vand.u32 4294901760, %v7885_v54  ;;  %1812 = vmatpush2.msra.mxu0 %v7740_v27  ;;  %v357_v43 = vld [vmem:[#allocation2 + $0x518] sm:$0xff] }
 0x142   : > { %12263 = vst [vmem:[#allocation105_spill] sm:$0xff] %v7914_v61  ;;  %2049 = vmatpush1.msra.mxu1 %v12265_v29  ;;  %v2108_v3 = vand.u32 4294901760, %v7890_v63  ;;  %v12269_v13 = vand.u32 4294901760, %v7839_v17  ;;  %v7940_v34 = vand.u32 4294901760, %v372_v23  ;;  %v364_v29 = vld [vmem:[#allocation2 + $0x550] sm:$0xff]  ;;  %v12272_v59 = vand.u32 4294901760, %v7855_v57  ;;  %1814 = vmatprep.subr.mxu0 %v7766_v26 }
 0x143   : > { %12266 = vst [vmem:[#allocation107_spill] sm:$0xff] %v7925_v42  ;;  %12267 = vst [vmem:[#allocation108_spill] sm:$0xff] %v7927_v47  ;;  %2055 = vmatprep.subr.mxu1 %v12268_v56  ;;  %v7950_v54 = vand.u32 4294901760, %v373_v60  ;;  %v2120_v27 = vand.u32 4294901760, %v7912_v35  ;;  %v12276_v21 = vand.u32 4294901760, %v7845_v22  ;;  %v356_v63 = vld [vmem:[#allocation2 + $0x510] sm:$0xff]  ;;  %1816 = vmatpush2.msra.mxu0 %v7751_v25 }
 0x144   : > { %v7938_v55 = vsub.f32 %v7839_v17, %v12269_v13  ;;  %12270 = vst [vmem:[#allocation109_spill] sm:$0xff] %v7940_v34  ;;  %2061 = vmatpush1.msra.mxu1 %v12271_v20  ;;  %v7948_v56 = vsub.f32 %v7855_v57, %v12272_v59  ;;  %v7954_v13 = vsub.f32 %v389_v39, %v7892_v31  ;;  %v12277_v39 = vand.u32 4294901760, %v7788_v8  ;;  %v349_v25 = vld [vmem:[#allocation2 + $0x4d8] sm:$0xff] }
 0x145   : > { %12273 = vst [vmem:[#allocation110_spill] sm:$0xff] %v7950_v54  ;;  %2067 = vmatprep.subr.mxu1 %v2066_v44  ;;  %v7959_v20 = vsub.f32 %v380_v15, %v7914_v61  ;;  %v7964_v59 = vsub.f32 %v7845_v22, %v12276_v21  ;;  %v12278_v44 = vand.u32 4294901760, %v7862_v28  ;;  %v7975_v15 = vand.u32 4294901760, %v364_v29  ;;  %1818 = vmatprep.subr.mxu0 %v7799_v6 }
 0x146   : > { %12274 = vst [vmem:[#allocation111_spill] sm:$0xff] %v7954_v13  ;;  %2073 = vmatpush1.msra.mxu1 %v12277_v39  ;;  %v2114_v57 = vand.u32 4294901760, %v7938_v55  ;;  %v7982_v8 = vsub.f32 %v372_v23, %v7940_v34  ;;  %v7984_v39 = vand.u32 4294901760, %v365_v46  ;;  %1820 = vmatpush2.msra.mxu0 %v7801_v10  ;;  %v12283_v26 = vand.u32 4294901760, %v7827_v4 }
 0x147   : > { %12275 = vst [vmem:[#allocation112_spill] sm:$0xff] %v7959_v20  ;;  %v7973_v35 = vsub.f32 %v7862_v28, %v12278_v44  ;;  %12279 = vst [vmem:[#allocation113_spill] sm:$0xff] %v7975_v15  ;;  %2079 = vmatprep.subr.mxu1 %v2078_v53  ;;  %v7987_v44 = vsub.f32 %v381_v12, %v7927_v47  ;;  %v2126_v21 = vand.u32 4294901760, %v7948_v56  ;;  %v12284_v6 = vand.u32 4294901760, %v7904_v51  ;;  %v348_v28 = vld [vmem:[#allocation2 + $0x4d0] sm:$0xff] }
 0x148   : > { %12280 = vst [vmem:[#allocation114_spill] sm:$0xff] %v7982_v8  ;;  %12281 = vst [vmem:[#allocation115_spill] sm:$0xff] %v7984_v39  ;;  %2085 = vmatpush2.msra.mxu1 %v12283_v26  ;;  %v7997_v23 = vand.u32 4294901760, %v356_v63  ;;  %1822 = vmatprep.subr.mxu0 %v7829_v14  ;;  %v2132_v12 = vand.u32 4294901760, %v7964_v59  ;;  %v12285_v4 = vand.u32 4294901760, %v7918_v48  ;;  %v8006_v56 = vand.u32 4294901760, %v357_v43 }
 0x149   : > { %12282 = vst [vmem:[#allocation116_spill] sm:$0xff] %v7987_v44  ;;  %v2137_v53 = vsub.f32 %v7904_v51, %v12284_v6  ;;  %2091 = vmatprep.subr.mxu1 %v2090_v38  ;;  %v8009_v6 = vsub.f32 %v373_v60, %v7950_v54  ;;  %1824 = vmatpush2.msra.mxu0 %v7814_v1  ;;  %v12287_v55 = vand.u32 4294901760, %v7850_v7  ;;  %v2144_v14 = vand.u32 4294901760, %v7973_v35 }
 0x14a   : > { %v8004_v26 = vsub.f32 %v7918_v48, %v12285_v4  ;;  %v8016_v38 = vsub.f32 %v364_v29, %v7975_v15  ;;  %v12289_v59 = vand.u32 4294901760, %v7900_v41  ;;  %v12290_v10 = vand.u32 4294901760, %v7925_v42  ;;  %v340_v48 = vld [vmem:[#allocation2 + $0x490] sm:$0xff]  ;;  %1826 = vmatprep.subr.mxu0 %v7864_v18 }
 0x14b   : > { %12286 = vst [vmem:[#allocation117_spill] sm:$0xff] %v8009_v6  ;;  %2097 = vmatpush2.msra.mxu1 %v12287_v55  ;;  %v8029_v7 = vand.u32 4294901760, %v349_v25  ;;  %v8032_v29 = vand.u32 4294901760, %v348_v28  ;;  %v341_v55 = vld [vmem:[#allocation2 + $0x498] sm:$0xff]  ;;  %v8035_v1 = vsub.f32 %v365_v46, %v7984_v39  ;;  %1828 = vmatpush2.msra.mxu0 %v7852_v24  ;;  %v12295_v46 = vand.u32 4294901760, %v7987_v44 }
 0x14c   : > { %12288 = vst [vmem:[#allocation118_spill] sm:$0xff] %v8016_v38  ;;  %v8021_v4 = vsub.f32 %v7900_v41, %v12289_v59  ;;  %v8026_v60 = vsub.f32 %v7925_v42, %v12290_v10  ;;  %2103 = vmatprep.subr.mxu1 %v2102_v52  ;;  %v2138_v59 = vand.u32 4294901760, %v2137_v53  ;;  %v12292_v10 = vand.u32 4294901760, %v7954_v13  ;;  %1830 = vmatprep.subr.mxu0 %v7892_v31 }
 0x14d   : > { %12291 = vst [vmem:[#allocation119_spill] sm:$0xff] %v8035_v1  ;;  %2109 = vmatpush2.msra.mxu1 %v2108_v3  ;;  %v8042_v52 = vsub.f32 %v356_v63, %v7997_v23  ;;  %v2150_v35 = vand.u32 4294901760, %v8004_v26  ;;  %v8048_v41 = vand.u32 4294901760, %v340_v48  ;;  %v333_v3 = vld [vmem:[#allocation2 + $0x458] sm:$0xff]  ;;  %v8051_v53 = vsub.f32 %v357_v43, %v8006_v56  ;;  %1832 = vmatpush2.msra.mxu0 %v7877_v45  ;;  %v332_v26 = vld [vmem:[#allocation2 + $0x450] sm:$0xff] }
 0x14e   : > { %v2161_v42 = vsub.f32 %v7954_v13, %v12292_v10  ;;  %2115 = vmatprep.subr.mxu1 %v2114_v57  ;;  %v2156_v63 = vand.u32 4294901760, %v8021_v4  ;;  %v2168_v10 = vand.u32 4294901760, %v8026_v60  ;;  %v8056_v18 = vand.u32 4294901760, %v341_v55  ;;  %1834 = vmatprep.subr.mxu0 %v7927_v47  ;;  %v325_v4 = vld [vmem:[#allocation2 + $0x418] sm:$0xff] }
 0x14f   : > { %12293 = vst [vmem:[#allocation120_spill] sm:$0xff] %v8042_v52  ;;  %12294 = vst [vmem:[#allocation121_spill] sm:$0xff] %v8051_v53  ;;  %2121 = vmatpush2.msra.mxu1 %v2120_v27  ;;  %v2173_v43 = vsub.f32 %v7987_v44, %v12295_v46  ;;  %v8064_v31 = vsub.f32 %v348_v28, %v8032_v29  ;;  %v8068_v60 = vsub.f32 %v349_v25, %v8029_v7  ;;  %v324_v28 = vld [vmem:[#allocation2 + $0x410] sm:$0xff] }
 0x150   : > { %2127 = vmatprep.subr.mxu1 %v2126_v21  ;;  %1836 = vmatpush2.msra.mxu0 %v7914_v61  ;;  %v2162_v57 = vand.u32 4294901760, %v2161_v42  ;;  %v12296_v47 = vand.u32 4294901760, %v7959_v20  ;;  %v8074_v45 = vand.u32 4294901760, %v333_v3  ;;  %v12297_v27 = vand.u32 4294901760, %v8009_v6 }
 0x151   : > { %2133 = vmatpush2.msra.mxu1 %v2132_v12  ;;  %1838 = vmatprep.subr.mxu0 %v7950_v54  ;;  %v8082_v61 = vsub.f32 %v340_v48, %v8048_v41  ;;  %v8084_v42 = vand.u32 4294901760, %v332_v26  ;;  %v8091_v54 = vand.u32 4294901760, %v325_v4  ;;  %v2174_v48 = vand.u32 4294901760, %v2173_v43 }
 0x152   : > { %v2179_v21 = vsub.f32 %v7959_v20, %v12296_v47  ;;  %2139 = vmatprep.subr.mxu1 %v2138_v59  ;;  %v2185_v25 = vsub.f32 %v8009_v6, %v12297_v27  ;;  %1840 = vmatpush2.msra.mxu0 %v7940_v34  ;;  %v12299_v47 = vand.u32 4294901760, %v7982_v8  ;;  %v8095_v27 = vsub.f32 %v341_v55, %v8056_v18 }
 0x153   : > { %12298 = vst [vmem:[#allocation122_spill] sm:$0xff] %v8082_v61  ;;  %2145 = vmatpush2.msra.mxu1 %v2144_v14  ;;  %1842 = vmatprep.subr.mxu0 %v7984_v39  ;;  %v12301_v12 = vand.u32 4294901760, %v8035_v1  ;;  %v8101_v14 = vand.u32 4294901760, %v324_v28  ;;  %v12302_v59 = vand.u32 4294901760, %v8016_v38  ;;  %v8109_v39 = vsub.f32 %v333_v3, %v8074_v45 }
 0x154   : > { %v2191_v46 = vsub.f32 %v7982_v8, %v12299_v47  ;;  %12300 = vst [vmem:[#allocation123_spill] sm:$0xff] %v8095_v27  ;;  %2151 = vmatprep.subr.mxu1 %v2150_v35  ;;  %1844 = vmatpush2.msra.mxu0 %v7975_v15  ;;  %v2180_v47 = vand.u32 4294901760, %v2179_v21  ;;  %v2186_v35 = vand.u32 4294901760, %v2185_v25  ;;  %v8113_v43 = vsub.f32 %v332_v26, %v8084_v42 }
 0x155   : > { %v2197_v34 = vsub.f32 %v8035_v1, %v12301_v12  ;;  %2157 = vmatpush2.msra.mxu1 %v2156_v63  ;;  %v2203_v55 = vsub.f32 %v8016_v38, %v12302_v59  ;;  %1846 = vmatprep.subr.mxu0 %v8006_v56  ;;  %v12303_v12 = vand.u32 4294901760, %v8051_v53  ;;  %v12304_v3 = vand.u32 4294901760, %v8042_v52 }
 0x156   : > { %2163 = vmatprep.subr.mxu1 %v2162_v57  ;;  %1848 = vmatpush2.msra.mxu0 %v7997_v23  ;;  %v2192_v21 = vand.u32 4294901760, %v2191_v46  ;;  %v8125_v25 = vsub.f32 %v325_v4, %v8091_v54  ;;  %v12306_v63 = vand.u32 4294901760, %v8068_v60  ;;  %v11330_v4 = vand.u32 4294901760, %v8109_v39 }
 0x157   : > { %v2209_v24 = vsub.f32 %v8051_v53, %v12303_v12  ;;  %2169 = vmatpush2.msra.mxu1 %v2168_v10  ;;  %v2215_v59 = vsub.f32 %v8042_v52, %v12304_v3  ;;  %1850 = vmatprep.subr.mxu0 %v8029_v7  ;;  %v2198_v26 = vand.u32 4294901760, %v2197_v34  ;;  %v8129_v12 = vsub.f32 %v324_v28, %v8101_v14 }
 0x158   : > { %2175 = vmatprep.subr.mxu1 %v2174_v48  ;;  %v2221_v10 = vsub.f32 %v8068_v60, %v12306_v63  ;;  %1852 = vmatpush2.msra.mxu0 %v8032_v29  ;;  %v2204_v3 = vand.u32 4294901760, %v2203_v55  ;;  %v12307_v34 = vand.u32 4294901760, %v8064_v31  ;;  %v12308_v46 = vand.u32 4294901760, %v8095_v27 }
 0x159   : > { %12305 = vst [vmem:[#allocation124_spill] sm:$0xff] %v8129_v12  ;;  %2181 = vmatpush2.msra.mxu1 %v2180_v47  ;;  %1854 = vmatprep.subr.mxu0 %v8056_v18  ;;  %v2210_v48 = vand.u32 4294901760, %v2209_v24  ;;  %v2216_v63 = vand.u32 4294901760, %v2215_v59  ;;  %v11332_v55 = vand.u32 4294901760, %v8125_v25  ;;  %v11331_v57 = vand.u32 4294901760, %v8129_v12 }
 0x15a   : > { %2187 = vmatprep.subr.mxu1 %v2186_v35  ;;  %v2227_v28 = vsub.f32 %v8064_v31, %v12307_v34  ;;  %1856 = vmatpush2.msra.mxu0 %v8048_v41  ;;  %v2233_v47 = vsub.f32 %v8095_v27, %v12308_v46  ;;  %v2222_v24 = vand.u32 4294901760, %v2221_v10  ;;  %v12309_v35 = vand.u32 4294901760, %v8082_v61 }
 0x15b   : > { %2193 = vmatpush2.msra.mxu1 %v2192_v21  ;;  %1858 = vmatprep.subr.mxu0 %v8074_v45  ;;  %v2245_v21 = vsub.f32 %v8109_v39, %v11330_v4 }
 0x15c   : > { %2199 = vmatprep.subr.mxu1 %v2198_v26  ;;  %v2239_v34 = vsub.f32 %v8082_v61, %v12309_v35  ;;  %1860 = vmatpush2.msra.mxu0 %v8084_v42  ;;  %v2228_v59 = vand.u32 4294901760, %v2227_v28  ;;  %v12310_v26 = vand.u32 4294901760, %v8113_v43  ;;  %v2234_v46 = vand.u32 4294901760, %v2233_v47  ;;  %v12311_v35 = vld [vmem:[#allocation102_spill] sm:$0xff]  ;;  %v12312_v28 = vld [vmem:[#allocation101_spill] sm:$0xff] }
 0x15d   : > { %2205 = vmatpush2.msra.mxu1 %v2204_v3  ;;  %1862 = vmatprep.subr.mxu0 %v8091_v54  ;;  %v2257_v3 = vsub.f32 %v8125_v25, %v11332_v55  ;;  %v12326_v55 = vld [vmem:[#allocation13_spill] sm:$0xff] }
 0x15e   : > { %2211 = vmatprep.subr.mxu1 %v2210_v48  ;;  %v2251_v10 = vsub.f32 %v8113_v43, %v12310_v26  ;;  %1864 = vmatpush2.msra.mxu0 %v8101_v14  ;;  %v2240_v4 = vand.u32 4294901760, %v2239_v34  ;;  %v2263_v48 = vsub.f32 %v8129_v12, %v11331_v57  ;;  %v2246_v26 = vand.u32 4294901760, %v2245_v21  ;;  %v12313_v34 = vld [vmem:[#allocation89_spill] sm:$0xff]  ;;  %v12314_v57 = vld [vmem:[#allocation88_spill] sm:$0xff] }
 0x15f   : > { %2217 = vmatpush2.msra.mxu1 %v2216_v63  ;;  %1870 = vmatprep.mubr.f32.mxu0 %v12311_v35  ;;  %v2258_v47 = vand.u32 4294901760, %v2257_v3  ;;  %v12315_v21 = vld [vmem:[#allocation73_spill] sm:$0xff]  ;;  %v12320_v3 = vld [vmem:[#allocation28_spill] sm:$0xff] }
 0x160   : > { %2223 = vmatprep.subr.mxu1 %v2222_v24  ;;  %2277 = vmatprep.subr.mxu0 %v7269_v19  ;;  %v2252_v63 = vand.u32 4294901760, %v2251_v10  ;;  %v2264_v24 = vand.u32 4294901760, %v2263_v48  ;;  %v12318_v10 = vld [vmem:[#allocation92_spill] sm:$0xff] }
 0x161   : > { %1876 = vmatmul.mubr.f32.vlgmr.msra.gmra.mxu0 %v12312_v28  ;;  %2229 = vmatpush2.msra.mxu1 %v2228_v59  ;;  %v12316_v59 = vld [vmem:[#allocation75_spill] sm:$0xff]  ;;  %v12321_v48 = vld [vmem:[#allocation36_spill] sm:$0xff] }
 0x162   : > { %2280 = vmatpush1.msra.mxu0 %v7266_v33  ;;  %2235 = vmatprep.subr.mxu1 %v2234_v46  ;;  %v12319_v46 = vld [vmem:[#allocation38_spill] sm:$0xff]  ;;  %v12327_v28 = vld [vmem:[#allocation19_spill] sm:$0xff]  ;;  %v12328_v35 = vld [vmem:[#allocation32_spill] sm:$0xff] }
 0x163   : > { %2283 = vmatprep.subr.mxu0 %v7282_v36  ;;  %2241 = vmatpush2.msra.mxu1 %v2240_v4  ;;  %v12317_v4 = vld [vmem:[#allocation94_spill] sm:$0xff] }
 0x164   : > { %2286 = vmatpush1.msra.mxu0 %v7288_v0  ;;  %2247 = vmatprep.subr.mxu1 %v2246_v26  ;;  %v12322_v26 = vld [vmem:[#allocation12_spill] sm:$0xff] }
 0x165   : > { %2289 = vmatprep.subr.mxu0 %v12313_v34  ;;  %2253 = vmatpush2.msra.mxu1 %v2252_v63  ;;  %v12323_v63 = vld [vmem:[#allocation40_spill] sm:$0xff] }
 0x166   : > { %2292 = vmatpush1.msra.mxu0 %v12314_v57  ;;  %2259 = vmatprep.subr.mxu1 %v2258_v47  ;;  %v12324_v47 = vld [vmem:[#allocation30_spill] sm:$0xff] }
 0x167   : > { %2295 = vmatprep.subr.mxu0 %v12315_v21  ;;  %2265 = vmatpush2.msra.mxu1 %v2264_v24  ;;  %v12325_v24 = vld [vmem:[#allocation16_spill] sm:$0xff] }
 0x168   : > { %2298 = vmatpush1.msra.mxu0 %v12316_v59  ;;  %2269 = vmatmul.mubr.f32.vlgmr.msra.gmra.mxu1 %v12147_v32  ;;  %v12329_v32 = vld [vmem:[#allocation18_spill] sm:$0xff] }
 0x169   : > { %2301 = vmatprep.subr.mxu0 %v12317_v4  ;;  %2479 = vmatprep.subr.mxu1 %v7245_v5 }
 0x16a   : > { %2304 = vmatpush1.msra.mxu0 %v12318_v10  ;;  %2481 = vmatpush1.msra.mxu1 %v7247_v9 }
 0x16b   : > { %2307 = vmatprep.subr.mxu0 %v12319_v46  ;;  %2483 = vmatprep.subr.mxu1 %v12320_v3  ;;  %v12331_v3 = vld [vmem:[#allocation48_spill] sm:$0xff] }
 0x16c   : > { %2310 = vmatpush1.msra.mxu0 %v12321_v48  ;;  %2485 = vmatpush1.msra.mxu1 %v12322_v26  ;;  %v12332_v48 = vld [vmem:[#allocation91_spill] sm:$0xff]  ;;  %v12333_v26 = vld [vmem:[#allocation20_spill] sm:$0xff] }
 0x16d   : > { %2313 = vmatprep.subr.mxu0 %v12323_v63  ;;  %2487 = vmatprep.subr.mxu1 %v12324_v47  ;;  %v12334_v47 = vld [vmem:[#allocation23_spill] sm:$0xff] }
 0x16e   : > { %2316 = vmatpush1.msra.mxu0 %v12325_v24  ;;  %2489 = vmatpush1.msra.mxu1 %v12326_v55  ;;  %v12335_v24 = vld [vmem:[#allocation90_spill] sm:$0xff] }
 0x16f   : > { %2319 = vmatprep.subr.mxu0 %v12327_v28  ;;  %2491 = vmatprep.subr.mxu1 %v12328_v35  ;;  %v12336_v55 = vld [vmem:[#allocation22_spill] sm:$0xff]  ;;  %v12337_v28 = vld [vmem:[#allocation11_spill] sm:$0xff]  ;;  %v12338_v35 = vld [vmem:[#allocation56_spill] sm:$0xff] }
 0x170   : > { %2322 = vmatpush1.msra.mxu0 %v12329_v32  ;;  %2493 = vmatpush1.msra.mxu1 %v12330_v49  ;;  %v12339_v32 = vld [vmem:[#allocation34_spill] sm:$0xff]  ;;  %v12340_v49 = vld [vmem:[#allocation24_spill] sm:$0xff] }
 0x171   : > { %2325 = vmatprep.subr.mxu0 %v12331_v3  ;;  %2495 = vmatprep.subr.mxu1 %v12332_v48  ;;  %v12341_v3 = vld [vmem:[#allocation14_spill] sm:$0xff] }
 0x172   : > { %2328 = vmatpush1.msra.mxu0 %v12333_v26  ;;  %2497 = vmatpush1.msra.mxu1 %v7313_v58  ;;  %v12342_v58 = vld [vmem:[#allocation26_spill] sm:$0xff] }
 0x173   : > { %2331 = vmatprep.subr.mxu0 %v12334_v47  ;;  %2499 = vmatprep.subr.mxu1 %v12335_v24  ;;  %v12343_v47 = vld [vmem:[#allocation15_spill] sm:$0xff]  ;;  %v12344_v24 = vld [vmem:[#allocation64_spill] sm:$0xff] }
 0x174   : > { %2334 = vmatpush1.msra.mxu0 %v12336_v55  ;;  %2501 = vmatpush1.msra.mxu1 %v12337_v28  ;;  %v12345_v55 = vld [vmem:[#allocation17_spill] sm:$0xff] }
 0x175   : > { %2337 = vmatprep.subr.mxu0 %v12338_v35  ;;  %2503 = vmatprep.subr.mxu1 %v12339_v32  ;;  %v12346_v28 = vld [vmem:[#allocation29_spill] sm:$0xff]  ;;  %v12347_v35 = vld [vmem:[#allocation42_spill] sm:$0xff] }
 0x176   : > { %2340 = vmatpush1.msra.mxu0 %v12340_v49  ;;  %2505 = vmatpush1.msra.mxu1 %v12341_v3  ;;  %v12348_v49 = vld [vmem:[#allocation46_spill] sm:$0xff]  ;;  %v12349_v3 = vld [vmem:[#allocation33_spill] sm:$0xff] }
 0x177   : > { %2343 = vmatprep.subr.mxu0 %v7579_v50  ;;  %2507 = vmatprep.subr.mxu1 %v7406_v16  ;;  %v12350_v50 = vld [vmem:[#allocation44_spill] sm:$0xff] }
 0x178   : > { %2346 = vmatpush1.msra.mxu0 %v12342_v58  ;;  %2509 = vmatpush1.msra.mxu1 %v12343_v47  ;;  %v12351_v58 = vld [vmem:[#allocation21_spill] sm:$0xff] }
 0x179   : > { %2349 = vmatprep.subr.mxu0 %v12344_v24  ;;  %2511 = vmatprep.subr.mxu1 %v12345_v55  ;;  %v12352_v47 = vld [vmem:[#allocation37_spill] sm:$0xff]  ;;  %v12353_v24 = vld [vmem:[#allocation50_spill] sm:$0xff] }
 0x17a   : > { %2352 = vmatpush1.msra.mxu0 %v12346_v28  ;;  %2513 = vmatpush1.msra.mxu1 %v12347_v35  ;;  %v12354_v28 = vld [vmem:[#allocation54_spill] sm:$0xff]  ;;  %v12355_v35 = vld [vmem:[#allocation41_spill] sm:$0xff] }
 0x17b   : > { %2355 = vmatprep.subr.mxu0 %v7642_v40  ;;  %2515 = vmatprep.subr.mxu1 %v12348_v49  ;;  %v12356_v40 = vld [vmem:[#allocation52_spill] sm:$0xff] }
 0x17c   : > { %2358 = vmatpush1.msra.mxu0 %v12349_v3  ;;  %2517 = vmatpush1.msra.mxu1 %v12350_v50  ;;  %v12357_v49 = vld [vmem:[#allocation80_spill] sm:$0xff]  ;;  %v12358_v3 = vld [vmem:[#allocation25_spill] sm:$0xff] }
 0x17d   : > { %2361 = vmatprep.subr.mxu0 %v7665_v11  ;;  %2519 = vmatprep.subr.mxu1 %v12351_v58  ;;  %v12359_v11 = vld [vmem:[#allocation58_spill] sm:$0xff] }
 0x17e   : > { %2364 = vmatpush1.msra.mxu0 %v12352_v47  ;;  %2521 = vmatpush1.msra.mxu1 %v12353_v24  ;;  %v12360_v47 = vld [vmem:[#allocation62_spill] sm:$0xff]  ;;  %v12361_v24 = vld [vmem:[#allocation84_spill] sm:$0xff] }
 0x17f   : > { %2367 = vmatprep.subr.mxu0 %v7713_v62  ;;  %2523 = vmatprep.subr.mxu1 %v12354_v28  ;;  %v12362_v62 = vld [vmem:[#allocation60_spill] sm:$0xff] }
 0x180   : > { %2370 = vmatpush1.msra.mxu0 %v12355_v35  ;;  %2525 = vmatpush1.msra.mxu1 %v12356_v40  ;;  %v12363_v35 = vld [vmem:[#allocation31_spill] sm:$0xff] }
 0x181   : > { %2373 = vmatprep.subr.mxu0 %v12357_v49  ;;  %2527 = vmatprep.subr.mxu1 %v12358_v3  ;;  %v12364_v40 = vld [vmem:[#allocation55_spill] sm:$0xff]  ;;  %v12365_v49 = vld [vmem:[#allocation66_spill] sm:$0xff] }
 0x182   : > { %2376 = vmatpush2.msra.mxu0 %v7720_v2  ;;  %2529 = vmatpush1.msra.mxu1 %v12359_v11  ;;  %v12366_v2 = vld [vmem:[#allocation70_spill] sm:$0xff]  ;;  %v12367_v11 = vld [vmem:[#allocation59_spill] sm:$0xff] }
 0x183   : > { %2379 = vmatprep.subr.mxu0 %v7776_v37  ;;  %2531 = vmatprep.subr.mxu1 %v12360_v47  ;;  %v12368_v37 = vld [vmem:[#allocation68_spill] sm:$0xff]  ;;  %v12369_v47 = vld [vmem:[#allocation79_spill] sm:$0xff] }
 0x184   : > { %2382 = vmatpush2.msra.mxu0 %v12361_v24  ;;  %2533 = vmatpush1.msra.mxu1 %v12362_v62  ;;  %v12370_v24 = vld [vmem:[#allocation39_spill] sm:$0xff] }
 0x185   : > { %2385 = vmatprep.subr.mxu0 %v7791_v30  ;;  %2535 = vmatprep.subr.mxu1 %v12363_v35  ;;  %v12371_v30 = vld [vmem:[#allocation74_spill] sm:$0xff] }
 0x186   : > { %2388 = vmatpush2.msra.mxu0 %v12364_v40  ;;  %2537 = vmatpush1.msra.mxu1 %v12365_v49  ;;  %v12372_v40 = vld [vmem:[#allocation76_spill] sm:$0xff]  ;;  %v12373_v49 = vld [vmem:[#allocation81_spill] sm:$0xff] }
 0x187   : > { %2391 = vmatprep.subr.mxu0 %v7839_v17  ;;  %2539 = vmatprep.subr.mxu1 %v12366_v2  ;;  %v12374_v17 = vld [vmem:[#allocation43_spill] sm:$0xff]  ;;  %v12375_v2 = vld [vmem:[#allocation106_spill] sm:$0xff] }
 0x188   : > { %2394 = vmatpush2.msra.mxu0 %v12367_v11  ;;  %2541 = vmatpush1.msra.mxu1 %v12368_v37  ;;  %v12376_v11 = vld [vmem:[#allocation47_spill] sm:$0xff] }
 0x189   : > { %2397 = vmatprep.subr.mxu0 %v12369_v47  ;;  %2543 = vmatprep.subr.mxu1 %v12370_v24  ;;  %v12377_v37 = vld [vmem:[#allocation87_spill] sm:$0xff]  ;;  %v12378_v47 = vld [vmem:[#allocation49_spill] sm:$0xff] }
 0x18a   : > { %2400 = vmatpush2.msra.mxu0 %v7845_v22  ;;  %2545 = vmatpush2.msra.mxu1 %v12371_v30  ;;  %v12379_v22 = vld [vmem:[#allocation86_spill] sm:$0xff]  ;;  %v12380_v30 = vld [vmem:[#allocation107_spill] sm:$0xff] }
 0x18b   : > { %2403 = vmatprep.subr.mxu0 %v7904_v51  ;;  %2547 = vmatprep.subr.mxu1 %v12372_v40  ;;  %v12381_v51 = vld [vmem:[#allocation51_spill] sm:$0xff] }
 0x18c   : > { %2406 = vmatpush2.msra.mxu0 %v12373_v49  ;;  %2549 = vmatpush2.msra.mxu1 %v12374_v17  ;;  %v12382_v49 = vld [vmem:[#allocation61_spill] sm:$0xff] }
 0x18d   : > { %2409 = vmatprep.subr.mxu0 %v12375_v2  ;;  %2551 = vmatprep.subr.mxu1 %v12376_v11  ;;  %v12383_v2 = vld [vmem:[#allocation63_spill] sm:$0xff] }
 0x18e   : > { %2412 = vmatpush2.msra.mxu0 %v12377_v37  ;;  %2553 = vmatpush2.msra.mxu1 %v12378_v47  ;;  %v12384_v37 = vld [vmem:[#allocation67_spill] sm:$0xff] }
 0x18f   : > { %2415 = vmatprep.subr.mxu0 %v7954_v13  ;;  %2555 = vmatprep.subr.mxu1 %v12379_v22  ;;  %v12385_v13 = vld [vmem:[#allocation65_spill] sm:$0xff] }
 0x190   : > { %2418 = vmatpush2.msra.mxu0 %v12380_v30  ;;  %2557 = vmatpush2.msra.mxu1 %v12381_v51  ;;  %v12386_v30 = vld [vmem:[#allocation83_spill] sm:$0xff] }
 0x191   : > { %2421 = vmatprep.subr.mxu0 %v7987_v44  ;;  %2559 = vmatprep.subr.mxu1 %v12382_v49  ;;  %v12387_v44 = vld [vmem:[#allocation77_spill] sm:$0xff] }
 0x192   : > { %2424 = vmatpush2.msra.mxu0 %v7959_v20  ;;  %2561 = vmatpush2.msra.mxu1 %v12383_v2  ;;  %v12388_v20 = vld [vmem:[#allocation85_spill] sm:$0xff] }
 0x193   : > { %2427 = vmatprep.subr.mxu0 %v8009_v6  ;;  %2563 = vmatprep.subr.mxu1 %v12384_v37  ;;  %v12389_v6 = vld [vmem:[#allocation103_spill] sm:$0xff] }
 0x194   : > { %2430 = vmatpush2.msra.mxu0 %v7982_v8  ;;  %2565 = vmatpush2.msra.mxu1 %v12385_v13  ;;  %v12390_v8 = vld [vmem:[#allocation108_spill] sm:$0xff] }
 0x195   : > { %2433 = vmatprep.subr.mxu0 %v8035_v1  ;;  %2567 = vmatprep.subr.mxu1 %v12386_v30  ;;  %v12391_v1 = vld [vmem:[#allocation105_spill] sm:$0xff] }
 0x196   : > { %2436 = vmatpush2.msra.mxu0 %v8016_v38  ;;  %2569 = vmatpush2.msra.mxu1 %v12387_v44  ;;  %v12392_v38 = vld [vmem:[#allocation110_spill] sm:$0xff] }
 0x197   : > { %2439 = vmatprep.subr.mxu0 %v8051_v53  ;;  %2571 = vmatprep.subr.mxu1 %v12388_v20  ;;  %v12393_v53 = vld [vmem:[#allocation109_spill] sm:$0xff] }
 0x198   : > { %2442 = vmatpush2.msra.mxu0 %v8042_v52  ;;  %2573 = vmatpush2.msra.mxu1 %v12389_v6  ;;  %v12394_v52 = vld [vmem:[#allocation115_spill] sm:$0xff] }
 0x199   : > { %2445 = vmatprep.subr.mxu0 %v8068_v60  ;;  %2575 = vmatprep.subr.mxu1 %v12390_v8 }
 0x19a   : > { %2448 = vmatpush2.msra.mxu0 %v8064_v31  ;;  %2577 = vmatpush2.msra.mxu1 %v12391_v1 }
 0x19b   : > { %2451 = vmatprep.subr.mxu0 %v8095_v27  ;;  %2579 = vmatprep.subr.mxu1 %v12392_v38  ;;  %v12395_v27 = vld [vmem:[#allocation98_spill] sm:$0xff] }
 0x19c   : > { %2454 = vmatpush2.msra.mxu0 %v8082_v61  ;;  %2581 = vmatpush2.msra.mxu1 %v12393_v53  ;;  %v12396_v61 = vld [vmem:[#allocation97_spill] sm:$0xff] }
 0x19d   : > { %2457 = vmatprep.subr.mxu0 %v8109_v39  ;;  %2583 = vmatprep.subr.mxu1 %v12394_v52  ;;  %v12397_v52 = vand.u32 4294901760, %v7269_v19  ;;  %v12401_v19 = vand.u32 4294901760, %v12313_v34  ;;  %v12410_v34 = vld [vmem:[#allocation28_spill] sm:$0xff] }
 0x19e   : > { %2460 = vmatpush2.msra.mxu0 %v8113_v43  ;;  %2585 = vmatpush2.msra.mxu1 %v7975_v15  ;;  %v12398_v15 = vand.u32 4294901760, %v7266_v33  ;;  %v12402_v33 = vand.u32 4294901760, %v12314_v57  ;;  %v12408_v57 = vand.u32 4294901760, %v12318_v10 }
 0x19f   : > { %2463 = vmatprep.subr.mxu0 %v8125_v25  ;;  %2587 = vmatprep.subr.mxu1 %v8006_v56 }
 0x1a0   : > { %2466 = vmatpush2.msra.mxu0 %v8129_v12  ;;  %2469 = vmatprep.mubr.f32.mxu0 %v12395_v27  ;;  %v12399_v12 = vand.u32 4294901760, %v7282_v36  ;;  %v12400_v27 = vand.u32 4294901760, %v7288_v0  ;;  %v12403_v36 = vand.u32 4294901760, %v12315_v21  ;;  %v12405_v0 = vand.u32 4294901760, %v12316_v59  ;;  %v12411_v21 = vld [vmem:[#allocation36_spill] sm:$0xff] }
 0x1a1   : > { %2589 = vmatpush2.msra.mxu1 %v7997_v23  ;;  %2472 = vmatmul.mubr.f32.vlgmr.msra.gmra.mxu0 %v12396_v61  ;;  %v12412_v59 = vand.u32 4294901760, %v12411_v21  ;;  %v12427_v21 = vand.u32 4294901760, %v12333_v26 }
 0x1a2   : > { %2591 = vmatprep.subr.mxu1 %v8029_v7  ;;  %2622 = vmatprep.subr.mxu0 %v12397_v52  ;;  %v12406_v52 = vld [vmem:[#allocation99_spill] sm:$0xff] }
 0x1a3   : > { %2593 = vmatpush2.msra.mxu1 %v8032_v29  ;;  %2626 = vmatpush1.msra.mxu0 %v12398_v15  ;;  %v12404_v15 = vld [vmem:[#allocation100_spill] sm:$0xff] }
 0x1a4   : > { %2595 = vmatprep.subr.mxu1 %v8056_v18  ;;  %2630 = vmatprep.subr.mxu0 %v12399_v12  ;;  %v12409_v12 = vand.u32 4294901760, %v12319_v46 }
 0x1a5   : > { %2597 = vmatpush2.msra.mxu1 %v8048_v41  ;;  %2634 = vmatpush1.msra.mxu0 %v12400_v27  ;;  %v12407_v27 = vand.u32 4294901760, %v12317_v4  ;;  %v12414_v4 = vand.u32 4294901760, %v12323_v63 }
 0x1a6   : > { %2599 = vmatprep.subr.mxu1 %v8074_v45  ;;  %2638 = vmatprep.subr.mxu0 %v12401_v19  ;;  %v12413_v19 = vld [vmem:[#allocation12_spill] sm:$0xff] }
 0x1a7   : > { %2601 = vmatpush2.msra.mxu1 %v8084_v42  ;;  %2642 = vmatpush1.msra.mxu0 %v12402_v33  ;;  %v12415_v33 = vld [vmem:[#allocation30_spill] sm:$0xff] }
 0x1a8   : > { %2603 = vmatprep.subr.mxu1 %v8091_v54  ;;  %2646 = vmatprep.subr.mxu0 %v12403_v36  ;;  %v12418_v36 = vld [vmem:[#allocation13_spill] sm:$0xff] }
 0x1a9   : > { %2605 = vmatpush2.msra.mxu1 %v8101_v14  ;;  %2609 = vmatprep.mubr.f32.mxu1 %v12404_v15 }
 0x1aa   : > { %2650 = vmatpush1.msra.mxu0 %v12405_v0  ;;  %2613 = vmatmul.mubr.f32.vlgmr.msra.gmra.mxu1 %v12406_v52  ;;  %v12421_v0 = vld [vmem:[#allocation32_spill] sm:$0xff] }
 0x1ab   : > { %2654 = vmatprep.subr.mxu0 %v12407_v27  ;;  %2885 = vmatprep.subr.mxu1 %v7245_v5  ;;  %v12416_v5 = vld [vmem:[#allocation16_spill] sm:$0xff]  ;;  %v12422_v27 = vld [vmem:[#allocation18_spill] sm:$0xff] }
 0x1ac   : > { %2658 = vmatpush1.msra.mxu0 %v12408_v57  ;;  %2887 = vmatpush1.msra.mxu1 %v7247_v9  ;;  %v12417_v10 = vand.u32 4294901760, %v12416_v5  ;;  %v12419_v9 = vld [vmem:[#allocation19_spill] sm:$0xff]  ;;  %v12423_v57 = vand.u32 4294901760, %v12422_v27  ;;  %v12432_v5 = vld [vmem:[#allocation22_spill] sm:$0xff] }
 0x1ad   : > { %2662 = vmatprep.subr.mxu0 %v12409_v12  ;;  %2889 = vmatprep.subr.mxu1 %v12410_v34  ;;  %v12420_v46 = vand.u32 4294901760, %v12419_v9  ;;  %v12424_v12 = vld [vmem:[#allocation82_spill] sm:$0xff]  ;;  %v12425_v34 = vld [vmem:[#allocation48_spill] sm:$0xff]  ;;  %v12440_v27 = vld [vmem:[#allocation27_spill] sm:$0xff] }
 0x1ae   : > { %2666 = vmatpush1.msra.mxu0 %v12412_v59  ;;  %2891 = vmatpush1.msra.mxu1 %v12413_v19  ;;  %v12426_v63 = vand.u32 4294901760, %v12425_v34  ;;  %v12428_v59 = vld [vmem:[#allocation93_spill] sm:$0xff]  ;;  %v12429_v19 = vld [vmem:[#allocation23_spill] sm:$0xff]  ;;  %v12435_v9 = vld [vmem:[#allocation56_spill] sm:$0xff] }
 0x1af   : > { %2670 = vmatprep.subr.mxu0 %v12414_v4  ;;  %2893 = vmatprep.subr.mxu1 %v12415_v33  ;;  %v12430_v4 = vand.u32 4294901760, %v12429_v19  ;;  %v12431_v33 = vld [vmem:[#allocation90_spill] sm:$0xff] }
 0x1b0   : > { %2674 = vmatpush1.msra.mxu0 %v12417_v10  ;;  %2895 = vmatpush1.msra.mxu1 %v12418_v36  ;;  %v12433_v10 = vand.u32 4294901760, %v12432_v5  ;;  %v12434_v36 = vld [vmem:[#allocation11_spill] sm:$0xff] }
 0x1b1   : > { %2678 = vmatprep.subr.mxu0 %v12420_v46  ;;  %2897 = vmatprep.subr.mxu1 %v12421_v0  ;;  %v12436_v46 = vand.u32 4294901760, %v12435_v9  ;;  %v12439_v0 = vld [vmem:[#allocation14_spill] sm:$0xff]  ;;  %v12455_v9 = vld [vmem:[#allocation72_spill] sm:$0xff] }
 0x1b2   : > { %2682 = vmatpush1.msra.mxu0 %v12423_v57  ;;  %2899 = vmatpush1.msra.mxu1 %v12424_v12  ;;  %v12441_v57 = vand.u32 4294901760, %v12440_v27  ;;  %v12442_v12 = vld [vmem:[#allocation26_spill] sm:$0xff] }
 0x1b3   : > { %2686 = vmatprep.subr.mxu0 %v12426_v63  ;;  %2901 = vmatprep.subr.mxu1 %v12332_v48  ;;  %v12437_v48 = vld [vmem:[#allocation24_spill] sm:$0xff]  ;;  %v12443_v34 = vand.u32 4294901760, %v12442_v12  ;;  %v12444_v63 = vld [vmem:[#allocation15_spill] sm:$0xff] }
 0x1b4   : > { %2690 = vmatpush1.msra.mxu0 %v12427_v21  ;;  %2903 = vmatpush1.msra.mxu1 %v12428_v59  ;;  %v12438_v26 = vand.u32 4294901760, %v12437_v48  ;;  %v12445_v21 = vld [vmem:[#allocation64_spill] sm:$0xff] }
 0x1b5   : > { %2694 = vmatprep.subr.mxu0 %v12430_v4  ;;  %2905 = vmatprep.subr.mxu1 %v12431_v33  ;;  %v12446_v59 = vand.u32 4294901760, %v12445_v21  ;;  %v12449_v4 = vld [vmem:[#allocation42_spill] sm:$0xff]  ;;  %v12450_v33 = vld [vmem:[#allocation35_spill] sm:$0xff] }
 0x1b6   : > { %2698 = vmatpush1.msra.mxu0 %v12433_v10  ;;  %2907 = vmatpush1.msra.mxu1 %v12434_v36  ;;  %v12451_v5 = vand.u32 4294901760, %v12450_v33  ;;  %v12452_v10 = vld [vmem:[#allocation46_spill] sm:$0xff] }
 0x1b7   : > { %2702 = vmatprep.subr.mxu0 %v12436_v46  ;;  %2909 = vmatprep.subr.mxu1 %v12339_v32  ;;  %v12447_v32 = vld [vmem:[#allocation29_spill] sm:$0xff]  ;;  %v12456_v46 = vand.u32 4294901760, %v12455_v9  ;;  %v12479_v9 = vld [vmem:[#allocation66_spill] sm:$0xff] }
 0x1b8   : > { %2706 = vmatpush1.msra.mxu0 %v12438_v26  ;;  %2911 = vmatpush1.msra.mxu1 %v12439_v0  ;;  %v12448_v19 = vand.u32 4294901760, %v12447_v32  ;;  %v12459_v26 = vld [vmem:[#allocation50_spill] sm:$0xff]  ;;  %v12470_v32 = vld [vmem:[#allocation53_spill] sm:$0xff] }
 0x1b9   : > { %2710 = vmatprep.subr.mxu0 %v12441_v57  ;;  %2913 = vmatprep.subr.mxu1 %v7406_v16  ;;  %v12453_v16 = vld [vmem:[#allocation33_spill] sm:$0xff]  ;;  %v12460_v0 = vld [vmem:[#allocation78_spill] sm:$0xff] }
 0x1ba   : > { %2714 = vmatpush1.msra.mxu0 %v12443_v34  ;;  %2915 = vmatpush1.msra.mxu1 %v12444_v63  ;;  %v12454_v36 = vand.u32 4294901760, %v12453_v16  ;;  %v12461_v27 = vand.u32 4294901760, %v12460_v0  ;;  %v12462_v57 = vld [vmem:[#allocation41_spill] sm:$0xff]  ;;  %v12464_v34 = vld [vmem:[#allocation52_spill] sm:$0xff]  ;;  %v12477_v16 = vld [vmem:[#allocation55_spill] sm:$0xff] }
 0x1bb   : > { %2718 = vmatprep.subr.mxu0 %v12446_v59  ;;  %2917 = vmatprep.subr.mxu1 %v12345_v55  ;;  %v12457_v55 = vld [vmem:[#allocation37_spill] sm:$0xff]  ;;  %v12463_v12 = vand.u32 4294901760, %v12462_v57  ;;  %v12469_v59 = vld [vmem:[#allocation58_spill] sm:$0xff]  ;;  %v12485_v57 = vld [vmem:[#allocation68_spill] sm:$0xff] }
 0x1bc   : > { %2722 = vmatpush1.msra.mxu0 %v12448_v19  ;;  %2919 = vmatpush1.msra.mxu1 %v12449_v4  ;;  %v12458_v48 = vand.u32 4294901760, %v12457_v55  ;;  %v12471_v19 = vand.u32 4294901760, %v12470_v32  ;;  %v12472_v4 = vld [vmem:[#allocation62_spill] sm:$0xff] }
 0x1bd   : > { %2726 = vmatprep.subr.mxu0 %v12451_v5  ;;  %2921 = vmatprep.subr.mxu1 %v12452_v10  ;;  %v12475_v5 = vld [vmem:[#allocation57_spill] sm:$0xff]  ;;  %v311_v0 = vld [vmem:[#allocation2 + $0x3a8] sm:$0xff] }
 0x1be   : > { %2730 = vmatpush1.msra.mxu0 %v12454_v36  ;;  %2923 = vmatpush1.msra.mxu1 %v12350_v50  ;;  %v12465_v50 = vld [vmem:[#allocation80_spill] sm:$0xff]  ;;  %v12476_v10 = vand.u32 4294901760, %v12475_v5  ;;  %v12478_v36 = vand.u32 4294901760, %v12477_v16  ;;  %v12493_v16 = vld [vmem:[#allocation81_spill] sm:$0xff] }
 0x1bf   : > { %2734 = vmatprep.subr.mxu0 %v12456_v46  ;;  %2925 = vmatprep.subr.mxu1 %v12351_v58  ;;  %v12466_v63 = vand.u32 4294901760, %v12465_v50  ;;  %v12467_v58 = vld [vmem:[#allocation45_spill] sm:$0xff] }
 0x1c0   : > { %2738 = vmatpush1.msra.mxu0 %v12458_v48  ;;  %2927 = vmatpush1.msra.mxu1 %v12459_v26  ;;  %v12468_v21 = vand.u32 4294901760, %v12467_v58  ;;  %v12480_v46 = vld [vmem:[#allocation69_spill] sm:$0xff]  ;;  %v12482_v48 = vld [vmem:[#allocation70_spill] sm:$0xff]  ;;  %v12488_v58 = vld [vmem:[#allocation71_spill] sm:$0xff] }
 0x1c1   : > { %2742 = vmatprep.subr.mxu0 %v12461_v27  ;;  %2929 = vmatprep.subr.mxu1 %v12354_v28  ;;  %v12473_v28 = vld [vmem:[#allocation84_spill] sm:$0xff]  ;;  %v12481_v55 = vand.u32 4294901760, %v12480_v46  ;;  %v318_v26 = vld [vmem:[#allocation2 + $0x3e0] sm:$0xff]  ;;  %v12483_v27 = vld [vmem:[#allocation59_spill] sm:$0xff] }
 0x1c2   : > { %2746 = vmatpush1.msra.mxu0 %v12463_v12  ;;  %2931 = vmatpush1.msra.mxu1 %v12464_v34  ;;  %v12474_v33 = vand.u32 4294901760, %v12473_v28  ;;  %v12486_v34 = vld [vmem:[#allocation79_spill] sm:$0xff]  ;;  %v8423_v32 = vand.u32 4294901760, %v318_v26  ;;  %v295_v28 = vld [vmem:[#allocation2 + $0x328] sm:$0xff] }
 0x1c3   : > { %2750 = vmatprep.subr.mxu0 %v12466_v63  ;;  %2933 = vmatprep.subr.mxu1 %v12358_v3  ;;  %v319_v3 = vld [vmem:[#allocation2 + $0x3e8] sm:$0xff]  ;;  %v12487_v50 = vand.u32 4294901760, %v12486_v34 }
 0x1c4   : > { %2754 = vmatpush2.msra.mxu0 %v12468_v21  ;;  %2935 = vmatpush1.msra.mxu1 %v12469_v59  ;;  %v8415_v12 = vand.u32 4294901760, %v319_v3  ;;  %v303_v63 = vld [vmem:[#allocation2 + $0x368] sm:$0xff]  ;;  %v12489_v21 = vand.u32 4294901760, %v12488_v58 }
 0x1c5   : > { %2758 = vmatprep.subr.mxu0 %v12471_v19  ;;  %2937 = vmatprep.subr.mxu1 %v12472_v4  ;;  %v12490_v59 = vld [vmem:[#allocation74_spill] sm:$0xff]  ;;  %v8425_v19 = vand.u32 4294901760, %v311_v0  ;;  %v302_v4 = vld [vmem:[#allocation2 + $0x360] sm:$0xff] }
 0x1c6   : > { %2762 = vmatpush2.msra.mxu0 %v12474_v33  ;;  %2939 = vmatpush1.msra.mxu1 %v12362_v62  ;;  %v12484_v62 = vand.u32 4294901760, %v12483_v27  ;;  %v12491_v33 = vld [vmem:[#allocation104_spill] sm:$0xff]  ;;  %v287_v46 = vld [vmem:[#allocation2 + $0x2e8] sm:$0xff] }
 0x1c7   : > { %2766 = vmatprep.subr.mxu0 %v12476_v10  ;;  %2941 = vmatprep.subr.mxu1 %v12363_v35  ;;  %v310_v35 = vld [vmem:[#allocation2 + $0x3a0] sm:$0xff]  ;;  %v12492_v5 = vand.u32 4294901760, %v12491_v33  ;;  %v8456_v58 = vsub.f32 %v311_v0, %v8425_v19  ;;  %v8464_v33 = vand.u32 4294901760, %v287_v46 }
 0x1c8   : > { %2770 = vmatpush2.msra.mxu0 %v12478_v36  ;;  %2943 = vmatpush1.msra.mxu1 %v12479_v9  ;;  %v8430_v10 = vand.u32 4294901760, %v310_v35  ;;  %v12494_v36 = vand.u32 4294901760, %v12493_v16  ;;  %v8435_v9 = vand.u32 4294901760, %v303_v63  ;;  %v278_v16 = vld [vmem:[#allocation2 + $0x2a0] sm:$0xff] }
 0x1c9   : > { %2774 = vmatprep.subr.mxu0 %v12481_v55  ;;  %2945 = vmatprep.subr.mxu1 %v12482_v48  ;;  %v8438_v55 = vsub.f32 %v319_v3, %v8415_v12  ;;  %v12497_v48 = vld [vmem:[#allocation106_spill] sm:$0xff]  ;;  %v286_v3 = vld [vmem:[#allocation2 + $0x2e0] sm:$0xff]  ;;  %12505 = vst [vmem:[#allocation38_spill] sm:$0xff] %v8456_v58  ;;  %12509 = vst [vmem:[#allocation91_spill] sm:$0xff] %v8464_v33 }
 0x1ca   : > { %2778 = vmatpush2.msra.mxu0 %v12484_v62  ;;  %2947 = vmatpush1.msra.mxu1 %v12485_v57  ;;  %12495 = vst [vmem:[#allocation89_spill] sm:$0xff] %v8435_v9  ;;  %v12498_v27 = vand.u32 4294901760, %v12497_v48  ;;  %v8445_v62 = vand.u32 4294901760, %v295_v28  ;;  %v12501_v57 = vld [vmem:[#allocation87_spill] sm:$0xff]  ;;  %v8471_v0 = vsub.f32 %v303_v63, %v8435_v9  ;;  %v12513_v48 = vld [vmem:[#allocation116_spill] sm:$0xff] }
 0x1cb   : > { %2782 = vmatprep.subr.mxu0 %v12487_v50  ;;  %2949 = vmatprep.subr.mxu1 %v12370_v24  ;;  %v294_v24 = vld [vmem:[#allocation2 + $0x320] sm:$0xff]  ;;  %12496 = vst [vmem:[#allocation88_spill] sm:$0xff] %v8438_v55  ;;  %v12502_v34 = vand.u32 4294901760, %v12501_v57  ;;  %v279_v57 = vld [vmem:[#allocation2 + $0x2a8] sm:$0xff] }
 0x1cc   : > { %2786 = vmatpush2.msra.mxu0 %v12489_v21  ;;  %2951 = vmatpush2.msra.mxu1 %v12490_v59  ;;  %12500 = vst [vmem:[#allocation75_spill] sm:$0xff] %v8445_v62  ;;  %v8453_v50 = vand.u32 4294901760, %v294_v24  ;;  %v12506_v21 = vld [vmem:[#allocation111_spill] sm:$0xff]  ;;  %v8462_v59 = vsub.f32 %v310_v35, %v8430_v10  ;;  %12512 = vst [vmem:[#allocation20_spill] sm:$0xff] %v8471_v0  ;;  %v8479_v35 = vand.u32 4294901760, %v286_v3 }
 0x1cd   : > { %2790 = vmatprep.subr.mxu0 %v12492_v5  ;;  %2953 = vmatprep.subr.mxu1 %v12372_v40  ;;  %v8443_v40 = vand.u32 4294901760, %v302_v4 }
 0x1ce   : > { %2794 = vmatpush2.msra.mxu0 %v12494_v36  ;;  %2955 = vmatpush2.msra.mxu1 %v12374_v17  ;;  %v8451_v17 = vsub.f32 %v318_v26, %v8423_v32  ;;  %12504 = vst [vmem:[#allocation92_spill] sm:$0xff] %v8453_v50  ;;  %12508 = vst [vmem:[#allocation40_spill] sm:$0xff] %v8462_v59  ;;  %v11359_v26 = vand.u32 4294901760, %v8438_v55  ;;  %v986_v36 = vpop.f32.mrf.mxu1  ;;  %v8488_v63 = vsub.f32 %v294_v24, %v8453_v50 }
 0x1cf   : > { %2798 = vmatprep.subr.mxu0 %v12498_v27  ;;  %2957 = vmatprep.subr.mxu1 %v12376_v11  ;;  %12499 = vst [vmem:[#allocation73_spill] sm:$0xff] %v8443_v40  ;;  %v12507_v11 = vand.u32 4294901760, %v12506_v21  ;;  %v12514_v27 = vand.u32 4294901760, %v12513_v48  ;;  %12516 = vst [vmem:[#allocation17_spill] sm:$0xff] %v8479_v35  ;;  %v12518_v21 = vld [vmem:[#allocation112_spill] sm:$0xff]  ;;  %v12528_v48 = vld [vmem:[#allocation119_spill] sm:$0xff] }
 0x1d0   : > { %2802 = vmatpush2.msra.mxu0 %v12502_v34  ;;  %2959 = vmatpush2.msra.mxu1 %v12378_v47  ;;  %12503 = vst [vmem:[#allocation94_spill] sm:$0xff] %v8451_v17  ;;  %v12510_v47 = vld [vmem:[#allocation107_spill] sm:$0xff]  ;;  %v593_v34 = vpop.f32.mrf.mxu0  ;;  %12520 = vst [vmem:[#allocation21_spill] sm:$0xff] %v8488_v63  ;;  %v8507_v24 = vsub.f32 %v8438_v55, %v11359_v26  ;;  %v238_v55 = vld [vmem:[#allocation2 + $0x160] sm:$0xff] }
 0x1d1   : > { %2806 = vmatprep.subr.mxu0 %v12507_v11  ;;  %2961 = vmatprep.subr.mxu1 %v12379_v22  ;;  %v12511_v5 = vand.u32 4294901760, %v12510_v47  ;;  %v8477_v22 = vsub.f32 %v302_v4, %v8443_v40  ;;  %v12519_v11 = vand.u32 4294901760, %v12518_v21  ;;  %v12521_v47 = vld [vmem:[#allocation117_spill] sm:$0xff]  ;;  %v12529_v4 = vand.u32 4294901760, %v12528_v48 }
 0x1d2   : > { %2963 = vmatpush2.msra.mxu1 %v12381_v51  ;;  %v8482_v51 = vsub.f32 %v295_v28, %v8445_v62  ;;  %v8495_v28 = vand.u32 4294901760, %v278_v16  ;;  %v8520_v26 = vadd.f32 %v986_v36, %v593_v34  ;;  %v12533_v48 = vand.u32 4294901760, %v8451_v17  ;;  %v12535_v36 = vld [vmem:[#allocation121_spill] sm:$0xff] }
 0x1d3   : > { %2810 = vmatpush2.msra.mxu0 %v12511_v5  ;;  %2965 = vmatprep.subr.mxu1 %v12382_v49  ;;  %12515 = vst [vmem:[#allocation34_spill] sm:$0xff] %v8477_v22  ;;  %v12522_v5 = vand.u32 4294901760, %v12521_v47  ;;  %v12531_v49 = vld [vmem:[#allocation118_spill] sm:$0xff]  ;;  %v12536_v34 = vand.u32 4294901760, %v12535_v36  ;;  %v12540_v36 = vld [vmem:[#allocation120_spill] sm:$0xff]  ;;  %v12566_v47 = vand.u32 4294901760, %v8113_v43 }
 0x1d4   : > { %2814 = vmatprep.subr.mxu0 %v12514_v27  ;;  %12517 = vst [vmem:[#allocation44_spill] sm:$0xff] %v8482_v51  ;;  %2967 = vmatpush2.msra.mxu1 %v12383_v2  ;;  %12523 = vst [vmem:[#allocation54_spill] sm:$0xff] %v8495_v28  ;;  %v8499_v27 = vsub.f32 %v287_v46, %v8464_v33  ;;  %v12525_v2 = vld [vmem:[#allocation114_spill] sm:$0xff]  ;;  %v8516_v46 = vsub.f32 %v286_v3, %v8479_v35  ;;  %v12532_v52 = vand.u32 4294901760, %v12531_v49 }
 0x1d5   : > { %2818 = vmatpush2.msra.mxu0 %v12519_v11  ;;  %2969 = vmatprep.subr.mxu1 %v12384_v37  ;;  %v12526_v21 = vand.u32 4294901760, %v12525_v2  ;;  %v8509_v11 = vand.u32 4294901760, %v279_v57  ;;  %v271_v37 = vld [vmem:[#allocation2 + $0x268] sm:$0xff] }
 0x1d6   : > { %2822 = vmatprep.subr.mxu0 %v12522_v5  ;;  %12524 = vst [vmem:[#allocation25_spill] sm:$0xff] %v8499_v27  ;;  %2971 = vmatpush2.msra.mxu1 %v12385_v13  ;;  %v988_v5 = vpop.f32.mrf.mxu1  ;;  %12530 = vst [vmem:[#allocation31_spill] sm:$0xff] %v8516_v46  ;;  %v270_v13 = vld [vmem:[#allocation2 + $0x260] sm:$0xff] }
 0x1d7   : > { %2826 = vmatpush2.msra.mxu0 %v12526_v21  ;;  %12527 = vst [vmem:[#allocation60_spill] sm:$0xff] %v8509_v11  ;;  %2973 = vmatprep.subr.mxu1 %v12386_v30  ;;  %v595_v21 = vpop.f32.mrf.mxu0  ;;  %v12534_v30 = vand.u32 4294901760, %v8456_v58  ;;  %v8564_v61 = vsub.f32 %v279_v57, %v8509_v11  ;;  %v254_v57 = vld [vmem:[#allocation2 + $0x1e0] sm:$0xff] }
 0x1d8   : > { %2830 = vmatprep.subr.mxu0 %v12529_v4  ;;  %2975 = vmatpush2.msra.mxu1 %v12387_v44  ;;  %v8528_v4 = vsub.f32 %v8451_v17, %v12533_v48  ;;  %v8540_v44 = vsub.f32 %v278_v16, %v8495_v28  ;;  %v8547_v48 = vand.u32 4294901760, %v271_v37  ;;  %v8550_v15 = vadd.f32 %v988_v5, %v595_v21 }
 0x1d9   : > { %2834 = vmatpush2.msra.mxu0 %v12532_v52  ;;  %v8533_v3 = vsub.f32 %v8456_v58, %v12534_v30  ;;  %2977 = vmatprep.subr.mxu1 %v12388_v20  ;;  %v12538_v52 = vand.u32 4294901760, %v8462_v59  ;;  %v262_v30 = vld [vmem:[#allocation2 + $0x220] sm:$0xff]  ;;  %v8552_v2 = vpop.f32.mrf.mxu0  ;;  %v12542_v16 = vand.u32 4294901760, %v8471_v0  ;;  %12543 = vst [vmem:[#allocation43_spill] sm:$0xff] %v8564_v61  ;;  %v12544_v5 = vand.u32 4294901760, %v8068_v60 }
 0x1da   : > { %2838 = vmatprep.subr.mxu0 %v12536_v34  ;;  %12537 = vst [vmem:[#allocation39_spill] sm:$0xff] %v8540_v44  ;;  %12539 = vst [vmem:[#allocation76_spill] sm:$0xff] %v8547_v48  ;;  %v12541_v34 = vand.u32 4294901760, %v12540_v36  ;;  %2979 = vmatpush2.msra.mxu1 %v12389_v6  ;;  %v8569_v21 = vand.u32 4294901760, %v270_v13  ;;  %v12546_v36 = vand.u32 4294901760, %v8477_v22  ;;  %v12547_v20 = vand.u32 4294901760, %v8482_v51 }
 0x1db   : > { %v8545_v49 = vsub.f32 %v8462_v59, %v12538_v52  ;;  %v8561_v52 = vsub.f32 %v8471_v0, %v12542_v16  ;;  %2981 = vmatprep.subr.mxu1 %v12390_v8  ;;  %v12549_v60 = vand.u32 4294901760, %v8064_v31  ;;  %v8605_v59 = vsub.f32 %v271_v37, %v8547_v48 }
 0x1dc   : > { %2842 = vmatpush2.msra.mxu0 %v12541_v34  ;;  %12545 = vst [vmem:[#allocation47_spill] sm:$0xff] %v8569_v21  ;;  %v8574_v6 = vsub.f32 %v8477_v22, %v12546_v36  ;;  %v263_v34 = vld [vmem:[#allocation2 + $0x228] sm:$0xff]  ;;  %v8579_v16 = vsub.f32 %v8482_v51, %v12547_v20  ;;  %2983 = vmatpush2.msra.mxu1 %v12391_v1  ;;  %v8587_v36 = vand.u32 4294901760, %v262_v30  ;;  %v12551_v22 = vand.u32 4294901760, %v8488_v63  ;;  %v12553_v20 = vld [vmem:[#allocation123_spill] sm:$0xff] }
 0x1dd   : > { %2846 = vmatprep.subr.mxu0 %v12544_v5  ;;  %v12554_v51 = vand.u32 4294901760, %v12553_v20  ;;  %2985 = vmatprep.subr.mxu1 %v12392_v38  ;;  %v12555_v1 = vand.u32 4294901760, %v8499_v27  ;;  %v246_v5 = vld [vmem:[#allocation2 + $0x1a0] sm:$0xff]  ;;  %12557 = vst [vmem:[#allocation63_spill] sm:$0xff] %v8605_v59  ;;  %v12558_v20 = vld [vmem:[#allocation122_spill] sm:$0xff]  ;;  %v8611_v31 = vand.u32 4294901760, %v263_v34 }
 0x1de   : > { %12548 = vst [vmem:[#allocation49_spill] sm:$0xff] %v8579_v16  ;;  %2850 = vmatpush2.msra.mxu0 %v12549_v60  ;;  %12550 = vst [vmem:[#allocation86_spill] sm:$0xff] %v8587_v36  ;;  %v8592_v0 = vsub.f32 %v8488_v63, %v12551_v22  ;;  %v255_v60 = vld [vmem:[#allocation2 + $0x1e8] sm:$0xff]  ;;  %v1191_v22 = vpop.f32.mrf.mxu0  ;;  %v1330_v63 = vpop.f32.mrf.mxu1  ;;  %2987 = vmatpush2.msra.mxu1 %v12393_v53  ;;  %v8613_v58 = vand.u32 4294901760, %v254_v57  ;;  %v12562_v37 = vand.u32 4294901760, %v8109_v39  ;;  %v12565_v38 = vand.u32 4294901760, %v8516_v46 }
 0x1df   : > { %2854 = vmatprep.subr.mxu0 %v12554_v51  ;;  %v8601_v8 = vsub.f32 %v8499_v27, %v12555_v1  ;;  %v12559_v51 = vand.u32 4294901760, %v12558_v20  ;;  %12560 = vst [vmem:[#allocation67_spill] sm:$0xff] %v8611_v31  ;;  %v8615_v1 = vld [vmem:[#allocation2 + $0x1a8] sm:$0xff]  ;;  %v12563_v27 = vld [vmem:[#allocation115_spill] sm:$0xff]  ;;  %v8622_v20 = vsub.f32 %v270_v13, %v8569_v21  ;;  %v12567_v39 = vld [vmem:[#allocation113_spill] sm:$0xff]  ;;  %v8638_v53 = vand.u32 4294901760, %v255_v60 }
 0x1e0   : > { %12552 = vst [vmem:[#allocation51_spill] sm:$0xff] %v8592_v0  ;;  %12561 = vst [vmem:[#allocation65_spill] sm:$0xff] %v8613_v58  ;;  %2989 = vmatprep.subr.mxu1 %v12563_v27  ;;  %v8629_v17 = vsub.f32 %v8516_v46, %v12565_v38  ;;  %v8635_v27 = vsub.f32 %v262_v30, %v8587_v36  ;;  %v12571_v16 = vand.u32 4294901760, %v8125_v25  ;;  %v12573_v38 = vand.u32 4294901760, %v8540_v44  ;;  %v1332_v46 = vpop.f32.mrf.mxu1  ;;  %v12574_v0 = vld [vmem:[#allocation124_spill] sm:$0xff] }
 0x1e1   : > { %12556 = vst [vmem:[#allocation61_spill] sm:$0xff] %v8601_v8  ;;  %2858 = vmatpush2.msra.mxu0 %v12559_v51  ;;  %12564 = vst [vmem:[#allocation83_spill] sm:$0xff] %v8622_v20  ;;  %2991 = vmatpush2.msra.mxu1 %v12567_v39  ;;  %v8640_v51 = vand.u32 4294901760, %v246_v5  ;;  %v239_v39 = vld [vmem:[#allocation2 + $0x168] sm:$0xff]  ;;  %v12575_v36 = vand.u32 4294901760, %v12574_v0  ;;  %v12576_v25 = vld [vmem:[#allocation96_spill] sm:$0xff]  ;;  %v1190_v13 = vadd.f32 %v8552_v2, %v8520_v26 }
 0x1e2   : > { %2862 = vmatprep.subr.mxu0 %v12562_v37  ;;  %v1595_v37 = vpop.f32.mrf.mxu0  ;;  %12568 = vst [vmem:[#allocation77_spill] sm:$0xff] %v8635_v27  ;;  %12569 = vst [vmem:[#allocation85_spill] sm:$0xff] %v8638_v53  ;;  %2993 = vmatprep.subr.mxu1 %v8006_v56  ;;  %v8652_v30 = vsub.f32 %v8540_v44, %v12573_v38  ;;  %v8659_v56 = vsub.f32 %v254_v57, %v8613_v58  ;;  %v8666_v8 = vand.u32 4294901760, %v238_v55 }
 0x1e3   : > { %2866 = vmatpush2.msra.mxu0 %v12566_v47  ;;  %12570 = vst [vmem:[#allocation103_spill] sm:$0xff] %v8640_v51  ;;  %v8647_v47 = vand.u32 4294901760, %v8615_v1  ;;  %2876 = vmatprep.mubr.f32.mxu0 %v12576_v25  ;;  %v8669_v38 = vsub.f32 %v263_v34, %v8611_v31  ;;  %v1192_v0 = vadd.f32 %v1191_v22, %v8550_v15  ;;  %v8685_v26 = vand.u32 4294901760, %v239_v39  ;;  %v230_v15 = vld [vmem:[#allocation2 + $0x120] sm:$0xff] }
 0x1e4   : > { %2870 = vmatprep.subr.mxu0 %v12571_v16  ;;  %12577 = vst [vmem:[#allocation105_spill] sm:$0xff] %v8659_v56  ;;  %v12578_v16 = vand.u32 4294901760, %v8564_v61  ;;  %12579 = vst [vmem:[#allocation110_spill] sm:$0xff] %v8666_v8  ;;  %2995 = vmatpush2.msra.mxu1 %v7997_v23  ;;  %v1597_v34 = vpop.f32.mrf.mxu0  ;;  %v8689_v2 = vsub.f32 %v255_v60, %v8638_v53  ;;  %v1331_v22 = vadd.f32 %v1330_v63, %v1190_v13  ;;  %v1732_v60 = vpop.f32.mrf.mxu1  ;;  %v222_v23 = vld [vmem:[#allocation2 + $0xe0] sm:$0xff] }
 0x1e5   : > { %12572 = vst [vmem:[#allocation108_spill] sm:$0xff] %v8647_v47  ;;  %2874 = vmatpush2.msra.mxu0 %v12575_v36  ;;  %12580 = vst [vmem:[#allocation109_spill] sm:$0xff] %v8669_v38  ;;  %v12581_v36 = vld [vmem:[#allocation95_spill] sm:$0xff]  ;;  %2997 = vmatprep.subr.mxu1 %v8029_v7  ;;  %v1333_v57 = vadd.f32 %v1332_v46, %v1192_v0  ;;  %v8703_v46 = vsub.f32 %v238_v55, %v8666_v8  ;;  %v8717_v63 = vand.u32 4294901760, %v230_v15  ;;  %v223_v55 = vld [vmem:[#allocation2 + $0xe8] sm:$0xff] }
 0x1e6   : > { %v8664_v43 = vsub.f32 %v8564_v61, %v12578_v16  ;;  %2878 = vmatmul.mubr.f32.vlgmr.msra.gmra.mxu0 %v12581_v36  ;;  %v8678_v16 = vld [vmem:[#allocation2 + $0x128] sm:$0xff]  ;;  %3022 = vmatprep.subr.mxu0 %v8415_v12  ;;  %v8683_v61 = vsub.f32 %v246_v5, %v8640_v51  ;;  %12583 = vst [vmem:[#allocation36_spill] sm:$0xff] %v8685_v26  ;;  %12584 = vst [vmem:[#allocation12_spill] sm:$0xff] %v8689_v2  ;;  %v12585_v5 = vand.u32 4294901760, %v8605_v59  ;;  %v214_v13 = vld [vmem:[#allocation2 + $0xa0] sm:$0xff] }
 0x1e7   : > { %2999 = vmatpush2.msra.mxu1 %v8032_v29  ;;  %3024 = vmatpush1.msra.mxu0 %v8423_v32  ;;  %12586 = vst [vmem:[#allocation30_spill] sm:$0xff] %v8703_v46  ;;  %v8706_v29 = vand.u32 4294901760, %v8678_v16  ;;  %v1596_v0 = vadd.f32 %v1595_v37, %v1331_v22  ;;  %v1598_v7 = vadd.f32 %v1597_v34, %v1333_v57  ;;  %12589 = vst [vmem:[#allocation13_spill] sm:$0xff] %v8717_v63  ;;  %v1734_v37 = vpop.f32.mrf.mxu1 }
 0x1e8   : > { %12582 = vst [vmem:[#allocation28_spill] sm:$0xff] %v8683_v61  ;;  %v8697_v44 = vsub.f32 %v8605_v59, %v12585_v5  ;;  %3001 = vmatprep.subr.mxu1 %v8056_v18  ;;  %3026 = vmatprep.subr.mxu0 %v8425_v19  ;;  %v12588_v18 = vand.u32 4294901760, %v8622_v20  ;;  %v12590_v57 = vand.u32 4294901760, %v8635_v27  ;;  %v11395_v34 = vand.u32 4294901760, %v8689_v2  ;;  %v8735_v59 = vld [vmem:[#allocation2 + $0xa8] sm:$0xff] }
 0x1e9   : > { %12587 = vst [vmem:[#allocation16_spill] sm:$0xff] %v8706_v29  ;;  %3003 = vmatpush2.msra.mxu1 %v8048_v41  ;;  %3028 = vmatpush1.msra.mxu0 %v8430_v10 }
 0x1ea   : > { %v8715_v5 = vsub.f32 %v8622_v20, %v12588_v18  ;;  %3005 = vmatprep.subr.mxu1 %v8074_v45  ;;  %3030 = vmatprep.subr.mxu0 %v8435_v9  ;;  %v8724_v41 = vsub.f32 %v8635_v27, %v12590_v57  ;;  %v8730_v18 = vsub.f32 %v8615_v1, %v8647_v47  ;;  %v12593_v1 = vand.u32 4294901760, %v8669_v38  ;;  %v206_v9 = vld [vmem:[#allocation2 + $0x60] sm:$0xff] }
 0x1eb   : > { %3007 = vmatpush2.msra.mxu1 %v8084_v42  ;;  %3032 = vmatpush1.msra.mxu0 %v8443_v40  ;;  %v1733_v45 = vadd.f32 %v1732_v60, %v1596_v0  ;;  %v1735_v20 = vadd.f32 %v1734_v37, %v1598_v7  ;;  %v8738_v57 = vsub.f32 %v239_v39, %v8685_v26  ;;  %v8747_v42 = vand.u32 4294901760, %v223_v55 }
 0x1ec   : > { %12591 = vst [vmem:[#allocation19_spill] sm:$0xff] %v8730_v18  ;;  %3009 = vmatprep.subr.mxu1 %v8091_v54  ;;  %3034 = vmatprep.subr.mxu0 %v8445_v62  ;;  %v8745_v22 = vsub.f32 %v8669_v38, %v12593_v1  ;;  %v8749_v60 = vand.u32 4294901760, %v222_v23  ;;  %v8756_v0 = vsub.f32 %v230_v15, %v8717_v63  ;;  %v8758_v37 = vand.u32 4294901760, %v214_v13  ;;  %v207_v54 = vld [vmem:[#allocation2 + $0x68] sm:$0xff] }
 0x1ed   : > { %12592 = vst [vmem:[#allocation32_spill] sm:$0xff] %v8738_v57  ;;  %12594 = vst [vmem:[#allocation18_spill] sm:$0xff] %v8747_v42  ;;  %3011 = vmatpush2.msra.mxu1 %v8101_v14  ;;  %3013 = vmatprep.mubr.f32.mxu1 %v12576_v25  ;;  %v5597_v39 = vcombine.low %v1733_v45, %v1735_v20  ;;  %v8765_v1 = vsub.f32 %v8689_v2, %v11395_v34  ;;  %v12598_v14 = vand.u32 4294901760, %v8659_v56  ;;  %v198_v2 = vld [vmem:[#allocation2 + $0x20] sm:$0xff] }
 0x1ee   : > { %12595 = vst [vmem:[#allocation82_spill] sm:$0xff] %v8749_v60  ;;  %12596 = vst [vmem:[#allocation48_spill] sm:$0xff] %v8756_v0  ;;  %3036 = vmatpush1.msra.mxu0 %v8453_v50  ;;  %3015 = vmatmul.mubr.f32.vlgmr.msra.gmra.mxu1 %v12581_v36  ;;  %v8773_v45 = vand.u32 4294901760, %v8735_v59  ;;  %v12600_v7 = vand.u32 4294901760, %v8507_v24  ;;  %v8789_v15 = vsub.f32 %v8678_v16, %v8706_v29  ;;  %v12602_v24 = vand.u32 4294901760, %v8528_v4 }
 0x1ef   : > { %12597 = vst [vmem:[#allocation93_spill] sm:$0xff] %v8758_v37  ;;  %v8770_v20 = vsub.f32 %v8659_v56, %v12598_v14  ;;  %3038 = vmatprep.subr.mxu0 %v8464_v33  ;;  %5605 = vst [vmem:[%s8781_s19] sm:$0xff] %v5597_v39  ;;  %v8796_v39 = vsub.f32 %v222_v23, %v8749_v60  ;;  %v12604_v14 = vand.u32 4294901760, %v8683_v61  ;;  %v199_v56 = vld [vmem:[#allocation2 + $0x28] sm:$0xff]  ;;  %v8814_v23 = vand.u32 4294901760, %v206_v9 }
 0x1f0   : > { %12599 = vst [vmem:[#allocation23_spill] sm:$0xff] %v8773_v45  ;;  %3171 = vmatprep.subr.mxu1 %v12600_v7  ;;  %12601 = vst [vmem:[#allocation90_spill] sm:$0xff] %v8789_v15  ;;  %3040 = vmatpush1.msra.mxu0 %v8479_v35  ;;  %v8804_v16 = vsub.f32 %v223_v55, %v8747_v42  ;;  %v12606_v35 = vand.u32 4294901760, %v8533_v3  ;;  %v8810_v4 = vsub.f32 %v214_v13, %v8758_v37 }
 0x1f1   : > { %3177 = vmatpush1.msra.mxu1 %v12602_v24  ;;  %12603 = vst [vmem:[#allocation22_spill] sm:$0xff] %v8796_v39  ;;  %v8801_v34 = vsub.f32 %v8683_v61, %v12604_v14  ;;  %3042 = vmatprep.subr.mxu0 %v8509_v11  ;;  %v8812_v24 = vand.u32 4294901760, %v207_v54  ;;  %12609 = vst [vmem:[#allocation14_spill] sm:$0xff] %v8814_v23  ;;  %v12610_v14 = vand.u32 4294901760, %v8545_v49  ;;  %v8827_v13 = vand.u32 4294901760, %v198_v2  ;;  %v446_v11 = vld [vmem:[#allocation2 + $0x7e0] sm:$0xff] }
 0x1f2   : > { %12605 = vst [vmem:[#allocation11_spill] sm:$0xff] %v8804_v16  ;;  %3183 = vmatprep.subr.mxu1 %v12606_v35  ;;  %12607 = vst [vmem:[#allocation56_spill] sm:$0xff] %v8810_v4  ;;  %3044 = vmatpush1.msra.mxu0 %v8495_v28  ;;  %v12611_v35 = vand.u32 4294901760, %v8730_v18  ;;  %v12613_v7 = vand.u32 4294901760, %v8561_v52  ;;  %v12614_v49 = vand.u32 4294901760, %v8738_v57  ;;  %v12615_v61 = vand.u32 4294901760, %v8703_v46 }
 0x1f3   : > { %12608 = vst [vmem:[#allocation24_spill] sm:$0xff] %v8812_v24  ;;  %3189 = vmatpush1.msra.mxu1 %v12610_v14  ;;  %12612 = vst [vmem:[#allocation27_spill] sm:$0xff] %v8827_v13  ;;  %3046 = vmatprep.subr.mxu0 %v8547_v48  ;;  %v12617_v52 = vand.u32 4294901760, %v8574_v6  ;;  %v12619_v28 = vld [vmem:[#allocation49_spill] sm:$0xff]  ;;  %v12622_v6 = vand.u32 4294901760, %v8756_v0  ;;  %v439_v48 = vld [vmem:[#allocation2 + $0x7a8] sm:$0xff] }
 0x1f4   : > { %v8825_v3 = vsub.f32 %v8730_v18, %v12611_v35  ;;  %3195 = vmatprep.subr.mxu1 %v12613_v7  ;;  %v8835_v14 = vsub.f32 %v8738_v57, %v12614_v49  ;;  %v8840_v55 = vsub.f32 %v8703_v46, %v12615_v61  ;;  %v8842_v35 = vand.u32 4294901760, %v199_v56  ;;  %v447_v18 = vld [vmem:[#allocation2 + $0x7e8] sm:$0xff]  ;;  %3048 = vmatpush1.msra.mxu0 %v8569_v21  ;;  %v438_v46 = vld [vmem:[#allocation2 + $0x7a0] sm:$0xff] }
 0x1f5   : > { %3201 = vmatpush1.msra.mxu1 %v12617_v52  ;;  %v8853_v61 = vsub.f32 %v8735_v59, %v8773_v45  ;;  %3050 = vmatprep.subr.mxu0 %v8611_v31  ;;  %v12620_v57 = vand.u32 4294901760, %v12619_v28  ;;  %v8859_v21 = vsub.f32 %v206_v9, %v8814_v23  ;;  %v8864_v52 = vsub.f32 %v8756_v0, %v12622_v6  ;;  %v12625_v49 = vld [vmem:[#allocation86_spill] sm:$0xff]  ;;  %v12626_v31 = vld [vmem:[#allocation51_spill] sm:$0xff]  ;;  %v12630_v0 = vld [vmem:[#allocation61_spill] sm:$0xff] }
 0x1f6   : > { %12616 = vst [vmem:[#allocation26_spill] sm:$0xff] %v8842_v35  ;;  %v8866_v7 = vand.u32 4294901760, %v446_v11  ;;  %v8869_v59 = vsub.f32 %v207_v54, %v8812_v24  ;;  %3052 = vmatpush1.msra.mxu0 %v12625_v49  ;;  %v12627_v33 = vand.u32 4294901760, %v12626_v31  ;;  %v8876_v9 = vsub.f32 %v198_v2, %v8827_v13  ;;  %v430_v28 = vld [vmem:[#allocation2 + $0x760] sm:$0xff]  ;;  %3551 = vmatprep.mubr.f32.mxu1 %v12576_v25 }
 0x1f7   : > { %12618 = vst [vmem:[#allocation15_spill] sm:$0xff] %v8853_v61  ;;  %3207 = vmatprep.subr.mxu1 %v12620_v57  ;;  %12621 = vst [vmem:[#allocation64_spill] sm:$0xff] %v8859_v21  ;;  %v8878_v57 = vand.u32 4294901760, %v447_v18  ;;  %3054 = vmatprep.subr.mxu0 %v8638_v53  ;;  %v12631_v50 = vand.u32 4294901760, %v12630_v0  ;;  %v8891_v2 = vand.u32 4294901760, %v438_v46  ;;  %v12634_v6 = vand.u32 4294901760, %v8629_v17 }
 0x1f8   : > { %12623 = vst [vmem:[#allocation29_spill] sm:$0xff] %v8866_v7  ;;  %12624 = vst [vmem:[#allocation42_spill] sm:$0xff] %v8869_v59  ;;  %3213 = vmatpush1.msra.mxu1 %v12627_v33  ;;  %v12632_v33 = vand.u32 4294901760, %v8789_v15  ;;  %3056 = vmatpush1.msra.mxu0 %v8613_v58  ;;  %v12635_v0 = vand.u32 4294901760, %v8804_v16  ;;  %v12636_v49 = vand.u32 4294901760, %v8796_v39  ;;  %v12638_v17 = vand.u32 4294901760, %v8664_v43 }
 0x1f9   : > { %12628 = vst [vmem:[#allocation35_spill] sm:$0xff] %v8876_v9  ;;  %12629 = vst [vmem:[#allocation46_spill] sm:$0xff] %v8878_v57  ;;  %3219 = vmatprep.subr.mxu1 %v12631_v50  ;;  %3058 = vmatprep.subr.mxu0 %v8647_v47  ;;  %v12641_v53 = vand.u32 4294901760, %v8652_v30  ;;  %v12642_v47 = vand.u32 4294901760, %v8810_v4  ;;  %v8932_v58 = vsub.f32 %v447_v18, %v8878_v57  ;;  %v12762_v25 = vld [vmem:[#allocation17_spill] sm:$0xff] }
 0x1fa   : > { %v8889_v31 = vsub.f32 %v8789_v15, %v12632_v33  ;;  %12633 = vst [vmem:[#allocation33_spill] sm:$0xff] %v8891_v2  ;;  %3225 = vmatpush1.msra.mxu1 %v12634_v6  ;;  %v8899_v50 = vsub.f32 %v8804_v16, %v12635_v0  ;;  %v8904_v54 = vsub.f32 %v8796_v39, %v12636_v49  ;;  %v8906_v33 = vand.u32 4294901760, %v439_v48  ;;  %v431_v15 = vld [vmem:[#allocation2 + $0x768] sm:$0xff]  ;;  %v422_v39 = vld [vmem:[#allocation2 + $0x720] sm:$0xff] }
 0x1fb   : > { %3231 = vmatprep.subr.mxu1 %v12638_v17  ;;  %v8914_v0 = vsub.f32 %v446_v11, %v8866_v7  ;;  %v8918_v49 = vsub.f32 %v199_v56, %v8842_v35  ;;  %3060 = vmatpush1.msra.mxu0 %v8640_v51  ;;  %v8926_v43 = vsub.f32 %v8810_v4, %v12642_v47  ;;  %v8928_v17 = vand.u32 4294901760, %v430_v28  ;;  %v423_v6 = vld [vmem:[#allocation2 + $0x728] sm:$0xff]  ;;  %v406_v4 = vld [vmem:[#allocation2 + $0x6a0] sm:$0xff] }
 0x1fc   : > { %12637 = vst [vmem:[#allocation72_spill] sm:$0xff] %v8906_v33  ;;  %3237 = vmatpush1.msra.mxu1 %v12641_v53  ;;  %12644 = vst [vmem:[#allocation41_spill] sm:$0xff] %v8932_v58  ;;  %3062 = vmatprep.subr.mxu0 %v8685_v26  ;;  %v12645_v56 = vand.u32 4294901760, %v8697_v44  ;;  %v8939_v30 = vsub.f32 %v438_v46, %v8891_v2  ;;  %v8941_v47 = vand.u32 4294901760, %v431_v15  ;;  %v12648_v11 = vand.u32 4294901760, %v8715_v5  ;;  %v414_v53 = vld [vmem:[#allocation2 + $0x6e0] sm:$0xff] }
 0x1fd   : > { %12639 = vst [vmem:[#allocation37_spill] sm:$0xff] %v8914_v0  ;;  %12640 = vst [vmem:[#allocation50_spill] sm:$0xff] %v8918_v49  ;;  %3064 = vmatpush1.msra.mxu0 %v8666_v8  ;;  %v12649_v44 = vand.u32 4294901760, %v8853_v61  ;;  %v8954_v46 = vand.u32 4294901760, %v422_v39  ;;  %v12651_v51 = vand.u32 4294901760, %v8745_v22  ;;  %v12652_v5 = vand.u32 4294901760, %v8869_v59 }
 0x1fe   : > { %12643 = vst [vmem:[#allocation78_spill] sm:$0xff] %v8928_v17  ;;  %3243 = vmatprep.subr.mxu1 %v12645_v56  ;;  %12646 = vst [vmem:[#allocation52_spill] sm:$0xff] %v8939_v30  ;;  %3066 = vmatprep.subr.mxu0 %v8706_v29  ;;  %v8964_v18 = vand.u32 4294901760, %v423_v6  ;;  %v415_v8 = vld [vmem:[#allocation2 + $0x6e8] sm:$0xff]  ;;  %v12655_v29 = vand.u32 4294901760, %v8724_v41  ;;  %v8975_v22 = vsub.f32 %v430_v28, %v8928_v17  ;;  %v8991_v28 = vand.u32 4294901760, %v414_v53 }
 0x1ff   : > { %12647 = vst [vmem:[#allocation80_spill] sm:$0xff] %v8941_v47  ;;  %3249 = vmatpush1.msra.mxu1 %v12648_v11  ;;  %v8952_v56 = vsub.f32 %v8853_v61, %v12649_v44  ;;  %12650 = vst [vmem:[#allocation45_spill] sm:$0xff] %v8954_v46  ;;  %v8962_v11 = vsub.f32 %v8869_v59, %v12652_v5  ;;  %v8968_v44 = vsub.f32 %v439_v48, %v8906_v33 }
 0x200   : > { %3255 = vmatprep.subr.mxu1 %v12651_v51  ;;  %12653 = vst [vmem:[#allocation58_spill] sm:$0xff] %v8964_v18  ;;  %3068 = vmatpush1.msra.mxu0 %v8717_v63  ;;  %12656 = vst [vmem:[#allocation62_spill] sm:$0xff] %v8975_v22  ;;  %v12657_v5 = vand.u32 4294901760, %v8859_v21  ;;  %v12658_v48 = vand.u32 4294901760, %v8765_v1  ;;  %v407_v63 = vld [vmem:[#allocation2 + $0x6a8] sm:$0xff]  ;;  %v12661_v26 = vand.u32 4294901760, %v8770_v20 }
 0x201   : > { %12654 = vst [vmem:[#allocation53_spill] sm:$0xff] %v8968_v44  ;;  %3261 = vmatpush1.msra.mxu1 %v12655_v29  ;;  %3070 = vmatprep.subr.mxu0 %v8747_v42  ;;  %v12659_v29 = vand.u32 4294901760, %v8876_v9  ;;  %12660 = vst [vmem:[#allocation84_spill] sm:$0xff] %v8991_v28  ;;  %v3326_v1 = vand.u32 4294901760, %v8952_v56  ;;  %v9002_v42 = vand.u32 4294901760, %v415_v8  ;;  %v12665_v51 = vand.u32 4294901760, %v8825_v3 }
 0x202   : > { %v8980_v59 = vsub.f32 %v8859_v21, %v12657_v5  ;;  %3267 = vmatprep.subr.mxu1 %v12658_v48  ;;  %3072 = vmatpush1.msra.mxu0 %v8749_v60  ;;  %v9000_v48 = vsub.f32 %v422_v39, %v8954_v46  ;;  %v12666_v20 = vand.u32 4294901760, %v8918_v49  ;;  %v9017_v56 = vand.u32 4294901760, %v406_v4  ;;  %v398_v60 = vld [vmem:[#allocation2 + $0x660] sm:$0xff] }
 0x203   : > { %v8989_v41 = vsub.f32 %v8876_v9, %v12659_v29  ;;  %3273 = vmatpush1.msra.mxu1 %v12661_v26  ;;  %12663 = vst [vmem:[#allocation55_spill] sm:$0xff] %v9002_v42  ;;  %v9005_v29 = vsub.f32 %v431_v15, %v8941_v47  ;;  %3074 = vmatprep.subr.mxu0 %v8773_v45  ;;  %v12668_v15 = vand.u32 4294901760, %v8801_v34  ;;  %v9028_v45 = vand.u32 4294901760, %v407_v63 }
 0x204   : > { %12662 = vst [vmem:[#allocation57_spill] sm:$0xff] %v9000_v48  ;;  %3279 = vmatprep.subr.mxu1 %v12665_v51  ;;  %v9014_v26 = vsub.f32 %v8918_v49, %v12666_v20  ;;  %12667 = vst [vmem:[#allocation69_spill] sm:$0xff] %v9017_v56  ;;  %3076 = vmatpush1.msra.mxu0 %v8758_v37  ;;  %v12669_v51 = vand.u32 4294901760, %v8932_v58  ;;  %v9031_v20 = vsub.f32 %v423_v6, %v8964_v18 }
 0x205   : > { %12664 = vst [vmem:[#allocation66_spill] sm:$0xff] %v9005_v29  ;;  %3285 = vmatpush1.msra.mxu1 %v12668_v15  ;;  %12670 = vst [vmem:[#allocation70_spill] sm:$0xff] %v9028_v45  ;;  %3078 = vmatprep.subr.mxu0 %v8812_v24  ;;  %v12672_v39 = vand.u32 4294901760, %v8835_v14  ;;  %v9038_v15 = vsub.f32 %v414_v53, %v8991_v28  ;;  %v12674_v3 = vand.u32 4294901760, %v8914_v0  ;;  %v12675_v37 = vand.u32 4294901760, %v8939_v30  ;;  %v391_v24 = vld [vmem:[#allocation2 + $0x628] sm:$0xff] }
 0x206   : > { %v9026_v5 = vsub.f32 %v8932_v58, %v12669_v51  ;;  %12671 = vst [vmem:[#allocation59_spill] sm:$0xff] %v9031_v20  ;;  %v399_v58 = vld [vmem:[#allocation2 + $0x668] sm:$0xff]  ;;  %3080 = vmatpush1.msra.mxu0 %v8814_v23  ;;  %v12676_v14 = vand.u32 4294901760, %v8840_v55  ;;  %v9054_v53 = vand.u32 4294901760, %v398_v60  ;;  %v3350_v23 = vand.u32 4294901760, %v9014_v26 }
 0x207   : > { %3291 = vmatprep.subr.mxu1 %v12672_v39  ;;  %12673 = vst [vmem:[#allocation68_spill] sm:$0xff] %v9038_v15  ;;  %v9043_v51 = vsub.f32 %v8914_v0, %v12674_v3  ;;  %v9048_v6 = vsub.f32 %v8939_v30, %v12675_v37  ;;  %v390_v3 = vld [vmem:[#allocation2 + $0x620] sm:$0xff]  ;;  %v9058_v0 = vsub.f32 %v415_v8, %v9002_v42  ;;  %v12679_v37 = vand.u32 4294901760, %v8889_v31 }
 0x208   : > { %3297 = vmatpush1.msra.mxu1 %v12676_v14  ;;  %12677 = vst [vmem:[#allocation79_spill] sm:$0xff] %v9054_v53  ;;  %3082 = vmatprep.subr.mxu0 %v8842_v35  ;;  %v12680_v55 = vand.u32 4294901760, %v8968_v44  ;;  %v9070_v39 = vsub.f32 %v406_v4, %v9017_v56  ;;  %v12682_v8 = vand.u32 4294901760, %v8864_v52  ;;  %v3362_v31 = vand.u32 4294901760, %v9026_v5  ;;  %v383_v35 = vld [vmem:[#allocation2 + $0x5e8] sm:$0xff]  ;;  %v382_v30 = vld [vmem:[#allocation2 + $0x5e0] sm:$0xff] }
 0x209   : > { %12678 = vst [vmem:[#allocation71_spill] sm:$0xff] %v9058_v0  ;;  %3303 = vmatprep.subr.mxu1 %v12679_v37  ;;  %3084 = vmatpush1.msra.mxu0 %v8827_v13  ;;  %v9077_v37 = vand.u32 4294901760, %v399_v58  ;;  %v12685_v4 = vand.u32 4294901760, %v8899_v50  ;;  %v3368_v34 = vand.u32 4294901760, %v9043_v51  ;;  %v9090_v5 = vand.u32 4294901760, %v390_v3  ;;  %v374_v13 = vld [vmem:[#allocation2 + $0x5a0] sm:$0xff] }
 0x20a   : > { %v9067_v14 = vsub.f32 %v8968_v44, %v12680_v55  ;;  %12681 = vst [vmem:[#allocation74_spill] sm:$0xff] %v9070_v39  ;;  %3309 = vmatpush1.msra.mxu1 %v12682_v8  ;;  %v9081_v55 = vsub.f32 %v407_v63, %v9028_v45  ;;  %3086 = vmatprep.subr.mxu0 %v8878_v57  ;;  %v9088_v8 = vand.u32 4294901760, %v391_v24  ;;  %v12688_v26 = vand.u32 4294901760, %v8904_v54 }
 0x20b   : > { %12683 = vst [vmem:[#allocation104_spill] sm:$0xff] %v9077_v37  ;;  %3315 = vmatprep.subr.mxu1 %v12685_v4  ;;  %12687 = vst [vmem:[#allocation87_spill] sm:$0xff] %v9090_v5  ;;  %3088 = vmatpush2.msra.mxu0 %v8866_v7  ;;  %v12689_v63 = vand.u32 4294901760, %v9005_v29  ;;  %v9101_v50 = vsub.f32 %v398_v60, %v9054_v53  ;;  %v12691_v51 = vand.u32 4294901760, %v8975_v22  ;;  %v9116_v60 = vand.u32 4294901760, %v383_v35 }
 0x20c   : > { %12684 = vst [vmem:[#allocation81_spill] sm:$0xff] %v9081_v55  ;;  %12686 = vst [vmem:[#allocation106_spill] sm:$0xff] %v9088_v8  ;;  %3321 = vmatpush1.msra.mxu1 %v12688_v26  ;;  %3090 = vmatprep.subr.mxu0 %v8906_v33  ;;  %v3374_v54 = vand.u32 4294901760, %v9067_v14  ;;  %v12692_v26 = vand.u32 4294901760, %v9000_v48  ;;  %v9118_v7 = vand.u32 4294901760, %v382_v30  ;;  %v12696_v52 = vand.u32 4294901760, %v9031_v20 }
 0x20d   : > { %v9098_v57 = vsub.f32 %v9005_v29, %v12689_v63  ;;  %12690 = vst [vmem:[#allocation111_spill] sm:$0xff] %v9101_v50  ;;  %v9106_v4 = vsub.f32 %v8975_v22, %v12691_v51  ;;  %3327 = vmatprep.subr.mxu1 %v3326_v1  ;;  %12693 = vst [vmem:[#allocation107_spill] sm:$0xff] %v9116_v60  ;;  %v375_v29 = vld [vmem:[#allocation2 + $0x5a8] sm:$0xff]  ;;  %3092 = vmatpush2.msra.mxu0 %v8891_v2  ;;  %v12695_v51 = vand.u32 4294901760, %v8926_v43 }
 0x20e   : > { %v9114_v63 = vsub.f32 %v9000_v48, %v12692_v26  ;;  %12694 = vst [vmem:[#allocation116_spill] sm:$0xff] %v9118_v7  ;;  %v9126_v1 = vsub.f32 %v9031_v20, %v12696_v52  ;;  %v9131_v33 = vsub.f32 %v399_v58, %v9077_v37  ;;  %3094 = vmatprep.subr.mxu0 %v8941_v47  ;;  %v12698_v48 = vand.u32 4294901760, %v8962_v11  ;;  %v367_v52 = vld [vmem:[#allocation2 + $0x568] sm:$0xff] }
 0x20f   : > { %3333 = vmatpush1.msra.mxu1 %v12695_v51  ;;  %v9137_v43 = vsub.f32 %v390_v3, %v9090_v5  ;;  %v9139_v51 = vand.u32 4294901760, %v374_v13  ;;  %v9143_v2 = vsub.f32 %v391_v24, %v9088_v8  ;;  %3096 = vmatpush2.msra.mxu0 %v8928_v17  ;;  %v12702_v58 = vand.u32 4294901760, %v8980_v59  ;;  %v359_v47 = vld [vmem:[#allocation2 + $0x528] sm:$0xff] }
 0x210   : > { %12697 = vst [vmem:[#allocation112_spill] sm:$0xff] %v9131_v33  ;;  %3339 = vmatprep.subr.mxu1 %v12698_v48  ;;  %v3386_v26 = vand.u32 4294901760, %v9098_v57  ;;  %v3392_v11 = vand.u32 4294901760, %v9106_v4  ;;  %v12703_v48 = vand.u32 4294901760, %v9058_v0  ;;  %v9155_v14 = vand.u32 4294901760, %v375_v29  ;;  %3098 = vmatprep.subr.mxu0 %v8964_v18  ;;  %v358_v4 = vld [vmem:[#allocation2 + $0x520] sm:$0xff] }
 0x211   : > { %12699 = vst [vmem:[#allocation117_spill] sm:$0xff] %v9137_v43  ;;  %12700 = vst [vmem:[#allocation114_spill] sm:$0xff] %v9139_v51  ;;  %3345 = vmatpush1.msra.mxu1 %v12702_v58  ;;  %v3404_v24 = vand.u32 4294901760, %v9114_v63  ;;  %v9160_v59 = vsub.f32 %v382_v30, %v9118_v7  ;;  %v366_v58 = vld [vmem:[#allocation2 + $0x560] sm:$0xff]  ;;  %v9164_v17 = vsub.f32 %v383_v35, %v9116_v60  ;;  %3100 = vmatpush2.msra.mxu0 %v8954_v46 }
 0x212   : > { %12701 = vst [vmem:[#allocation119_spill] sm:$0xff] %v9143_v2  ;;  %v9153_v3 = vsub.f32 %v9058_v0, %v12703_v48  ;;  %3351 = vmatprep.subr.mxu1 %v3350_v23  ;;  %v12706_v48 = vand.u32 4294901760, %v8989_v41  ;;  %v3398_v18 = vand.u32 4294901760, %v9126_v1  ;;  %v12707_v23 = vand.u32 4294901760, %v9038_v15  ;;  %3102 = vmatprep.subr.mxu0 %v9002_v42 }
 0x213   : > { %12704 = vst [vmem:[#allocation118_spill] sm:$0xff] %v9160_v59  ;;  %12705 = vst [vmem:[#allocation121_spill] sm:$0xff] %v9164_v17  ;;  %v12708_v30 = vand.u32 4294901760, %v9081_v55  ;;  %v9183_v41 = vsub.f32 %v374_v13, %v9139_v51  ;;  %v12710_v1 = vand.u32 4294901760, %v9070_v39  ;;  %3104 = vmatpush2.msra.mxu0 %v8991_v28  ;;  %v9195_v42 = vand.u32 4294901760, %v366_v58 }
 0x214   : > { %3357 = vmatpush1.msra.mxu1 %v12706_v48  ;;  %v9173_v63 = vsub.f32 %v9038_v15, %v12707_v23  ;;  %v9190_v23 = vand.u32 4294901760, %v367_v52  ;;  %v3410_v35 = vand.u32 4294901760, %v9153_v3  ;;  %3106 = vmatprep.subr.mxu0 %v9028_v45  ;;  %v9210_v3 = vsub.f32 %v375_v29, %v9155_v14 }
 0x215   : > { %v9178_v57 = vsub.f32 %v9081_v55, %v12708_v30  ;;  %3363 = vmatprep.subr.mxu1 %v3362_v31  ;;  %12709 = vst [vmem:[#allocation120_spill] sm:$0xff] %v9183_v41  ;;  %v9188_v48 = vsub.f32 %v9070_v39, %v12710_v1  ;;  %v350_v30 = vld [vmem:[#allocation2 + $0x4e0] sm:$0xff]  ;;  %12712 = vst [vmem:[#allocation122_spill] sm:$0xff] %v9195_v42  ;;  %v9197_v31 = vand.u32 4294901760, %v358_v4  ;;  %v351_v55 = vld [vmem:[#allocation2 + $0x4e8] sm:$0xff]  ;;  %v12713_v1 = vand.u32 4294901760, %v9101_v50 }
 0x216   : > { %12711 = vst [vmem:[#allocation123_spill] sm:$0xff] %v9190_v23  ;;  %3369 = vmatpush2.msra.mxu1 %v3368_v34  ;;  %v9206_v39 = vand.u32 4294901760, %v359_v47  ;;  %12714 = vst [vmem:[#allocation115_spill] sm:$0xff] %v9210_v3  ;;  %3108 = vmatpush2.msra.mxu0 %v9017_v56  ;;  %v12715_v13 = vand.u32 4294901760, %v9048_v6  ;;  %v3416_v45 = vand.u32 4294901760, %v9173_v63  ;;  %v12716_v28 = vand.u32 4294901760, %v9131_v33 }
 0x217   : > { %3375 = vmatprep.subr.mxu1 %v3374_v54  ;;  %v9204_v46 = vsub.f32 %v9101_v50, %v12713_v1  ;;  %v3422_v54 = vand.u32 4294901760, %v9178_v57  ;;  %v9220_v50 = vand.u32 4294901760, %v350_v30  ;;  %3110 = vmatprep.subr.mxu0 %v9077_v37  ;;  %v3428_v29 = vand.u32 4294901760, %v9188_v48  ;;  %v343_v63 = vld [vmem:[#allocation2 + $0x4a8] sm:$0xff]  ;;  %v342_v56 = vld [vmem:[#allocation2 + $0x4a0] sm:$0xff] }
 0x218   : > { %3381 = vmatpush2.msra.mxu1 %v12715_v13  ;;  %v3433_v1 = vsub.f32 %v9131_v33, %v12716_v28  ;;  %v12717_v34 = vand.u32 4294901760, %v9143_v2  ;;  %v9229_v13 = vand.u32 4294901760, %v351_v55  ;;  %v9232_v57 = vsub.f32 %v367_v52, %v9190_v23  ;;  %3112 = vmatpush2.msra.mxu0 %v9054_v53 }
 0x219   : > { %3387 = vmatprep.subr.mxu1 %v3386_v26  ;;  %v9236_v28 = vsub.f32 %v366_v58, %v9195_v42  ;;  %v9239_v26 = vsub.f32 %v358_v4, %v9197_v31  ;;  %v12720_v48 = vand.u32 4294901760, %v9137_v43  ;;  %3114 = vmatprep.subr.mxu0 %v9088_v8  ;;  %v3440_v52 = vand.u32 4294901760, %v9204_v46  ;;  %v335_v4 = vld [vmem:[#allocation2 + $0x468] sm:$0xff]  ;;  %v334_v8 = vld [vmem:[#allocation2 + $0x460] sm:$0xff] }
 0x21a   : > { %v9227_v6 = vsub.f32 %v9143_v2, %v12717_v34  ;;  %12718 = vst [vmem:[#allocation113_spill] sm:$0xff] %v9232_v57  ;;  %3393 = vmatpush2.msra.mxu1 %v3392_v11  ;;  %v12721_v11 = vand.u32 4294901760, %v9164_v17  ;;  %v9252_v2 = vsub.f32 %v359_v47, %v9206_v39  ;;  %3116 = vmatpush2.msra.mxu0 %v9090_v5  ;;  %v9263_v53 = vand.u32 4294901760, %v342_v56  ;;  %v327_v5 = vld [vmem:[#allocation2 + $0x428] sm:$0xff] }
 0x21b   : > { %12719 = vst [vmem:[#allocation124_spill] sm:$0xff] %v9239_v26  ;;  %v3451_v34 = vsub.f32 %v9137_v43, %v12720_v48  ;;  %3399 = vmatprep.subr.mxu1 %v3398_v18  ;;  %v3434_v48 = vand.u32 4294901760, %v3433_v1  ;;  %v9256_v37 = vsub.f32 %v350_v30, %v9220_v50  ;;  %v9258_v18 = vand.u32 4294901760, %v343_v63  ;;  %3118 = vmatprep.subr.mxu0 %v9116_v60 }
 0x21c   : > { %v3457_v58 = vsub.f32 %v9164_v17, %v12721_v11  ;;  %12722 = vst [vmem:[#allocation49_spill] sm:$0xff] %v9252_v2  ;;  %3405 = vmatpush2.msra.mxu1 %v3404_v24  ;;  %v3446_v11 = vand.u32 4294901760, %v9227_v6  ;;  %v9267_v24 = vsub.f32 %v351_v55, %v9229_v13  ;;  %3120 = vmatpush2.msra.mxu0 %v9118_v7  ;;  %v12724_v1 = vand.u32 4294901760, %v9160_v59  ;;  %v326_v6 = vld [vmem:[#allocation2 + $0x420] sm:$0xff] }
 0x21d   : > { %3411 = vmatprep.subr.mxu1 %v3410_v35  ;;  %v3452_v30 = vand.u32 4294901760, %v3451_v34  ;;  %v9273_v60 = vand.u32 4294901760, %v335_v4  ;;  %3122 = vmatprep.subr.mxu0 %v9155_v14  ;;  %v12725_v55 = vand.u32 4294901760, %v9210_v3  ;;  %v9280_v7 = vand.u32 4294901760, %v334_v8 }
 0x21e   : > { %12723 = vst [vmem:[#allocation51_spill] sm:$0xff] %v9267_v24  ;;  %3417 = vmatpush2.msra.mxu1 %v3416_v45  ;;  %v3463_v46 = vsub.f32 %v9160_v59, %v12724_v1  ;;  %v3458_v47 = vand.u32 4294901760, %v3457_v58  ;;  %3124 = vmatpush2.msra.mxu0 %v9139_v51  ;;  %v12726_v34 = vand.u32 4294901760, %v9183_v41  ;;  %v9287_v35 = vand.u32 4294901760, %v327_v5 }
 0x21f   : > { %3423 = vmatprep.subr.mxu1 %v3422_v54  ;;  %v3469_v17 = vsub.f32 %v9210_v3, %v12725_v55  ;;  %v9291_v58 = vsub.f32 %v343_v63, %v9258_v18  ;;  %3126 = vmatprep.subr.mxu0 %v9190_v23  ;;  %v9295_v55 = vsub.f32 %v342_v56, %v9263_v53  ;;  %v12730_v45 = vand.u32 4294901760, %v9232_v57 }
 0x220   : > { %3429 = vmatpush2.msra.mxu1 %v3428_v29  ;;  %v3475_v1 = vsub.f32 %v9183_v41, %v12726_v34  ;;  %12727 = vst [vmem:[#allocation61_spill] sm:$0xff] %v9287_v35  ;;  %v9300_v51 = vand.u32 4294901760, %v326_v6  ;;  %3128 = vmatpush2.msra.mxu0 %v9195_v42  ;;  %v3464_v54 = vand.u32 4294901760, %v3463_v46  ;;  %v12732_v63 = vand.u32 4294901760, %v9236_v28 }
 0x221   : > { %12728 = vst [vmem:[#allocation125_spill] sm:$0xff] %v9291_v58  ;;  %3435 = vmatprep.subr.mxu1 %v3434_v48  ;;  %12729 = vst [vmem:[#allocation126_spill] sm:$0xff] %v9295_v55  ;;  %v3481_v29 = vsub.f32 %v9232_v57, %v12730_v45  ;;  %v9308_v48 = vsub.f32 %v335_v4, %v9273_v60  ;;  %3130 = vmatprep.subr.mxu0 %v9206_v39  ;;  %v3470_v56 = vand.u32 4294901760, %v3469_v17 }
 0x222   : > { %12731 = vst [vmem:[#allocation127_spill] sm:$0xff] %v9300_v51  ;;  %3441 = vmatpush2.msra.mxu1 %v3440_v52  ;;  %v3487_v23 = vsub.f32 %v9236_v28, %v12732_v63  ;;  %v9312_v45 = vsub.f32 %v334_v8, %v9280_v7  ;;  %v12733_v34 = vand.u32 4294901760, %v9252_v2  ;;  %3132 = vmatpush2.msra.mxu0 %v9197_v31  ;;  %v3476_v46 = vand.u32 4294901760, %v3475_v1 }
 0x223   : > { %3447 = vmatprep.subr.mxu1 %v3446_v11  ;;  %v12734_v4 = vand.u32 4294901760, %v9239_v26  ;;  %v9324_v17 = vsub.f32 %v327_v5, %v9287_v35  ;;  %3134 = vmatprep.subr.mxu0 %v9229_v13  ;;  %v3482_v8 = vand.u32 4294901760, %v3481_v29  ;;  %v12736_v52 = vand.u32 4294901760, %v9267_v24 }
 0x224   : > { %v3493_v42 = vsub.f32 %v9252_v2, %v12733_v34  ;;  %3453 = vmatpush2.msra.mxu1 %v3452_v30  ;;  %v9328_v34 = vsub.f32 %v326_v6, %v9300_v51  ;;  %3136 = vmatpush2.msra.mxu0 %v9220_v50  ;;  %v11528_v5 = vand.u32 4294901760, %v9308_v48  ;;  %v12737_v29 = vand.u32 4294901760, %v9256_v37 }
 0x225   : > { %v3499_v63 = vsub.f32 %v9239_v26, %v12734_v4  ;;  %3459 = vmatprep.subr.mxu1 %v3458_v47  ;;  %v3505_v30 = vsub.f32 %v9267_v24, %v12736_v52  ;;  %v3488_v4 = vand.u32 4294901760, %v3487_v23  ;;  %3138 = vmatprep.subr.mxu0 %v9258_v18  ;;  %v12738_v1 = vand.u32 4294901760, %v9291_v58 }
 0x226   : > { %12735 = vst [vmem:[#allocation128_spill] sm:$0xff] %v9328_v34  ;;  %3465 = vmatpush2.msra.mxu1 %v3464_v54  ;;  %v3494_v47 = vand.u32 4294901760, %v3493_v42  ;;  %v3511_v6 = vsub.f32 %v9256_v37, %v12737_v29  ;;  %3140 = vmatpush2.msra.mxu0 %v9263_v53  ;;  %v11533_v54 = vand.u32 4294901760, %v9324_v17  ;;  %v11534_v11 = vand.u32 4294901760, %v9328_v34 }
 0x227   : > { %3471 = vmatprep.subr.mxu1 %v3470_v56  ;;  %v3500_v52 = vand.u32 4294901760, %v3499_v63  ;;  %v3517_v23 = vsub.f32 %v9291_v58, %v12738_v1  ;;  %3142 = vmatprep.subr.mxu0 %v9273_v60  ;;  %v3506_v42 = vand.u32 4294901760, %v3505_v30  ;;  %v12739_v56 = vand.u32 4294901760, %v9295_v55 }
 0x228   : > { %3477 = vmatpush2.msra.mxu1 %v3476_v46  ;;  %3144 = vmatpush2.msra.mxu0 %v9280_v7  ;;  %v3529_v46 = vsub.f32 %v9308_v48, %v11528_v5  ;;  %v3512_v63 = vand.u32 4294901760, %v3511_v6  ;;  %v12742_v6 = vld [vmem:[#allocation88_spill] sm:$0xff] }
 0x229   : > { %3483 = vmatprep.subr.mxu1 %v3482_v8  ;;  %v3523_v29 = vsub.f32 %v9295_v55, %v12739_v56  ;;  %3146 = vmatprep.subr.mxu0 %v9287_v35  ;;  %v12740_v8 = vand.u32 4294901760, %v9312_v45  ;;  %v3518_v1 = vand.u32 4294901760, %v3517_v23  ;;  %v12741_v56 = vld [vmem:[#allocation102_spill] sm:$0xff]  ;;  %v12743_v35 = vld [vmem:[#allocation101_spill] sm:$0xff] }
 0x22a   : > { %3489 = vmatpush2.msra.mxu1 %v3488_v4  ;;  %3148 = vmatpush2.msra.mxu0 %v9300_v51  ;;  %v3541_v4 = vsub.f32 %v9324_v17, %v11533_v54  ;;  %v12745_v51 = vld [vmem:[#allocation38_spill] sm:$0xff] }
 0x22b   : > { %3495 = vmatprep.subr.mxu1 %v3494_v47  ;;  %v3535_v30 = vsub.f32 %v9312_v45, %v12740_v8  ;;  %3154 = vmatprep.mubr.f32.mxu0 %v12741_v56  ;;  %v3524_v5 = vand.u32 4294901760, %v3523_v29  ;;  %v3547_v47 = vsub.f32 %v9328_v34, %v11534_v11  ;;  %v3530_v8 = vand.u32 4294901760, %v3529_v46  ;;  %v12747_v56 = vld [vmem:[#allocation20_spill] sm:$0xff]  ;;  %v12748_v11 = vld [vmem:[#allocation34_spill] sm:$0xff] }
 0x22c   : > { %3501 = vmatpush2.msra.mxu1 %v3500_v52  ;;  %3561 = vmatprep.subr.mxu0 %v12742_v6  ;;  %v12744_v52 = vld [vmem:[#allocation94_spill] sm:$0xff]  ;;  %v3542_v54 = vand.u32 4294901760, %v3541_v4  ;;  %v12749_v46 = vld [vmem:[#allocation44_spill] sm:$0xff]  ;;  %v12755_v4 = vld [vmem:[#allocation63_spill] sm:$0xff] }
 0x22d   : > { %3507 = vmatprep.subr.mxu1 %v3506_v42  ;;  %3160 = vmatmul.mubr.f32.vlgmr.msra.gmra.mxu0 %v12743_v35  ;;  %v3536_v23 = vand.u32 4294901760, %v3535_v30  ;;  %v12746_v42 = vld [vmem:[#allocation40_spill] sm:$0xff]  ;;  %v3548_v29 = vand.u32 4294901760, %v3547_v47  ;;  %v12752_v30 = vld [vmem:[#allocation31_spill] sm:$0xff]  ;;  %v12756_v47 = vld [vmem:[#allocation89_spill] sm:$0xff] }
 0x22e   : > { %3513 = vmatpush2.msra.mxu1 %v3512_v63  ;;  %3564 = vmatpush1.msra.mxu0 %v12744_v52  ;;  %v12750_v63 = vld [vmem:[#allocation21_spill] sm:$0xff]  ;;  %v12760_v35 = vld [vmem:[#allocation91_spill] sm:$0xff] }
 0x22f   : > { %3519 = vmatprep.subr.mxu1 %v3518_v1  ;;  %3567 = vmatprep.subr.mxu0 %v12745_v51  ;;  %v12753_v1 = vld [vmem:[#allocation43_spill] sm:$0xff] }
 0x230   : > { %3525 = vmatpush2.msra.mxu1 %v3524_v5  ;;  %3570 = vmatpush1.msra.mxu0 %v12746_v42  ;;  %v12751_v5 = vld [vmem:[#allocation25_spill] sm:$0xff] }
 0x231   : > { %3531 = vmatprep.subr.mxu1 %v3530_v8  ;;  %3573 = vmatprep.subr.mxu0 %v12747_v56  ;;  %v12757_v8 = vld [vmem:[#allocation83_spill] sm:$0xff] }
 0x232   : > { %3537 = vmatpush2.msra.mxu1 %v3536_v23  ;;  %3576 = vmatpush1.msra.mxu0 %v12748_v11  ;;  %v12758_v23 = vld [vmem:[#allocation92_spill] sm:$0xff] }
 0x233   : > { %3543 = vmatprep.subr.mxu1 %v3542_v54  ;;  %3579 = vmatprep.subr.mxu0 %v12749_v46  ;;  %v12754_v54 = vld [vmem:[#allocation39_spill] sm:$0xff] }
 0x234   : > { %3549 = vmatpush2.msra.mxu1 %v3548_v29  ;;  %3582 = vmatpush1.msra.mxu0 %v12750_v63  ;;  %v12759_v29 = vld [vmem:[#allocation12_spill] sm:$0xff] }
 0x235   : > { %3553 = vmatmul.mubr.f32.vlgmr.msra.gmra.mxu1 %v12581_v36  ;;  %3585 = vmatprep.subr.mxu0 %v12751_v5  ;;  %v12761_v36 = vld [vmem:[#allocation105_spill] sm:$0xff] }
 0x236   : > { %3763 = vmatprep.subr.mxu1 %v8415_v12  ;;  %3588 = vmatpush1.msra.mxu0 %v12752_v30 }
 0x237   : > { %3765 = vmatpush1.msra.mxu1 %v8423_v32  ;;  %3591 = vmatprep.subr.mxu0 %v12753_v1 }
 0x238   : > { %3767 = vmatprep.subr.mxu1 %v8425_v19  ;;  %3594 = vmatpush1.msra.mxu0 %v12754_v54 }
 0x239   : > { %3769 = vmatpush1.msra.mxu1 %v8430_v10  ;;  %3597 = vmatprep.subr.mxu0 %v12755_v4 }
 0x23a   : > { %3771 = vmatprep.subr.mxu1 %v12756_v47  ;;  %3600 = vmatpush1.msra.mxu0 %v12757_v8  ;;  %v12763_v47 = vld [vmem:[#allocation19_spill] sm:$0xff]  ;;  %v12764_v8 = vld [vmem:[#allocation60_spill] sm:$0xff] }
 0x23b   : > { %3773 = vmatpush1.msra.mxu1 %v8443_v40  ;;  %3603 = vmatprep.subr.mxu0 %v8669_v38  ;;  %v12765_v40 = vld [vmem:[#allocation28_spill] sm:$0xff]  ;;  %v12766_v38 = vld [vmem:[#allocation54_spill] sm:$0xff] }
 0x23c   : > { %3775 = vmatprep.subr.mxu1 %v8445_v62  ;;  %3606 = vmatpush1.msra.mxu0 %v8635_v27  ;;  %v12767_v62 = vld [vmem:[#allocation32_spill] sm:$0xff] }
 0x23d   : > { %3777 = vmatpush1.msra.mxu1 %v12758_v23  ;;  %3609 = vmatprep.subr.mxu0 %v12759_v29  ;;  %v12768_v27 = vld [vmem:[#allocation76_spill] sm:$0xff]  ;;  %v12769_v23 = vld [vmem:[#allocation30_spill] sm:$0xff]  ;;  %v12770_v29 = vld [vmem:[#allocation47_spill] sm:$0xff] }
 0x23e   : > { %3779 = vmatprep.subr.mxu1 %v12760_v35  ;;  %3612 = vmatpush1.msra.mxu0 %v12761_v36  ;;  %v12771_v35 = vld [vmem:[#allocation90_spill] sm:$0xff]  ;;  %v12772_v36 = vld [vmem:[#allocation67_spill] sm:$0xff] }
 0x23f   : > { %3781 = vmatpush1.msra.mxu1 %v12762_v25  ;;  %3615 = vmatprep.subr.mxu0 %v12763_v47  ;;  %v12773_v25 = vld [vmem:[#allocation48_spill] sm:$0xff]  ;;  %v12774_v47 = vld [vmem:[#allocation86_spill] sm:$0xff] }
 0x240   : > { %3783 = vmatprep.subr.mxu1 %v12764_v8  ;;  %3618 = vmatpush1.msra.mxu0 %v12765_v40  ;;  %v12775_v40 = vld [vmem:[#allocation85_spill] sm:$0xff] }
 0x241   : > { %3785 = vmatpush1.msra.mxu1 %v12766_v38  ;;  %3621 = vmatprep.subr.mxu0 %v12767_v62  ;;  %v12776_v38 = vld [vmem:[#allocation22_spill] sm:$0xff]  ;;  %v12777_v62 = vld [vmem:[#allocation65_spill] sm:$0xff] }
 0x242   : > { %3787 = vmatprep.subr.mxu1 %v12768_v27  ;;  %3624 = vmatpush1.msra.mxu0 %v12769_v23  ;;  %v12778_v23 = vld [vmem:[#allocation108_spill] sm:$0xff] }
 0x243   : > { %3789 = vmatpush1.msra.mxu1 %v12770_v29  ;;  %3627 = vmatprep.subr.mxu0 %v12771_v35  ;;  %v12779_v29 = vld [vmem:[#allocation56_spill] sm:$0xff]  ;;  %v12780_v35 = vld [vmem:[#allocation103_spill] sm:$0xff] }
 0x244   : > { %3791 = vmatprep.subr.mxu1 %v12772_v36  ;;  %3630 = vmatpush1.msra.mxu0 %v12773_v25  ;;  %v12781_v36 = vld [vmem:[#allocation42_spill] sm:$0xff]  ;;  %v12782_v25 = vld [vmem:[#allocation36_spill] sm:$0xff] }
 0x245   : > { %3793 = vmatpush1.msra.mxu1 %v12774_v47  ;;  %3633 = vmatprep.subr.mxu0 %v8804_v16  ;;  %v12783_v16 = vld [vmem:[#allocation110_spill] sm:$0xff] }
 0x246   : > { %3795 = vmatprep.subr.mxu1 %v12775_v40  ;;  %3636 = vmatpush1.msra.mxu0 %v12776_v38  ;;  %v12784_v38 = vld [vmem:[#allocation16_spill] sm:$0xff] }
 0x247   : > { %3797 = vmatpush1.msra.mxu1 %v12777_v62  ;;  %3639 = vmatprep.subr.mxu0 %v8853_v61  ;;  %v12785_v61 = vld [vmem:[#allocation13_spill] sm:$0xff] }
 0x248   : > { %3799 = vmatprep.subr.mxu1 %v12778_v23  ;;  %3642 = vmatpush1.msra.mxu0 %v12779_v29  ;;  %v12786_v23 = vld [vmem:[#allocation41_spill] sm:$0xff]  ;;  %v12787_v29 = vld [vmem:[#allocation18_spill] sm:$0xff] }
 0x249   : > { %3801 = vmatpush1.msra.mxu1 %v12780_v35  ;;  %3645 = vmatprep.subr.mxu0 %v12781_v36  ;;  %v12788_v35 = vld [vmem:[#allocation37_spill] sm:$0xff]  ;;  %v12789_v36 = vld [vmem:[#allocation82_spill] sm:$0xff] }
 0x24a   : > { %3803 = vmatprep.subr.mxu1 %v12782_v25  ;;  %3648 = vmatpush1.msra.mxu0 %v8859_v21  ;;  %v12790_v21 = vld [vmem:[#allocation23_spill] sm:$0xff] }
 0x24b   : > { %3805 = vmatpush1.msra.mxu1 %v12783_v16  ;;  %3651 = vmatprep.subr.mxu0 %v8918_v49  ;;  %v12791_v16 = vld [vmem:[#allocation52_spill] sm:$0xff]  ;;  %v12792_v49 = vld [vmem:[#allocation93_spill] sm:$0xff] }
 0x24c   : > { %3807 = vmatprep.subr.mxu1 %v12784_v38  ;;  %3654 = vmatpush1.msra.mxu0 %v8876_v9  ;;  %v12793_v38 = vld [vmem:[#allocation66_spill] sm:$0xff]  ;;  %v12794_v9 = vld [vmem:[#allocation24_spill] sm:$0xff] }
 0x24d   : > { %3809 = vmatpush1.msra.mxu1 %v12785_v61  ;;  %3657 = vmatprep.subr.mxu0 %v12786_v23  ;;  %v12795_v23 = vld [vmem:[#allocation14_spill] sm:$0xff] }
 0x24e   : > { %3811 = vmatprep.subr.mxu1 %v12787_v29  ;;  %3660 = vmatpush2.msra.mxu0 %v12788_v35  ;;  %v12796_v35 = vld [vmem:[#allocation26_spill] sm:$0xff] }
 0x24f   : > { %3813 = vmatpush1.msra.mxu1 %v12789_v36  ;;  %3663 = vmatprep.subr.mxu0 %v8968_v44  ;;  %v12797_v36 = vld [vmem:[#allocation57_spill] sm:$0xff]  ;;  %v12798_v44 = vld [vmem:[#allocation27_spill] sm:$0xff] }
 0x250   : > { %3815 = vmatprep.subr.mxu1 %v12790_v21  ;;  %3666 = vmatpush2.msra.mxu0 %v12791_v16  ;;  %v12799_v16 = vld [vmem:[#allocation46_spill] sm:$0xff] }
 0x251   : > { %3817 = vmatpush1.msra.mxu1 %v12792_v49  ;;  %3669 = vmatprep.subr.mxu0 %v12793_v38  ;;  %v12800_v38 = vld [vmem:[#allocation29_spill] sm:$0xff] }
 0x252   : > { %3819 = vmatprep.subr.mxu1 %v12794_v9  ;;  %3672 = vmatpush2.msra.mxu0 %v8975_v22  ;;  %v12801_v9 = vld [vmem:[#allocation81_spill] sm:$0xff]  ;;  %v12802_v22 = vld [vmem:[#allocation72_spill] sm:$0xff] }
 0x253   : > { %3821 = vmatpush1.msra.mxu1 %v12795_v23  ;;  %3675 = vmatprep.subr.mxu0 %v9031_v20  ;;  %v12803_v23 = vld [vmem:[#allocation74_spill] sm:$0xff]  ;;  %v12804_v20 = vld [vmem:[#allocation33_spill] sm:$0xff] }
 0x254   : > { %3823 = vmatprep.subr.mxu1 %v12796_v35  ;;  %3678 = vmatpush2.msra.mxu0 %v12797_v36  ;;  %v12805_v36 = vld [vmem:[#allocation80_spill] sm:$0xff] }
 0x255   : > { %3825 = vmatpush1.msra.mxu1 %v12798_v44  ;;  %3681 = vmatprep.subr.mxu0 %v9058_v0  ;;  %v12806_v44 = vld [vmem:[#allocation111_spill] sm:$0xff]  ;;  %v12807_v0 = vld [vmem:[#allocation78_spill] sm:$0xff] }
 0x256   : > { %3827 = vmatprep.subr.mxu1 %v12799_v16  ;;  %3684 = vmatpush2.msra.mxu0 %v9038_v15  ;;  %v12808_v16 = vld [vmem:[#allocation119_spill] sm:$0xff]  ;;  %v12809_v15 = vld [vmem:[#allocation58_spill] sm:$0xff] }
 0x257   : > { %3829 = vmatpush2.msra.mxu1 %v12800_v38  ;;  %3687 = vmatprep.subr.mxu0 %v12801_v9  ;;  %v12810_v9 = vld [vmem:[#allocation45_spill] sm:$0xff] }
 0x258   : > { %3831 = vmatprep.subr.mxu1 %v12802_v22  ;;  %3690 = vmatpush2.msra.mxu0 %v12803_v23  ;;  %v12811_v22 = vld [vmem:[#allocation121_spill] sm:$0xff]  ;;  %v12812_v23 = vld [vmem:[#allocation55_spill] sm:$0xff] }
 0x259   : > { %3833 = vmatpush2.msra.mxu1 %v12804_v20  ;;  %3693 = vmatprep.subr.mxu0 %v9131_v33  ;;  %v12813_v33 = vld [vmem:[#allocation84_spill] sm:$0xff] }
 0x25a   : > { %3835 = vmatprep.subr.mxu1 %v12805_v36  ;;  %3696 = vmatpush2.msra.mxu0 %v12806_v44  ;;  %v12814_v44 = vld [vmem:[#allocation70_spill] sm:$0xff] }
 0x25b   : > { %3837 = vmatpush2.msra.mxu1 %v12807_v0  ;;  %3699 = vmatprep.subr.mxu0 %v12808_v16  ;;  %v12815_v16 = vld [vmem:[#allocation69_spill] sm:$0xff] }
 0x25c   : > { %3839 = vmatprep.subr.mxu1 %v12809_v15  ;;  %3702 = vmatpush2.msra.mxu0 %v9137_v43  ;;  %v12816_v43 = vld [vmem:[#allocation104_spill] sm:$0xff] }
 0x25d   : > { %3841 = vmatpush2.msra.mxu1 %v12810_v9  ;;  %3705 = vmatprep.subr.mxu0 %v12811_v22  ;;  %v12817_v22 = vld [vmem:[#allocation79_spill] sm:$0xff] }
 0x25e   : > { %3843 = vmatprep.subr.mxu1 %v12812_v23  ;;  %3708 = vmatpush2.msra.mxu0 %v9160_v59  ;;  %v12818_v59 = vld [vmem:[#allocation106_spill] sm:$0xff] }
 0x25f   : > { %3845 = vmatpush2.msra.mxu1 %v12813_v33  ;;  %3711 = vmatprep.subr.mxu0 %v9210_v3  ;;  %v12819_v3 = vld [vmem:[#allocation87_spill] sm:$0xff] }
 0x260   : > { %3847 = vmatprep.subr.mxu1 %v12814_v44  ;;  %3714 = vmatpush2.msra.mxu0 %v9183_v41  ;;  %v12820_v41 = vld [vmem:[#allocation107_spill] sm:$0xff] }
 0x261   : > { %3849 = vmatpush2.msra.mxu1 %v12815_v16  ;;  %3717 = vmatprep.subr.mxu0 %v9232_v57  ;;  %v12821_v57 = vld [vmem:[#allocation116_spill] sm:$0xff] }
 0x262   : > { %3851 = vmatprep.subr.mxu1 %v12816_v43  ;;  %3720 = vmatpush2.msra.mxu0 %v9236_v28 }
 0x263   : > { %3853 = vmatpush2.msra.mxu1 %v12817_v22  ;;  %3723 = vmatprep.subr.mxu0 %v9252_v2  ;;  %v12822_v2 = vld [vmem:[#allocation114_spill] sm:$0xff] }
 0x264   : > { %3855 = vmatprep.subr.mxu1 %v12818_v59  ;;  %3726 = vmatpush2.msra.mxu0 %v9239_v26  ;;  %v12823_v26 = vld [vmem:[#allocation123_spill] sm:$0xff] }
 0x265   : > { %3857 = vmatpush2.msra.mxu1 %v12819_v3  ;;  %3729 = vmatprep.subr.mxu0 %v9267_v24  ;;  %v12824_v24 = vld [vmem:[#allocation122_spill] sm:$0xff] }
 0x266   : > { %3859 = vmatprep.subr.mxu1 %v12820_v41  ;;  %3732 = vmatpush2.msra.mxu0 %v9256_v37 }
 0x267   : > { %3861 = vmatpush2.msra.mxu1 %v12821_v57  ;;  %3735 = vmatprep.subr.mxu0 %v9291_v58  ;;  %v12825_v58 = vld [vmem:[#allocation98_spill] sm:$0xff] }
 0x268   : > { %3863 = vmatprep.subr.mxu1 %v9155_v14  ;;  %3738 = vmatpush2.msra.mxu0 %v9295_v55  ;;  %v12826_v55 = vld [vmem:[#allocation97_spill] sm:$0xff] }
 0x269   : > { %3865 = vmatpush2.msra.mxu1 %v12822_v2  ;;  %3741 = vmatprep.subr.mxu0 %v9308_v48 }
 0x26a   : > { %3867 = vmatprep.subr.mxu1 %v12823_v26  ;;  %3744 = vmatpush2.msra.mxu0 %v9312_v45  ;;  %v12827_v26 = vand.u32 4294901760, %v12742_v6  ;;  %v12831_v6 = vand.u32 4294901760, %v12747_v56  ;;  %v12839_v56 = vand.u32 4294901760, %v12751_v5  ;;  %v12843_v5 = vand.u32 4294901760, %v12755_v4 }
 0x26b   : > { %3869 = vmatpush2.msra.mxu1 %v12824_v24  ;;  %3747 = vmatprep.subr.mxu0 %v9324_v17  ;;  %v12828_v24 = vand.u32 4294901760, %v12744_v52  ;;  %v12836_v52 = vld [vmem:[#allocation100_spill] sm:$0xff] }
 0x26c   : > { %3871 = vmatprep.subr.mxu1 %v9206_v39  ;;  %3750 = vmatpush2.msra.mxu0 %v9328_v34  ;;  %v12829_v34 = vand.u32 4294901760, %v12745_v51  ;;  %v12834_v51 = vand.u32 4294901760, %v12749_v46  ;;  %v12841_v46 = vand.u32 4294901760, %v12753_v1 }
 0x26d   : > { %3753 = vmatprep.mubr.f32.mxu0 %v12825_v58  ;;  %3873 = vmatpush2.msra.mxu1 %v9197_v31  ;;  %v12830_v58 = vand.u32 4294901760, %v12746_v42  ;;  %v12838_v42 = vld [vmem:[#allocation99_spill] sm:$0xff] }
 0x26e   : > { %3756 = vmatmul.mubr.f32.vlgmr.msra.gmra.mxu0 %v12826_v55  ;;  %3875 = vmatprep.subr.mxu1 %v9229_v13 }
 0x26f   : > { %3906 = vmatprep.subr.mxu0 %v12827_v26  ;;  %3877 = vmatpush2.msra.mxu1 %v9220_v50  ;;  %v12832_v26 = vand.u32 4294901760, %v12748_v11  ;;  %v12840_v11 = vand.u32 4294901760, %v12752_v30 }
 0x270   : > { %3910 = vmatpush1.msra.mxu0 %v12828_v24  ;;  %3879 = vmatprep.subr.mxu1 %v9258_v18  ;;  %v12833_v24 = vld [vmem:[#allocation61_spill] sm:$0xff] }
 0x271   : > { %3914 = vmatprep.subr.mxu0 %v12829_v34  ;;  %3881 = vmatpush2.msra.mxu1 %v9263_v53  ;;  %v12835_v34 = vld [vmem:[#allocation127_spill] sm:$0xff] }
 0x272   : > { %3918 = vmatpush1.msra.mxu0 %v12830_v58  ;;  %3883 = vmatprep.subr.mxu1 %v9273_v60  ;;  %v12837_v58 = vand.u32 4294901760, %v12750_v63  ;;  %v12842_v63 = vand.u32 4294901760, %v12754_v54 }
 0x273   : > { %3922 = vmatprep.subr.mxu0 %v12831_v6  ;;  %3885 = vmatpush2.msra.mxu1 %v9280_v7  ;;  %v12844_v6 = vld [vmem:[#allocation89_spill] sm:$0xff] }
 0x274   : > { %3926 = vmatpush1.msra.mxu0 %v12832_v26  ;;  %3887 = vmatprep.subr.mxu1 %v12833_v24  ;;  %v12847_v26 = vld [vmem:[#allocation73_spill] sm:$0xff] }
 0x275   : > { %3930 = vmatprep.subr.mxu0 %v12834_v51  ;;  %3889 = vmatpush2.msra.mxu1 %v12835_v34  ;;  %v12850_v51 = vld [vmem:[#allocation75_spill] sm:$0xff] }
 0x276   : > { %3893 = vmatprep.mubr.f32.mxu1 %v12836_v52  ;;  %3934 = vmatpush1.msra.mxu0 %v12837_v58  ;;  %v12853_v58 = vld [vmem:[#allocation92_spill] sm:$0xff]  ;;  %v12973_v52 = vld [vmem:[#allocation51_spill] sm:$0xff] }
 0x277   : > { %3897 = vmatmul.mubr.f32.vlgmr.msra.gmra.mxu1 %v12838_v42  ;;  %3938 = vmatprep.subr.mxu0 %v12839_v56  ;;  %v12856_v56 = vld [vmem:[#allocation91_spill] sm:$0xff]  ;;  %v12961_v42 = vand.u32 4294901760, %v9236_v28  ;;  %v12974_v55 = vand.u32 4294901760, %v12973_v52 }
 0x278   : > { %4169 = vmatprep.subr.mxu1 %v8415_v12  ;;  %3942 = vmatpush1.msra.mxu0 %v12840_v11  ;;  %v12845_v12 = vld [vmem:[#allocation83_spill] sm:$0xff]  ;;  %v12857_v11 = vld [vmem:[#allocation105_spill] sm:$0xff] }
 0x279   : > { %4171 = vmatpush1.msra.mxu1 %v8423_v32  ;;  %3946 = vmatprep.subr.mxu0 %v12841_v46  ;;  %v12846_v30 = vand.u32 4294901760, %v12845_v12  ;;  %v12848_v32 = vld [vmem:[#allocation109_spill] sm:$0xff]  ;;  %v12858_v46 = vand.u32 4294901760, %v12857_v11  ;;  %v12862_v12 = vld [vmem:[#allocation28_spill] sm:$0xff]  ;;  %v12875_v11 = vld [vmem:[#allocation11_spill] sm:$0xff] }
 0x27a   : > { %4173 = vmatprep.subr.mxu1 %v8425_v19  ;;  %3950 = vmatpush1.msra.mxu0 %v12842_v63  ;;  %v12849_v1 = vand.u32 4294901760, %v12848_v32  ;;  %v12851_v19 = vld [vmem:[#allocation77_spill] sm:$0xff]  ;;  %v12865_v32 = vld [vmem:[#allocation32_spill] sm:$0xff]  ;;  %v256_v52 = vld [vmem:[#allocation2 + $0x1f0] sm:$0xff] }
 0x27b   : > { %4175 = vmatpush1.msra.mxu1 %v8430_v10  ;;  %3954 = vmatprep.subr.mxu0 %v12843_v5  ;;  %v12852_v54 = vand.u32 4294901760, %v12851_v19  ;;  %v12854_v10 = vld [vmem:[#allocation12_spill] sm:$0xff]  ;;  %v12859_v63 = vld [vmem:[#allocation17_spill] sm:$0xff]  ;;  %v12860_v5 = vld [vmem:[#allocation19_spill] sm:$0xff] }
 0x27c   : > { %4177 = vmatprep.subr.mxu1 %v12844_v6  ;;  %3958 = vmatpush1.msra.mxu0 %v12846_v30  ;;  %v12855_v4 = vand.u32 4294901760, %v12854_v10  ;;  %v12861_v6 = vand.u32 4294901760, %v12860_v5  ;;  %v12863_v30 = vand.u32 4294901760, %v12862_v12  ;;  %v12879_v5 = vld [vmem:[#allocation15_spill] sm:$0xff]  ;;  %v12881_v12 = vld [vmem:[#allocation108_spill] sm:$0xff] }
 0x27d   : > { %4179 = vmatpush1.msra.mxu1 %v12847_v26  ;;  %3962 = vmatprep.subr.mxu0 %v12849_v1  ;;  %v12864_v26 = vld [vmem:[#allocation54_spill] sm:$0xff]  ;;  %v12866_v1 = vand.u32 4294901760, %v12865_v32  ;;  %v12884_v32 = vld [vmem:[#allocation103_spill] sm:$0xff] }
 0x27e   : > { %4181 = vmatprep.subr.mxu1 %v12850_v51  ;;  %3966 = vmatpush1.msra.mxu0 %v12852_v54  ;;  %v12867_v51 = vld [vmem:[#allocation30_spill] sm:$0xff]  ;;  %v12869_v54 = vld [vmem:[#allocation47_spill] sm:$0xff] }
 0x27f   : > { %4183 = vmatpush1.msra.mxu1 %v12853_v58  ;;  %3970 = vmatprep.subr.mxu0 %v12855_v4  ;;  %v12868_v19 = vand.u32 4294901760, %v12867_v51  ;;  %v12870_v58 = vld [vmem:[#allocation90_spill] sm:$0xff]  ;;  %v12872_v4 = vld [vmem:[#allocation67_spill] sm:$0xff] }
 0x280   : > { %4185 = vmatprep.subr.mxu1 %v12856_v56  ;;  %3974 = vmatpush1.msra.mxu0 %v12858_v46  ;;  %v12871_v10 = vand.u32 4294901760, %v12870_v58  ;;  %v12876_v46 = vand.u32 4294901760, %v12875_v11  ;;  %v12892_v58 = vld [vmem:[#allocation16_spill] sm:$0xff] }
 0x281   : > { %4187 = vmatpush1.msra.mxu1 %v12859_v63  ;;  %3978 = vmatprep.subr.mxu0 %v12861_v6  ;;  %v12880_v6 = vand.u32 4294901760, %v12879_v5  ;;  %v12902_v5 = vld [vmem:[#allocation52_spill] sm:$0xff] }
 0x282   : > { %4189 = vmatprep.subr.mxu1 %v12764_v8  ;;  %3982 = vmatpush1.msra.mxu0 %v12863_v30  ;;  %v12873_v8 = vld [vmem:[#allocation48_spill] sm:$0xff] }
 0x283   : > { %4191 = vmatpush1.msra.mxu1 %v12864_v26  ;;  %3986 = vmatprep.subr.mxu0 %v12866_v1  ;;  %v12874_v56 = vand.u32 4294901760, %v12873_v8  ;;  %v12882_v30 = vld [vmem:[#allocation56_spill] sm:$0xff]  ;;  %v12895_v8 = vld [vmem:[#allocation41_spill] sm:$0xff] }
 0x284   : > { %4193 = vmatprep.subr.mxu1 %v12768_v27  ;;  %3990 = vmatpush1.msra.mxu0 %v12868_v19  ;;  %v12877_v27 = vld [vmem:[#allocation22_spill] sm:$0xff]  ;;  %v12883_v26 = vand.u32 4294901760, %v12882_v30  ;;  %v12906_v30 = vld [vmem:[#allocation24_spill] sm:$0xff] }
 0x285   : > { %4195 = vmatpush1.msra.mxu1 %v12869_v54  ;;  %3994 = vmatprep.subr.mxu0 %v12871_v10  ;;  %v12878_v63 = vand.u32 4294901760, %v12877_v27  ;;  %v12889_v19 = vld [vmem:[#allocation110_spill] sm:$0xff]  ;;  %v12893_v10 = vld [vmem:[#allocation35_spill] sm:$0xff]  ;;  %v12900_v27 = vld [vmem:[#allocation53_spill] sm:$0xff] }
 0x286   : > { %4197 = vmatprep.subr.mxu1 %v12872_v4  ;;  %3998 = vmatpush1.msra.mxu0 %v12874_v56  ;;  %v12894_v4 = vand.u32 4294901760, %v12893_v10  ;;  %v12896_v56 = vand.u32 4294901760, %v12895_v8  ;;  %v12915_v10 = vld [vmem:[#allocation71_spill] sm:$0xff]  ;;  %v12917_v8 = vld [vmem:[#allocation46_spill] sm:$0xff] }
 0x287   : > { %4199 = vmatpush1.msra.mxu1 %v12774_v47  ;;  %4002 = vmatprep.subr.mxu0 %v12876_v46  ;;  %v12885_v47 = vld [vmem:[#allocation42_spill] sm:$0xff] }
 0x288   : > { %4201 = vmatprep.subr.mxu1 %v12775_v40  ;;  %4006 = vmatpush1.msra.mxu0 %v12878_v63  ;;  %v12886_v1 = vand.u32 4294901760, %v12885_v47  ;;  %v12887_v40 = vld [vmem:[#allocation64_spill] sm:$0xff]  ;;  %v12899_v46 = vld [vmem:[#allocation82_spill] sm:$0xff]  ;;  %v12901_v63 = vand.u32 4294901760, %v12900_v27  ;;  %v304_v27 = vld [vmem:[#allocation2 + $0x370] sm:$0xff] }
 0x289   : > { %4203 = vmatpush1.msra.mxu1 %v12777_v62  ;;  %4010 = vmatprep.subr.mxu0 %v12880_v6  ;;  %v12888_v51 = vand.u32 4294901760, %v12887_v40  ;;  %v12890_v62 = vld [vmem:[#allocation50_spill] sm:$0xff]  ;;  %v12903_v6 = vand.u32 4294901760, %v12902_v5  ;;  %v12920_v5 = vld [vmem:[#allocation81_spill] sm:$0xff] }
 0x28a   : > { %4205 = vmatprep.subr.mxu1 %v12881_v12  ;;  %4014 = vmatpush1.msra.mxu0 %v12883_v26  ;;  %v12891_v54 = vand.u32 4294901760, %v12890_v62  ;;  %v12907_v26 = vld [vmem:[#allocation62_spill] sm:$0xff]  ;;  %v12914_v62 = vld [vmem:[#allocation27_spill] sm:$0xff] }
 0x28b   : > { %4207 = vmatpush1.msra.mxu1 %v12884_v32  ;;  %4018 = vmatprep.subr.mxu0 %v12886_v1  ;;  %v12908_v32 = vand.u32 4294901760, %v12907_v26  ;;  %v12909_v47 = vld [vmem:[#allocation14_spill] sm:$0xff]  ;;  %v12910_v1 = vld [vmem:[#allocation59_spill] sm:$0xff] }
 0x28c   : > { %4209 = vmatprep.subr.mxu1 %v12782_v25  ;;  %4022 = vmatpush1.msra.mxu0 %v12888_v51  ;;  %v12897_v25 = vld [vmem:[#allocation37_spill] sm:$0xff]  ;;  %v12911_v40 = vand.u32 4294901760, %v12910_v1  ;;  %v313_v51 = vld [vmem:[#allocation2 + $0x3b8] sm:$0xff]  ;;  %v12923_v26 = vld [vmem:[#allocation74_spill] sm:$0xff] }
 0x28d   : > { %4211 = vmatpush1.msra.mxu1 %v12889_v19  ;;  %4026 = vmatprep.subr.mxu0 %v12891_v54  ;;  %v12898_v11 = vand.u32 4294901760, %v12897_v25  ;;  %v12912_v19 = vld [vmem:[#allocation57_spill] sm:$0xff]  ;;  %v12926_v1 = vld [vmem:[#allocation112_spill] sm:$0xff] }
 0x28e   : > { %4213 = vmatprep.subr.mxu1 %v12892_v58  ;;  %4030 = vmatpush1.msra.mxu0 %v12894_v4  ;;  %v312_v58 = vld [vmem:[#allocation2 + $0x3b0] sm:$0xff]  ;;  %v12916_v4 = vand.u32 4294901760, %v12915_v10 }
 0x28f   : > { %4215 = vmatpush1.msra.mxu1 %v12785_v61  ;;  %4034 = vmatprep.subr.mxu0 %v12896_v56  ;;  %v12904_v61 = vld [vmem:[#allocation66_spill] sm:$0xff]  ;;  %v12918_v56 = vld [vmem:[#allocation68_spill] sm:$0xff]  ;;  %v12931_v10 = vld [vmem:[#allocation111_spill] sm:$0xff] }
 0x290   : > { %4217 = vmatprep.subr.mxu1 %v12787_v29  ;;  %4038 = vmatpush2.msra.mxu0 %v12898_v11  ;;  %v12905_v12 = vand.u32 4294901760, %v12904_v61  ;;  %v321_v29 = vld [vmem:[#allocation2 + $0x3f8] sm:$0xff]  ;;  %v12919_v25 = vand.u32 4294901760, %v12918_v56  ;;  %v9624_v11 = vand.u32 4294901760, %v313_v51 }
 0x291   : > { %4219 = vmatpush1.msra.mxu1 %v12899_v46  ;;  %4042 = vmatprep.subr.mxu0 %v12901_v63  ;;  %v9614_v54 = vand.u32 4294901760, %v321_v29  ;;  %v305_v46 = vld [vmem:[#allocation2 + $0x378] sm:$0xff] }
 0x292   : > { %4221 = vmatprep.subr.mxu1 %v12790_v21  ;;  %4046 = vmatpush2.msra.mxu0 %v12903_v6  ;;  %v320_v21 = vld [vmem:[#allocation2 + $0x3f0] sm:$0xff]  ;;  %v297_v63 = vld [vmem:[#allocation2 + $0x338] sm:$0xff]  ;;  %v12921_v6 = vand.u32 4294901760, %v12920_v5  ;;  %v9655_v56 = vsub.f32 %v313_v51, %v9624_v11  ;;  %v2270_v51 = vpop.f32.mrf.mxu1 }
 0x293   : > { %4223 = vmatpush1.msra.mxu1 %v12792_v49  ;;  %4050 = vmatprep.subr.mxu0 %v12905_v12  ;;  %v12913_v49 = vand.u32 4294901760, %v12912_v19  ;;  %v12922_v61 = vld [vmem:[#allocation72_spill] sm:$0xff]  ;;  %v9629_v12 = vand.u32 4294901760, %v312_v58  ;;  %v9640_v19 = vand.u32 4294901760, %v305_v46 }
 0x294   : > { %4225 = vmatprep.subr.mxu1 %v12906_v30  ;;  %4054 = vmatpush2.msra.mxu0 %v12908_v32  ;;  %v296_v30 = vld [vmem:[#allocation2 + $0x330] sm:$0xff]  ;;  %v12924_v32 = vand.u32 4294901760, %v12923_v26  ;;  %12935 = vst [vmem:[#allocation44_spill] sm:$0xff] %v9655_v56 }
 0x295   : > { %4227 = vmatpush1.msra.mxu1 %v12909_v47  ;;  %4058 = vmatprep.subr.mxu0 %v12911_v40  ;;  %v9635_v47 = vsub.f32 %v321_v29, %v9614_v54  ;;  %v12927_v40 = vand.u32 4294901760, %v12926_v1  ;;  %12928 = vst [vmem:[#allocation94_spill] sm:$0xff] %v9640_v19  ;;  %v9652_v29 = vand.u32 4294901760, %v296_v30  ;;  %v9661_v5 = vsub.f32 %v312_v58, %v9629_v12  ;;  %v280_v26 = vld [vmem:[#allocation2 + $0x2b0] sm:$0xff] }
 0x296   : > { %4229 = vmatprep.subr.mxu1 %v12796_v35  ;;  %4062 = vmatpush2.msra.mxu0 %v12913_v49  ;;  %v9622_v35 = vand.u32 4294901760, %v320_v21  ;;  %v9642_v49 = vand.u32 4294901760, %v304_v27 }
 0x297   : > { %4231 = vmatpush1.msra.mxu1 %v12914_v62  ;;  %4066 = vmatprep.subr.mxu0 %v12916_v4  ;;  %12925 = vst [vmem:[#allocation88_spill] sm:$0xff] %v9635_v47  ;;  %v9644_v62 = vand.u32 4294901760, %v297_v63  ;;  %v12932_v4 = vand.u32 4294901760, %v12931_v10  ;;  %12934 = vst [vmem:[#allocation34_spill] sm:$0xff] %v9652_v29  ;;  %v9678_v10 = vsub.f32 %v305_v46, %v9640_v19  ;;  %v9694_v46 = vand.u32 4294901760, %v280_v26 }
 0x298   : > { %4233 = vmatprep.subr.mxu1 %v12917_v8  ;;  %4070 = vmatpush2.msra.mxu0 %v12919_v25  ;;  %12929 = vst [vmem:[#allocation38_spill] sm:$0xff] %v9642_v49  ;;  %v288_v8 = vld [vmem:[#allocation2 + $0x2f0] sm:$0xff]  ;;  %12938 = vst [vmem:[#allocation21_spill] sm:$0xff] %v9661_v5 }
 0x299   : > { %4235 = vmatpush2.msra.mxu1 %v12800_v38  ;;  %4074 = vmatprep.subr.mxu0 %v12921_v6  ;;  %v289_v38 = vld [vmem:[#allocation2 + $0x2f8] sm:$0xff]  ;;  %12930 = vst [vmem:[#allocation40_spill] sm:$0xff] %v9644_v62  ;;  %v9675_v58 = vand.u32 4294901760, %v288_v8  ;;  %12946 = vst [vmem:[#allocation39_spill] sm:$0xff] %v9678_v10  ;;  %v9739_v28 = vsub.f32 %v280_v26, %v9694_v46 }
 0x29a   : > { %4237 = vmatprep.subr.mxu1 %v12922_v61  ;;  %4078 = vmatpush2.msra.mxu0 %v12924_v32  ;;  %v9663_v6 = vand.u32 4294901760, %v289_v38  ;;  %v12942_v32 = vld [vmem:[#allocation121_spill] sm:$0xff]  ;;  %12953 = vst [vmem:[#allocation76_spill] sm:$0xff] %v9694_v46 }
 0x29b   : > { %4239 = vmatpush2.msra.mxu1 %v12804_v20  ;;  %4082 = vmatprep.subr.mxu0 %v12927_v40  ;;  %v9650_v20 = vsub.f32 %v320_v21, %v9622_v35  ;;  %v11563_v21 = vand.u32 4294901760, %v9635_v47  ;;  %v12943_v1 = vand.u32 4294901760, %v12942_v32  ;;  %12945 = vst [vmem:[#allocation43_spill] sm:$0xff] %v9675_v58  ;;  %v281_v40 = vld [vmem:[#allocation2 + $0x2b8] sm:$0xff]  ;;  %12966 = vst [vmem:[#allocation36_spill] sm:$0xff] %v9739_v28 }
 0x29c   : > { %4241 = vmatprep.subr.mxu1 %v12805_v36  ;;  %4086 = vmatpush2.msra.mxu0 %v12932_v4  ;;  %v12936_v36 = vld [vmem:[#allocation119_spill] sm:$0xff]  ;;  %12939 = vst [vmem:[#allocation25_spill] sm:$0xff] %v9663_v6  ;;  %v1877_v4 = vpop.f32.mrf.mxu0 }
 0x29d   : > { %4243 = vmatpush2.msra.mxu1 %v12807_v0  ;;  %12933 = vst [vmem:[#allocation20_spill] sm:$0xff] %v9650_v20  ;;  %v12937_v25 = vand.u32 4294901760, %v12936_v36  ;;  %v12940_v0 = vld [vmem:[#allocation117_spill] sm:$0xff]  ;;  %v12948_v36 = vld [vmem:[#allocation118_spill] sm:$0xff] }
 0x29e   : > { %4245 = vmatprep.subr.mxu1 %v12809_v15  ;;  %v12941_v61 = vand.u32 4294901760, %v12940_v0  ;;  %v9673_v15 = vsub.f32 %v304_v27, %v9642_v49  ;;  %v9719_v27 = vadd.f32 %v2270_v51, %v1877_v4 }
 0x29f   : > { %4090 = vmatprep.subr.mxu0 %v12937_v25  ;;  %4247 = vmatpush2.msra.mxu1 %v12810_v9  ;;  %v9681_v9 = vsub.f32 %v297_v63, %v9644_v62  ;;  %v12949_v25 = vand.u32 4294901760, %v12948_v36  ;;  %v1879_v63 = vpop.f32.mrf.mxu0 }
 0x2a0   : > { %4094 = vmatpush2.msra.mxu0 %v12941_v61  ;;  %4249 = vmatprep.subr.mxu1 %v12812_v23  ;;  %12944 = vst [vmem:[#allocation31_spill] sm:$0xff] %v9673_v15  ;;  %v9687_v23 = vsub.f32 %v296_v30, %v9652_v29  ;;  %v12951_v61 = vld [vmem:[#allocation115_spill] sm:$0xff]  ;;  %v9706_v30 = vsub.f32 %v9635_v47, %v11563_v21  ;;  %v12995_v47 = vand.u32 4294901760, %v9312_v45 }
 0x2a1   : > { %4098 = vmatprep.subr.mxu0 %v12943_v1  ;;  %12947 = vst [vmem:[#allocation63_spill] sm:$0xff] %v9681_v9  ;;  %4251 = vmatpush2.msra.mxu1 %v12813_v33  ;;  %v12952_v32 = vand.u32 4294901760, %v12951_v61  ;;  %v9698_v1 = vsub.f32 %v289_v38, %v9663_v6  ;;  %v12955_v33 = vld [vmem:[#allocation120_spill] sm:$0xff]  ;;  %v2272_v61 = vpop.f32.mrf.mxu1  ;;  %v9714_v38 = vsub.f32 %v288_v8, %v9675_v58  ;;  %v9751_v21 = vpop.f32.mrf.mxu0 }
 0x2a2   : > { %4102 = vmatpush2.msra.mxu0 %v12949_v25  ;;  %12950 = vst [vmem:[#allocation60_spill] sm:$0xff] %v9687_v23  ;;  %4253 = vmatprep.subr.mxu1 %v12814_v44  ;;  %v12956_v36 = vand.u32 4294901760, %v12955_v33  ;;  %v9708_v25 = vand.u32 4294901760, %v281_v40  ;;  %v273_v44 = vld [vmem:[#allocation2 + $0x278] sm:$0xff]  ;;  %v9749_v33 = vadd.f32 %v2272_v61, %v1879_v63  ;;  %v12975_v63 = vand.u32 4294901760, %v9678_v10 }
 0x2a3   : > { %4106 = vmatprep.subr.mxu0 %v12952_v32  ;;  %12954 = vst [vmem:[#allocation86_spill] sm:$0xff] %v9698_v1  ;;  %4255 = vmatpush2.msra.mxu1 %v12815_v16  ;;  %v12958_v32 = vld [vmem:[#allocation113_spill] sm:$0xff]  ;;  %12960 = vst [vmem:[#allocation65_spill] sm:$0xff] %v9714_v38  ;;  %v272_v16 = vld [vmem:[#allocation2 + $0x270] sm:$0xff]  ;;  %v9746_v4 = vand.u32 4294901760, %v273_v44 }
 0x2a4   : > { %4110 = vmatpush2.msra.mxu0 %v12956_v36  ;;  %12957 = vst [vmem:[#allocation85_spill] sm:$0xff] %v9708_v25  ;;  %v12959_v0 = vand.u32 4294901760, %v12958_v32  ;;  %4257 = vmatprep.subr.mxu1 %v12816_v43  ;;  %v12962_v43 = vand.u32 4294901760, %v9650_v20  ;;  %v12964_v36 = vld [vmem:[#allocation49_spill] sm:$0xff]  ;;  %v9757_v26 = vand.u32 4294901760, %v272_v16  ;;  %v9768_v61 = vsub.f32 %v9678_v10, %v12975_v63 }
 0x2a5   : > { %4259 = vmatpush2.msra.mxu1 %v12817_v22  ;;  %v12965_v51 = vand.u32 4294901760, %v12964_v36  ;;  %v12967_v22 = vand.u32 4294901760, %v9661_v5  ;;  %12968 = vst [vmem:[#allocation13_spill] sm:$0xff] %v9746_v4  ;;  %v12969_v36 = vld [vmem:[#allocation124_spill] sm:$0xff] }
 0x2a6   : > { %4114 = vmatprep.subr.mxu0 %v12959_v0  ;;  %v9727_v8 = vsub.f32 %v9650_v20, %v12962_v43  ;;  %v12963_v0 = vand.u32 4294901760, %v9655_v56  ;;  %4261 = vmatprep.subr.mxu1 %v12818_v59  ;;  %v264_v43 = vld [vmem:[#allocation2 + $0x230] sm:$0xff]  ;;  %12971 = vst [vmem:[#allocation18_spill] sm:$0xff] %v9757_v26  ;;  %v12977_v59 = vand.u32 4294901760, %v9681_v9 }
 0x2a7   : > { %4118 = vmatpush2.msra.mxu0 %v12961_v42  ;;  %v9744_v42 = vsub.f32 %v9661_v5, %v12967_v22  ;;  %4263 = vmatpush2.msra.mxu1 %v12819_v3  ;;  %v9760_v22 = vsub.f32 %v281_v40, %v9708_v25  ;;  %v9804_v5 = vsub.f32 %v273_v44, %v9746_v4  ;;  %v12992_v44 = vand.u32 4294901760, %v9308_v48 }
 0x2a8   : > { %v9732_v32 = vsub.f32 %v9655_v56, %v12963_v0  ;;  %4122 = vmatprep.subr.mxu0 %v12965_v51  ;;  %v12970_v51 = vand.u32 4294901760, %v12969_v36  ;;  %4265 = vmatprep.subr.mxu1 %v12820_v41  ;;  %v12976_v36 = vand.u32 4294901760, %v9673_v15  ;;  %v9778_v40 = vsub.f32 %v9681_v9, %v12977_v59  ;;  %v12983_v59 = vld [vmem:[#allocation125_spill] sm:$0xff]  ;;  %v248_v0 = vld [vmem:[#allocation2 + $0x1b0] sm:$0xff] }
 0x2a9   : > { %12972 = vst [vmem:[#allocation23_spill] sm:$0xff] %v9760_v22  ;;  %v12979_v41 = vand.u32 4294901760, %v9256_v37  ;;  %4267 = vmatpush2.msra.mxu1 %v12821_v57  ;;  %v12984_v9 = vand.u32 4294901760, %v12983_v59  ;;  %v12985_v57 = vand.u32 4294901760, %v9698_v1  ;;  %12986 = vst [vmem:[#allocation33_spill] sm:$0xff] %v9804_v5  ;;  %v12987_v59 = vld [vmem:[#allocation126_spill] sm:$0xff] }
 0x2aa   : > { %4126 = vmatpush2.msra.mxu0 %v12970_v51  ;;  %v9773_v3 = vsub.f32 %v9673_v15, %v12976_v36  ;;  %v265_v51 = vld [vmem:[#allocation2 + $0x238] sm:$0xff]  ;;  %12978 = vst [vmem:[#allocation93_spill] sm:$0xff] %v9778_v40  ;;  %v9786_v36 = vand.u32 4294901760, %v264_v43  ;;  %v12981_v15 = vand.u32 4294901760, %v9687_v23  ;;  %4269 = vmatprep.subr.mxu1 %v9155_v14  ;;  %v9810_v14 = vsub.f32 %v272_v16, %v9757_v26  ;;  %v12993_v56 = vld [vmem:[#allocation123_spill] sm:$0xff] }
 0x2ab   : > { %4130 = vmatprep.subr.mxu0 %v12974_v55  ;;  %v9800_v63 = vsub.f32 %v9698_v1, %v12985_v57  ;;  %4271 = vmatpush2.msra.mxu1 %v12822_v2  ;;  %v9812_v37 = vand.u32 4294901760, %v265_v51  ;;  %v9814_v57 = vand.u32 4294901760, %v256_v52  ;;  %v9816_v1 = vld [vmem:[#allocation2 + $0x1b8] sm:$0xff]  ;;  %v12996_v55 = vld [vmem:[#allocation122_spill] sm:$0xff]  ;;  %v9839_v2 = vand.u32 4294901760, %v248_v0 }
 0x2ac   : > { %4134 = vmatpush2.msra.mxu0 %v12979_v41  ;;  %12980 = vst [vmem:[#allocation26_spill] sm:$0xff] %v9786_v36  ;;  %v9791_v10 = vsub.f32 %v9687_v23, %v12981_v15  ;;  %v257_v41 = vld [vmem:[#allocation2 + $0x1f8] sm:$0xff]  ;;  %v2475_v15 = vpop.f32.mrf.mxu0  ;;  %v2614_v23 = vpop.f32.mrf.mxu1  ;;  %12989 = vst [vmem:[#allocation80_spill] sm:$0xff] %v9810_v14  ;;  %4273 = vmatprep.subr.mxu1 %v12993_v56  ;;  %v2474_v56 = vadd.f32 %v9751_v21, %v9719_v27 }
 0x2ad   : > { %4138 = vmatprep.subr.mxu0 %v12984_v9  ;;  %v12988_v9 = vand.u32 4294901760, %v12987_v59  ;;  %12990 = vst [vmem:[#allocation78_spill] sm:$0xff] %v9812_v37  ;;  %12991 = vst [vmem:[#allocation58_spill] sm:$0xff] %v9814_v57  ;;  %4275 = vmatpush2.msra.mxu1 %v12996_v55  ;;  %v9837_v59 = vand.u32 4294901760, %v257_v41  ;;  %v9841_v16 = vld [vmem:[#allocation2 + $0x178] sm:$0xff]  ;;  %v9885_v21 = vsub.f32 %v248_v0, %v9839_v2 }
 0x2ae   : > { %12982 = vst [vmem:[#allocation29_spill] sm:$0xff] %v9791_v10  ;;  %v2879_v48 = vpop.f32.mrf.mxu0  ;;  %12999 = vst [vmem:[#allocation84_spill] sm:$0xff] %v9839_v2  ;;  %4277 = vmatprep.subr.mxu1 %v9206_v39  ;;  %v2616_v10 = vpop.f32.mrf.mxu1  ;;  %v9860_v39 = vsub.f32 %v256_v52, %v9814_v57  ;;  %v9878_v57 = vand.u32 4294901760, %v9841_v16  ;;  %v2615_v52 = vadd.f32 %v2614_v23, %v2474_v56 }
 0x2af   : > { %4142 = vmatpush2.msra.mxu0 %v12988_v9  ;;  %v12994_v9 = vand.u32 4294901760, %v9714_v38  ;;  %12998 = vst [vmem:[#allocation55_spill] sm:$0xff] %v9837_v59  ;;  %4279 = vmatpush2.msra.mxu1 %v9197_v31  ;;  %13011 = vst [vmem:[#allocation106_spill] sm:$0xff] %v9885_v21  ;;  %v232_v31 = vld [vmem:[#allocation2 + $0x130] sm:$0xff] }
 0x2b0   : > { %4146 = vmatprep.subr.mxu0 %v12992_v44  ;;  %v9834_v44 = vsub.f32 %v264_v43, %v9786_v36  ;;  %v13002_v43 = vand.u32 4294901760, %v9739_v28  ;;  %v13003_v36 = vld [vmem:[#allocation128_spill] sm:$0xff]  ;;  %13006 = vst [vmem:[#allocation69_spill] sm:$0xff] %v9860_v39  ;;  %13010 = vst [vmem:[#allocation79_spill] sm:$0xff] %v9878_v57  ;;  %4281 = vmatprep.subr.mxu1 %v9229_v13 }
 0x2b1   : > { %v9828_v20 = vsub.f32 %v9714_v38, %v12994_v9  ;;  %4150 = vmatpush2.msra.mxu0 %v12995_v47  ;;  %v13000_v9 = vand.u32 4294901760, %v9324_v17  ;;  %v9848_v47 = vand.u32 4294901760, %v9816_v1  ;;  %v240_v38 = vld [vmem:[#allocation2 + $0x170] sm:$0xff]  ;;  %v13004_v40 = vand.u32 4294901760, %v13003_v36  ;;  %v13005_v17 = vld [vmem:[#allocation96_spill] sm:$0xff]  ;;  %4283 = vmatpush2.msra.mxu1 %v9220_v50 }
 0x2b2   : > { %12997 = vst [vmem:[#allocation45_spill] sm:$0xff] %v9834_v44  ;;  %v9853_v55 = vsub.f32 %v9739_v28, %v13002_v43  ;;  %4160 = vmatprep.mubr.f32.mxu0 %v13005_v17  ;;  %v9869_v28 = vsub.f32 %v265_v51, %v9812_v37  ;;  %v13009_v36 = vld [vmem:[#allocation95_spill] sm:$0xff]  ;;  %v2881_v51 = vpop.f32.mrf.mxu0  ;;  %v9887_v27 = vand.u32 4294901760, %v240_v38  ;;  %4285 = vmatprep.subr.mxu1 %v9258_v18  ;;  %v9915_v18 = vand.u32 4294901760, %v232_v31  ;;  %v225_v13 = vld [vmem:[#allocation2 + $0xf8] sm:$0xff] }
 0x2b3   : > { %4154 = vmatprep.subr.mxu0 %v13000_v9  ;;  %13001 = vst [vmem:[#allocation70_spill] sm:$0xff] %v9848_v47  ;;  %v13007_v9 = vand.u32 4294901760, %v9760_v22  ;;  %4287 = vmatpush2.msra.mxu1 %v9263_v53  ;;  %v13020_v53 = vand.u32 4294901760, %v9834_v44 }
 0x2b4   : > { %4158 = vmatpush2.msra.mxu0 %v13004_v40  ;;  %13008 = vst [vmem:[#allocation104_spill] sm:$0xff] %v9869_v28  ;;  %v2476_v40 = vadd.f32 %v2475_v15, %v9749_v33  ;;  %13012 = vst [vmem:[#allocation87_spill] sm:$0xff] %v9887_v27  ;;  %v9891_v15 = vsub.f32 %v257_v41, %v9837_v59  ;;  %v3016_v33 = vpop.f32.mrf.mxu1  ;;  %v224_v41 = vld [vmem:[#allocation2 + $0xf0] sm:$0xff]  ;;  %4289 = vmatprep.subr.mxu1 %v9273_v60 }
 0x2b5   : > { %v9865_v45 = vsub.f32 %v9760_v22, %v13007_v9  ;;  %4162 = vmatmul.mubr.f32.vlgmr.msra.gmra.mxu0 %v13009_v36  ;;  %v9880_v9 = vld [vmem:[#allocation2 + $0x138] sm:$0xff]  ;;  %4306 = vmatprep.subr.mxu0 %v9614_v54  ;;  %v13014_v22 = vand.u32 4294901760, %v9804_v5  ;;  %13017 = vst [vmem:[#allocation114_spill] sm:$0xff] %v9915_v18 }
 0x2b6   : > { %13013 = vst [vmem:[#allocation107_spill] sm:$0xff] %v9891_v15  ;;  %v2617_v43 = vadd.f32 %v2616_v10, %v2476_v40  ;;  %4308 = vmatpush1.msra.mxu0 %v9622_v35  ;;  %v13015_v10 = vand.u32 4294901760, %v9810_v14  ;;  %v9910_v23 = vand.u32 4294901760, %v9880_v9  ;;  %v2880_v40 = vadd.f32 %v2879_v48, %v2615_v52  ;;  %4291 = vmatpush2.msra.mxu1 %v9280_v7 }
 0x2b7   : > { %v9899_v0 = vsub.f32 %v9804_v5, %v13014_v22  ;;  %4310 = vmatprep.subr.mxu0 %v9624_v11  ;;  %v9919_v5 = vsub.f32 %v9816_v1, %v9848_v47  ;;  %v9924_v48 = vsub.f32 %v240_v38, %v9887_v27  ;;  %v11600_v52 = vand.u32 4294901760, %v9891_v15  ;;  %v216_v38 = vld [vmem:[#allocation2 + $0xb0] sm:$0xff]  ;;  %4293 = vmatprep.subr.mxu1 %v12833_v24 }
 0x2b8   : > { %v9907_v50 = vsub.f32 %v9810_v14, %v13015_v10  ;;  %13016 = vst [vmem:[#allocation116_spill] sm:$0xff] %v9910_v23  ;;  %v2882_v22 = vadd.f32 %v2881_v51, %v2617_v43  ;;  %4312 = vmatpush1.msra.mxu0 %v9629_v12  ;;  %v3018_v10 = vpop.f32.mrf.mxu1  ;;  %v9929_v43 = vsub.f32 %v9834_v44, %v13020_v53  ;;  %v11601_v51 = vand.u32 4294901760, %v9860_v39  ;;  %v9936_v14 = vld [vmem:[#allocation2 + $0xb8] sm:$0xff]  ;;  %v208_v24 = vld [vmem:[#allocation2 + $0x70] sm:$0xff] }
 0x2b9   : > { %13018 = vst [vmem:[#allocation61_spill] sm:$0xff] %v9919_v5  ;;  %4314 = vmatprep.subr.mxu0 %v9640_v19  ;;  %13019 = vst [vmem:[#allocation127_spill] sm:$0xff] %v9924_v48  ;;  %v3017_v60 = vadd.f32 %v3016_v33, %v2880_v40  ;;  %v9940_v19 = vsub.f32 %v9841_v16, %v9878_v57  ;;  %v13022_v53 = vand.u32 4294901760, %v9869_v28  ;;  %v9949_v33 = vand.u32 4294901760, %v225_v13 }
 0x2ba   : > { %4316 = vmatpush1.msra.mxu0 %v9642_v49  ;;  %v3019_v1 = vadd.f32 %v3018_v10, %v2882_v22  ;;  %v9951_v40 = vand.u32 4294901760, %v224_v41  ;;  %4295 = vmatpush2.msra.mxu1 %v12835_v34  ;;  %v9958_v10 = vsub.f32 %v232_v31, %v9915_v18  ;;  %v9966_v56 = vsub.f32 %v9891_v15, %v11600_v52  ;;  %v200_v15 = vld [vmem:[#allocation2 + $0x30] sm:$0xff] }
 0x2bb   : > { %13021 = vst [vmem:[#allocation89_spill] sm:$0xff] %v9940_v19  ;;  %4318 = vmatprep.subr.mxu0 %v9644_v62  ;;  %v9947_v7 = vsub.f32 %v9869_v28, %v13022_v53  ;;  %13023 = vst [vmem:[#allocation83_spill] sm:$0xff] %v9949_v33  ;;  %4297 = vmatprep.mubr.f32.mxu1 %v13005_v17  ;;  %v9971_v34 = vsub.f32 %v9860_v39, %v11601_v51  ;;  %v9976_v31 = vand.u32 4294901760, %v216_v38  ;;  %v201_v51 = vld [vmem:[#allocation2 + $0x38] sm:$0xff] }
 0x2bc   : > { %13024 = vst [vmem:[#allocation73_spill] sm:$0xff] %v9951_v40  ;;  %v5598_v16 = vcombine.low %v3017_v60, %v3019_v1  ;;  %13025 = vst [vmem:[#allocation109_spill] sm:$0xff] %v9958_v10  ;;  %4320 = vmatpush1.msra.mxu0 %v9652_v29  ;;  %4299 = vmatmul.mubr.f32.vlgmr.msra.gmra.mxu1 %v13009_v36  ;;  %v9974_v60 = vand.u32 4294901760, %v9936_v14  ;;  %v209_v1 = vld [vmem:[#allocation2 + $0x78] sm:$0xff]  ;;  %v13028_v53 = vand.u32 4294901760, %v9706_v30  ;;  %v13030_v29 = vand.u32 4294901760, %v9727_v8 }
 0x2bd   : > { %13027 = vst [vmem:[#allocation77_spill] sm:$0xff] %v9976_v31  ;;  %4322 = vmatprep.subr.mxu0 %v9663_v6  ;;  %v9987_v39 = vsub.f32 %v9880_v9, %v9910_v23  ;;  %v10002_v9 = vsub.f32 %v225_v13, %v9949_v33  ;;  %v13034_v22 = vand.u32 4294901760, %v9732_v32  ;;  %v10014_v30 = vand.u32 4294901760, %v208_v24  ;;  %v13061_v6 = vld [vmem:[#allocation58_spill] sm:$0xff]  ;;  %4835 = vmatprep.mubr.f32.mxu1 %v13005_v17  ;;  %v13190_v17 = vld [vmem:[#allocation43_spill] sm:$0xff] }
 0x2be   : > { %13026 = vst [vmem:[#allocation75_spill] sm:$0xff] %v9974_v60  ;;  %4455 = vmatprep.subr.mxu1 %v13028_v53  ;;  %5606 = vst [vmem:[%s8781_s19 + $0x8] sm:$0xff] %v5598_v16  ;;  %4324 = vmatpush1.msra.mxu0 %v9675_v58  ;;  %v9994_v16 = vsub.f32 %v224_v41, %v9951_v40  ;;  %v13032_v53 = vand.u32 4294901760, %v9885_v21  ;;  %v10012_v41 = vand.u32 4294901760, %v209_v1  ;;  %v13038_v13 = vand.u32 4294901760, %v9744_v42 }
 0x2bf   : > { %13029 = vst [vmem:[#allocation92_spill] sm:$0xff] %v9987_v39  ;;  %4461 = vmatpush1.msra.mxu1 %v13030_v29  ;;  %13033 = vst [vmem:[#allocation91_spill] sm:$0xff] %v10002_v9  ;;  %4326 = vmatprep.subr.mxu0 %v9708_v25  ;;  %v13035_v29 = vand.u32 4294901760, %v9919_v5  ;;  %v13041_v25 = vand.u32 4294901760, %v9768_v61  ;;  %v13043_v42 = vand.u32 4294901760, %v9924_v48  ;;  %v10040_v32 = vand.u32 4294901760, %v201_v51 }
 0x2c0   : > { %13031 = vst [vmem:[#allocation12_spill] sm:$0xff] %v9994_v16  ;;  %v9999_v52 = vsub.f32 %v9885_v21, %v13032_v53  ;;  %4467 = vmatprep.subr.mxu1 %v13034_v22  ;;  %13036 = vst [vmem:[#allocation105_spill] sm:$0xff] %v10012_v41  ;;  %4328 = vmatpush1.msra.mxu0 %v9694_v46  ;;  %v10023_v22 = vsub.f32 %v216_v38, %v9976_v31  ;;  %v13042_v53 = vand.u32 4294901760, %v9940_v19  ;;  %v449_v21 = vld [vmem:[#allocation2 + $0x7f8] sm:$0xff]  ;;  %v13047_v38 = vld [vmem:[#allocation93_spill] sm:$0xff] }
 0x2c1   : > { %v10010_v8 = vsub.f32 %v9919_v5, %v13035_v29  ;;  %13037 = vst [vmem:[#allocation17_spill] sm:$0xff] %v10014_v30  ;;  %4473 = vmatpush1.msra.mxu1 %v13038_v13  ;;  %v10025_v29 = vand.u32 4294901760, %v200_v15  ;;  %4330 = vmatprep.subr.mxu0 %v9746_v4  ;;  %v10038_v13 = vsub.f32 %v9924_v48, %v13043_v42  ;;  %13044 = vst [vmem:[#allocation54_spill] sm:$0xff] %v10040_v32  ;;  %v448_v5 = vld [vmem:[#allocation2 + $0x7f0] sm:$0xff] }
 0x2c2   : > { %13039 = vst [vmem:[#allocation19_spill] sm:$0xff] %v10023_v22  ;;  %4479 = vmatprep.subr.mxu1 %v13041_v25  ;;  %v10033_v46 = vsub.f32 %v9940_v19, %v13042_v53  ;;  %4332 = vmatpush1.msra.mxu0 %v9757_v26  ;;  %v13045_v25 = vand.u32 4294901760, %v9773_v3  ;;  %v10051_v42 = vsub.f32 %v9936_v14, %v9974_v60  ;;  %v440_v48 = vld [vmem:[#allocation2 + $0x7b0] sm:$0xff]  ;;  %v13048_v19 = vand.u32 4294901760, %v13047_v38  ;;  %v13052_v14 = vld [vmem:[#allocation26_spill] sm:$0xff]  ;;  %v13053_v53 = vld [vmem:[#allocation29_spill] sm:$0xff] }
 0x2c3   : > { %13040 = vst [vmem:[#allocation28_spill] sm:$0xff] %v10025_v29  ;;  %4334 = vmatprep.subr.mxu0 %v9812_v37  ;;  %v10058_v3 = vsub.f32 %v208_v24, %v10014_v30  ;;  %v10066_v4 = vsub.f32 %v209_v1, %v10012_v41  ;;  %v13054_v37 = vand.u32 4294901760, %v13053_v53  ;;  %v10074_v38 = vand.u32 4294901760, %v449_v21  ;;  %v441_v26 = vld [vmem:[#allocation2 + $0x7b8] sm:$0xff] }
 0x2c4   : > { %4485 = vmatpush1.msra.mxu1 %v13045_v25  ;;  %13046 = vst [vmem:[#allocation32_spill] sm:$0xff] %v10051_v42  ;;  %v13050_v25 = vand.u32 4294901760, %v9958_v10  ;;  %4336 = vmatpush1.msra.mxu0 %v13052_v14  ;;  %v10076_v24 = vand.u32 4294901760, %v448_v5  ;;  %v13058_v1 = vand.u32 4294901760, %v9800_v63  ;;  %v10089_v14 = vand.u32 4294901760, %v440_v48 }
 0x2c5   : > { %4491 = vmatprep.subr.mxu1 %v13048_v19  ;;  %13049 = vst [vmem:[#allocation30_spill] sm:$0xff] %v10058_v3  ;;  %13051 = vst [vmem:[#allocation47_spill] sm:$0xff] %v10066_v4  ;;  %v10072_v19 = vsub.f32 %v200_v15, %v10025_v29  ;;  %4338 = vmatprep.subr.mxu0 %v9837_v59  ;;  %v13062_v58 = vand.u32 4294901760, %v9828_v20  ;;  %v13063_v63 = vand.u32 4294901760, %v10002_v9  ;;  %v13064_v53 = vand.u32 4294901760, %v9994_v16  ;;  %v433_v59 = vld [vmem:[#allocation2 + $0x778] sm:$0xff] }
 0x2c6   : > { %v10063_v61 = vsub.f32 %v9958_v10, %v13050_v25  ;;  %4497 = vmatpush1.msra.mxu1 %v13054_v37  ;;  %13056 = vst [vmem:[#allocation67_spill] sm:$0xff] %v10074_v38  ;;  %13057 = vst [vmem:[#allocation48_spill] sm:$0xff] %v10076_v24  ;;  %v13059_v37 = vand.u32 4294901760, %v9987_v39  ;;  %v432_v10 = vld [vmem:[#allocation2 + $0x770] sm:$0xff]  ;;  %4340 = vmatpush1.msra.mxu0 %v13061_v6  ;;  %v13066_v20 = vand.u32 4294901760, %v9865_v45 }
 0x2c7   : > { %13055 = vst [vmem:[#allocation90_spill] sm:$0xff] %v10072_v19  ;;  %4503 = vmatprep.subr.mxu1 %v13058_v1  ;;  %13060 = vst [vmem:[#allocation11_spill] sm:$0xff] %v10089_v14  ;;  %v10097_v1 = vsub.f32 %v10002_v9, %v13063_v63  ;;  %v10102_v25 = vsub.f32 %v9994_v16, %v13064_v53  ;;  %4342 = vmatprep.subr.mxu0 %v9848_v47  ;;  %v10112_v63 = vand.u32 4294901760, %v441_v26  ;;  %v424_v16 = vld [vmem:[#allocation2 + $0x730] sm:$0xff] }
 0x2c8   : > { %v10087_v15 = vsub.f32 %v9987_v39, %v13059_v37  ;;  %4509 = vmatpush1.msra.mxu1 %v13062_v58  ;;  %v10106_v39 = vsub.f32 %v201_v51, %v10040_v32  ;;  %4344 = vmatpush1.msra.mxu0 %v9839_v2  ;;  %v13068_v37 = vand.u32 4294901760, %v9853_v55  ;;  %v10120_v51 = vsub.f32 %v448_v5, %v10076_v24  ;;  %v425_v58 = vld [vmem:[#allocation2 + $0x738] sm:$0xff] }
 0x2c9   : > { %4515 = vmatprep.subr.mxu1 %v13066_v20  ;;  %13067 = vst [vmem:[#allocation15_spill] sm:$0xff] %v10112_v63  ;;  %v13070_v47 = vand.u32 4294901760, %v10023_v22  ;;  %v10127_v20 = vand.u32 4294901760, %v432_v10  ;;  %v10130_v6 = vsub.f32 %v449_v21, %v10074_v38  ;;  %4346 = vmatprep.subr.mxu0 %v9878_v57  ;;  %v13073_v55 = vand.u32 4294901760, %v9899_v0  ;;  %v417_v5 = vld [vmem:[#allocation2 + $0x6f8] sm:$0xff] }
 0x2ca   : > { %13065 = vst [vmem:[#allocation22_spill] sm:$0xff] %v10106_v39  ;;  %4521 = vmatpush1.msra.mxu1 %v13068_v37  ;;  %13069 = vst [vmem:[#allocation108_spill] sm:$0xff] %v10120_v51  ;;  %v10137_v37 = vsub.f32 %v440_v48, %v10089_v14  ;;  %v10139_v53 = vand.u32 4294901760, %v433_v59  ;;  %4348 = vmatpush1.msra.mxu0 %v9887_v27  ;;  %v13076_v2 = vand.u32 4294901760, %v9907_v50  ;;  %v13077_v0 = vand.u32 4294901760, %v10051_v42 }
 0x2cb   : > { %v10125_v45 = vsub.f32 %v10023_v22, %v13070_v47  ;;  %13071 = vst [vmem:[#allocation56_spill] sm:$0xff] %v10127_v20  ;;  %13072 = vst [vmem:[#allocation103_spill] sm:$0xff] %v10130_v6  ;;  %4527 = vmatprep.subr.mxu1 %v13073_v55  ;;  %v416_v22 = vld [vmem:[#allocation2 + $0x6f0] sm:$0xff]  ;;  %4350 = vmatprep.subr.mxu0 %v9910_v23  ;;  %v13078_v47 = vand.u32 4294901760, %v9947_v7  ;;  %v13080_v57 = vand.u32 4294901760, %v10058_v3  ;;  %v10168_v48 = vand.u32 4294901760, %v424_v16 }
 0x2cc   : > { %13074 = vst [vmem:[#allocation42_spill] sm:$0xff] %v10137_v37  ;;  %13075 = vst [vmem:[#allocation64_spill] sm:$0xff] %v10139_v53  ;;  %4533 = vmatpush1.msra.mxu1 %v13076_v2  ;;  %v10150_v55 = vsub.f32 %v10051_v42, %v13077_v0  ;;  %v13079_v2 = vand.u32 4294901760, %v10066_v4  ;;  %v10166_v0 = vand.u32 4294901760, %v425_v58  ;;  %4352 = vmatpush1.msra.mxu0 %v9915_v18  ;;  %v13083_v23 = vand.u32 4294901760, %v9929_v43 }
 0x2cd   : > { %4539 = vmatprep.subr.mxu1 %v13078_v47  ;;  %v10164_v21 = vsub.f32 %v10058_v3, %v13080_v57  ;;  %13082 = vst [vmem:[#allocation50_spill] sm:$0xff] %v10168_v48  ;;  %v10175_v47 = vsub.f32 %v432_v10, %v10127_v20  ;;  %v10179_v27 = vsub.f32 %v441_v26, %v10112_v63  ;;  %v408_v57 = vld [vmem:[#allocation2 + $0x6b0] sm:$0xff]  ;;  %v13086_v3 = vand.u32 4294901760, %v9966_v56 }
 0x2ce   : > { %v10159_v50 = vsub.f32 %v10066_v4, %v13079_v2  ;;  %13081 = vst [vmem:[#allocation110_spill] sm:$0xff] %v10166_v0  ;;  %4545 = vmatpush1.msra.mxu1 %v13083_v23  ;;  %4354 = vmatprep.subr.mxu0 %v9949_v33  ;;  %v13087_v18 = vand.u32 4294901760, %v10072_v19  ;;  %v10189_v43 = vand.u32 4294901760, %v417_v5  ;;  %v10191_v10 = vand.u32 4294901760, %v416_v22  ;;  %v409_v2 = vld [vmem:[#allocation2 + $0x6b8] sm:$0xff] }
 0x2cf   : > { %13084 = vst [vmem:[#allocation16_spill] sm:$0xff] %v10175_v47  ;;  %13085 = vst [vmem:[#allocation35_spill] sm:$0xff] %v10179_v27  ;;  %4551 = vmatprep.subr.mxu1 %v13086_v3  ;;  %4356 = vmatpush1.msra.mxu0 %v9951_v40  ;;  %v13090_v26 = vand.u32 4294901760, %v9971_v34  ;;  %v4610_v56 = vand.u32 4294901760, %v10150_v55  ;;  %v13091_v3 = vand.u32 4294901760, %v10106_v39  ;;  %v13093_v7 = vand.u32 4294901760, %v10010_v8 }
 0x2d0   : > { %v10187_v23 = vsub.f32 %v10072_v19, %v13087_v18  ;;  %13088 = vst [vmem:[#allocation41_spill] sm:$0xff] %v10189_v43  ;;  %13089 = vst [vmem:[#allocation37_spill] sm:$0xff] %v10191_v10  ;;  %v10205_v19 = vsub.f32 %v433_v59, %v10139_v53  ;;  %4358 = vmatprep.subr.mxu0 %v9974_v60  ;;  %v10213_v55 = vsub.f32 %v424_v16, %v10168_v48  ;;  %v400_v34 = vld [vmem:[#allocation2 + $0x670] sm:$0xff] }
 0x2d1   : > { %4557 = vmatpush1.msra.mxu1 %v13090_v26  ;;  %v10201_v33 = vsub.f32 %v10106_v39, %v13091_v3  ;;  %v10215_v40 = vand.u32 4294901760, %v408_v57  ;;  %4360 = vmatpush1.msra.mxu0 %v9976_v31  ;;  %v13096_v3 = vand.u32 4294901760, %v9999_v52  ;;  %v13097_v59 = vand.u32 4294901760, %v10130_v6  ;;  %v401_v26 = vld [vmem:[#allocation2 + $0x678] sm:$0xff] }
 0x2d2   : > { %13092 = vst [vmem:[#allocation82_spill] sm:$0xff] %v10205_v19  ;;  %4563 = vmatprep.subr.mxu1 %v13093_v7  ;;  %13094 = vst [vmem:[#allocation53_spill] sm:$0xff] %v10213_v55  ;;  %v10225_v8 = vand.u32 4294901760, %v409_v2  ;;  %v10229_v16 = vsub.f32 %v425_v58, %v10166_v0  ;;  %4362 = vmatprep.subr.mxu0 %v10012_v41  ;;  %v13100_v31 = vand.u32 4294901760, %v10033_v46  ;;  %v13104_v58 = vand.u32 4294901760, %v10038_v13  ;;  %v393_v41 = vld [vmem:[#allocation2 + $0x638] sm:$0xff] }
 0x2d3   : > { %13095 = vst [vmem:[#allocation52_spill] sm:$0xff] %v10215_v40  ;;  %4569 = vmatpush1.msra.mxu1 %v13096_v3  ;;  %v10223_v18 = vsub.f32 %v10130_v6, %v13097_v59  ;;  %v10236_v3 = vsub.f32 %v416_v22, %v10191_v10  ;;  %v13102_v59 = vand.u32 4294901760, %v10120_v51  ;;  %v10244_v7 = vsub.f32 %v417_v5, %v10189_v43 }
 0x2d4   : > { %13098 = vst [vmem:[#allocation66_spill] sm:$0xff] %v10225_v8  ;;  %13099 = vst [vmem:[#allocation24_spill] sm:$0xff] %v10229_v16  ;;  %4575 = vmatprep.subr.mxu1 %v13100_v31  ;;  %4364 = vmatpush1.msra.mxu0 %v10014_v30  ;;  %v4634_v46 = vand.u32 4294901760, %v10201_v33  ;;  %v13105_v31 = vand.u32 4294901760, %v10137_v37  ;;  %v13106_v5 = vand.u32 4294901760, %v10087_v15  ;;  %v10261_v13 = vsub.f32 %v408_v57, %v10215_v40  ;;  %v384_v30 = vld [vmem:[#allocation2 + $0x5f0] sm:$0xff] }
 0x2d5   : > { %13101 = vst [vmem:[#allocation62_spill] sm:$0xff] %v10236_v3  ;;  %v10241_v60 = vsub.f32 %v10120_v51, %v13102_v59  ;;  %13103 = vst [vmem:[#allocation14_spill] sm:$0xff] %v10244_v7  ;;  %4581 = vmatpush1.msra.mxu1 %v13104_v58  ;;  %v392_v51 = vld [vmem:[#allocation2 + $0x630] sm:$0xff]  ;;  %4366 = vmatprep.subr.mxu0 %v10040_v32  ;;  %v10263_v33 = vand.u32 4294901760, %v401_v26  ;;  %v10265_v58 = vand.u32 4294901760, %v400_v34  ;;  %v13110_v59 = vand.u32 4294901760, %v10063_v61 }
 0x2d6   : > { %v10253_v22 = vsub.f32 %v10137_v37, %v13105_v31  ;;  %4587 = vmatprep.subr.mxu1 %v13106_v5  ;;  %13107 = vst [vmem:[#allocation59_spill] sm:$0xff] %v10261_v13  ;;  %4368 = vmatpush1.msra.mxu0 %v10025_v29  ;;  %v4646_v52 = vand.u32 4294901760, %v10223_v18  ;;  %v13111_v32 = vand.u32 4294901760, %v10179_v27  ;;  %v385_v5 = vld [vmem:[#allocation2 + $0x5f8] sm:$0xff]  ;;  %v10279_v37 = vsub.f32 %v409_v2, %v10225_v8 }
 0x2d7   : > { %13108 = vst [vmem:[#allocation57_spill] sm:$0xff] %v10263_v33  ;;  %13109 = vst [vmem:[#allocation27_spill] sm:$0xff] %v10265_v58  ;;  %4593 = vmatpush1.msra.mxu1 %v13110_v59  ;;  %4370 = vmatprep.subr.mxu0 %v10074_v38  ;;  %v13113_v31 = vand.u32 4294901760, %v10097_v1  ;;  %v4652_v61 = vand.u32 4294901760, %v10241_v60  ;;  %v10285_v18 = vand.u32 4294901760, %v393_v41  ;;  %v10287_v59 = vand.u32 4294901760, %v392_v51 }
 0x2d8   : > { %v10275_v15 = vsub.f32 %v10179_v27, %v13111_v32  ;;  %13112 = vst [vmem:[#allocation71_spill] sm:$0xff] %v10279_v37  ;;  %4372 = vmatpush2.msra.mxu0 %v10076_v24  ;;  %v13116_v57 = vand.u32 4294901760, %v10102_v25  ;;  %v13117_v38 = vand.u32 4294901760, %v10205_v19  ;;  %v13118_v60 = vand.u32 4294901760, %v10175_v47  ;;  %v377_v24 = vld [vmem:[#allocation2 + $0x5b8] sm:$0xff] }
 0x2d9   : > { %4599 = vmatprep.subr.mxu1 %v13113_v31  ;;  %13114 = vst [vmem:[#allocation46_spill] sm:$0xff] %v10285_v18  ;;  %13115 = vst [vmem:[#allocation68_spill] sm:$0xff] %v10287_v59  ;;  %4374 = vmatprep.subr.mxu0 %v10112_v63  ;;  %v10307_v25 = vsub.f32 %v400_v34, %v10265_v58  ;;  %v10316_v32 = vand.u32 4294901760, %v384_v30  ;;  %v13124_v34 = vand.u32 4294901760, %v10229_v16 }
 0x2da   : > { %4605 = vmatpush1.msra.mxu1 %v13116_v57  ;;  %v10297_v1 = vsub.f32 %v10205_v19, %v13117_v38  ;;  %v10302_v31 = vsub.f32 %v10175_v47, %v13118_v60  ;;  %v13120_v57 = vand.u32 4294901760, %v10213_v55  ;;  %v10314_v38 = vand.u32 4294901760, %v385_v5  ;;  %4376 = vmatpush2.msra.mxu0 %v10089_v14  ;;  %v369_v14 = vld [vmem:[#allocation2 + $0x578] sm:$0xff] }
 0x2db   : > { %4611 = vmatprep.subr.mxu1 %v4610_v56  ;;  %13119 = vst [vmem:[#allocation81_spill] sm:$0xff] %v10307_v25  ;;  %13122 = vst [vmem:[#allocation74_spill] sm:$0xff] %v10316_v32  ;;  %v13123_v60 = vand.u32 4294901760, %v10125_v45  ;;  %v4658_v56 = vand.u32 4294901760, %v10275_v15  ;;  %v10325_v29 = vsub.f32 %v10229_v16, %v13124_v34  ;;  %v10329_v63 = vsub.f32 %v401_v26, %v10263_v33  ;;  %v376_v34 = vld [vmem:[#allocation2 + $0x5b0] sm:$0xff] }
 0x2dc   : > { %v10312_v2 = vsub.f32 %v10213_v55, %v13120_v57  ;;  %13121 = vst [vmem:[#allocation72_spill] sm:$0xff] %v10314_v38  ;;  %4378 = vmatprep.subr.mxu0 %v10139_v53  ;;  %v13126_v55 = vand.u32 4294901760, %v10159_v50  ;;  %v10335_v45 = vsub.f32 %v392_v51, %v10287_v59  ;;  %v13128_v15 = vand.u32 4294901760, %v10244_v7 }
 0x2dd   : > { %4617 = vmatpush1.msra.mxu1 %v13123_v60  ;;  %13125 = vst [vmem:[#allocation112_spill] sm:$0xff] %v10329_v63  ;;  %v10344_v57 = vsub.f32 %v393_v41, %v10285_v18  ;;  %4380 = vmatpush2.msra.mxu0 %v10127_v20  ;;  %v13130_v26 = vand.u32 4294901760, %v10164_v21  ;;  %v4670_v50 = vand.u32 4294901760, %v10297_v1  ;;  %v4676_v51 = vand.u32 4294901760, %v10302_v31  ;;  %v360_v31 = vld [vmem:[#allocation2 + $0x530] sm:$0xff] }
 0x2de   : > { %4623 = vmatprep.subr.mxu1 %v13126_v55  ;;  %13127 = vst [vmem:[#allocation111_spill] sm:$0xff] %v10335_v45  ;;  %v10340_v60 = vsub.f32 %v10244_v7, %v13128_v15  ;;  %v13131_v55 = vand.u32 4294901760, %v10236_v3  ;;  %v10356_v53 = vand.u32 4294901760, %v377_v24  ;;  %4382 = vmatprep.subr.mxu0 %v10166_v0  ;;  %v4688_v41 = vand.u32 4294901760, %v10312_v2 }
 0x2df   : > { %13129 = vst [vmem:[#allocation119_spill] sm:$0xff] %v10344_v57  ;;  %4629 = vmatpush1.msra.mxu1 %v13130_v26  ;;  %v10361_v21 = vsub.f32 %v384_v30, %v10316_v32  ;;  %v368_v26 = vld [vmem:[#allocation2 + $0x570] sm:$0xff]  ;;  %v10365_v20 = vsub.f32 %v385_v5, %v10314_v38  ;;  %4384 = vmatpush2.msra.mxu0 %v10168_v48  ;;  %v4682_v0 = vand.u32 4294901760, %v10325_v29  ;;  %v10376_v30 = vand.u32 4294901760, %v376_v34 }
 0x2e0   : > { %v10354_v15 = vsub.f32 %v10236_v3, %v13131_v55  ;;  %4635 = vmatprep.subr.mxu1 %v4634_v46  ;;  %v13134_v55 = vand.u32 4294901760, %v10187_v23  ;;  %v13135_v46 = vand.u32 4294901760, %v10279_v37  ;;  %v361_v3 = vld [vmem:[#allocation2 + $0x538] sm:$0xff]  ;;  %4386 = vmatprep.subr.mxu0 %v10189_v43  ;;  %v4694_v5 = vand.u32 4294901760, %v10340_v60  ;;  %v352_v48 = vld [vmem:[#allocation2 + $0x4f0] sm:$0xff] }
 0x2e1   : > { %13132 = vst [vmem:[#allocation117_spill] sm:$0xff] %v10361_v21  ;;  %13133 = vst [vmem:[#allocation121_spill] sm:$0xff] %v10365_v20  ;;  %v13137_v23 = vand.u32 4294901760, %v10261_v13  ;;  %v10386_v29 = vand.u32 4294901760, %v369_v14  ;;  %4388 = vmatpush2.msra.mxu0 %v10191_v10  ;;  %v353_v43 = vld [vmem:[#allocation2 + $0x4f8] sm:$0xff]  ;;  %v13142_v60 = vand.u32 4294901760, %v10253_v22 }
 0x2e2   : > { %4641 = vmatpush1.msra.mxu1 %v13134_v55  ;;  %v10374_v2 = vsub.f32 %v10279_v37, %v13135_v46  ;;  %13136 = vst [vmem:[#allocation118_spill] sm:$0xff] %v10376_v30  ;;  %v4700_v1 = vand.u32 4294901760, %v10354_v15  ;;  %v10391_v37 = vand.u32 4294901760, %v368_v26  ;;  %4390 = vmatprep.subr.mxu0 %v10225_v8  ;;  %v10406_v15 = vsub.f32 %v377_v24, %v10356_v53 }
 0x2e3   : > { %4647 = vmatprep.subr.mxu1 %v4646_v52  ;;  %v10384_v55 = vsub.f32 %v10261_v13, %v13137_v23  ;;  %13138 = vst [vmem:[#allocation115_spill] sm:$0xff] %v10386_v29  ;;  %v10393_v52 = vand.u32 4294901760, %v360_v31  ;;  %v13140_v23 = vand.u32 4294901760, %v10307_v25  ;;  %v10402_v13 = vand.u32 4294901760, %v361_v3  ;;  %4392 = vmatpush2.msra.mxu0 %v10215_v40  ;;  %v344_v40 = vld [vmem:[#allocation2 + $0x4b0] sm:$0xff] }
 0x2e4   : > { %4653 = vmatpush2.msra.mxu1 %v4652_v61  ;;  %13139 = vst [vmem:[#allocation120_spill] sm:$0xff] %v10391_v37  ;;  %13141 = vst [vmem:[#allocation113_spill] sm:$0xff] %v10406_v15  ;;  %v4706_v8 = vand.u32 4294901760, %v10374_v2  ;;  %4394 = vmatprep.subr.mxu0 %v10263_v33  ;;  %v13145_v61 = vand.u32 4294901760, %v10344_v57  ;;  %v10427_v2 = vand.u32 4294901760, %v353_v43 }
 0x2e5   : > { %4659 = vmatprep.subr.mxu1 %v4658_v56  ;;  %v10400_v46 = vsub.f32 %v10307_v25, %v13140_v23  ;;  %v10413_v56 = vsub.f32 %v376_v34, %v10376_v30  ;;  %v13144_v23 = vand.u32 4294901760, %v10329_v63  ;;  %v10418_v25 = vand.u32 4294901760, %v352_v48  ;;  %v345_v34 = vld [vmem:[#allocation2 + $0x4b8] sm:$0xff]  ;;  %4396 = vmatpush2.msra.mxu0 %v10265_v58 }
 0x2e6   : > { %4665 = vmatpush2.msra.mxu1 %v13142_v60  ;;  %v4712_v24 = vand.u32 4294901760, %v10384_v55  ;;  %v10425_v22 = vsub.f32 %v10344_v57, %v13145_v61  ;;  %v10430_v60 = vsub.f32 %v369_v14, %v10386_v29  ;;  %v13148_v55 = vand.u32 4294901760, %v10335_v45  ;;  %4398 = vmatprep.subr.mxu0 %v10285_v18  ;;  %v336_v18 = vld [vmem:[#allocation2 + $0x470] sm:$0xff] }
 0x2e7   : > { %13143 = vst [vmem:[#allocation49_spill] sm:$0xff] %v10413_v56  ;;  %v4717_v10 = vsub.f32 %v10329_v63, %v13144_v23  ;;  %4671 = vmatprep.subr.mxu1 %v4670_v50  ;;  %v10434_v23 = vsub.f32 %v368_v26, %v10391_v37  ;;  %v10437_v50 = vsub.f32 %v360_v31, %v10393_v52  ;;  %v4724_v14 = vand.u32 4294901760, %v10400_v46  ;;  %v337_v31 = vld [vmem:[#allocation2 + $0x478] sm:$0xff] }
 0x2e8   : > { %13146 = vst [vmem:[#allocation124_spill] sm:$0xff] %v10430_v60  ;;  %4677 = vmatpush2.msra.mxu1 %v4676_v51  ;;  %v4735_v61 = vsub.f32 %v10335_v45, %v13148_v55  ;;  %v13149_v51 = vand.u32 4294901760, %v10365_v20  ;;  %v10450_v57 = vsub.f32 %v361_v3, %v10402_v13  ;;  %4400 = vmatpush2.msra.mxu0 %v10287_v59  ;;  %v10461_v58 = vand.u32 4294901760, %v344_v40  ;;  %v329_v59 = vld [vmem:[#allocation2 + $0x438] sm:$0xff] }
 0x2e9   : > { %13147 = vst [vmem:[#allocation51_spill] sm:$0xff] %v10437_v50  ;;  %4683 = vmatprep.subr.mxu1 %v4682_v0  ;;  %v4718_v55 = vand.u32 4294901760, %v4717_v10  ;;  %v10454_v33 = vsub.f32 %v352_v48, %v10418_v25  ;;  %v10456_v0 = vand.u32 4294901760, %v345_v34  ;;  %4402 = vmatprep.subr.mxu0 %v10314_v38  ;;  %v10465_v10 = vsub.f32 %v353_v43, %v10427_v2 }
 0x2ea   : > { %v4741_v26 = vsub.f32 %v10365_v20, %v13149_v51  ;;  %13150 = vst [vmem:[#allocation125_spill] sm:$0xff] %v10450_v57  ;;  %4689 = vmatpush2.msra.mxu1 %v4688_v41  ;;  %v4730_v51 = vand.u32 4294901760, %v10425_v22  ;;  %4404 = vmatpush2.msra.mxu0 %v10316_v32  ;;  %v4736_v48 = vand.u32 4294901760, %v4735_v61  ;;  %v13152_v41 = vand.u32 4294901760, %v10361_v21  ;;  %v328_v22 = vld [vmem:[#allocation2 + $0x430] sm:$0xff] }
 0x2eb   : > { %4695 = vmatprep.subr.mxu1 %v4694_v5  ;;  %13151 = vst [vmem:[#allocation126_spill] sm:$0xff] %v10465_v10  ;;  %v10471_v38 = vand.u32 4294901760, %v337_v31  ;;  %4406 = vmatprep.subr.mxu0 %v10356_v53  ;;  %v13153_v43 = vand.u32 4294901760, %v10406_v15  ;;  %v10478_v32 = vand.u32 4294901760, %v336_v18  ;;  %v13154_v61 = vand.u32 4294901760, %v10413_v56 }
 0x2ec   : > { %4701 = vmatpush2.msra.mxu1 %v4700_v1  ;;  %v4747_v46 = vsub.f32 %v10361_v21, %v13152_v41  ;;  %v4742_v3 = vand.u32 4294901760, %v4741_v26  ;;  %4408 = vmatpush2.msra.mxu0 %v10376_v30  ;;  %v10485_v5 = vand.u32 4294901760, %v329_v59  ;;  %v10489_v26 = vsub.f32 %v345_v34, %v10456_v0 }
 0x2ed   : > { %4707 = vmatprep.subr.mxu1 %v4706_v8  ;;  %v4753_v20 = vsub.f32 %v10406_v15, %v13153_v43  ;;  %v4759_v41 = vsub.f32 %v10413_v56, %v13154_v61  ;;  %4410 = vmatprep.subr.mxu0 %v10386_v29  ;;  %v10493_v43 = vsub.f32 %v344_v40, %v10461_v58  ;;  %v13158_v1 = vand.u32 4294901760, %v10430_v60 }
 0x2ee   : > { %4713 = vmatpush2.msra.mxu1 %v4712_v24  ;;  %13155 = vst [vmem:[#allocation123_spill] sm:$0xff] %v10485_v5  ;;  %13156 = vst [vmem:[#allocation122_spill] sm:$0xff] %v10489_v26  ;;  %v10498_v30 = vand.u32 4294901760, %v328_v22  ;;  %4412 = vmatpush2.msra.mxu0 %v10391_v37  ;;  %v4748_v8 = vand.u32 4294901760, %v4747_v46  ;;  %v13160_v34 = vand.u32 4294901760, %v10434_v23  ;;  %v13161_v61 = vand.u32 4294901760, %v10450_v57 }
 0x2ef   : > { %4719 = vmatprep.subr.mxu1 %v4718_v55  ;;  %13157 = vst [vmem:[#allocation128_spill] sm:$0xff] %v10493_v43  ;;  %v4765_v24 = vsub.f32 %v10430_v60, %v13158_v1  ;;  %v10506_v55 = vsub.f32 %v337_v31, %v10471_v38  ;;  %4414 = vmatprep.subr.mxu0 %v10402_v13  ;;  %v4754_v40 = vand.u32 4294901760, %v4753_v20  ;;  %v4760_v46 = vand.u32 4294901760, %v4759_v41 }
 0x2f0   : > { %13159 = vst [vmem:[#allocation93_spill] sm:$0xff] %v10498_v30  ;;  %4725 = vmatpush2.msra.mxu1 %v4724_v14  ;;  %v4771_v29 = vsub.f32 %v10434_v23, %v13160_v34  ;;  %v10510_v1 = vsub.f32 %v336_v18, %v10478_v32  ;;  %v4777_v37 = vsub.f32 %v10450_v57, %v13161_v61  ;;  %v13162_v31 = vand.u32 4294901760, %v10437_v50 }
 0x2f1   : > { %4731 = vmatprep.subr.mxu1 %v4730_v51  ;;  %4416 = vmatpush2.msra.mxu0 %v10393_v52  ;;  %v10522_v20 = vsub.f32 %v329_v59, %v10485_v5  ;;  %v4766_v18 = vand.u32 4294901760, %v4765_v24  ;;  %v10526_v61 = vsub.f32 %v328_v22, %v10498_v30  ;;  %v13164_v14 = vand.u32 4294901760, %v10465_v10 }
 0x2f2   : > { %4737 = vmatpush2.msra.mxu1 %v4736_v48  ;;  %v4783_v34 = vsub.f32 %v10437_v50, %v13162_v31  ;;  %4418 = vmatprep.subr.mxu0 %v10427_v2  ;;  %v4772_v31 = vand.u32 4294901760, %v4771_v29  ;;  %v11732_v59 = vand.u32 4294901760, %v10506_v55  ;;  %v13165_v24 = vand.u32 4294901760, %v10454_v33 }
 0x2f3   : > { %4743 = vmatprep.subr.mxu1 %v4742_v3  ;;  %13163 = vst [vmem:[#allocation29_spill] sm:$0xff] %v10526_v61  ;;  %v4789_v48 = vsub.f32 %v10465_v10, %v13164_v14  ;;  %4420 = vmatpush2.msra.mxu0 %v10418_v25  ;;  %v4778_v3 = vand.u32 4294901760, %v4777_v37  ;;  %v13166_v41 = vand.u32 4294901760, %v10489_v26  ;;  %v11738_v51 = vand.u32 4294901760, %v10526_v61 }
 0x2f4   : > { %4749 = vmatpush2.msra.mxu1 %v4748_v8  ;;  %4422 = vmatprep.subr.mxu0 %v10456_v0  ;;  %v4795_v22 = vsub.f32 %v10454_v33, %v13165_v24  ;;  %v4784_v14 = vand.u32 4294901760, %v4783_v34  ;;  %v11737_v8 = vand.u32 4294901760, %v10522_v20 }
 0x2f5   : > { %4755 = vmatprep.subr.mxu1 %v4754_v40  ;;  %4424 = vmatpush2.msra.mxu0 %v10461_v58  ;;  %v4801_v29 = vsub.f32 %v10489_v26, %v13166_v41  ;;  %v4790_v37 = vand.u32 4294901760, %v4789_v48  ;;  %v13167_v40 = vand.u32 4294901760, %v10493_v43 }
 0x2f6   : > { %4761 = vmatpush2.msra.mxu1 %v4760_v46  ;;  %4426 = vmatprep.subr.mxu0 %v10471_v38  ;;  %v4813_v46 = vsub.f32 %v10506_v55, %v11732_v59  ;;  %v4796_v34 = vand.u32 4294901760, %v4795_v22  ;;  %v13170_v22 = vld [vmem:[#allocation88_spill] sm:$0xff] }
 0x2f7   : > { %4767 = vmatprep.subr.mxu1 %v4766_v18  ;;  %v4807_v24 = vsub.f32 %v10493_v43, %v13167_v40  ;;  %4428 = vmatpush2.msra.mxu0 %v10478_v32  ;;  %v13168_v18 = vand.u32 4294901760, %v10510_v1  ;;  %v4802_v41 = vand.u32 4294901760, %v4801_v29  ;;  %v13169_v40 = vld [vmem:[#allocation102_spill] sm:$0xff] }
 0x2f8   : > { %4773 = vmatpush2.msra.mxu1 %v4772_v31  ;;  %4430 = vmatprep.subr.mxu0 %v10485_v5  ;;  %v4825_v31 = vsub.f32 %v10522_v20, %v11737_v8  ;;  %v13171_v5 = vld [vmem:[#allocation101_spill] sm:$0xff] }
 0x2f9   : > { %4779 = vmatprep.subr.mxu1 %v4778_v3  ;;  %v4819_v48 = vsub.f32 %v10510_v1, %v13168_v18  ;;  %4432 = vmatpush2.msra.mxu0 %v10498_v30  ;;  %v4808_v59 = vand.u32 4294901760, %v4807_v24  ;;  %v4831_v3 = vsub.f32 %v10526_v61, %v11738_v51  ;;  %v4814_v18 = vand.u32 4294901760, %v4813_v46  ;;  %v13173_v30 = vld [vmem:[#allocation44_spill] sm:$0xff]  ;;  %v13176_v51 = vld [vmem:[#allocation31_spill] sm:$0xff] }
 0x2fa   : > { %4785 = vmatpush2.msra.mxu1 %v4784_v14  ;;  %4438 = vmatprep.mubr.f32.mxu0 %v13169_v40  ;;  %v13172_v14 = vld [vmem:[#allocation20_spill] sm:$0xff]  ;;  %v4826_v8 = vand.u32 4294901760, %v4825_v31  ;;  %v13175_v40 = vld [vmem:[#allocation39_spill] sm:$0xff]  ;;  %v13184_v31 = vld [vmem:[#allocation94_spill] sm:$0xff] }
 0x2fb   : > { %4791 = vmatprep.subr.mxu1 %v4790_v37  ;;  %4845 = vmatprep.subr.mxu0 %v13170_v22  ;;  %v4820_v29 = vand.u32 4294901760, %v4819_v48  ;;  %v13174_v37 = vld [vmem:[#allocation21_spill] sm:$0xff]  ;;  %v4832_v24 = vand.u32 4294901760, %v4831_v3  ;;  %v13178_v46 = vld [vmem:[#allocation60_spill] sm:$0xff]  ;;  %v13181_v48 = vld [vmem:[#allocation23_spill] sm:$0xff] }
 0x2fc   : > { %4444 = vmatmul.mubr.f32.vlgmr.msra.gmra.mxu0 %v13171_v5  ;;  %4797 = vmatpush2.msra.mxu1 %v4796_v34  ;;  %v13177_v5 = vld [vmem:[#allocation63_spill] sm:$0xff]  ;;  %v13180_v34 = vld [vmem:[#allocation65_spill] sm:$0xff]  ;;  %v13185_v3 = vld [vmem:[#allocation80_spill] sm:$0xff] }
 0x2fd   : > { %4848 = vmatpush1.msra.mxu0 %v13172_v14  ;;  %4803 = vmatprep.subr.mxu1 %v4802_v41  ;;  %v13183_v41 = vld [vmem:[#allocation33_spill] sm:$0xff] }
 0x2fe   : > { %4851 = vmatprep.subr.mxu0 %v13173_v30  ;;  %4809 = vmatpush2.msra.mxu1 %v4808_v59  ;;  %v13179_v59 = vld [vmem:[#allocation86_spill] sm:$0xff] }
 0x2ff   : > { %4854 = vmatpush1.msra.mxu0 %v13174_v37  ;;  %4815 = vmatprep.subr.mxu1 %v4814_v18  ;;  %v13186_v18 = vld [vmem:[#allocation34_spill] sm:$0xff] }
 0x300   : > { %4857 = vmatprep.subr.mxu0 %v13175_v40  ;;  %4821 = vmatpush2.msra.mxu1 %v4820_v29  ;;  %v13187_v29 = vld [vmem:[#allocation107_spill] sm:$0xff] }
 0x301   : > { %4860 = vmatpush1.msra.mxu0 %v13176_v51  ;;  %4827 = vmatprep.subr.mxu1 %v4826_v8  ;;  %v13182_v8 = vld [vmem:[#allocation36_spill] sm:$0xff] }
 0x302   : > { %4863 = vmatprep.subr.mxu0 %v13177_v5  ;;  %4833 = vmatpush2.msra.mxu1 %v4832_v24  ;;  %v13188_v24 = vld [vmem:[#allocation25_spill] sm:$0xff] }
 0x303   : > { %4866 = vmatpush1.msra.mxu0 %v13178_v46  ;;  %4837 = vmatmul.mubr.f32.vlgmr.msra.gmra.mxu1 %v13009_v36  ;;  %v13189_v36 = vld [vmem:[#allocation69_spill] sm:$0xff] }
 0x304   : > { %4869 = vmatprep.subr.mxu0 %v13179_v59  ;;  %5047 = vmatprep.subr.mxu1 %v9614_v54 }
 0x305   : > { %4872 = vmatpush1.msra.mxu0 %v13180_v34  ;;  %5049 = vmatpush1.msra.mxu1 %v9622_v35 }
 0x306   : > { %4875 = vmatprep.subr.mxu0 %v13181_v48  ;;  %5051 = vmatprep.subr.mxu1 %v9624_v11 }
 0x307   : > { %4878 = vmatpush1.msra.mxu0 %v13182_v8  ;;  %5053 = vmatpush1.msra.mxu1 %v9629_v12 }
 0x308   : > { %4881 = vmatprep.subr.mxu0 %v13183_v41  ;;  %5055 = vmatprep.subr.mxu1 %v13184_v31  ;;  %v13191_v31 = vld [vmem:[#allocation61_spill] sm:$0xff] }
 0x309   : > { %4884 = vmatpush1.msra.mxu0 %v13185_v3  ;;  %5057 = vmatpush1.msra.mxu1 %v9642_v49  ;;  %v13192_v3 = vld [vmem:[#allocation85_spill] sm:$0xff]  ;;  %v13193_v49 = vld [vmem:[#allocation106_spill] sm:$0xff] }
 0x30a   : > { %4887 = vmatprep.subr.mxu0 %v9869_v28  ;;  %5059 = vmatprep.subr.mxu1 %v9644_v62  ;;  %v13194_v28 = vld [vmem:[#allocation76_spill] sm:$0xff]  ;;  %v13195_v62 = vld [vmem:[#allocation89_spill] sm:$0xff] }
 0x30b   : > { %4890 = vmatpush1.msra.mxu0 %v9834_v44  ;;  %5061 = vmatpush1.msra.mxu1 %v13186_v18  ;;  %v13196_v44 = vld [vmem:[#allocation13_spill] sm:$0xff]  ;;  %v13197_v18 = vld [vmem:[#allocation127_spill] sm:$0xff] }
 0x30c   : > { %4893 = vmatprep.subr.mxu0 %v13187_v29  ;;  %5063 = vmatprep.subr.mxu1 %v13188_v24  ;;  %v13198_v29 = vld [vmem:[#allocation18_spill] sm:$0xff]  ;;  %v13199_v24 = vld [vmem:[#allocation92_spill] sm:$0xff] }
 0x30d   : > { %4896 = vmatpush1.msra.mxu0 %v13189_v36  ;;  %5065 = vmatpush1.msra.mxu1 %v13190_v17  ;;  %v13200_v36 = vld [vmem:[#allocation78_spill] sm:$0xff]  ;;  %v13201_v17 = vld [vmem:[#allocation109_spill] sm:$0xff] }
 0x30e   : > { %4899 = vmatprep.subr.mxu0 %v13191_v31  ;;  %5067 = vmatprep.subr.mxu1 %v13192_v3  ;;  %v13202_v31 = vld [vmem:[#allocation26_spill] sm:$0xff] }
 0x30f   : > { %4902 = vmatpush1.msra.mxu0 %v13193_v49  ;;  %5069 = vmatpush1.msra.mxu1 %v13194_v28  ;;  %v13203_v49 = vld [vmem:[#allocation55_spill] sm:$0xff]  ;;  %v13204_v28 = vld [vmem:[#allocation12_spill] sm:$0xff] }
 0x310   : > { %4905 = vmatprep.subr.mxu0 %v13195_v62  ;;  %5071 = vmatprep.subr.mxu1 %v13196_v44  ;;  %v13205_v62 = vld [vmem:[#allocation58_spill] sm:$0xff] }
 0x311   : > { %4908 = vmatpush1.msra.mxu0 %v13197_v18  ;;  %5073 = vmatpush1.msra.mxu1 %v13198_v29  ;;  %v13206_v18 = vld [vmem:[#allocation70_spill] sm:$0xff]  ;;  %v13207_v29 = vld [vmem:[#allocation19_spill] sm:$0xff] }
 0x312   : > { %4911 = vmatprep.subr.mxu0 %v13199_v24  ;;  %5075 = vmatprep.subr.mxu1 %v13200_v36  ;;  %v13208_v24 = vld [vmem:[#allocation84_spill] sm:$0xff] }
 0x313   : > { %4914 = vmatpush1.msra.mxu0 %v13201_v17  ;;  %5077 = vmatpush1.msra.mxu1 %v13202_v31  ;;  %v13209_v17 = vld [vmem:[#allocation79_spill] sm:$0xff]  ;;  %v13210_v31 = vld [vmem:[#allocation30_spill] sm:$0xff] }
 0x314   : > { %4917 = vmatprep.subr.mxu0 %v10002_v9  ;;  %5079 = vmatprep.subr.mxu1 %v13203_v49  ;;  %v13211_v9 = vld [vmem:[#allocation87_spill] sm:$0xff] }
 0x315   : > { %4920 = vmatpush1.msra.mxu0 %v13204_v28  ;;  %5081 = vmatpush1.msra.mxu1 %v13205_v62  ;;  %v13212_v28 = vld [vmem:[#allocation116_spill] sm:$0xff]  ;;  %v13213_v62 = vld [vmem:[#allocation90_spill] sm:$0xff] }
 0x316   : > { %4923 = vmatprep.subr.mxu0 %v10051_v42  ;;  %5083 = vmatprep.subr.mxu1 %v13206_v18  ;;  %v13214_v42 = vld [vmem:[#allocation114_spill] sm:$0xff] }
 0x317   : > { %4926 = vmatpush1.msra.mxu0 %v13207_v29  ;;  %5085 = vmatpush1.msra.mxu1 %v13208_v24  ;;  %v13215_v29 = vld [vmem:[#allocation83_spill] sm:$0xff]  ;;  %v13216_v24 = vld [vmem:[#allocation108_spill] sm:$0xff] }
 0x318   : > { %4929 = vmatprep.subr.mxu0 %v10066_v4  ;;  %5087 = vmatprep.subr.mxu1 %v13209_v17  ;;  %v13217_v4 = vld [vmem:[#allocation73_spill] sm:$0xff] }
 0x319   : > { %4932 = vmatpush1.msra.mxu0 %v13210_v31  ;;  %5089 = vmatpush1.msra.mxu1 %v13211_v9  ;;  %v13218_v31 = vld [vmem:[#allocation75_spill] sm:$0xff]  ;;  %v13219_v9 = vld [vmem:[#allocation42_spill] sm:$0xff] }
 0x31a   : > { %4935 = vmatprep.subr.mxu0 %v10106_v39  ;;  %5091 = vmatprep.subr.mxu1 %v13212_v28  ;;  %v13220_v39 = vld [vmem:[#allocation77_spill] sm:$0xff] }
 0x31b   : > { %4938 = vmatpush1.msra.mxu0 %v13213_v62  ;;  %5093 = vmatpush1.msra.mxu1 %v13214_v42  ;;  %v13221_v62 = vld [vmem:[#allocation105_spill] sm:$0xff] }
 0x31c   : > { %4941 = vmatprep.subr.mxu0 %v10130_v6  ;;  %5095 = vmatprep.subr.mxu1 %v13215_v29  ;;  %v13222_v6 = vld [vmem:[#allocation17_spill] sm:$0xff] }
 0x31d   : > { %4944 = vmatpush2.msra.mxu0 %v13216_v24  ;;  %5097 = vmatpush1.msra.mxu1 %v13217_v4  ;;  %v13223_v24 = vld [vmem:[#allocation54_spill] sm:$0xff]  ;;  %v13224_v4 = vld [vmem:[#allocation53_spill] sm:$0xff] }
 0x31e   : > { %4947 = vmatprep.subr.mxu0 %v10179_v27  ;;  %5099 = vmatprep.subr.mxu1 %v13218_v31  ;;  %v13225_v27 = vld [vmem:[#allocation28_spill] sm:$0xff] }
 0x31f   : > { %4950 = vmatpush2.msra.mxu0 %v13219_v9  ;;  %5101 = vmatpush1.msra.mxu1 %v13220_v39  ;;  %v13226_v9 = vld [vmem:[#allocation67_spill] sm:$0xff]  ;;  %v13227_v39 = vld [vmem:[#allocation62_spill] sm:$0xff] }
 0x320   : > { %4953 = vmatprep.subr.mxu0 %v10205_v19  ;;  %5103 = vmatprep.subr.mxu1 %v13221_v62  ;;  %v13228_v19 = vld [vmem:[#allocation48_spill] sm:$0xff]  ;;  %v13229_v62 = vld [vmem:[#allocation71_spill] sm:$0xff] }
 0x321   : > { %4956 = vmatpush2.msra.mxu0 %v10175_v47  ;;  %5105 = vmatpush1.msra.mxu1 %v13222_v6  ;;  %v13230_v47 = vld [vmem:[#allocation15_spill] sm:$0xff] }
 0x322   : > { %4959 = vmatprep.subr.mxu0 %v10229_v16  ;;  %5107 = vmatprep.subr.mxu1 %v13223_v24  ;;  %v13231_v6 = vld [vmem:[#allocation59_spill] sm:$0xff] }
 0x323   : > { %4962 = vmatpush2.msra.mxu0 %v13224_v4  ;;  %5109 = vmatpush1.msra.mxu1 %v13225_v27  ;;  %v13232_v16 = vld [vmem:[#allocation11_spill] sm:$0xff]  ;;  %v13233_v4 = vld [vmem:[#allocation64_spill] sm:$0xff]  ;;  %v13234_v27 = vld [vmem:[#allocation81_spill] sm:$0xff] }
 0x324   : > { %4965 = vmatprep.subr.mxu0 %v10244_v7  ;;  %5111 = vmatprep.subr.mxu1 %v13226_v9  ;;  %v13235_v7 = vld [vmem:[#allocation56_spill] sm:$0xff]  ;;  %v13236_v9 = vld [vmem:[#allocation119_spill] sm:$0xff] }
 0x325   : > { %4968 = vmatpush2.msra.mxu0 %v13227_v39  ;;  %5113 = vmatpush2.msra.mxu1 %v13228_v19  ;;  %v13237_v39 = vld [vmem:[#allocation110_spill] sm:$0xff] }
 0x326   : > { %4971 = vmatprep.subr.mxu0 %v13229_v62  ;;  %5115 = vmatprep.subr.mxu1 %v13230_v47  ;;  %v13238_v62 = vld [vmem:[#allocation50_spill] sm:$0xff]  ;;  %v13239_v47 = vld [vmem:[#allocation121_spill] sm:$0xff] }
 0x327   : > { %4974 = vmatpush2.msra.mxu0 %v13231_v6  ;;  %5117 = vmatpush2.msra.mxu1 %v13232_v16  ;;  %v13240_v6 = vld [vmem:[#allocation41_spill] sm:$0xff] }
 0x328   : > { %4977 = vmatprep.subr.mxu0 %v10329_v63  ;;  %5119 = vmatprep.subr.mxu1 %v13233_v4  ;;  %v13241_v63 = vld [vmem:[#allocation37_spill] sm:$0xff] }
 0x329   : > { %4980 = vmatpush2.msra.mxu0 %v13234_v27  ;;  %5121 = vmatpush2.msra.mxu1 %v13235_v7  ;;  %v13242_v27 = vld [vmem:[#allocation66_spill] sm:$0xff] }
 0x32a   : > { %4983 = vmatprep.subr.mxu0 %v13236_v9  ;;  %5123 = vmatprep.subr.mxu1 %v13237_v39  ;;  %v13243_v9 = vld [vmem:[#allocation52_spill] sm:$0xff] }
 0x32b   : > { %4986 = vmatpush2.msra.mxu0 %v10335_v45  ;;  %5125 = vmatpush2.msra.mxu1 %v13238_v62  ;;  %v13244_v45 = vld [vmem:[#allocation57_spill] sm:$0xff] }
 0x32c   : > { %4989 = vmatprep.subr.mxu0 %v13239_v47  ;;  %5127 = vmatprep.subr.mxu1 %v13240_v6  ;;  %v13245_v47 = vld [vmem:[#allocation27_spill] sm:$0xff] }
 0x32d   : > { %4992 = vmatpush2.msra.mxu0 %v10361_v21  ;;  %5129 = vmatpush2.msra.mxu1 %v13241_v63  ;;  %v13246_v21 = vld [vmem:[#allocation46_spill] sm:$0xff] }
 0x32e   : > { %4995 = vmatprep.subr.mxu0 %v10406_v15  ;;  %5131 = vmatprep.subr.mxu1 %v13242_v27  ;;  %v13247_v15 = vld [vmem:[#allocation68_spill] sm:$0xff] }
 0x32f   : > { %4998 = vmatpush2.msra.mxu0 %v10413_v56  ;;  %5133 = vmatpush2.msra.mxu1 %v13243_v9  ;;  %v13248_v56 = vld [vmem:[#allocation72_spill] sm:$0xff] }
 0x330   : > { %5001 = vmatprep.subr.mxu0 %v10430_v60  ;;  %5135 = vmatprep.subr.mxu1 %v13244_v45  ;;  %v13249_v60 = vld [vmem:[#allocation74_spill] sm:$0xff] }
 0x331   : > { %5004 = vmatpush2.msra.mxu0 %v10434_v23  ;;  %5137 = vmatpush2.msra.mxu1 %v13245_v47 }
 0x332   : > { %5007 = vmatprep.subr.mxu0 %v10450_v57  ;;  %5139 = vmatprep.subr.mxu1 %v13246_v21  ;;  %v13250_v57 = vld [vmem:[#allocation118_spill] sm:$0xff] }
 0x333   : > { %5010 = vmatpush2.msra.mxu0 %v10437_v50  ;;  %5141 = vmatpush2.msra.mxu1 %v13247_v15  ;;  %v13251_v50 = vld [vmem:[#allocation115_spill] sm:$0xff] }
 0x334   : > { %5013 = vmatprep.subr.mxu0 %v10465_v10  ;;  %5143 = vmatprep.subr.mxu1 %v13248_v56  ;;  %v13252_v10 = vld [vmem:[#allocation120_spill] sm:$0xff] }
 0x335   : > { %5016 = vmatpush2.msra.mxu0 %v10454_v33  ;;  %5145 = vmatpush2.msra.mxu1 %v13249_v60 }
 0x336   : > { %5019 = vmatprep.subr.mxu0 %v10489_v26  ;;  %5147 = vmatprep.subr.mxu1 %v10356_v53  ;;  %v13253_v26 = vld [vmem:[#allocation98_spill] sm:$0xff] }
 0x337   : > { %5022 = vmatpush2.msra.mxu0 %v10493_v43  ;;  %5149 = vmatpush2.msra.mxu1 %v13250_v57  ;;  %v13254_v43 = vld [vmem:[#allocation97_spill] sm:$0xff] }
 0x338   : > { %5025 = vmatprep.subr.mxu0 %v10506_v55  ;;  %5151 = vmatprep.subr.mxu1 %v13251_v50  ;;  %v13255_v50 = vand.u32 4294901760, %v13170_v22  ;;  %v13264_v22 = vld [vmem:[#allocation100_spill] sm:$0xff] }
 0x339   : > { %5028 = vmatpush2.msra.mxu0 %v10510_v1  ;;  %5153 = vmatpush2.msra.mxu1 %v13252_v10  ;;  %v13256_v10 = vand.u32 4294901760, %v13172_v14  ;;  %v13265_v14 = vand.u32 4294901760, %v13178_v46  ;;  %v13270_v46 = vand.u32 4294901760, %v13182_v8 }
 0x33a   : > { %5031 = vmatprep.subr.mxu0 %v10522_v20  ;;  %5155 = vmatprep.subr.mxu1 %v10402_v13 }
 0x33b   : > { %5034 = vmatpush2.msra.mxu0 %v10526_v61  ;;  %5037 = vmatprep.mubr.f32.mxu0 %v13253_v26  ;;  %v13257_v61 = vand.u32 4294901760, %v13173_v30  ;;  %v13258_v26 = vand.u32 4294901760, %v13174_v37  ;;  %v13262_v30 = vand.u32 4294901760, %v13177_v5  ;;  %v13266_v37 = vld [vmem:[#allocation99_spill] sm:$0xff]  ;;  %v13269_v5 = vand.u32 4294901760, %v13181_v48 }
 0x33c   : > { %5157 = vmatpush2.msra.mxu1 %v10393_v52  ;;  %5040 = vmatmul.mubr.f32.vlgmr.msra.gmra.mxu0 %v13254_v43  ;;  %v13259_v43 = vand.u32 4294901760, %v13175_v40  ;;  %v13267_v40 = vand.u32 4294901760, %v13179_v59  ;;  %v13271_v59 = vand.u32 4294901760, %v13183_v41 }
 0x33d   : > { %5159 = vmatprep.subr.mxu1 %v10427_v2  ;;  %5190 = vmatprep.subr.mxu0 %v13255_v50  ;;  %v13260_v50 = vand.u32 4294901760, %v13176_v51  ;;  %v13268_v51 = vand.u32 4294901760, %v13180_v34 }
 0x33e   : > { %5161 = vmatpush2.msra.mxu1 %v10418_v25  ;;  %5194 = vmatpush1.msra.mxu0 %v13256_v10  ;;  %v13261_v10 = vld [vmem:[#allocation123_spill] sm:$0xff] }
 0x33f   : > { %5163 = vmatprep.subr.mxu1 %v10456_v0  ;;  %5198 = vmatprep.subr.mxu0 %v13257_v61  ;;  %v13263_v61 = vld [vmem:[#allocation93_spill] sm:$0xff] }
 0x340   : > { %5165 = vmatpush2.msra.mxu1 %v10461_v58  ;;  %5202 = vmatpush1.msra.mxu0 %v13258_v26  ;;  %v13272_v26 = vld [vmem:[#allocation94_spill] sm:$0xff] }
 0x341   : > { %5167 = vmatprep.subr.mxu1 %v10471_v38  ;;  %5206 = vmatprep.subr.mxu0 %v13259_v43  ;;  %v13275_v43 = vld [vmem:[#allocation38_spill] sm:$0xff] }
 0x342   : > { %5169 = vmatpush2.msra.mxu1 %v10478_v32  ;;  %5210 = vmatpush1.msra.mxu0 %v13260_v50  ;;  %v13278_v50 = vld [vmem:[#allocation40_spill] sm:$0xff] }
 0x343   : > { %5171 = vmatprep.subr.mxu1 %v13261_v10  ;;  %5214 = vmatprep.subr.mxu0 %v13262_v30  ;;  %v13281_v30 = vld [vmem:[#allocation34_spill] sm:$0xff] }
 0x344   : > { %5173 = vmatpush2.msra.mxu1 %v13263_v61  ;;  %5177 = vmatprep.mubr.f32.mxu1 %v13264_v22  ;;  %v13284_v22 = vld [vmem:[#allocation25_spill] sm:$0xff] }
 0x345   : > { %5218 = vmatpush1.msra.mxu0 %v13265_v14  ;;  %5181 = vmatmul.mubr.f32.vlgmr.msra.gmra.mxu1 %v13266_v37  ;;  %v13285_v14 = vld [vmem:[#allocation69_spill] sm:$0xff] }
 0x346   : > { %5222 = vmatprep.subr.mxu0 %v13267_v40  ;;  %5453 = vmatprep.subr.mxu1 %v9614_v54  ;;  %v13273_v54 = vld [vmem:[#allocation80_spill] sm:$0xff]  ;;  %v13286_v37 = vand.u32 4294901760, %v13285_v14  ;;  %v13287_v40 = vld [vmem:[#allocation43_spill] sm:$0xff]  ;;  %v13307_v14 = vld [vmem:[#allocation58_spill] sm:$0xff] }
 0x347   : > { %5226 = vmatpush1.msra.mxu0 %v13268_v51  ;;  %5455 = vmatpush1.msra.mxu1 %v9622_v35  ;;  %v13274_v34 = vand.u32 4294901760, %v13273_v54  ;;  %v13276_v35 = vld [vmem:[#allocation104_spill] sm:$0xff]  ;;  %v13288_v51 = vld [vmem:[#allocation61_spill] sm:$0xff] }
 0x348   : > { %5230 = vmatprep.subr.mxu0 %v13269_v5  ;;  %5457 = vmatprep.subr.mxu1 %v9624_v11  ;;  %v13277_v48 = vand.u32 4294901760, %v13276_v35  ;;  %v13279_v11 = vld [vmem:[#allocation45_spill] sm:$0xff]  ;;  %v13289_v5 = vand.u32 4294901760, %v13288_v51 }
 0x349   : > { %5234 = vmatpush1.msra.mxu0 %v13270_v46  ;;  %5459 = vmatpush1.msra.mxu1 %v9629_v12  ;;  %v13280_v8 = vand.u32 4294901760, %v13279_v11  ;;  %v13282_v12 = vld [vmem:[#allocation107_spill] sm:$0xff]  ;;  %v13290_v46 = vld [vmem:[#allocation106_spill] sm:$0xff]  ;;  %v13293_v54 = vld [vmem:[#allocation89_spill] sm:$0xff] }
 0x34a   : > { %5238 = vmatprep.subr.mxu0 %v13271_v59  ;;  %5461 = vmatprep.subr.mxu1 %v13272_v26  ;;  %v13283_v41 = vand.u32 4294901760, %v13282_v12  ;;  %v13291_v59 = vand.u32 4294901760, %v13290_v46  ;;  %v13292_v26 = vld [vmem:[#allocation76_spill] sm:$0xff]  ;;  %v13303_v12 = vld [vmem:[#allocation91_spill] sm:$0xff] }
 0x34b   : > { %5242 = vmatpush1.msra.mxu0 %v13274_v34  ;;  %5463 = vmatpush1.msra.mxu1 %v13275_v43  ;;  %v13294_v34 = vand.u32 4294901760, %v13293_v54  ;;  %v13295_v43 = vld [vmem:[#allocation127_spill] sm:$0xff] }
 0x34c   : > { %5246 = vmatprep.subr.mxu0 %v13277_v48  ;;  %5465 = vmatprep.subr.mxu1 %v13278_v50  ;;  %v13296_v35 = vand.u32 4294901760, %v13295_v43  ;;  %v13297_v48 = vld [vmem:[#allocation18_spill] sm:$0xff]  ;;  %v13298_v50 = vld [vmem:[#allocation92_spill] sm:$0xff]  ;;  %v13313_v46 = vld [vmem:[#allocation47_spill] sm:$0xff] }
 0x34d   : > { %5250 = vmatpush1.msra.mxu0 %v13280_v8  ;;  %5467 = vmatpush1.msra.mxu1 %v13281_v30  ;;  %v13299_v11 = vand.u32 4294901760, %v13298_v50  ;;  %v13302_v30 = vld [vmem:[#allocation26_spill] sm:$0xff]  ;;  %v13317_v54 = vld [vmem:[#allocation87_spill] sm:$0xff] }
 0x34e   : > { %5254 = vmatprep.subr.mxu0 %v13283_v41  ;;  %5469 = vmatprep.subr.mxu1 %v13284_v22  ;;  %v13304_v41 = vand.u32 4294901760, %v13303_v12 }
 0x34f   : > { %5258 = vmatpush1.msra.mxu0 %v13286_v37  ;;  %5471 = vmatpush1.msra.mxu1 %v13287_v40  ;;  %v13308_v37 = vld [vmem:[#allocation32_spill] sm:$0xff] }
 0x350   : > { %5262 = vmatprep.subr.mxu0 %v13289_v5  ;;  %5473 = vmatprep.subr.mxu1 %v13192_v3  ;;  %v13300_v3 = vld [vmem:[#allocation109_spill] sm:$0xff]  ;;  %v13309_v40 = vand.u32 4294901760, %v13308_v37  ;;  %v13312_v5 = vld [vmem:[#allocation84_spill] sm:$0xff] }
 0x351   : > { %5266 = vmatpush1.msra.mxu0 %v13291_v59  ;;  %5475 = vmatpush1.msra.mxu1 %v13292_v26  ;;  %v13301_v8 = vand.u32 4294901760, %v13300_v3  ;;  %v13314_v59 = vand.u32 4294901760, %v13313_v46  ;;  %v13326_v3 = vld [vmem:[#allocation73_spill] sm:$0xff]  ;;  %v13343_v46 = vld [vmem:[#allocation14_spill] sm:$0xff] }
 0x352   : > { %5270 = vmatprep.subr.mxu0 %v13294_v34  ;;  %5477 = vmatprep.subr.mxu1 %v13196_v44  ;;  %v13305_v44 = vld [vmem:[#allocation12_spill] sm:$0xff]  ;;  %v13318_v34 = vld [vmem:[#allocation22_spill] sm:$0xff]  ;;  %v13337_v37 = vld [vmem:[#allocation17_spill] sm:$0xff] }
 0x353   : > { %5274 = vmatpush1.msra.mxu0 %v13296_v35  ;;  %5479 = vmatpush1.msra.mxu1 %v13297_v48  ;;  %v13306_v22 = vand.u32 4294901760, %v13305_v44  ;;  %v13319_v43 = vand.u32 4294901760, %v13318_v34  ;;  %v13322_v48 = vld [vmem:[#allocation103_spill] sm:$0xff] }
 0x354   : > { %5278 = vmatprep.subr.mxu0 %v13299_v11  ;;  %5481 = vmatprep.subr.mxu1 %v13200_v36  ;;  %v13310_v36 = vld [vmem:[#allocation19_spill] sm:$0xff]  ;;  %v13323_v50 = vand.u32 4294901760, %v13322_v48  ;;  %v13353_v48 = vld [vmem:[#allocation112_spill] sm:$0xff] }
 0x355   : > { %5282 = vmatpush1.msra.mxu0 %v13301_v8  ;;  %5483 = vmatpush1.msra.mxu1 %v13302_v30  ;;  %v13311_v51 = vand.u32 4294901760, %v13310_v36  ;;  %v13327_v8 = vld [vmem:[#allocation35_spill] sm:$0xff] }
 0x356   : > { %5286 = vmatprep.subr.mxu0 %v13304_v41  ;;  %5485 = vmatprep.subr.mxu1 %v13203_v49  ;;  %v13315_v49 = vld [vmem:[#allocation30_spill] sm:$0xff]  ;;  %v13328_v30 = vand.u32 4294901760, %v13327_v8  ;;  %v13331_v41 = vld [vmem:[#allocation77_spill] sm:$0xff]  ;;  %v13348_v34 = vld [vmem:[#allocation71_spill] sm:$0xff] }
 0x357   : > { %5290 = vmatpush1.msra.mxu0 %v13306_v22  ;;  %5487 = vmatpush1.msra.mxu1 %v13307_v14  ;;  %v13316_v26 = vand.u32 4294901760, %v13315_v49  ;;  %v13334_v22 = vld [vmem:[#allocation105_spill] sm:$0xff]  ;;  %v13345_v49 = vld [vmem:[#allocation67_spill] sm:$0xff] }
 0x358   : > { %5294 = vmatprep.subr.mxu0 %v13309_v40  ;;  %5489 = vmatprep.subr.mxu1 %v13206_v18  ;;  %v13320_v18 = vld [vmem:[#allocation90_spill] sm:$0xff]  ;;  %v13338_v40 = vld [vmem:[#allocation24_spill] sm:$0xff]  ;;  %v13359_v8 = vld [vmem:[#allocation111_spill] sm:$0xff] }
 0x359   : > { %5298 = vmatpush1.msra.mxu0 %v13311_v51  ;;  %5491 = vmatpush1.msra.mxu1 %v13312_v5  ;;  %v13321_v35 = vand.u32 4294901760, %v13320_v18  ;;  %v13339_v36 = vand.u32 4294901760, %v13338_v40  ;;  %v13342_v5 = vld [vmem:[#allocation28_spill] sm:$0xff]  ;;  %v13350_v18 = vld [vmem:[#allocation15_spill] sm:$0xff] }
 0x35a   : > { %5302 = vmatprep.subr.mxu0 %v13314_v59  ;;  %5493 = vmatprep.subr.mxu1 %v13209_v17  ;;  %v13324_v17 = vld [vmem:[#allocation108_spill] sm:$0xff]  ;;  %v13344_v59 = vand.u32 4294901760, %v13343_v46  ;;  %v13374_v40 = vld [vmem:[#allocation51_spill] sm:$0xff] }
 0x35b   : > { %5306 = vmatpush1.msra.mxu0 %v13316_v26  ;;  %5495 = vmatpush1.msra.mxu1 %v13317_v54  ;;  %v13325_v11 = vand.u32 4294901760, %v13324_v17  ;;  %v13346_v26 = vld [vmem:[#allocation62_spill] sm:$0xff]  ;;  %v13355_v17 = vld [vmem:[#allocation81_spill] sm:$0xff]  ;;  %v13381_v46 = vld [vmem:[#allocation128_spill] sm:$0xff] }
 0x35c   : > { %5310 = vmatprep.subr.mxu0 %v13319_v43  ;;  %5497 = vmatprep.subr.mxu1 %v13212_v28  ;;  %v13329_v28 = vld [vmem:[#allocation42_spill] sm:$0xff]  ;;  %v13347_v54 = vand.u32 4294901760, %v13346_v26  ;;  %v13349_v43 = vand.u32 4294901760, %v13348_v34 }
 0x35d   : > { %5314 = vmatpush1.msra.mxu0 %v13321_v35  ;;  %5499 = vmatpush1.msra.mxu1 %v13214_v42  ;;  %v13330_v12 = vand.u32 4294901760, %v13329_v28  ;;  %v13332_v42 = vld [vmem:[#allocation82_spill] sm:$0xff] }
 0x35e   : > { %5318 = vmatprep.subr.mxu0 %v13323_v50  ;;  %5501 = vmatprep.subr.mxu1 %v13215_v29  ;;  %v13333_v44 = vand.u32 4294901760, %v13332_v42  ;;  %v13335_v29 = vld [vmem:[#allocation16_spill] sm:$0xff]  ;;  %v13354_v50 = vand.u32 4294901760, %v13353_v48 }
 0x35f   : > { %5322 = vmatpush2.msra.mxu0 %v13325_v11  ;;  %5503 = vmatpush1.msra.mxu1 %v13326_v3  ;;  %v13336_v14 = vand.u32 4294901760, %v13335_v29  ;;  %v13356_v11 = vand.u32 4294901760, %v13355_v17  ;;  %v3554_v29 = vpop.f32.mrf.mxu1 }
 0x360   : > { %5326 = vmatprep.subr.mxu0 %v13328_v30  ;;  %5505 = vmatprep.subr.mxu1 %v13218_v31  ;;  %v13340_v31 = vld [vmem:[#allocation53_spill] sm:$0xff]  ;;  %v13360_v30 = vand.u32 4294901760, %v13359_v8 }
 0x361   : > { %5330 = vmatpush2.msra.mxu0 %v13330_v12  ;;  %5507 = vmatpush1.msra.mxu1 %v13331_v41  ;;  %v13341_v51 = vand.u32 4294901760, %v13340_v31  ;;  %v13363_v12 = vld [vmem:[#allocation117_spill] sm:$0xff]  ;;  %v13378_v31 = vand.u32 4294901760, %v10454_v33  ;;  %v13385_v33 = vand.u32 4294901760, %v10510_v1  ;;  %v13391_v1 = vld [vmem:[#allocation95_spill] sm:$0xff] }
 0x362   : > { %5334 = vmatprep.subr.mxu0 %v13333_v44  ;;  %5509 = vmatprep.subr.mxu1 %v13334_v22  ;;  %v13364_v41 = vand.u32 4294901760, %v13363_v12 }
 0x363   : > { %5338 = vmatpush2.msra.mxu0 %v13336_v14  ;;  %5511 = vmatpush1.msra.mxu1 %v13337_v37  ;;  %v13371_v14 = vand.u32 4294901760, %v10434_v23  ;;  %v3556_v23 = vpop.f32.mrf.mxu1 }
 0x364   : > { %5342 = vmatprep.subr.mxu0 %v13339_v36  ;;  %5513 = vmatprep.subr.mxu1 %v13223_v24  ;;  %v13351_v24 = vld [vmem:[#allocation59_spill] sm:$0xff]  ;;  %v13376_v36 = vld [vmem:[#allocation126_spill] sm:$0xff] }
 0x365   : > { %5346 = vmatpush2.msra.mxu0 %v13341_v51  ;;  %5515 = vmatpush1.msra.mxu1 %v13342_v5  ;;  %v13352_v35 = vand.u32 4294901760, %v13351_v24  ;;  %v3898_v5 = vpop.f32.mrf.mxu1 }
 0x366   : > { %5350 = vmatprep.subr.mxu0 %v13344_v59  ;;  %5517 = vmatprep.subr.mxu1 %v13345_v49  ;;  %v13384_v59 = vld [vmem:[#allocation115_spill] sm:$0xff] }
 0x367   : > { %5354 = vmatpush2.msra.mxu0 %v13347_v54  ;;  %5519 = vmatpush2.msra.mxu1 %v13228_v19  ;;  %v13357_v19 = vld [vmem:[#allocation119_spill] sm:$0xff]  ;;  %v13387_v54 = vand.u32 4294901760, %v10522_v20  ;;  %v3900_v34 = vpop.f32.mrf.mxu1 }
 0x368   : > { %5358 = vmatprep.subr.mxu0 %v13349_v43  ;;  %5521 = vmatprep.subr.mxu1 %v13350_v18  ;;  %v13358_v3 = vand.u32 4294901760, %v13357_v19 }
 0x369   : > { %5362 = vmatpush2.msra.mxu0 %v13352_v35  ;;  %5523 = vmatpush2.msra.mxu1 %v13232_v16  ;;  %v13361_v16 = vld [vmem:[#allocation121_spill] sm:$0xff] }
 0x36a   : > { %5366 = vmatprep.subr.mxu0 %v13354_v50  ;;  %5525 = vmatprep.subr.mxu1 %v13233_v4  ;;  %v13362_v28 = vand.u32 4294901760, %v13361_v16  ;;  %v3161_v4 = vpop.f32.mrf.mxu0 }
 0x36b   : > { %5370 = vmatpush2.msra.mxu0 %v13356_v11  ;;  %5527 = vmatpush2.msra.mxu1 %v13235_v7  ;;  %v13365_v7 = vld [vmem:[#allocation113_spill] sm:$0xff]  ;;  %v3555_v26 = vadd.f32 %v3554_v29, %v3161_v4 }
 0x36c   : > { %5374 = vmatprep.subr.mxu0 %v13358_v3  ;;  %5529 = vmatprep.subr.mxu1 %v13237_v39  ;;  %v13366_v42 = vand.u32 4294901760, %v13365_v7  ;;  %v13367_v39 = vld [vmem:[#allocation49_spill] sm:$0xff] }
 0x36d   : > { %5378 = vmatpush2.msra.mxu0 %v13360_v30  ;;  %5531 = vmatpush2.msra.mxu1 %v13238_v62  ;;  %v13368_v44 = vand.u32 4294901760, %v13367_v39  ;;  %v13369_v62 = vld [vmem:[#allocation124_spill] sm:$0xff] }
 0x36e   : > { %5382 = vmatprep.subr.mxu0 %v13362_v28  ;;  %5533 = vmatprep.subr.mxu1 %v13240_v6  ;;  %v13370_v22 = vand.u32 4294901760, %v13369_v62  ;;  %v3163_v6 = vpop.f32.mrf.mxu0 }
 0x36f   : > { %5386 = vmatpush2.msra.mxu0 %v13364_v41  ;;  %5535 = vmatpush2.msra.mxu1 %v13241_v63  ;;  %v13372_v63 = vld [vmem:[#allocation125_spill] sm:$0xff] }
 0x370   : > { %5390 = vmatprep.subr.mxu0 %v13366_v42  ;;  %5537 = vmatprep.subr.mxu1 %v13242_v27  ;;  %v13373_v37 = vand.u32 4294901760, %v13372_v63  ;;  %v3757_v27 = vpop.f32.mrf.mxu0 }
 0x371   : > { %5394 = vmatpush2.msra.mxu0 %v13368_v44  ;;  %5539 = vmatpush2.msra.mxu1 %v13243_v9  ;;  %v13375_v9 = vand.u32 4294901760, %v13374_v40  ;;  %v3758_v18 = vadd.f32 %v3757_v27, %v3555_v26 }
 0x372   : > { %5398 = vmatprep.subr.mxu0 %v13370_v22  ;;  %5541 = vmatprep.subr.mxu1 %v13244_v45  ;;  %v13377_v45 = vand.u32 4294901760, %v13376_v36 }
 0x373   : > { %5402 = vmatpush2.msra.mxu0 %v13371_v14  ;;  %5543 = vmatpush2.msra.mxu1 %v13245_v47  ;;  %v13379_v47 = vld [vmem:[#allocation122_spill] sm:$0xff]  ;;  %v3899_v20 = vadd.f32 %v3898_v5, %v3758_v18 }
 0x374   : > { %5406 = vmatprep.subr.mxu0 %v13373_v37  ;;  %5545 = vmatprep.subr.mxu1 %v13246_v21  ;;  %v13380_v51 = vand.u32 4294901760, %v13379_v47  ;;  %v3759_v21 = vpop.f32.mrf.mxu0 }
 0x375   : > { %5410 = vmatpush2.msra.mxu0 %v13375_v9  ;;  %5547 = vmatpush2.msra.mxu1 %v13247_v15  ;;  %v13382_v15 = vand.u32 4294901760, %v13381_v46 }
 0x376   : > { %5414 = vmatprep.subr.mxu0 %v13377_v45  ;;  %5549 = vmatprep.subr.mxu1 %v13248_v56  ;;  %v13383_v56 = vand.u32 4294901760, %v10506_v55  ;;  %v4163_v49 = vpop.f32.mrf.mxu0  ;;  %v13390_v55 = vld [vmem:[#allocation96_spill] sm:$0xff] }
 0x377   : > { %5418 = vmatpush2.msra.mxu0 %v13378_v31  ;;  %5551 = vmatpush2.msra.mxu1 %v13249_v60  ;;  %v13386_v60 = vld [vmem:[#allocation120_spill] sm:$0xff]  ;;  %v4164_v50 = vadd.f32 %v4163_v49, %v3899_v20 }
 0x378   : > { %5422 = vmatprep.subr.mxu0 %v13380_v51  ;;  %5553 = vmatprep.subr.mxu1 %v10356_v53  ;;  %v3557_v53 = vadd.f32 %v3556_v23, %v3163_v6  ;;  %v4165_v35 = vpop.f32.mrf.mxu0 }
 0x379   : > { %5426 = vmatpush2.msra.mxu0 %v13382_v15  ;;  %5555 = vmatpush2.msra.mxu1 %v13250_v57  ;;  %v13388_v57 = vld [vmem:[#allocation29_spill] sm:$0xff] }
 0x37a   : > { %5430 = vmatprep.subr.mxu0 %v13383_v56  ;;  %5557 = vmatprep.subr.mxu1 %v13384_v59  ;;  %v13389_v43 = vand.u32 4294901760, %v13388_v57  ;;  %v3760_v24 = vadd.f32 %v3759_v21, %v3557_v53 }
 0x37b   : > { %5434 = vmatpush2.msra.mxu0 %v13385_v33  ;;  %5559 = vmatpush2.msra.mxu1 %v13386_v60 }
 0x37c   : > { %5438 = vmatprep.subr.mxu0 %v13387_v54  ;;  %5561 = vmatprep.subr.mxu1 %v10402_v13  ;;  %v3901_v48 = vadd.f32 %v3900_v34, %v3760_v24  ;;  %v4300_v13 = vpop.f32.mrf.mxu1 }
 0x37d   : > { %5442 = vmatpush2.msra.mxu0 %v13389_v43  ;;  %5444 = vmatprep.mubr.f32.mxu0 %v13390_v55 }
 0x37e   : > { %5563 = vmatpush2.msra.mxu1 %v10393_v52  ;;  %5446 = vmatmul.mubr.f32.vlgmr.msra.gmra.mxu0 %v13391_v1  ;;  %v4166_v17 = vadd.f32 %v4165_v35, %v3901_v48  ;;  %v4302_v52 = vpop.f32.mrf.mxu1 }
 0x37f   : > { %5565 = vmatprep.subr.mxu1 %v10427_v2  ;;  %5581 = vmatprep.mubr.f32.mxu1 %v13390_v55  ;;  %v4301_v2 = vadd.f32 %v4300_v13, %v4164_v50 }
 0x380   : > { %5567 = vmatpush2.msra.mxu1 %v10418_v25  ;;  %v4303_v11 = vadd.f32 %v4302_v52, %v4166_v17 }
 0x381   : > { %5569 = vmatprep.subr.mxu1 %v10456_v0 }
 0x382   : > { %5571 = vmatpush2.msra.mxu1 %v10461_v58  ;;  %v5599_v19 = vcombine.low %v4301_v2, %v4303_v11 }
 0x383   : > { %5573 = vmatprep.subr.mxu1 %v10471_v38 }
 0x384   : > { %5575 = vmatpush2.msra.mxu1 %v10478_v32  ;;  %5607 = vst [vmem:[%s8781_s19 + $0x10] sm:$0xff] %v5599_v19 }
 0x385   : > { %5577 = vmatprep.subr.mxu1 %v13261_v10 }
 0x386   : > { %5579 = vmatpush2.msra.mxu1 %v13263_v61 }
 0x387   : > { %5583 = vmatmul.mubr.f32.vlgmr.msra.gmra.mxu1 %v13391_v1 }
 0x3bc   : > { %v4445_v25 = vpop.f32.mrf.mxu0 }
 0x3be   : > { %v4447_v0 = vpop.f32.mrf.mxu0 }
 0x3c3   : > { %v4838_v3 = vpop.f32.mrf.mxu1 }
 0x3c4   : > { %v4839_v16 = vadd.f32 %v4838_v3, %v4445_v25 }
 0x3c5   : > { %v4840_v58 = vpop.f32.mrf.mxu1 }
 0x3c6   : > { %v4841_v28 = vadd.f32 %v4840_v58, %v4447_v0 }
 0x3fc   : > { %v5041_v8 = vpop.f32.mrf.mxu0 }
 0x3fd   : > { %v5042_v10 = vadd.f32 %v5041_v8, %v4839_v16 }
 0x3fe   : > { %v5043_v38 = vpop.f32.mrf.mxu0 }
 0x3ff   : > { %v5044_v61 = vadd.f32 %v5043_v38, %v4841_v28 }
 0x405   : > { %v5182_v30 = vpop.f32.mrf.mxu1 }
 0x406   : > { %v5183_v41 = vadd.f32 %v5182_v30, %v5042_v10 }
 0x407   : > { %v5184_v4 = vpop.f32.mrf.mxu1 }
 0x408   : > { %v5185_v7 = vadd.f32 %v5184_v4, %v5044_v61 }
 0x43e   : > { %v5447_v32 = vpop.f32.mrf.mxu0 }
 0x43f   : > { %v5448_v39 = vadd.f32 %v5447_v32, %v5183_v41 }
 0x440   : > { %v5449_v12 = vpop.f32.mrf.mxu0 }
 0x441   : > { %v5450_v44 = vadd.f32 %v5449_v12, %v5185_v7 }
 0x447   : > { %v5584_v42 = vpop.f32.mrf.mxu1 }
 0x448   : > { %v5585_v22 = vadd.f32 %v5584_v42, %v5448_v39 }
 0x449   : > { %v5586_v62 = vpop.f32.mrf.mxu1 }
 0x44a   : > { %v5587_v6 = vadd.f32 %v5586_v62, %v5450_v44 }
 0x44c   : > { %v5600_v29 = vcombine.low %v5585_v22, %v5587_v6 }
 0x44e   : > { %5608 = vst [vmem:[%s8781_s19 + $0x18] sm:$0xff] %v5600_v29 }
 0x44f   : > { %5884 = shalt.err (!%p5881_p5)
}
 0x450   : > { %s5885_s30 = scalar_lea.hbm %s5624_s26, 512  ;;  %s5889_s4 = scalar_lea.hbm %s10941_s2, 1024 }
 0x451   : > { %p5886_p7 = scmp.ne.s32.totalorder %s5624_s26, %s5885_s30  ;;  %p5890_p9 = scmp.lt.s32.totalorder %s5624_s26, %s10941_s2 }
 0x452   : > { %p5891_p11 = scmp.lt.s32.totalorder %s5889_s4, %s5885_s30 }
 0x453   : > { %p5887_p6 = pnand %p5886_p7, %p6064_p13 }
 0x454   : > { %p5892_p10 = por %p5891_p11, %p5890_p9 }
 0x455   : > { %p5888_p4 = pneg %p5887_p6 }
 0x457   : > { %p5893_p1 = pnand %p5892_p10, %p5888_p4 }
 0x459   : > { %5896 = shalt.err (!%p5893_p1)
}
 0x45a   : > { %5747 = dma.vmem_to_hbm [thread:$0]  (%p6064_p13), %s5627_s22, 512, %s5624_s26, %s5610_s27  }
 0x45b PF: > { %s5638_s16 = sand.u32 1, %s5935_s9   ;;  %p13392_p8 = scmp.ne.s32.totalorder %s11770_s20, 0 }
 0x45c   : > { %p13393_p12 = scmp.ge.s32.totalorder %s5955_s14, 2  ;;  %s5639_s17 = scalar_lea.sflag [#allocation4], %s5638_s16 }
 0x45e   : > { %p5758_p0 = pnand %p13393_p12, %p13392_p8 }
 0x460   : > { %p5759_p2 = pneg %p5758_p0 }
 0x462   : > { %5930 = dma.done.wait (%p5759_p2), %s5639_s17, 512  }
 0x463   : > { %5932 = vsyncadd (%p5759_p2), %s5639_s17, 4294966784  ;;  %s19_s14 = sadd.s32 1, %s5955_s14   ;;  %s13394_s9 = smov %s5939_s10 }
 0x464   : > { %p16_p3 = scmp.ge.s32.totalorder %s19_s14, 4   ;;  %s13395_s10 = smov %s5943_s11 }
 0x465   : > { %s13396_s11 = smov %s6073_s15  ;;  %s13397_s12 = smov %s5951_s13 }
 0x466   : > { %s13398_s13 = smov %s13400_s25  ;;  %18 = sbr.rel (!%p16_p3) target bundleno = 7 (0x7), region = 78 }
 0x46b   :  { %5644 = vsyncpa [#allocation3], 1 }
 0x46c   :  { %5646 = vsyncpa [#allocation3 + $0x1], 1 }
 0x46d   :  { %5647 = vsyncpa [#allocation6], 1 }
 0x46e   :  { %5649 = vsyncpa [#allocation6 + $0x1], 1 }
 0x46f   :  { %5650 = vsyncpa [#allocation4], 1 }
 0x470   :  { %5652 = vsyncpa [#allocation4 + $0x1], 1 }

</bundles_post_ra>
